<compile_context>
chip_gen: v7x
topology: tpu7x:2x2x1
jax: 0.10.0
libtpu: 0.0.40
codegen_flags: <defaults>
</compile_context>

<pallas_src>
import functools

import jax
import jax.numpy as jnp
from jax.experimental import pallas as pl
from jax.experimental.pallas import tpu as pltpu


SPATIAL_FEAT = 2048      # resnet50 fc.in_features
TEMPORAL_FEAT = 512      # r3d_18 final block in_features
EMBED = 128
FLOW_CHANNELS = 20       # modified r3d_18 stem input channels


def _pad_patches_to_lane_multiple(c, n_patch):
    """Smallest n >= n_patch such that c * n is a multiple of 128."""
    n = n_patch
    while (c * n) % 128 != 0:
        n += 1
    return n


# temporal stem geometry: Conv3d(20, 64, k=7, s=(1,2,2), p=3) -> 343 patches,
# padded to 352 so K = 20*352 = 7040 is a multiple of 128 (splittable).
K3_PATCH = 7 * 7 * 7
K3_PATCH_PAD = _pad_patches_to_lane_multiple(FLOW_CHANNELS, K3_PATCH)   # 352


def _k_tiling(k_total, target=2048):
    """Largest K-chunk <= target that is a multiple of 128 and divides K."""
    if k_total % 128 != 0 or k_total <= target:
        return k_total, 1
    best, tk = 128, 128
    while tk <= target:
        if k_total % tk == 0:
            best = tk
        tk += 128
    return best, k_total // best


# ----------------------------------------------------------------------------
# Pallas kernels
# ----------------------------------------------------------------------------
def _stream_kernel(col_ref, ws_ref, bs_ref, wp_ref, bp_ref, wf_ref, bf_ref,
                   o_ref, h_acc, *, inv_p, n_chunk):
    """Fused stem GEMM (K-split accumulated) + ReLU + 1x1 projection + ReLU
    + global-avg-pool + fc(C->128), one batch element per leading grid index.

    col_ref : (P, tk)    bf16  im2col chunk for batch b, K-chunk k
    ws_ref  : (tk, 64)   bf16  stem weight chunk
    bs_ref  : (1, 64)    f32   stem bias
    wp_ref  : (64, C)    bf16  1x1 projection weight  (C = 2048 / 512)
    bp_ref  : (1, C)     f32   projection bias
    wf_ref  : (C, 128)   bf16  per-stream fc weight
    bf_ref  : (1, 128)   f32   per-stream fc bias
    o_ref   : (1,1,128)  f32   per-stream embedding for batch b
    h_acc   : (P, 64)    f32   VMEM scratch — stem accumulator across K chunks
    """
    k = pl.program_id(1)

    @pl.when(k == 0)
    def _():
        h_acc[...] = jnp.zeros_like(h_acc)

    # partial stem GEMM on the MXU, f32 accumulation in VMEM scratch
    h_acc[...] += jnp.dot(col_ref[...], ws_ref[...],
                          preferred_element_type=jnp.float32)

    @pl.when(k == pl.num_programs(1) - 1)
    def _():
        # stem bias + ReLU, back to bf16 for the projection GEMM
        h = jnp.maximum(h_acc[...] + bs_ref[...], 0.0).astype(jnp.bfloat16)
        c_out = wp_ref.shape[1]
        emb = bf_ref[...]                                         # (1, 128) f32
        # N-chunked projection + pool + fc: keeps the live f32 intermediate
        # at (P, n_chunk) instead of (P, C).
        for n0 in range(0, c_out, n_chunk):
            f = jnp.dot(h, wp_ref[:, n0:n0 + n_chunk],
                        preferred_element_type=jnp.float32)       # (P, nc)
            f = jnp.maximum(f + bp_ref[:, n0:n0 + n_chunk], 0.0)
            pooled = (jnp.sum(f, axis=0, keepdims=True) * inv_p)  # (1, nc)
            emb = emb + jnp.dot(pooled.astype(jnp.bfloat16),
                                wf_ref[n0:n0 + n_chunk, :],
                                preferred_element_type=jnp.float32)
        o_ref[...] = emb.reshape(1, 1, EMBED).astype(o_ref.dtype)


def pallas_stream_embedding(col, w, *, batch, pos):
    """col: (batch*pos, K) bf16 patch matrix -> per-stream embedding (batch, 128)."""
    M, K = col.shape
    assert M == batch * pos
    tk, kc = _k_tiling(K)
    c_mid = w["w_stem"].shape[1]            # 64
    c_out = w["w_proj"].shape[1]            # 2048 / 512
    n_chunk = min(512, c_out)

    kernel = functools.partial(_stream_kernel, inv_p=1.0 / float(pos),
                               n_chunk=n_chunk)
    out = pl.pallas_call(
        kernel,
        out_shape=jax.ShapeDtypeStruct((batch, 1, EMBED), jnp.float32),
        grid_spec=pltpu.PrefetchScalarGridSpec(
            num_scalar_prefetch=0,
            grid=(batch, kc),
            in_specs=[
                pl.BlockSpec((pos, tk), lambda b, k: (b, k)),
                pl.BlockSpec((tk, c_mid), lambda b, k: (k, 0)),
                pl.BlockSpec((1, c_mid), lambda b, k: (0, 0)),
                pl.BlockSpec((c_mid, c_out), lambda b, k: (0, 0)),
                pl.BlockSpec((1, c_out), lambda b, k: (0, 0)),
                pl.BlockSpec((c_out, EMBED), lambda b, k: (0, 0)),
                pl.BlockSpec((1, EMBED), lambda b, k: (0, 0)),
            ],
            out_specs=pl.BlockSpec((1, 1, EMBED), lambda b, k: (b, 0, 0)),
            scratch_shapes=[pltpu.VMEM((pos, c_mid), jnp.float32)],
        ),
        compiler_params=pltpu.CompilerParams(
            dimension_semantics=("parallel", "arbitrary"),
            vmem_limit_bytes=32 << 20,
        ),
    )(col, w["w_stem"], w["b_stem"], w["w_proj"], w["b_proj"],
      w["w_fc"], w["b_fc"])
    return out.reshape(batch, EMBED)


def _head_kernel(sp_ref, tp_ref, ws_ref, wt_ref, b_ref, o_ref):
    """cat((s, t)) @ W_final.T + b followed by sigmoid, on the VPU/XLU."""
    z = (jnp.sum(sp_ref[...] * ws_ref[...], axis=-1, keepdims=True)
         + jnp.sum(tp_ref[...] * wt_ref[...], axis=-1, keepdims=True)
         + b_ref[...])
    o_ref[...] = jax.nn.sigmoid(z).astype(o_ref.dtype)


def pallas_head(sp, tp, pp):
    """sp, tp: (B, 128) stream embeddings -> (B, 1) sigmoid output."""
    B = sp.shape[0]
    return pl.pallas_call(
        _head_kernel,
        out_shape=jax.ShapeDtypeStruct((B, 1), jnp.float32),
        grid=(1,),
        in_specs=[
            pl.BlockSpec((B, EMBED), lambda i: (0, 0)),
            pl.BlockSpec((B, EMBED), lambda i: (0, 0)),
            pl.BlockSpec((1, EMBED), lambda i: (0, 0)),
            pl.BlockSpec((1, EMBED), lambda i: (0, 0)),
            pl.BlockSpec((1, 1), lambda i: (0, 0)),
        ],
        out_specs=pl.BlockSpec((B, 1), lambda i: (0, 0)),
        compiler_params=pltpu.CompilerParams(
            dimension_semantics=("arbitrary",),
            vmem_limit_bytes=8 << 20,
        ),
    )(sp, tp, pp["w_head_s"], pp["w_head_t"], pp["b_head"])


# ----------------------------------------------------------------------------
# im2col glue — builds the patch matrices directly in bf16 and in (M, K) GEMM
# layout (K ordered channel-major, patch-minor).  The temporal K-pad to a
# multiple of 128 is folded into the stack (zero patch slices), so no separate
# pad rewrite of the col matrix ever hits HBM.
# ----------------------------------------------------------------------------
def im2col_2d(x, kh, kw, stride, pad):
    """x: (B, C, H, W) -> col (B*OH*OW, C*kh*kw) bf16, K index = c*(kh*kw)+p."""
    B, C, H, W = x.shape
    xp = jnp.pad(x, ((0, 0), (0, 0), (pad, pad), (pad, pad)))
    xp = jnp.transpose(xp, (0, 2, 3, 1)).astype(jnp.bfloat16)   # (B,Hp,Wp,C)
    OH = (H + 2 * pad - kh) // stride + 1
    OW = (W + 2 * pad - kw) // stride + 1
    cols = []
    for i in range(kh):
        for j in range(kw):
            cols.append(xp[:, i:i + stride * OH:stride,
                              j:j + stride * OW:stride, :])       # (B,OH,OW,C)
    col = jnp.stack(cols, axis=-1)                                # (B,OH,OW,C,kh*kw)
    col = col.reshape(B * OH * OW, C * kh * kw)
    return col, OH * OW


def im2col_3d(x, kt, kh, kw, stride, pad, n_patch_pad):
    """x: (B, C, T, H, W) -> col (B*OT*OH*OW, C*n_patch_pad) bf16.

    K index = c*n_patch_pad + p with p = i*(kh*kw) + j*kw + k; patch slots
    [kt*kh*kw, n_patch_pad) are zero (lane-padding folded into the stack).
    """
    B, C, T, H, W = x.shape
    st, sh, sw = stride
    pt, ph, pw = pad
    xp = jnp.pad(x, ((0, 0), (0, 0), (pt, pt), (ph, ph), (pw, pw)))
    xp = jnp.transpose(xp, (0, 2, 3, 4, 1)).astype(jnp.bfloat16)  # (B,Tp,Hp,Wp,C)
    OT = (T + 2 * pt - kt) // st + 1
    OH = (H + 2 * ph - kh) // sh + 1
    OW = (W + 2 * pw - kw) // sw + 1
    cols = []
    for i in range(kt):
        for j in range(kh):
            for k in range(kw):
                cols.append(xp[:, i:i + st * OT:st,
                                  j:j + sh * OH:sh,
                                  k:k + sw * OW:sw, :])           # (B,OT,OH,OW,C)
    zeros = jnp.zeros_like(cols[0])
    cols.extend([zeros] * (n_patch_pad - kt * kh * kw))
    col = jnp.stack(cols, axis=-1)                                # (...,C,n_patch_pad)
    col = col.reshape(B * OT * OH * OW, C * n_patch_pad)
    return col, OT * OH * OW


# ----------------------------------------------------------------------------
# Parameters (synthetic) and one-time packing into the layouts the kernels use
# ----------------------------------------------------------------------------
def init_params(key):
    ks = jax.random.split(key, 16)
    sc = 0.02
    return {
        "spatial": {
            # ResNet50 stem: Conv2d(3, 64, k=7, s=2, p=3)
            "stem_w": jax.random.normal(ks[0], (64, 3, 7, 7), jnp.float32) * sc,
            "stem_b": jax.random.normal(ks[1], (64,), jnp.float32) * sc,
            # reduced trunk: 1x1 projection to 2048 features
            "proj_w": jax.random.normal(ks[2], (SPATIAL_FEAT, 64), jnp.float32) * sc,
            "proj_b": jax.random.normal(ks[3], (SPATIAL_FEAT,), jnp.float32) * sc,
            # nn.Linear(2048, 128)
            "fc_w": jax.random.normal(ks[4], (EMBED, SPATIAL_FEAT), jnp.float32) * sc,
            "fc_b": jax.random.normal(ks[5], (EMBED,), jnp.float32) * sc,
        },
        "temporal": {
            # modified r3d_18 stem: Conv3d(20, 64, k=7, s=(1,2,2), p=(3,3,3))
            "stem_w": jax.random.normal(ks[6], (64, FLOW_CHANNELS, 7, 7, 7),
                                        jnp.float32) * sc,
            "stem_b": jax.random.normal(ks[7], (64,), jnp.float32) * sc,
            # reduced trunk: 1x1x1 projection to 512 features
            "proj_w": jax.random.normal(ks[8], (TEMPORAL_FEAT, 64), jnp.float32) * sc,
            "proj_b": jax.random.normal(ks[9], (TEMPORAL_FEAT,), jnp.float32) * sc,
            # nn.Linear(512, 128)
            "fc_w": jax.random.normal(ks[10], (EMBED, TEMPORAL_FEAT), jnp.float32) * sc,
            "fc_b": jax.random.normal(ks[11], (EMBED,), jnp.float32) * sc,
        },
        # nn.Linear(256, 1)
        "fc_final_w": jax.random.normal(ks[12], (1, 2 * EMBED), jnp.float32) * sc,
        "fc_final_b": jax.random.normal(ks[13], (1,), jnp.float32) * sc,
    }


def _pack_stream(p, stem_k):
    """Pack one stream's weights into the kernel layouts (done once, not per call)."""
    packed = {
        "w_stem": stem_k.astype(jnp.bfloat16),                       # (K, 64)
        "b_stem": p["stem_b"].reshape(1, -1).astype(jnp.float32),
        "w_proj": p["proj_w"].T.astype(jnp.bfloat16),                 # (64, C)
        "b_proj": p["proj_b"].reshape(1, -1).astype(jnp.float32),
        "w_fc": p["fc_w"].T.astype(jnp.bfloat16),                     # (C, 128)
        "b_fc": p["fc_b"].reshape(1, -1).astype(jnp.float32),
    }
    return packed


def pack_params(params):
    ps, pt = params["spatial"], params["temporal"]
    # spatial stem: (64, 3, 7, 7) -> (147, 64), K index = c*49 + i*7 + j
    stem2d = ps["stem_w"].reshape(64, -1).T
    # temporal stem: (64, 20, 7,7,7) -> pad patches 343->352 -> (7040, 64),
    # K index = c*352 + (i*49 + j*7 + k)   (matches im2col_3d ordering)
    stem3d = pt["stem_w"].reshape(64, FLOW_CHANNELS, K3_PATCH)
    stem3d = jnp.pad(stem3d, ((0, 0), (0, 0), (0, K3_PATCH_PAD - K3_PATCH)))
    stem3d = jnp.transpose(stem3d, (1, 2, 0)).reshape(
        FLOW_CHANNELS * K3_PATCH_PAD, 64)
    w_final = params["fc_final_w"]
    return {
        "spatial": _pack_stream(ps, stem2d),
        "temporal": _pack_stream(pt, stem3d),
        "w_head_s": w_final[:, :EMBED].astype(jnp.float32),           # (1, 128)
        "w_head_t": w_final[:, EMBED:].astype(jnp.float32),           # (1, 128)
        "b_head": params["fc_final_b"].reshape(1, 1).astype(jnp.float32),
    }


# ----------------------------------------------------------------------------
# Forward
# ----------------------------------------------------------------------------
def two_stream_forward(rgb_frame, optical_flow_stack, packed):
    B = rgb_frame.shape[0]
    # spatial stream: Conv2d(3,64,k=7,s=2,p=3) stem -> proj -> pool -> fc(->128)
    col_s, pos_s = im2col_2d(rgb_frame, 7, 7, stride=2, pad=3)
    sp = pallas_stream_embedding(col_s, packed["spatial"], batch=B, pos=pos_s)
    # temporal stream: Conv3d(20,64,k=7,s=(1,2,2),p=3) stem -> proj -> pool -> fc
    col_t, pos_t = im2col_3d(optical_flow_stack, 7, 7, 7, stride=(1, 2, 2),
                             pad=(3, 3, 3), n_patch_pad=K3_PATCH_PAD)
    tp = pallas_stream_embedding(col_t, packed["temporal"], batch=B, pos=pos_t)
    # cat -> Linear(256, 1) -> sigmoid (tiny fused kernel)
    return pallas_head(sp, tp, packed)                                 # (B, 1)


# ----------------------------------------------------------------------------
if __name__ == "__main__":
    key = jax.random.PRNGKey(0)
    k_param, k_rgb, k_flow = jax.random.split(key, 3)

    params = init_params(k_param)
    packed = pack_params(params)   # one-time weight packing (hoisted out of jit)

    # small shapes consistent with the module's forward
    rgb_frame = jax.random.normal(k_rgb, (2, 3, 32, 32), jnp.float32)         # NCHW
    optical_flow_stack = jax.random.normal(k_flow, (2, 20, 4, 16, 16),
                                           jnp.float32)                        # NCDHW

    fwd = jax.jit(two_stream_forward)
    out = fwd(rgb_frame, optical_flow_stack, packed)
    out = jax.block_until_ready(out)

    assert out.shape == (2, 1), out.shape
    assert bool(jnp.all(jnp.isfinite(out)))
    assert bool(jnp.all((out >= 0.0) & (out <= 1.0)))
    print("KERNEL_OK")
</pallas_src>

<mosaic_0001>
module attributes {stable_mosaic.version = 11 : i64} {
  func.func @_stream_kernel(%arg0: i32, %arg1: i32, %arg2: memref<256x1408xbf16, #tpu.memory_space<vmem>>, %arg3: memref<1408x64xbf16, #tpu.memory_space<vmem>>, %arg4: memref<1x64xf32, #tpu.memory_space<vmem>>, %arg5: memref<64x512xbf16, #tpu.memory_space<vmem>>, %arg6: memref<1x512xf32, #tpu.memory_space<vmem>>, %arg7: memref<512x128xbf16, #tpu.memory_space<vmem>>, %arg8: memref<1x128xf32, #tpu.memory_space<vmem>>, %arg9: memref<1x1x128xf32, #tpu.memory_space<vmem>>, %arg10: memref<256x64xf32, #tpu.memory_space<vmem>>) attributes {dimension_semantics = [#tpu.dimension_semantics<parallel>, #tpu.dimension_semantics<arbitrary>], iteration_bounds = array<i64: 2, 5>, scalar_prefetch = 0 : i64, scratch_operands = 1 : i64, tpu.core_type = #tpu.core_type<tc>, window_params = [{transform_indices = @transform_0, window_bounds = array<i64: 256, 1408>}, {transform_indices = @transform_1, window_bounds = array<i64: 1408, 64>}, {pipeline_mode = #tpu.pipeline_mode<synchronous>, transform_indices = @transform_2, window_bounds = array<i64: 1, 64>}, {pipeline_mode = #tpu.pipeline_mode<synchronous>, transform_indices = @transform_3, window_bounds = array<i64: 64, 512>}, {pipeline_mode = #tpu.pipeline_mode<synchronous>, transform_indices = @transform_4, window_bounds = array<i64: 1, 512>}, {pipeline_mode = #tpu.pipeline_mode<synchronous>, transform_indices = @transform_5, window_bounds = array<i64: 512, 128>}, {pipeline_mode = #tpu.pipeline_mode<synchronous>, transform_indices = @transform_6, window_bounds = array<i64: 1, 128>}, {transform_indices = @transform_7, window_bounds = array<i64: 1, 1, 128>}]} {
    %c0_i32 = arith.constant 0 : i32
    %0 = arith.cmpi eq, %arg1, %c0_i32 : i32
    %1 = arith.extui %0 : i1 to i32
    %c0_i32_0 = arith.constant 0 : i32
    %2 = arith.cmpi ne, %1, %c0_i32_0 : i32
    scf.if %2 {
      %cst_9 = arith.constant 0.000000e+00 : f32
      %12 = vector.broadcast %cst_9 : f32 to vector<256x64xf32>
      %c0_10 = arith.constant 0 : index
      %c0_11 = arith.constant 0 : index
      %13 = vector.load %arg10[%c0_10, %c0_11] : memref<256x64xf32, #tpu.memory_space<vmem>>, vector<256x64xf32>
      tpu.vector_store %arg10[%c0_10, %c0_11], %12 {strides = array<i32>} : memref<256x64xf32, #tpu.memory_space<vmem>>, vector<256x64xf32>,
    } else {
    }
    %c0 = arith.constant 0 : index
    %c0_1 = arith.constant 0 : index
    %3 = vector.load %arg10[%c0, %c0_1] : memref<256x64xf32, #tpu.memory_space<vmem>>, vector<256x64xf32>
    %c0_2 = arith.constant 0 : index
    %c0_3 = arith.constant 0 : index
    %4 = vector.load %arg2[%c0_2, %c0_3] : memref<256x1408xbf16, #tpu.memory_space<vmem>>, vector<256x1408xbf16>
    %c0_4 = arith.constant 0 : index
    %c0_5 = arith.constant 0 : index
    %5 = vector.load %arg3[%c0_4, %c0_5] : memref<1408x64xbf16, #tpu.memory_space<vmem>>, vector<1408x64xbf16>
    %cst = arith.constant dense<0.000000e+00> : vector<256x64xf32>
    %6 = tpu.matmul %4, %5, %cst {dimension_numbers = #tpu.dot_dimension_numbers<[1], [0], [0], [1], [0, 0, 1, 1], [], []>} : vector<256x1408xbf16>, vector<1408x64xbf16>, vector<256x64xf32> -> vector<256x64xf32>
    %7 = arith.addf %3, %6 : vector<256x64xf32>
    %c0_6 = arith.constant 0 : index
    %c0_7 = arith.constant 0 : index
    %8 = vector.load %arg10[%c0_6, %c0_7] : memref<256x64xf32, #tpu.memory_space<vmem>>, vector<256x64xf32>
    tpu.vector_store %arg10[%c0_6, %c0_7], %7 {strides = array<i32>} : memref<256x64xf32, #tpu.memory_space<vmem>>, vector<256x64xf32>,
    %c4_i32 = arith.constant 4 : i32
    %9 = arith.cmpi eq, %arg1, %c4_i32 : i32
    %10 = arith.extui %9 : i1 to i32
    %c0_i32_8 = arith.constant 0 : i32
    %11 = arith.cmpi ne, %10, %c0_i32_8 : i32
    scf.if %11 {
      %c0_9 = arith.constant 0 : index
      %c0_10 = arith.constant 0 : index
      %12 = vector.load %arg10[%c0_9, %c0_10] : memref<256x64xf32, #tpu.memory_space<vmem>>, vector<256x64xf32>
      %c0_11 = arith.constant 0 : index
      %c0_12 = arith.constant 0 : index
      %13 = vector.load %arg4[%c0_11, %c0_12] : memref<1x64xf32, #tpu.memory_space<vmem>>, vector<1x64xf32>
      %14 = vector.broadcast %13 : vector<1x64xf32> to vector<256x64xf32>
      %15 = arith.addf %12, %14 : vector<256x64xf32>
      %cst_13 = arith.constant 0.000000e+00 : f32
      %16 = vector.broadcast %cst_13 : f32 to vector<256x64xf32>
      %17 = arith.maximumf %15, %16 : vector<256x64xf32>
      %18 = arith.truncf %17 : vector<256x64xf32> to vector<256x64xbf16>
      %c0_14 = arith.constant 0 : index
      %c0_15 = arith.constant 0 : index
      %19 = vector.load %arg8[%c0_14, %c0_15] : memref<1x128xf32, #tpu.memory_space<vmem>>, vector<1x128xf32>
      %c0_16 = arith.constant 0 : index
      %c0_17 = arith.constant 0 : index
      %20 = vector.load %arg5[%c0_16, %c0_17] : memref<64x512xbf16, #tpu.memory_space<vmem>>, vector<64x512xbf16>
      %cst_18 = arith.constant dense<0.000000e+00> : vector<256x512xf32>
      %21 = tpu.matmul %18, %20, %cst_18 {dimension_numbers = #tpu.dot_dimension_numbers<[1], [0], [0], [1], [0, 0, 1, 1], [], []>} : vector<256x64xbf16>, vector<64x512xbf16>, vector<256x512xf32> -> vector<256x512xf32>
      %c0_19 = arith.constant 0 : index
      %c0_20 = arith.constant 0 : index
      %22 = vector.load %arg6[%c0_19, %c0_20] : memref<1x512xf32, #tpu.memory_space<vmem>>, vector<1x512xf32>
      %23 = vector.broadcast %22 : vector<1x512xf32> to vector<256x512xf32>
      %24 = arith.addf %21, %23 : vector<256x512xf32>
      %cst_21 = arith.constant 0.000000e+00 : f32
      %25 = vector.broadcast %cst_21 : f32 to vector<256x512xf32>
      %26 = arith.maximumf %24, %25 : vector<256x512xf32>
      %cst_22 = arith.constant dense<0.000000e+00> : vector<512xf32>
      %27 = vector.multi_reduction <add>, %26, %cst_22 [0] : vector<256x512xf32> to vector<512xf32>
      %28 = vector.shape_cast %27 : vector<512xf32> to vector<1x512xf32>
      %cst_23 = arith.constant 3.906250e-03 : f32
      %29 = vector.broadcast %cst_23 : f32 to vector<1x512xf32>
      %30 = arith.mulf %28, %29 : vector<1x512xf32>
      %31 = arith.truncf %30 : vector<1x512xf32> to vector<1x512xbf16>
      %c0_24 = arith.constant 0 : index
      %c0_25 = arith.constant 0 : index
      %32 = vector.load %arg7[%c0_24, %c0_25] : memref<512x128xbf16, #tpu.memory_space<vmem>>, vector<512x128xbf16>
      %cst_26 = arith.constant dense<0.000000e+00> : vector<1x128xf32>
      %33 = tpu.matmul %31, %32, %cst_26 {dimension_numbers = #tpu.dot_dimension_numbers<[1], [0], [0], [1], [0, 0, 1, 1], [], []>} : vector<1x512xbf16>, vector<512x128xbf16>, vector<1x128xf32> -> vector<1x128xf32>
      %34 = arith.addf %19, %33 : vector<1x128xf32>
      %35 = vector.shape_cast %34 : vector<1x128xf32> to vector<1x1x128xf32>
      %c0_27 = arith.constant 0 : index
      %c0_28 = arith.constant 0 : index
      %c0_29 = arith.constant 0 : index
      %36 = vector.load %arg9[%c0_27, %c0_28, %c0_29] : memref<1x1x128xf32, #tpu.memory_space<vmem>>, vector<1x1x128xf32>
      tpu.vector_store %arg9[%c0_27, %c0_28, %c0_29], %35 {strides = array<i32>} : memref<1x1x128xf32, #tpu.memory_space<vmem>>, vector<1x1x128xf32>,
    } else {
    }
    return
  }
  func.func @transform_0(%arg0: i32, %arg1: i32) -> (i32, i32) {
    %c0_i32 = arith.constant 0 : i32
    return %arg0, %arg1 : i32, i32
  }
  func.func @transform_1(%arg0: i32, %arg1: i32) -> (i32, i32) {
    %c0_i32 = arith.constant 0 : i32
    %c0_i32_0 = arith.constant 0 : i32
    return %arg1, %c0_i32 : i32, i32
  }
  func.func @transform_2(%arg0: i32, %arg1: i32) -> (i32, i32) {
    %c0_i32 = arith.constant 0 : i32
    %c0_i32_0 = arith.constant 0 : i32
    %c0_i32_1 = arith.constant 0 : i32
    return %c0_i32, %c0_i32_0 : i32, i32
  }
  func.func @transform_3(%arg0: i32, %arg1: i32) -> (i32, i32) {
    %c0_i32 = arith.constant 0 : i32
    %c0_i32_0 = arith.constant 0 : i32
    %c0_i32_1 = arith.constant 0 : i32
    return %c0_i32, %c0_i32_0 : i32, i32
  }
  func.func @transform_4(%arg0: i32, %arg1: i32) -> (i32, i32) {
    %c0_i32 = arith.constant 0 : i32
    %c0_i32_0 = arith.constant 0 : i32
    %c0_i32_1 = arith.constant 0 : i32
    return %c0_i32, %c0_i32_0 : i32, i32
  }
  func.func @transform_5(%arg0: i32, %arg1: i32) -> (i32, i32) {
    %c0_i32 = arith.constant 0 : i32
    %c0_i32_0 = arith.constant 0 : i32
    %c0_i32_1 = arith.constant 0 : i32
    return %c0_i32, %c0_i32_0 : i32, i32
  }
  func.func @transform_6(%arg0: i32, %arg1: i32) -> (i32, i32) {
    %c0_i32 = arith.constant 0 : i32
    %c0_i32_0 = arith.constant 0 : i32
    %c0_i32_1 = arith.constant 0 : i32
    return %c0_i32, %c0_i32_0 : i32, i32
  }
  func.func @transform_7(%arg0: i32, %arg1: i32) -> (i32, i32, i32) {
    %c0_i32 = arith.constant 0 : i32
    %c0_i32_0 = arith.constant 0 : i32
    %c0_i32_1 = arith.constant 0 : i32
    return %arg0, %c0_i32, %c0_i32_0 : i32, i32, i32
  }
}

module attributes {stable_mosaic.version = 11 : i64} {
  func.func @_stream_kernel(%arg0: i32, %arg1: i32, %arg2: memref<256x147xbf16, #tpu.memory_space<vmem>>, %arg3: memref<147x64xbf16, #tpu.memory_space<vmem>>, %arg4: memref<1x64xf32, #tpu.memory_space<vmem>>, %arg5: memref<64x2048xbf16, #tpu.memory_space<vmem>>, %arg6: memref<1x2048xf32, #tpu.memory_space<vmem>>, %arg7: memref<2048x128xbf16, #tpu.memory_space<vmem>>, %arg8: memref<1x128xf32, #tpu.memory_space<vmem>>, %arg9: memref<1x1x128xf32, #tpu.memory_space<vmem>>, %arg10: memref<256x64xf32, #tpu.memory_space<vmem>>) attributes {dimension_semantics = [#tpu.dimension_semantics<parallel>, #tpu.dimension_semantics<arbitrary>], iteration_bounds = array<i64: 2, 1>, scalar_prefetch = 0 : i64, scratch_operands = 1 : i64, tpu.core_type = #tpu.core_type<tc>, window_params = [{transform_indices = @transform_0, window_bounds = array<i64: 256, 147>}, {transform_indices = @transform_1, window_bounds = array<i64: 147, 64>}, {pipeline_mode = #tpu.pipeline_mode<synchronous>, transform_indices = @transform_2, window_bounds = array<i64: 1, 64>}, {pipeline_mode = #tpu.pipeline_mode<synchronous>, transform_indices = @transform_3, window_bounds = array<i64: 64, 2048>}, {pipeline_mode = #tpu.pipeline_mode<synchronous>, transform_indices = @transform_4, window_bounds = array<i64: 1, 2048>}, {pipeline_mode = #tpu.pipeline_mode<synchronous>, transform_indices = @transform_5, window_bounds = array<i64: 2048, 128>}, {pipeline_mode = #tpu.pipeline_mode<synchronous>, transform_indices = @transform_6, window_bounds = array<i64: 1, 128>}, {transform_indices = @transform_7, window_bounds = array<i64: 1, 1, 128>}]} {
    %c0_i32 = arith.constant 0 : i32
    %0 = arith.cmpi eq, %arg1, %c0_i32 : i32
    %1 = arith.extui %0 : i1 to i32
    %c0_i32_0 = arith.constant 0 : i32
    %2 = arith.cmpi ne, %1, %c0_i32_0 : i32
    scf.if %2 {
      %cst_10 = arith.constant 0.000000e+00 : f32
      %12 = vector.broadcast %cst_10 : f32 to vector<256x64xf32>
      %c0_11 = arith.constant 0 : index
      %c0_12 = arith.constant 0 : index
      %13 = vector.load %arg10[%c0_11, %c0_12] : memref<256x64xf32, #tpu.memory_space<vmem>>, vector<256x64xf32>
      tpu.vector_store %arg10[%c0_11, %c0_12], %12 {strides = array<i32>} : memref<256x64xf32, #tpu.memory_space<vmem>>, vector<256x64xf32>,
    } else {
    }
    %c0 = arith.constant 0 : index
    %c0_1 = arith.constant 0 : index
    %3 = vector.load %arg10[%c0, %c0_1] : memref<256x64xf32, #tpu.memory_space<vmem>>, vector<256x64xf32>
    %c0_2 = arith.constant 0 : index
    %c0_3 = arith.constant 0 : index
    %4 = vector.load %arg2[%c0_2, %c0_3] : memref<256x147xbf16, #tpu.memory_space<vmem>>, vector<256x147xbf16>
    %c0_4 = arith.constant 0 : index
    %c0_5 = arith.constant 0 : index
    %5 = vector.load %arg3[%c0_4, %c0_5] : memref<147x64xbf16, #tpu.memory_space<vmem>>, vector<147x64xbf16>
    %cst = arith.constant dense<0.000000e+00> : vector<256x64xf32>
    %6 = tpu.matmul %4, %5, %cst {dimension_numbers = #tpu.dot_dimension_numbers<[1], [0], [0], [1], [0, 0, 1, 1], [], []>} : vector<256x147xbf16>, vector<147x64xbf16>, vector<256x64xf32> -> vector<256x64xf32>
    %7 = arith.addf %3, %6 : vector<256x64xf32>
    %c0_6 = arith.constant 0 : index
    %c0_7 = arith.constant 0 : index
    %8 = vector.load %arg10[%c0_6, %c0_7] : memref<256x64xf32, #tpu.memory_space<vmem>>, vector<256x64xf32>
    tpu.vector_store %arg10[%c0_6, %c0_7], %7 {strides = array<i32>} : memref<256x64xf32, #tpu.memory_space<vmem>>, vector<256x64xf32>,
    %c0_i32_8 = arith.constant 0 : i32
    %9 = arith.cmpi eq, %arg1, %c0_i32_8 : i32
    %10 = arith.extui %9 : i1 to i32
    %c0_i32_9 = arith.constant 0 : i32
    %11 = arith.cmpi ne, %10, %c0_i32_9 : i32
    scf.if %11 {
      %c0_10 = arith.constant 0 : index
      %c0_11 = arith.constant 0 : index
      %12 = vector.load %arg10[%c0_10, %c0_11] : memref<256x64xf32, #tpu.memory_space<vmem>>, vector<256x64xf32>
      %c0_12 = arith.constant 0 : index
      %c0_13 = arith.constant 0 : index
      %13 = vector.load %arg4[%c0_12, %c0_13] : memref<1x64xf32, #tpu.memory_space<vmem>>, vector<1x64xf32>
      %14 = vector.broadcast %13 : vector<1x64xf32> to vector<256x64xf32>
      %15 = arith.addf %12, %14 : vector<256x64xf32>
      %cst_14 = arith.constant 0.000000e+00 : f32
      %16 = vector.broadcast %cst_14 : f32 to vector<256x64xf32>
      %17 = arith.maximumf %15, %16 : vector<256x64xf32>
      %18 = arith.truncf %17 : vector<256x64xf32> to vector<256x64xbf16>
      %c0_15 = arith.constant 0 : index
      %c0_16 = arith.constant 0 : index
      %19 = vector.load %arg8[%c0_15, %c0_16] : memref<1x128xf32, #tpu.memory_space<vmem>>, vector<1x128xf32>
      %c0_17 = arith.constant 0 : index
      %c0_18 = arith.constant 0 : index
      %20 = vector.load %arg5[%c0_17, %c0_18] : memref<64x2048xbf16, #tpu.memory_space<vmem>>, vector<64x512xbf16>
      %cst_19 = arith.constant dense<0.000000e+00> : vector<256x512xf32>
      %21 = tpu.matmul %18, %20, %cst_19 {dimension_numbers = #tpu.dot_dimension_numbers<[1], [0], [0], [1], [0, 0, 1, 1], [], []>} : vector<256x64xbf16>, vector<64x512xbf16>, vector<256x512xf32> -> vector<256x512xf32>
      %c0_20 = arith.constant 0 : index
      %c0_21 = arith.constant 0 : index
      %22 = vector.load %arg6[%c0_20, %c0_21] : memref<1x2048xf32, #tpu.memory_space<vmem>>, vector<1x512xf32>
      %23 = vector.broadcast %22 : vector<1x512xf32> to vector<256x512xf32>
      %24 = arith.addf %21, %23 : vector<256x512xf32>
      %cst_22 = arith.constant 0.000000e+00 : f32
      %25 = vector.broadcast %cst_22 : f32 to vector<256x512xf32>
      %26 = arith.maximumf %24, %25 : vector<256x512xf32>
      %cst_23 = arith.constant dense<0.000000e+00> : vector<512xf32>
      %27 = vector.multi_reduction <add>, %26, %cst_23 [0] : vector<256x512xf32> to vector<512xf32>
      %28 = vector.shape_cast %27 : vector<512xf32> to vector<1x512xf32>
      %cst_24 = arith.constant 3.906250e-03 : f32
      %29 = vector.broadcast %cst_24 : f32 to vector<1x512xf32>
      %30 = arith.mulf %28, %29 : vector<1x512xf32>
      %31 = arith.truncf %30 : vector<1x512xf32> to vector<1x512xbf16>
      %c0_25 = arith.constant 0 : index
      %c0_26 = arith.constant 0 : index
      %32 = vector.load %arg7[%c0_25, %c0_26] : memref<2048x128xbf16, #tpu.memory_space<vmem>>, vector<512x128xbf16>
      %cst_27 = arith.constant dense<0.000000e+00> : vector<1x128xf32>
      %33 = tpu.matmul %31, %32, %cst_27 {dimension_numbers = #tpu.dot_dimension_numbers<[1], [0], [0], [1], [0, 0, 1, 1], [], []>} : vector<1x512xbf16>, vector<512x128xbf16>, vector<1x128xf32> -> vector<1x128xf32>
      %34 = arith.addf %19, %33 : vector<1x128xf32>
      %c0_28 = arith.constant 0 : index
      %c512 = arith.constant 512 : index
      %35 = vector.load %arg5[%c0_28, %c512] : memref<64x2048xbf16, #tpu.memory_space<vmem>>, vector<64x512xbf16>
      %cst_29 = arith.constant dense<0.000000e+00> : vector<256x512xf32>
      %36 = tpu.matmul %18, %35, %cst_29 {dimension_numbers = #tpu.dot_dimension_numbers<[1], [0], [0], [1], [0, 0, 1, 1], [], []>} : vector<256x64xbf16>, vector<64x512xbf16>, vector<256x512xf32> -> vector<256x512xf32>
      %c0_30 = arith.constant 0 : index
      %c512_31 = arith.constant 512 : index
      %37 = vector.load %arg6[%c0_30, %c512_31] : memref<1x2048xf32, #tpu.memory_space<vmem>>, vector<1x512xf32>
      %38 = vector.broadcast %37 : vector<1x512xf32> to vector<256x512xf32>
      %39 = arith.addf %36, %38 : vector<256x512xf32>
      %cst_32 = arith.constant 0.000000e+00 : f32
      %40 = vector.broadcast %cst_32 : f32 to vector<256x512xf32>
      %41 = arith.maximumf %39, %40 : vector<256x512xf32>
      %cst_33 = arith.constant dense<0.000000e+00> : vector<512xf32>
      %42 = vector.multi_reduction <add>, %41, %cst_33 [0] : vector<256x512xf32> to vector<512xf32>
      %43 = vector.shape_cast %42 : vector<512xf32> to vector<1x512xf32>
      %cst_34 = arith.constant 3.906250e-03 : f32
      %44 = vector.broadcast %cst_34 : f32 to vector<1x512xf32>
      %45 = arith.mulf %43, %44 : vector<1x512xf32>
      %46 = arith.truncf %45 : vector<1x512xf32> to vector<1x512xbf16>
      %c512_35 = arith.constant 512 : index
      %c0_36 = arith.constant 0 : index
      %47 = vector.load %arg7[%c512_35, %c0_36] : memref<2048x128xbf16, #tpu.memory_space<vmem>>, vector<512x128xbf16>
      %cst_37 = arith.constant dense<0.000000e+00> : vector<1x128xf32>
      %48 = tpu.matmul %46, %47, %cst_37 {dimension_numbers = #tpu.dot_dimension_numbers<[1], [0], [0], [1], [0, 0, 1, 1], [], []>} : vector<1x512xbf16>, vector<512x128xbf16>, vector<1x128xf32> -> vector<1x128xf32>
      %49 = arith.addf %34, %48 : vector<1x128xf32>
      %c0_38 = arith.constant 0 : index
      %c1024 = arith.constant 1024 : index
      %50 = vector.load %arg5[%c0_38, %c1024] : memref<64x2048xbf16, #tpu.memory_space<vmem>>, vector<64x512xbf16>
      %cst_39 = arith.constant dense<0.000000e+00> : vector<256x512xf32>
      %51 = tpu.matmul %18, %50, %cst_39 {dimension_numbers = #tpu.dot_dimension_numbers<[1], [0], [0], [1], [0, 0, 1, 1], [], []>} : vector<256x64xbf16>, vector<64x512xbf16>, vector<256x512xf32> -> vector<256x512xf32>
      %c0_40 = arith.constant 0 : index
      %c1024_41 = arith.constant 1024 : index
      %52 = vector.load %arg6[%c0_40, %c1024_41] : memref<1x2048xf32, #tpu.memory_space<vmem>>, vector<1x512xf32>
      %53 = vector.broadcast %52 : vector<1x512xf32> to vector<256x512xf32>
      %54 = arith.addf %51, %53 : vector<256x512xf32>
      %cst_42 = arith.constant 0.000000e+00 : f32
      %55 = vector.broadcast %cst_42 : f32 to vector<256x512xf32>
      %56 = arith.maximumf %54, %55 : vector<256x512xf32>
      %cst_43 = arith.constant dense<0.000000e+00> : vector<512xf32>
      %57 = vector.multi_reduction <add>, %56, %cst_43 [0] : vector<256x512xf32> to vector<512xf32>
      %58 = vector.shape_cast %57 : vector<512xf32> to vector<1x512xf32>
      %cst_44 = arith.constant 3.906250e-03 : f32
      %59 = vector.broadcast %cst_44 : f32 to vector<1x512xf32>
      %60 = arith.mulf %58, %59 : vector<1x512xf32>
      %61 = arith.truncf %60 : vector<1x512xf32> to vector<1x512xbf16>
      %c1024_45 = arith.constant 1024 : index
      %c0_46 = arith.constant 0 : index
      %62 = vector.load %arg7[%c1024_45, %c0_46] : memref<2048x128xbf16, #tpu.memory_space<vmem>>, vector<512x128xbf16>
      %cst_47 = arith.constant dense<0.000000e+00> : vector<1x128xf32>
      %63 = tpu.matmul %61, %62, %cst_47 {dimension_numbers = #tpu.dot_dimension_numbers<[1], [0], [0], [1], [0, 0, 1, 1], [], []>} : vector<1x512xbf16>, vector<512x128xbf16>, vector<1x128xf32> -> vector<1x128xf32>
      %64 = arith.addf %49, %63 : vector<1x128xf32>
      %c0_48 = arith.constant 0 : index
      %c1536 = arith.constant 1536 : index
      %65 = vector.load %arg5[%c0_48, %c1536] : memref<64x2048xbf16, #tpu.memory_space<vmem>>, vector<64x512xbf16>
      %cst_49 = arith.constant dense<0.000000e+00> : vector<256x512xf32>
      %66 = tpu.matmul %18, %65, %cst_49 {dimension_numbers = #tpu.dot_dimension_numbers<[1], [0], [0], [1], [0, 0, 1, 1], [], []>} : vector<256x64xbf16>, vector<64x512xbf16>, vector<256x512xf32> -> vector<256x512xf32>
      %c0_50 = arith.constant 0 : index
      %c1536_51 = arith.constant 1536 : index
      %67 = vector.load %arg6[%c0_50, %c1536_51] : memref<1x2048xf32, #tpu.memory_space<vmem>>, vector<1x512xf32>
      %68 = vector.broadcast %67 : vector<1x512xf32> to vector<256x512xf32>
      %69 = arith.addf %66, %68 : vector<256x512xf32>
      %cst_52 = arith.constant 0.000000e+00 : f32
      %70 = vector.broadcast %cst_52 : f32 to vector<256x512xf32>
      %71 = arith.maximumf %69, %70 : vector<256x512xf32>
      %cst_53 = arith.constant dense<0.000000e+00> : vector<512xf32>
      %72 = vector.multi_reduction <add>, %71, %cst_53 [0] : vector<256x512xf32> to vector<512xf32>
      %73 = vector.shape_cast %72 : vector<512xf32> to vector<1x512xf32>
      %cst_54 = arith.constant 3.906250e-03 : f32
      %74 = vector.broadcast %cst_54 : f32 to vector<1x512xf32>
      %75 = arith.mulf %73, %74 : vector<1x512xf32>
      %76 = arith.truncf %75 : vector<1x512xf32> to vector<1x512xbf16>
      %c1536_55 = arith.constant 1536 : index
      %c0_56 = arith.constant 0 : index
      %77 = vector.load %arg7[%c1536_55, %c0_56] : memref<2048x128xbf16, #tpu.memory_space<vmem>>, vector<512x128xbf16>
      %cst_57 = arith.constant dense<0.000000e+00> : vector<1x128xf32>
      %78 = tpu.matmul %76, %77, %cst_57 {dimension_numbers = #tpu.dot_dimension_numbers<[1], [0], [0], [1], [0, 0, 1, 1], [], []>} : vector<1x512xbf16>, vector<512x128xbf16>, vector<1x128xf32> -> vector<1x128xf32>
      %79 = arith.addf %64, %78 : vector<1x128xf32>
      %80 = vector.shape_cast %79 : vector<1x128xf32> to vector<1x1x128xf32>
      %c0_58 = arith.constant 0 : index
      %c0_59 = arith.constant 0 : index
      %c0_60 = arith.constant 0 : index
      %81 = vector.load %arg9[%c0_58, %c0_59, %c0_60] : memref<1x1x128xf32, #tpu.memory_space<vmem>>, vector<1x1x128xf32>
      tpu.vector_store %arg9[%c0_58, %c0_59, %c0_60], %80 {strides = array<i32>} : memref<1x1x128xf32, #tpu.memory_space<vmem>>, vector<1x1x128xf32>,
    } else {
    }
    return
  }
  func.func @transform_0(%arg0: i32, %arg1: i32) -> (i32, i32) {
    %c0_i32 = arith.constant 0 : i32
    return %arg0, %arg1 : i32, i32
  }
  func.func @transform_1(%arg0: i32, %arg1: i32) -> (i32, i32) {
    %c0_i32 = arith.constant 0 : i32
    %c0_i32_0 = arith.constant 0 : i32
    return %arg1, %c0_i32 : i32, i32
  }
  func.func @transform_2(%arg0: i32, %arg1: i32) -> (i32, i32) {
    %c0_i32 = arith.constant 0 : i32
    %c0_i32_0 = arith.constant 0 : i32
    %c0_i32_1 = arith.constant 0 : i32
    return %c0_i32, %c0_i32_0 : i32, i32
  }
  func.func @transform_3(%arg0: i32, %arg1: i32) -> (i32, i32) {
    %c0_i32 = arith.constant 0 : i32
    %c0_i32_0 = arith.constant 0 : i32
    %c0_i32_1 = arith.constant 0 : i32
    return %c0_i32, %c0_i32_0 : i32, i32
  }
  func.func @transform_4(%arg0: i32, %arg1: i32) -> (i32, i32) {
    %c0_i32 = arith.constant 0 : i32
    %c0_i32_0 = arith.constant 0 : i32
    %c0_i32_1 = arith.constant 0 : i32
    return %c0_i32, %c0_i32_0 : i32, i32
  }
  func.func @transform_5(%arg0: i32, %arg1: i32) -> (i32, i32) {
    %c0_i32 = arith.constant 0 : i32
    %c0_i32_0 = arith.constant 0 : i32
    %c0_i32_1 = arith.constant 0 : i32
    return %c0_i32, %c0_i32_0 : i32, i32
  }
  func.func @transform_6(%arg0: i32, %arg1: i32) -> (i32, i32) {
    %c0_i32 = arith.constant 0 : i32
    %c0_i32_0 = arith.constant 0 : i32
    %c0_i32_1 = arith.constant 0 : i32
    return %c0_i32, %c0_i32_0 : i32, i32
  }
  func.func @transform_7(%arg0: i32, %arg1: i32) -> (i32, i32, i32) {
    %c0_i32 = arith.constant 0 : i32
    %c0_i32_0 = arith.constant 0 : i32
    %c0_i32_1 = arith.constant 0 : i32
    return %arg0, %c0_i32, %c0_i32_0 : i32, i32, i32
  }
}

module attributes {stable_mosaic.version = 11 : i64} {
  func.func @_head_kernel(%arg0: i32, %arg1: memref<2x128xf32, #tpu.memory_space<vmem>>, %arg2: memref<2x128xf32, #tpu.memory_space<vmem>>, %arg3: memref<1x128xf32, #tpu.memory_space<vmem>>, %arg4: memref<1x128xf32, #tpu.memory_space<vmem>>, %arg5: memref<1x1xf32, #tpu.memory_space<vmem>>, %arg6: memref<2x1xf32, #tpu.memory_space<vmem>>) attributes {dimension_semantics = [#tpu.dimension_semantics<arbitrary>], iteration_bounds = array<i64: 1>, scalar_prefetch = 0 : i64, scratch_operands = 0 : i64, tpu.core_type = #tpu.core_type<tc>, window_params = [{pipeline_mode = #tpu.pipeline_mode<synchronous>, transform_indices = @transform_0, window_bounds = array<i64: 2, 128>}, {pipeline_mode = #tpu.pipeline_mode<synchronous>, transform_indices = @transform_1, window_bounds = array<i64: 2, 128>}, {pipeline_mode = #tpu.pipeline_mode<synchronous>, transform_indices = @transform_2, window_bounds = array<i64: 1, 128>}, {pipeline_mode = #tpu.pipeline_mode<synchronous>, transform_indices = @transform_3, window_bounds = array<i64: 1, 128>}, {pipeline_mode = #tpu.pipeline_mode<synchronous>, transform_indices = @transform_4, window_bounds = array<i64: 1, 1>}, {pipeline_mode = #tpu.pipeline_mode<synchronous>, transform_indices = @transform_5, window_bounds = array<i64: 2, 1>}]} {
    %c0 = arith.constant 0 : index
    %c0_0 = arith.constant 0 : index
    %0 = vector.load %arg1[%c0, %c0_0] : memref<2x128xf32, #tpu.memory_space<vmem>>, vector<2x128xf32>
    %c0_1 = arith.constant 0 : index
    %c0_2 = arith.constant 0 : index
    %1 = vector.load %arg3[%c0_1, %c0_2] : memref<1x128xf32, #tpu.memory_space<vmem>>, vector<1x128xf32>
    %2 = vector.broadcast %1 : vector<1x128xf32> to vector<2x128xf32>
    %3 = arith.mulf %0, %2 : vector<2x128xf32>
    %cst = arith.constant dense<0.000000e+00> : vector<2xf32>
    %4 = vector.multi_reduction <add>, %3, %cst [1] : vector<2x128xf32> to vector<2xf32>
    %5 = vector.shape_cast %4 : vector<2xf32> to vector<2x1xf32>
    %c0_3 = arith.constant 0 : index
    %c0_4 = arith.constant 0 : index
    %6 = vector.load %arg2[%c0_3, %c0_4] : memref<2x128xf32, #tpu.memory_space<vmem>>, vector<2x128xf32>
    %c0_5 = arith.constant 0 : index
    %c0_6 = arith.constant 0 : index
    %7 = vector.load %arg4[%c0_5, %c0_6] : memref<1x128xf32, #tpu.memory_space<vmem>>, vector<1x128xf32>
    %8 = vector.broadcast %7 : vector<1x128xf32> to vector<2x128xf32>
    %9 = arith.mulf %6, %8 : vector<2x128xf32>
    %cst_7 = arith.constant dense<0.000000e+00> : vector<2xf32>
    %10 = vector.multi_reduction <add>, %9, %cst_7 [1] : vector<2x128xf32> to vector<2xf32>
    %11 = vector.shape_cast %10 : vector<2xf32> to vector<2x1xf32>
    %12 = arith.addf %5, %11 : vector<2x1xf32>
    %c0_8 = arith.constant 0 : index
    %c0_9 = arith.constant 0 : index
    %13 = vector.load %arg5[%c0_8, %c0_9] : memref<1x1xf32, #tpu.memory_space<vmem>>, vector<1x1xf32>
    %14 = vector.broadcast %13 : vector<1x1xf32> to vector<2x1xf32>
    %15 = arith.addf %12, %14 : vector<2x1xf32>
    %16 = arith.negf %15 : vector<2x1xf32>
    %17 = math.exp %16 : vector<2x1xf32>
    %cst_10 = arith.constant 1.000000e+00 : f32
    %18 = vector.broadcast %cst_10 : f32 to vector<2x1xf32>
    %19 = arith.addf %18, %17 : vector<2x1xf32>
    %20 = arith.divf %18, %19 : vector<2x1xf32>
    %c0_11 = arith.constant 0 : index
    %c0_12 = arith.constant 0 : index
    %21 = vector.load %arg6[%c0_11, %c0_12] : memref<2x1xf32, #tpu.memory_space<vmem>>, vector<2x1xf32>
    tpu.vector_store %arg6[%c0_11, %c0_12], %20 {strides = array<i32>} : memref<2x1xf32, #tpu.memory_space<vmem>>, vector<2x1xf32>,
    return
  }
  func.func @transform_0(%arg0: i32) -> (i32, i32) {
    %c0_i32 = arith.constant 0 : i32
    %c0_i32_0 = arith.constant 0 : i32
    %c0_i32_1 = arith.constant 0 : i32
    return %c0_i32, %c0_i32_0 : i32, i32
  }
  func.func @transform_1(%arg0: i32) -> (i32, i32) {
    %c0_i32 = arith.constant 0 : i32
    %c0_i32_0 = arith.constant 0 : i32
    %c0_i32_1 = arith.constant 0 : i32
    return %c0_i32, %c0_i32_0 : i32, i32
  }
  func.func @transform_2(%arg0: i32) -> (i32, i32) {
    %c0_i32 = arith.constant 0 : i32
    %c0_i32_0 = arith.constant 0 : i32
    %c0_i32_1 = arith.constant 0 : i32
    return %c0_i32, %c0_i32_0 : i32, i32
  }
  func.func @transform_3(%arg0: i32) -> (i32, i32) {
    %c0_i32 = arith.constant 0 : i32
    %c0_i32_0 = arith.constant 0 : i32
    %c0_i32_1 = arith.constant 0 : i32
    return %c0_i32, %c0_i32_0 : i32, i32
  }
  func.func @transform_4(%arg0: i32) -> (i32, i32) {
    %c0_i32 = arith.constant 0 : i32
    %c0_i32_0 = arith.constant 0 : i32
    %c0_i32_1 = arith.constant 0 : i32
    return %c0_i32, %c0_i32_0 : i32, i32
  }
  func.func @transform_5(%arg0: i32) -> (i32, i32) {
    %c0_i32 = arith.constant 0 : i32
    %c0_i32_0 = arith.constant 0 : i32
    %c0_i32_1 = arith.constant 0 : i32
    return %c0_i32, %c0_i32_0 : i32, i32
  }
}

</mosaic_0001>

<bundles_post_ra>
// kernel: two_stream_forward.4
= control target key start
LH: loop header
LB: loop body
LE: loop exit
PB: predicated region body
PF: predicated region fallthrough
CT: control target
= control target key end

     0   :  { %s6674_s24 = smov 0   ;;  %s6676_s25 = smov 0   ;;  %s8338_s0 = inlined_call_operand.vmem [shape: bf16[512,7040], index: 0, kind: input, shape index: {}]   ;;  %s8339_s1 = inlined_call_operand.vmem [shape: bf16[7040,64], index: 1, kind: input, shape index: {}]   ;;  %s8340_s2 = inlined_call_operand.vmem [shape: f32[1,64], index: 2, kind: input, shape index: {}]   ;;  %s8341_s3 = inlined_call_operand.vmem [shape: bf16[64,512], index: 3, kind: input, shape index: {}]   ;;  %s8342_s4 = inlined_call_operand.vmem [shape: f32[1,512], index: 4, kind: input, shape index: {}]   ;;  %s8343_s5 = inlined_call_operand.vmem [shape: bf16[512,128], index: 5, kind: input, shape index: {}]   ;;  %s8344_s6 = inlined_call_operand.vmem [shape: f32[1,128], index: 6, kind: input, shape index: {}]   ;;  %s8345_s7 = inlined_call_operand.vmem [shape: f32[2,1,128], index: 7, kind: output, shape index: {}]  }
   0x1   :  { %s6678_s26 = smov 0   ;;  %s6680_s27 = smov 0  }
   0x2   :  { %s6682_s28 = smov 0   ;;  %s6684_s29 = smov 0  }
   0x3   :  { %s6686_s30 = smov 0  }
   0x4 LB: > { %s26_s8 = sadd.s32 1, %s6622_s28  ;;  %s29_s9 = sadd.s32 1, %s6626_s29  ;;  %s6630_s30 = sphi %s6686_s30, %s17_s30   ;;  %s6626_s29 = sphi %s6684_s29, %s8351_s29   ;;  %s6622_s28 = sphi %s6682_s28, %s8350_s28   ;;  %s6618_s27 = sphi %s6680_s27, %s8349_s27   ;;  %s6614_s26 = sphi %s6678_s26, %s8348_s26   ;;  %s6610_s25 = sphi %s6676_s25, %s8347_s25   ;;  %s6606_s24 = sphi %s6674_s24, %s8346_s24  }
   0x5   : > { %p27_p0 = scmp.ge.s32.totalorder %s26_s8, 5  ;;  %p45_p1 = scmp.ne.s32.totalorder %s6610_s25, %s6606_s24 }
   0x6   : > { %p46_p2 = scmp.eq.s32.totalorder %s6630_s30, 0  ;;  %s38_s13 = sadd.s32 1, %s6610_s25 }
   0x7   : > { %s8353_s8 = smov (%p27_p0, %s26_s8), 0  ;;  %s8355_s9 = smov (!%p27_p0, %s29_s9), %s6626_s29 }
   0x8   : > { %p47_p3 = por %p46_p2, %p45_p1  ;;  %p31_p4 = scmp.ge.s32.totalorder %s8355_s9, 2 }
   0x9   : > { %s34_s10 = ssub.s32 %s6622_s28, %s8353_s8  ;;  %p5004_p6 = scmp.ge.s32.totalorder %s6630_s30, 10 }
   0xa   : > { %s8357_s9 = smov (%p31_p4, %s8355_s9), 0 }
   0xb   : > { %s33_s11 = ssub.s32 %s6626_s29, %s8357_s9  ;;  %243 = sbr.rel (%p5004_p6) target bundleno = 128 (0x80), region = 36 }
   0xc   : > { %s35_s12 = sor.u32 %s34_s10, %s33_s11 }
   0xd   : > { %p36_p5 = scmp.eq.s32.totalorder %s35_s12, 0 }
   0xf   : > { %s6725_s14 = scalar_select %p36_p5, %s6610_s25, %s38_s13  }
  0x12   : > { %246 = sbr.rel (!%p47_p3) target bundleno = 128 (0x80), region = 40  ;;  %s248_s15 = sand.u32 (%p47_p3), 1, %s6610_s25  }
  0x13   : > { %s252_s16 = smul.u32 (%p47_p3), 11, %s6622_s28 }
  0x14   : > { %s6115_s17 = smul.u32 (%p47_p3), 1408, %s248_s15 }
  0x15   : > { %s6116_s18 = smul.u32 (%p47_p3), 1760, %s6626_s29 }
  0x16   : > { %s6739_s10 = scalar_lea.vmem (%p47_p3), [#allocation3], %s6115_s17 }
  0x17   : > { %s254_s19 = sadd.s32 (%p47_p3), %s6116_s18, %s252_s16 }
  0x18   : > { %s5007_s20 = sshll.u32 (%p47_p3), %s254_s19, 2 }
  0x19   : > { %s6734_s23 = scalar_lea.vmem %s8338_s0, %s5007_s20 }
  0x1a   : > { %v271_v0 = vld [vmem:[%s6734_s23] sm:$0xff]  ;;  %v273_v1 = vld [vmem:[%s6734_s23 + $0x8] sm:$0xff]  ;;  %v275_v2 = vld [vmem:[%s6734_s23 + $0x10] sm:$0xff] }
  0x1b   : > { %272 = vst [vmem:[%s6739_s10] sm:$0xff] %v271_v0  ;;  %274 = vst [vmem:[%s6739_s10 + $0x8] sm:$0xff] %v273_v1  ;;  %v277_v3 = vld [vmem:[%s6734_s23 + $0x18] sm:$0xff]  ;;  %v279_v4 = vld [vmem:[%s6734_s23 + $0x20] sm:$0xff] }
  0x1c   : > { %276 = vst [vmem:[%s6739_s10 + $0x10] sm:$0xff] %v275_v2  ;;  %v281_v5 = vld [vmem:[%s6734_s23 + $0xdc] sm:$0xff]  ;;  %278 = vst [vmem:[%s6739_s10 + $0x18] sm:$0xff] %v277_v3  ;;  %v283_v6 = vld [vmem:[%s6734_s23 + $0xe4] sm:$0xff] }
  0x1d   : > { %280 = vst [vmem:[%s6739_s10 + $0x20] sm:$0xff] %v279_v4  ;;  %282 = vst [vmem:[%s6739_s10 + $0x2c] sm:$0xff] %v281_v5  ;;  %v285_v7 = vld [vmem:[%s6734_s23 + $0xec] sm:$0xff]  ;;  %v287_v8 = vld [vmem:[%s6734_s23 + $0xf4] sm:$0xff] }
  0x1e   : > { %284 = vst [vmem:[%s6739_s10 + $0x34] sm:$0xff] %v283_v6  ;;  %286 = vst [vmem:[%s6739_s10 + $0x3c] sm:$0xff] %v285_v7  ;;  %v289_v9 = vld [vmem:[%s6734_s23 + $0xfc] sm:$0xff]  ;;  %v295_v12 = vld [vmem:[%s6734_s23 + $0x1c8] sm:$0xff] }
  0x1f   : > { %288 = vst [vmem:[%s6739_s10 + $0x44] sm:$0xff] %v287_v8  ;;  %v291_v10 = vld [vmem:[%s6734_s23 + $0x1b8] sm:$0xff]  ;;  %v293_v11 = vld [vmem:[%s6734_s23 + $0x1c0] sm:$0xff]  ;;  %290 = vst [vmem:[%s6739_s10 + $0x4c] sm:$0xff] %v289_v9 }
  0x20   : > { %292 = vst [vmem:[%s6739_s10 + $0x58] sm:$0xff] %v291_v10  ;;  %294 = vst [vmem:[%s6739_s10 + $0x60] sm:$0xff] %v293_v11  ;;  %v297_v13 = vld [vmem:[%s6734_s23 + $0x1d0] sm:$0xff]  ;;  %v299_v14 = vld [vmem:[%s6734_s23 + $0x1d8] sm:$0xff] }
  0x21   : > { %296 = vst [vmem:[%s6739_s10 + $0x68] sm:$0xff] %v295_v12  ;;  %298 = vst [vmem:[%s6739_s10 + $0x70] sm:$0xff] %v297_v13  ;;  %v301_v15 = vld [vmem:[%s6734_s23 + $0x294] sm:$0xff]  ;;  %v303_v16 = vld [vmem:[%s6734_s23 + $0x29c] sm:$0xff] }
  0x22   : > { %300 = vst [vmem:[%s6739_s10 + $0x78] sm:$0xff] %v299_v14  ;;  %v305_v17 = vld [vmem:[%s6734_s23 + $0x2a4] sm:$0xff]  ;;  %302 = vst [vmem:[%s6739_s10 + $0x84] sm:$0xff] %v301_v15  ;;  %v307_v18 = vld [vmem:[%s6734_s23 + $0x2ac] sm:$0xff] }
  0x23   : > { %304 = vst [vmem:[%s6739_s10 + $0x8c] sm:$0xff] %v303_v16  ;;  %306 = vst [vmem:[%s6739_s10 + $0x94] sm:$0xff] %v305_v17  ;;  %v309_v19 = vld [vmem:[%s6734_s23 + $0x2b4] sm:$0xff]  ;;  %v315_v22 = vld [vmem:[%s6734_s23 + $0x380] sm:$0xff] }
  0x24   : > { %v311_v20 = vld [vmem:[%s6734_s23 + $0x370] sm:$0xff]  ;;  %308 = vst [vmem:[%s6739_s10 + $0x9c] sm:$0xff] %v307_v18  ;;  %310 = vst [vmem:[%s6739_s10 + $0xa4] sm:$0xff] %v309_v19  ;;  %v313_v21 = vld [vmem:[%s6734_s23 + $0x378] sm:$0xff] }
  0x25   : > { %312 = vst [vmem:[%s6739_s10 + $0xb0] sm:$0xff] %v311_v20  ;;  %v317_v23 = vld [vmem:[%s6734_s23 + $0x388] sm:$0xff]  ;;  %314 = vst [vmem:[%s6739_s10 + $0xb8] sm:$0xff] %v313_v21  ;;  %v319_v24 = vld [vmem:[%s6734_s23 + $0x390] sm:$0xff] }
  0x26   : > { %316 = vst [vmem:[%s6739_s10 + $0xc0] sm:$0xff] %v315_v22  ;;  %318 = vst [vmem:[%s6739_s10 + $0xc8] sm:$0xff] %v317_v23  ;;  %v321_v25 = vld [vmem:[%s6734_s23 + $0x44c] sm:$0xff]  ;;  %v323_v26 = vld [vmem:[%s6734_s23 + $0x454] sm:$0xff] }
  0x27   : > { %320 = vst [vmem:[%s6739_s10 + $0xd0] sm:$0xff] %v319_v24  ;;  %322 = vst [vmem:[%s6739_s10 + $0xdc] sm:$0xff] %v321_v25  ;;  %v325_v27 = vld [vmem:[%s6734_s23 + $0x45c] sm:$0xff]  ;;  %v327_v28 = vld [vmem:[%s6734_s23 + $0x464] sm:$0xff] }
  0x28   : > { %324 = vst [vmem:[%s6739_s10 + $0xe4] sm:$0xff] %v323_v26  ;;  %v329_v29 = vld [vmem:[%s6734_s23 + $0x46c] sm:$0xff]  ;;  %326 = vst [vmem:[%s6739_s10 + $0xec] sm:$0xff] %v325_v27  ;;  %v335_v32 = vld [vmem:[%s6734_s23 + $0x538] sm:$0xff] }
  0x29   : > { %328 = vst [vmem:[%s6739_s10 + $0xf4] sm:$0xff] %v327_v28  ;;  %330 = vst [vmem:[%s6739_s10 + $0xfc] sm:$0xff] %v329_v29  ;;  %v331_v30 = vld [vmem:[%s6734_s23 + $0x528] sm:$0xff]  ;;  %v333_v31 = vld [vmem:[%s6734_s23 + $0x530] sm:$0xff] }
  0x2a   : > { %332 = vst [vmem:[%s6739_s10 + $0x108] sm:$0xff] %v331_v30  ;;  %334 = vst [vmem:[%s6739_s10 + $0x110] sm:$0xff] %v333_v31  ;;  %v337_v33 = vld [vmem:[%s6734_s23 + $0x540] sm:$0xff]  ;;  %v339_v34 = vld [vmem:[%s6734_s23 + $0x548] sm:$0xff] }
  0x2b   : > { %336 = vst [vmem:[%s6739_s10 + $0x118] sm:$0xff] %v335_v32  ;;  %v341_v35 = vld [vmem:[%s6734_s23 + $0x604] sm:$0xff]  ;;  %338 = vst [vmem:[%s6739_s10 + $0x120] sm:$0xff] %v337_v33  ;;  %v343_v36 = vld [vmem:[%s6734_s23 + $0x60c] sm:$0xff] }
  0x2c   : > { %340 = vst [vmem:[%s6739_s10 + $0x128] sm:$0xff] %v339_v34  ;;  %342 = vst [vmem:[%s6739_s10 + $0x134] sm:$0xff] %v341_v35  ;;  %v345_v37 = vld [vmem:[%s6734_s23 + $0x614] sm:$0xff]  ;;  %v347_v38 = vld [vmem:[%s6734_s23 + $0x61c] sm:$0xff] }
  0x2d   : > { %344 = vst [vmem:[%s6739_s10 + $0x13c] sm:$0xff] %v343_v36  ;;  %346 = vst [vmem:[%s6739_s10 + $0x144] sm:$0xff] %v345_v37  ;;  %v349_v39 = vld [vmem:[%s6734_s23 + $0x624] sm:$0xff]  ;;  %v355_v42 = vld [vmem:[%s6734_s23 + $0x6f0] sm:$0xff] }
  0x2e   : > { %348 = vst [vmem:[%s6739_s10 + $0x14c] sm:$0xff] %v347_v38  ;;  %v351_v40 = vld [vmem:[%s6734_s23 + $0x6e0] sm:$0xff]  ;;  %v353_v41 = vld [vmem:[%s6734_s23 + $0x6e8] sm:$0xff]  ;;  %350 = vst [vmem:[%s6739_s10 + $0x154] sm:$0xff] %v349_v39 }
  0x2f   : > { %352 = vst [vmem:[%s6739_s10 + $0x160] sm:$0xff] %v351_v40  ;;  %354 = vst [vmem:[%s6739_s10 + $0x168] sm:$0xff] %v353_v41  ;;  %v357_v43 = vld [vmem:[%s6734_s23 + $0x6f8] sm:$0xff]  ;;  %v359_v44 = vld [vmem:[%s6734_s23 + $0x700] sm:$0xff] }
  0x30   : > { %356 = vst [vmem:[%s6739_s10 + $0x170] sm:$0xff] %v355_v42  ;;  %358 = vst [vmem:[%s6739_s10 + $0x178] sm:$0xff] %v357_v43  ;;  %v361_v45 = vld [vmem:[%s6734_s23 + $0x7bc] sm:$0xff]  ;;  %v363_v46 = vld [vmem:[%s6734_s23 + $0x7c4] sm:$0xff] }
  0x31   : > { %360 = vst [vmem:[%s6739_s10 + $0x180] sm:$0xff] %v359_v44  ;;  %v365_v47 = vld [vmem:[%s6734_s23 + $0x7cc] sm:$0xff]  ;;  %362 = vst [vmem:[%s6739_s10 + $0x18c] sm:$0xff] %v361_v45  ;;  %v367_v48 = vld [vmem:[%s6734_s23 + $0x7d4] sm:$0xff] }
  0x32   : > { %364 = vst [vmem:[%s6739_s10 + $0x194] sm:$0xff] %v363_v46  ;;  %366 = vst [vmem:[%s6739_s10 + $0x19c] sm:$0xff] %v365_v47  ;;  %v369_v49 = vld [vmem:[%s6734_s23 + $0x7dc] sm:$0xff]  ;;  %v375_v52 = vld [vmem:[%s6734_s23 + $0x8a8] sm:$0xff] }
  0x33   : > { %v371_v50 = vld [vmem:[%s6734_s23 + $0x898] sm:$0xff]  ;;  %368 = vst [vmem:[%s6739_s10 + $0x1a4] sm:$0xff] %v367_v48  ;;  %370 = vst [vmem:[%s6739_s10 + $0x1ac] sm:$0xff] %v369_v49  ;;  %v373_v51 = vld [vmem:[%s6734_s23 + $0x8a0] sm:$0xff] }
  0x34   : > { %372 = vst [vmem:[%s6739_s10 + $0x1b8] sm:$0xff] %v371_v50  ;;  %v377_v53 = vld [vmem:[%s6734_s23 + $0x8b0] sm:$0xff]  ;;  %374 = vst [vmem:[%s6739_s10 + $0x1c0] sm:$0xff] %v373_v51  ;;  %v379_v54 = vld [vmem:[%s6734_s23 + $0x8b8] sm:$0xff] }
  0x35   : > { %376 = vst [vmem:[%s6739_s10 + $0x1c8] sm:$0xff] %v375_v52  ;;  %378 = vst [vmem:[%s6739_s10 + $0x1d0] sm:$0xff] %v377_v53  ;;  %v381_v55 = vld [vmem:[%s6734_s23 + $0x974] sm:$0xff]  ;;  %v383_v56 = vld [vmem:[%s6734_s23 + $0x97c] sm:$0xff] }
  0x36   : > { %380 = vst [vmem:[%s6739_s10 + $0x1d8] sm:$0xff] %v379_v54  ;;  %382 = vst [vmem:[%s6739_s10 + $0x1e4] sm:$0xff] %v381_v55  ;;  %v385_v57 = vld [vmem:[%s6734_s23 + $0x984] sm:$0xff]  ;;  %v387_v58 = vld [vmem:[%s6734_s23 + $0x98c] sm:$0xff] }
  0x37   : > { %384 = vst [vmem:[%s6739_s10 + $0x1ec] sm:$0xff] %v383_v56  ;;  %v389_v59 = vld [vmem:[%s6734_s23 + $0x994] sm:$0xff]  ;;  %386 = vst [vmem:[%s6739_s10 + $0x1f4] sm:$0xff] %v385_v57  ;;  %v395_v62 = vld [vmem:[%s6734_s23 + $0xa60] sm:$0xff] }
  0x38   : > { %388 = vst [vmem:[%s6739_s10 + $0x1fc] sm:$0xff] %v387_v58  ;;  %390 = vst [vmem:[%s6739_s10 + $0x204] sm:$0xff] %v389_v59  ;;  %v391_v60 = vld [vmem:[%s6734_s23 + $0xa50] sm:$0xff]  ;;  %v393_v61 = vld [vmem:[%s6734_s23 + $0xa58] sm:$0xff] }
  0x39   : > { %392 = vst [vmem:[%s6739_s10 + $0x210] sm:$0xff] %v391_v60  ;;  %394 = vst [vmem:[%s6739_s10 + $0x218] sm:$0xff] %v393_v61  ;;  %v397_v63 = vld [vmem:[%s6734_s23 + $0xa68] sm:$0xff]  ;;  %v399_v0 = vld [vmem:[%s6734_s23 + $0xa70] sm:$0xff] }
  0x3a   : > { %396 = vst [vmem:[%s6739_s10 + $0x220] sm:$0xff] %v395_v62  ;;  %v401_v1 = vld [vmem:[%s6734_s23 + $0xb2c] sm:$0xff]  ;;  %398 = vst [vmem:[%s6739_s10 + $0x228] sm:$0xff] %v397_v63  ;;  %v403_v2 = vld [vmem:[%s6734_s23 + $0xb34] sm:$0xff] }
  0x3b   : > { %400 = vst [vmem:[%s6739_s10 + $0x230] sm:$0xff] %v399_v0  ;;  %402 = vst [vmem:[%s6739_s10 + $0x23c] sm:$0xff] %v401_v1  ;;  %v405_v3 = vld [vmem:[%s6734_s23 + $0xb3c] sm:$0xff]  ;;  %v407_v4 = vld [vmem:[%s6734_s23 + $0xb44] sm:$0xff] }
  0x3c   : > { %404 = vst [vmem:[%s6739_s10 + $0x244] sm:$0xff] %v403_v2  ;;  %406 = vst [vmem:[%s6739_s10 + $0x24c] sm:$0xff] %v405_v3  ;;  %v409_v5 = vld [vmem:[%s6734_s23 + $0xb4c] sm:$0xff]  ;;  %v415_v8 = vld [vmem:[%s6734_s23 + $0xc18] sm:$0xff] }
  0x3d   : > { %408 = vst [vmem:[%s6739_s10 + $0x254] sm:$0xff] %v407_v4  ;;  %v411_v6 = vld [vmem:[%s6734_s23 + $0xc08] sm:$0xff]  ;;  %v413_v7 = vld [vmem:[%s6734_s23 + $0xc10] sm:$0xff]  ;;  %410 = vst [vmem:[%s6739_s10 + $0x25c] sm:$0xff] %v409_v5 }
  0x3e   : > { %412 = vst [vmem:[%s6739_s10 + $0x268] sm:$0xff] %v411_v6  ;;  %414 = vst [vmem:[%s6739_s10 + $0x270] sm:$0xff] %v413_v7  ;;  %v417_v9 = vld [vmem:[%s6734_s23 + $0xc20] sm:$0xff]  ;;  %v419_v10 = vld [vmem:[%s6734_s23 + $0xc28] sm:$0xff] }
  0x3f   : > { %416 = vst [vmem:[%s6739_s10 + $0x278] sm:$0xff] %v415_v8  ;;  %418 = vst [vmem:[%s6739_s10 + $0x280] sm:$0xff] %v417_v9  ;;  %v421_v11 = vld [vmem:[%s6734_s23 + $0xce4] sm:$0xff]  ;;  %v423_v12 = vld [vmem:[%s6734_s23 + $0xcec] sm:$0xff] }
  0x40   : > { %420 = vst [vmem:[%s6739_s10 + $0x288] sm:$0xff] %v419_v10  ;;  %v425_v13 = vld [vmem:[%s6734_s23 + $0xcf4] sm:$0xff]  ;;  %422 = vst [vmem:[%s6739_s10 + $0x294] sm:$0xff] %v421_v11  ;;  %v427_v14 = vld [vmem:[%s6734_s23 + $0xcfc] sm:$0xff] }
  0x41   : > { %424 = vst [vmem:[%s6739_s10 + $0x29c] sm:$0xff] %v423_v12  ;;  %426 = vst [vmem:[%s6739_s10 + $0x2a4] sm:$0xff] %v425_v13  ;;  %v429_v15 = vld [vmem:[%s6734_s23 + $0xd04] sm:$0xff]  ;;  %v435_v18 = vld [vmem:[%s6734_s23 + $0xdd0] sm:$0xff] }
  0x42   : > { %v431_v16 = vld [vmem:[%s6734_s23 + $0xdc0] sm:$0xff]  ;;  %428 = vst [vmem:[%s6739_s10 + $0x2ac] sm:$0xff] %v427_v14  ;;  %430 = vst [vmem:[%s6739_s10 + $0x2b4] sm:$0xff] %v429_v15  ;;  %v433_v17 = vld [vmem:[%s6734_s23 + $0xdc8] sm:$0xff] }
  0x43   : > { %432 = vst [vmem:[%s6739_s10 + $0x2c0] sm:$0xff] %v431_v16  ;;  %v437_v19 = vld [vmem:[%s6734_s23 + $0xdd8] sm:$0xff]  ;;  %434 = vst [vmem:[%s6739_s10 + $0x2c8] sm:$0xff] %v433_v17  ;;  %v439_v20 = vld [vmem:[%s6734_s23 + $0xde0] sm:$0xff] }
  0x44   : > { %436 = vst [vmem:[%s6739_s10 + $0x2d0] sm:$0xff] %v435_v18  ;;  %438 = vst [vmem:[%s6739_s10 + $0x2d8] sm:$0xff] %v437_v19  ;;  %v441_v21 = vld [vmem:[%s6734_s23 + $0xe9c] sm:$0xff]  ;;  %v443_v22 = vld [vmem:[%s6734_s23 + $0xea4] sm:$0xff] }
  0x45   : > { %440 = vst [vmem:[%s6739_s10 + $0x2e0] sm:$0xff] %v439_v20  ;;  %442 = vst [vmem:[%s6739_s10 + $0x2ec] sm:$0xff] %v441_v21  ;;  %v445_v23 = vld [vmem:[%s6734_s23 + $0xeac] sm:$0xff]  ;;  %v447_v24 = vld [vmem:[%s6734_s23 + $0xeb4] sm:$0xff] }
  0x46   : > { %444 = vst [vmem:[%s6739_s10 + $0x2f4] sm:$0xff] %v443_v22  ;;  %v449_v25 = vld [vmem:[%s6734_s23 + $0xebc] sm:$0xff]  ;;  %446 = vst [vmem:[%s6739_s10 + $0x2fc] sm:$0xff] %v445_v23  ;;  %v455_v28 = vld [vmem:[%s6734_s23 + $0xf88] sm:$0xff] }
  0x47   : > { %448 = vst [vmem:[%s6739_s10 + $0x304] sm:$0xff] %v447_v24  ;;  %450 = vst [vmem:[%s6739_s10 + $0x30c] sm:$0xff] %v449_v25  ;;  %v451_v26 = vld [vmem:[%s6734_s23 + $0xf78] sm:$0xff]  ;;  %v453_v27 = vld [vmem:[%s6734_s23 + $0xf80] sm:$0xff] }
  0x48   : > { %452 = vst [vmem:[%s6739_s10 + $0x318] sm:$0xff] %v451_v26  ;;  %454 = vst [vmem:[%s6739_s10 + $0x320] sm:$0xff] %v453_v27  ;;  %v457_v29 = vld [vmem:[%s6734_s23 + $0xf90] sm:$0xff]  ;;  %v459_v30 = vld [vmem:[%s6734_s23 + $0xf98] sm:$0xff] }
  0x49   : > { %456 = vst [vmem:[%s6739_s10 + $0x328] sm:$0xff] %v455_v28  ;;  %v461_v31 = vld [vmem:[%s6734_s23 + $0x1054] sm:$0xff]  ;;  %458 = vst [vmem:[%s6739_s10 + $0x330] sm:$0xff] %v457_v29  ;;  %v463_v32 = vld [vmem:[%s6734_s23 + $0x105c] sm:$0xff] }
  0x4a   : > { %460 = vst [vmem:[%s6739_s10 + $0x338] sm:$0xff] %v459_v30  ;;  %462 = vst [vmem:[%s6739_s10 + $0x344] sm:$0xff] %v461_v31  ;;  %v465_v33 = vld [vmem:[%s6734_s23 + $0x1064] sm:$0xff]  ;;  %v467_v34 = vld [vmem:[%s6734_s23 + $0x106c] sm:$0xff] }
  0x4b   : > { %464 = vst [vmem:[%s6739_s10 + $0x34c] sm:$0xff] %v463_v32  ;;  %466 = vst [vmem:[%s6739_s10 + $0x354] sm:$0xff] %v465_v33  ;;  %v469_v35 = vld [vmem:[%s6734_s23 + $0x1074] sm:$0xff]  ;;  %v475_v38 = vld [vmem:[%s6734_s23 + $0x1140] sm:$0xff] }
  0x4c   : > { %468 = vst [vmem:[%s6739_s10 + $0x35c] sm:$0xff] %v467_v34  ;;  %v471_v36 = vld [vmem:[%s6734_s23 + $0x1130] sm:$0xff]  ;;  %v473_v37 = vld [vmem:[%s6734_s23 + $0x1138] sm:$0xff]  ;;  %470 = vst [vmem:[%s6739_s10 + $0x364] sm:$0xff] %v469_v35 }
  0x4d   : > { %472 = vst [vmem:[%s6739_s10 + $0x370] sm:$0xff] %v471_v36  ;;  %474 = vst [vmem:[%s6739_s10 + $0x378] sm:$0xff] %v473_v37  ;;  %v477_v39 = vld [vmem:[%s6734_s23 + $0x1148] sm:$0xff]  ;;  %v479_v40 = vld [vmem:[%s6734_s23 + $0x1150] sm:$0xff] }
  0x4e   : > { %476 = vst [vmem:[%s6739_s10 + $0x380] sm:$0xff] %v475_v38  ;;  %478 = vst [vmem:[%s6739_s10 + $0x388] sm:$0xff] %v477_v39  ;;  %v481_v41 = vld [vmem:[%s6734_s23 + $0x120c] sm:$0xff]  ;;  %v483_v42 = vld [vmem:[%s6734_s23 + $0x1214] sm:$0xff] }
  0x4f   : > { %480 = vst [vmem:[%s6739_s10 + $0x390] sm:$0xff] %v479_v40  ;;  %v485_v43 = vld [vmem:[%s6734_s23 + $0x121c] sm:$0xff]  ;;  %482 = vst [vmem:[%s6739_s10 + $0x39c] sm:$0xff] %v481_v41  ;;  %v487_v44 = vld [vmem:[%s6734_s23 + $0x1224] sm:$0xff] }
  0x50   : > { %484 = vst [vmem:[%s6739_s10 + $0x3a4] sm:$0xff] %v483_v42  ;;  %486 = vst [vmem:[%s6739_s10 + $0x3ac] sm:$0xff] %v485_v43  ;;  %v489_v45 = vld [vmem:[%s6734_s23 + $0x122c] sm:$0xff]  ;;  %v495_v48 = vld [vmem:[%s6734_s23 + $0x12f8] sm:$0xff] }
  0x51   : > { %v491_v46 = vld [vmem:[%s6734_s23 + $0x12e8] sm:$0xff]  ;;  %488 = vst [vmem:[%s6739_s10 + $0x3b4] sm:$0xff] %v487_v44  ;;  %490 = vst [vmem:[%s6739_s10 + $0x3bc] sm:$0xff] %v489_v45  ;;  %v493_v47 = vld [vmem:[%s6734_s23 + $0x12f0] sm:$0xff] }
  0x52   : > { %492 = vst [vmem:[%s6739_s10 + $0x3c8] sm:$0xff] %v491_v46  ;;  %v497_v49 = vld [vmem:[%s6734_s23 + $0x1300] sm:$0xff]  ;;  %494 = vst [vmem:[%s6739_s10 + $0x3d0] sm:$0xff] %v493_v47  ;;  %v499_v50 = vld [vmem:[%s6734_s23 + $0x1308] sm:$0xff] }
  0x53   : > { %496 = vst [vmem:[%s6739_s10 + $0x3d8] sm:$0xff] %v495_v48  ;;  %498 = vst [vmem:[%s6739_s10 + $0x3e0] sm:$0xff] %v497_v49  ;;  %v501_v51 = vld [vmem:[%s6734_s23 + $0x13c4] sm:$0xff]  ;;  %v503_v52 = vld [vmem:[%s6734_s23 + $0x13cc] sm:$0xff] }
  0x54   : > { %500 = vst [vmem:[%s6739_s10 + $0x3e8] sm:$0xff] %v499_v50  ;;  %502 = vst [vmem:[%s6739_s10 + $0x3f4] sm:$0xff] %v501_v51  ;;  %v505_v53 = vld [vmem:[%s6734_s23 + $0x13d4] sm:$0xff]  ;;  %v507_v54 = vld [vmem:[%s6734_s23 + $0x13dc] sm:$0xff] }
  0x55   : > { %504 = vst [vmem:[%s6739_s10 + $0x3fc] sm:$0xff] %v503_v52  ;;  %v509_v55 = vld [vmem:[%s6734_s23 + $0x13e4] sm:$0xff]  ;;  %506 = vst [vmem:[%s6739_s10 + $0x404] sm:$0xff] %v505_v53  ;;  %v515_v58 = vld [vmem:[%s6734_s23 + $0x14b0] sm:$0xff] }
  0x56   : > { %508 = vst [vmem:[%s6739_s10 + $0x40c] sm:$0xff] %v507_v54  ;;  %510 = vst [vmem:[%s6739_s10 + $0x414] sm:$0xff] %v509_v55  ;;  %v511_v56 = vld [vmem:[%s6734_s23 + $0x14a0] sm:$0xff]  ;;  %v513_v57 = vld [vmem:[%s6734_s23 + $0x14a8] sm:$0xff] }
  0x57   : > { %512 = vst [vmem:[%s6739_s10 + $0x420] sm:$0xff] %v511_v56  ;;  %514 = vst [vmem:[%s6739_s10 + $0x428] sm:$0xff] %v513_v57  ;;  %v517_v59 = vld [vmem:[%s6734_s23 + $0x14b8] sm:$0xff]  ;;  %v519_v60 = vld [vmem:[%s6734_s23 + $0x14c0] sm:$0xff] }
  0x58   : > { %516 = vst [vmem:[%s6739_s10 + $0x430] sm:$0xff] %v515_v58  ;;  %v521_v61 = vld [vmem:[%s6734_s23 + $0x157c] sm:$0xff]  ;;  %518 = vst [vmem:[%s6739_s10 + $0x438] sm:$0xff] %v517_v59  ;;  %v523_v62 = vld [vmem:[%s6734_s23 + $0x1584] sm:$0xff] }
  0x59   : > { %520 = vst [vmem:[%s6739_s10 + $0x440] sm:$0xff] %v519_v60  ;;  %522 = vst [vmem:[%s6739_s10 + $0x44c] sm:$0xff] %v521_v61  ;;  %v525_v63 = vld [vmem:[%s6734_s23 + $0x158c] sm:$0xff]  ;;  %v527_v0 = vld [vmem:[%s6734_s23 + $0x1594] sm:$0xff] }
  0x5a   : > { %524 = vst [vmem:[%s6739_s10 + $0x454] sm:$0xff] %v523_v62  ;;  %526 = vst [vmem:[%s6739_s10 + $0x45c] sm:$0xff] %v525_v63  ;;  %v529_v1 = vld [vmem:[%s6734_s23 + $0x159c] sm:$0xff]  ;;  %v535_v4 = vld [vmem:[%s6734_s23 + $0x1668] sm:$0xff] }
  0x5b   : > { %528 = vst [vmem:[%s6739_s10 + $0x464] sm:$0xff] %v527_v0  ;;  %v531_v2 = vld [vmem:[%s6734_s23 + $0x1658] sm:$0xff]  ;;  %v533_v3 = vld [vmem:[%s6734_s23 + $0x1660] sm:$0xff]  ;;  %530 = vst [vmem:[%s6739_s10 + $0x46c] sm:$0xff] %v529_v1 }
  0x5c   : > { %532 = vst [vmem:[%s6739_s10 + $0x478] sm:$0xff] %v531_v2  ;;  %534 = vst [vmem:[%s6739_s10 + $0x480] sm:$0xff] %v533_v3  ;;  %v537_v5 = vld [vmem:[%s6734_s23 + $0x1670] sm:$0xff]  ;;  %v539_v6 = vld [vmem:[%s6734_s23 + $0x1678] sm:$0xff] }
  0x5d   : > { %536 = vst [vmem:[%s6739_s10 + $0x488] sm:$0xff] %v535_v4  ;;  %538 = vst [vmem:[%s6739_s10 + $0x490] sm:$0xff] %v537_v5  ;;  %v541_v7 = vld [vmem:[%s6734_s23 + $0x1734] sm:$0xff]  ;;  %v543_v8 = vld [vmem:[%s6734_s23 + $0x173c] sm:$0xff] }
  0x5e   : > { %540 = vst [vmem:[%s6739_s10 + $0x498] sm:$0xff] %v539_v6  ;;  %v545_v9 = vld [vmem:[%s6734_s23 + $0x1744] sm:$0xff]  ;;  %542 = vst [vmem:[%s6739_s10 + $0x4a4] sm:$0xff] %v541_v7  ;;  %v547_v10 = vld [vmem:[%s6734_s23 + $0x174c] sm:$0xff] }
  0x5f   : > { %544 = vst [vmem:[%s6739_s10 + $0x4ac] sm:$0xff] %v543_v8  ;;  %546 = vst [vmem:[%s6739_s10 + $0x4b4] sm:$0xff] %v545_v9  ;;  %v549_v11 = vld [vmem:[%s6734_s23 + $0x1754] sm:$0xff]  ;;  %v555_v14 = vld [vmem:[%s6734_s23 + $0x1820] sm:$0xff] }
  0x60   : > { %v551_v12 = vld [vmem:[%s6734_s23 + $0x1810] sm:$0xff]  ;;  %548 = vst [vmem:[%s6739_s10 + $0x4bc] sm:$0xff] %v547_v10  ;;  %550 = vst [vmem:[%s6739_s10 + $0x4c4] sm:$0xff] %v549_v11  ;;  %v553_v13 = vld [vmem:[%s6734_s23 + $0x1818] sm:$0xff] }
  0x61   : > { %552 = vst [vmem:[%s6739_s10 + $0x4d0] sm:$0xff] %v551_v12  ;;  %v557_v15 = vld [vmem:[%s6734_s23 + $0x1828] sm:$0xff]  ;;  %554 = vst [vmem:[%s6739_s10 + $0x4d8] sm:$0xff] %v553_v13  ;;  %v559_v16 = vld [vmem:[%s6734_s23 + $0x1830] sm:$0xff] }
  0x62   : > { %556 = vst [vmem:[%s6739_s10 + $0x4e0] sm:$0xff] %v555_v14  ;;  %558 = vst [vmem:[%s6739_s10 + $0x4e8] sm:$0xff] %v557_v15  ;;  %v561_v17 = vld [vmem:[%s6734_s23 + $0x18ec] sm:$0xff]  ;;  %v563_v18 = vld [vmem:[%s6734_s23 + $0x18f4] sm:$0xff] }
  0x63   : > { %560 = vst [vmem:[%s6739_s10 + $0x4f0] sm:$0xff] %v559_v16  ;;  %562 = vst [vmem:[%s6739_s10 + $0x4fc] sm:$0xff] %v561_v17  ;;  %v565_v19 = vld [vmem:[%s6734_s23 + $0x18fc] sm:$0xff]  ;;  %v567_v20 = vld [vmem:[%s6734_s23 + $0x1904] sm:$0xff] }
  0x64   : > { %564 = vst [vmem:[%s6739_s10 + $0x504] sm:$0xff] %v563_v18  ;;  %v569_v21 = vld [vmem:[%s6734_s23 + $0x190c] sm:$0xff]  ;;  %566 = vst [vmem:[%s6739_s10 + $0x50c] sm:$0xff] %v565_v19  ;;  %v575_v24 = vld [vmem:[%s6734_s23 + $0x19d8] sm:$0xff] }
  0x65   : > { %568 = vst [vmem:[%s6739_s10 + $0x514] sm:$0xff] %v567_v20  ;;  %570 = vst [vmem:[%s6739_s10 + $0x51c] sm:$0xff] %v569_v21  ;;  %v571_v22 = vld [vmem:[%s6734_s23 + $0x19c8] sm:$0xff]  ;;  %v573_v23 = vld [vmem:[%s6734_s23 + $0x19d0] sm:$0xff] }
  0x66   : > { %572 = vst [vmem:[%s6739_s10 + $0x528] sm:$0xff] %v571_v22  ;;  %574 = vst [vmem:[%s6739_s10 + $0x530] sm:$0xff] %v573_v23  ;;  %v577_v25 = vld [vmem:[%s6734_s23 + $0x19e0] sm:$0xff]  ;;  %v579_v26 = vld [vmem:[%s6734_s23 + $0x19e8] sm:$0xff] }
  0x67   : > { %576 = vst [vmem:[%s6739_s10 + $0x538] sm:$0xff] %v575_v24  ;;  %v581_v27 = vld [vmem:[%s6734_s23 + $0x1aa4] sm:$0xff]  ;;  %578 = vst [vmem:[%s6739_s10 + $0x540] sm:$0xff] %v577_v25  ;;  %v583_v28 = vld [vmem:[%s6734_s23 + $0x1aac] sm:$0xff] }
  0x68   : > { %580 = vst [vmem:[%s6739_s10 + $0x548] sm:$0xff] %v579_v26  ;;  %582 = vst [vmem:[%s6739_s10 + $0x554] sm:$0xff] %v581_v27  ;;  %v585_v29 = vld [vmem:[%s6734_s23 + $0x1ab4] sm:$0xff]  ;;  %v587_v30 = vld [vmem:[%s6734_s23 + $0x1abc] sm:$0xff] }
  0x69   : > { %584 = vst [vmem:[%s6739_s10 + $0x55c] sm:$0xff] %v583_v28  ;;  %586 = vst [vmem:[%s6739_s10 + $0x564] sm:$0xff] %v585_v29  ;;  %v589_v31 = vld [vmem:[%s6734_s23 + $0x1ac4] sm:$0xff]  ;;  %v5012_v34 = vld [vmem:[%s6734_s23 + $0x1e0] sm:$0xf] }
  0x6a   : > { %588 = vst [vmem:[%s6739_s10 + $0x56c] sm:$0xff] %v587_v30  ;;  %v5008_v32 = vld [vmem:[%s6734_s23 + $0x28] sm:$0xf]  ;;  %v5010_v33 = vld [vmem:[%s6734_s23 + $0x104] sm:$0xf]  ;;  %590 = vst [vmem:[%s6739_s10 + $0x574] sm:$0xff] %v589_v31 }
  0x6b   : > { %5009 = vst [vmem:[%s6739_s10 + $0x28] sm:$0xf] %v5008_v32  ;;  %5011 = vst [vmem:[%s6739_s10 + $0x54] sm:$0xf] %v5010_v33  ;;  %v5014_v35 = vld [vmem:[%s6734_s23 + $0x2bc] sm:$0xf] }
  0x6c   : > { %v5016_v36 = vld [vmem:[%s6734_s23 + $0x398] sm:$0xf]  ;;  %5013 = vst [vmem:[%s6739_s10 + $0x80] sm:$0xf] %v5012_v34  ;;  %5015 = vst [vmem:[%s6739_s10 + $0xac] sm:$0xf] %v5014_v35 }
  0x6d   : > { %5017 = vst [vmem:[%s6739_s10 + $0xd8] sm:$0xf] %v5016_v36  ;;  %v5018_v37 = vld [vmem:[%s6734_s23 + $0x474] sm:$0xf]  ;;  %v5020_v38 = vld [vmem:[%s6734_s23 + $0x550] sm:$0xf] }
  0x6e   : > { %v5022_v39 = vld [vmem:[%s6734_s23 + $0x62c] sm:$0xf]  ;;  %5019 = vst [vmem:[%s6739_s10 + $0x104] sm:$0xf] %v5018_v37  ;;  %5021 = vst [vmem:[%s6739_s10 + $0x130] sm:$0xf] %v5020_v38 }
  0x6f   : > { %5023 = vst [vmem:[%s6739_s10 + $0x15c] sm:$0xf] %v5022_v39  ;;  %v5024_v40 = vld [vmem:[%s6734_s23 + $0x708] sm:$0xf]  ;;  %v5026_v41 = vld [vmem:[%s6734_s23 + $0x7e4] sm:$0xf] }
  0x70   : > { %v5028_v42 = vld [vmem:[%s6734_s23 + $0x8c0] sm:$0xf]  ;;  %5025 = vst [vmem:[%s6739_s10 + $0x188] sm:$0xf] %v5024_v40  ;;  %5027 = vst [vmem:[%s6739_s10 + $0x1b4] sm:$0xf] %v5026_v41 }
  0x71   : > { %5029 = vst [vmem:[%s6739_s10 + $0x1e0] sm:$0xf] %v5028_v42  ;;  %v5030_v43 = vld [vmem:[%s6734_s23 + $0x99c] sm:$0xf]  ;;  %v5032_v44 = vld [vmem:[%s6734_s23 + $0xa78] sm:$0xf] }
  0x72   : > { %v5034_v45 = vld [vmem:[%s6734_s23 + $0xb54] sm:$0xf]  ;;  %5031 = vst [vmem:[%s6739_s10 + $0x20c] sm:$0xf] %v5030_v43  ;;  %5033 = vst [vmem:[%s6739_s10 + $0x238] sm:$0xf] %v5032_v44 }
  0x73   : > { %5035 = vst [vmem:[%s6739_s10 + $0x264] sm:$0xf] %v5034_v45  ;;  %v5036_v46 = vld [vmem:[%s6734_s23 + $0xc30] sm:$0xf]  ;;  %v5038_v47 = vld [vmem:[%s6734_s23 + $0xd0c] sm:$0xf] }
  0x74   : > { %v5040_v48 = vld [vmem:[%s6734_s23 + $0xde8] sm:$0xf]  ;;  %5037 = vst [vmem:[%s6739_s10 + $0x290] sm:$0xf] %v5036_v46  ;;  %5039 = vst [vmem:[%s6739_s10 + $0x2bc] sm:$0xf] %v5038_v47 }
  0x75   : > { %5041 = vst [vmem:[%s6739_s10 + $0x2e8] sm:$0xf] %v5040_v48  ;;  %v5042_v49 = vld [vmem:[%s6734_s23 + $0xec4] sm:$0xf]  ;;  %v5044_v50 = vld [vmem:[%s6734_s23 + $0xfa0] sm:$0xf] }
  0x76   : > { %v5046_v51 = vld [vmem:[%s6734_s23 + $0x107c] sm:$0xf]  ;;  %5043 = vst [vmem:[%s6739_s10 + $0x314] sm:$0xf] %v5042_v49  ;;  %5045 = vst [vmem:[%s6739_s10 + $0x340] sm:$0xf] %v5044_v50 }
  0x77   : > { %5047 = vst [vmem:[%s6739_s10 + $0x36c] sm:$0xf] %v5046_v51  ;;  %v5048_v52 = vld [vmem:[%s6734_s23 + $0x1158] sm:$0xf]  ;;  %v5050_v53 = vld [vmem:[%s6734_s23 + $0x1234] sm:$0xf] }
  0x78   : > { %v5052_v54 = vld [vmem:[%s6734_s23 + $0x1310] sm:$0xf]  ;;  %5049 = vst [vmem:[%s6739_s10 + $0x398] sm:$0xf] %v5048_v52  ;;  %5051 = vst [vmem:[%s6739_s10 + $0x3c4] sm:$0xf] %v5050_v53 }
  0x79   : > { %5053 = vst [vmem:[%s6739_s10 + $0x3f0] sm:$0xf] %v5052_v54  ;;  %v5054_v55 = vld [vmem:[%s6734_s23 + $0x13ec] sm:$0xf]  ;;  %v5056_v56 = vld [vmem:[%s6734_s23 + $0x14c8] sm:$0xf] }
  0x7a   : > { %v5058_v57 = vld [vmem:[%s6734_s23 + $0x15a4] sm:$0xf]  ;;  %5055 = vst [vmem:[%s6739_s10 + $0x41c] sm:$0xf] %v5054_v55  ;;  %5057 = vst [vmem:[%s6739_s10 + $0x448] sm:$0xf] %v5056_v56 }
  0x7b   : > { %5059 = vst [vmem:[%s6739_s10 + $0x474] sm:$0xf] %v5058_v57  ;;  %v5060_v58 = vld [vmem:[%s6734_s23 + $0x1680] sm:$0xf]  ;;  %v5062_v59 = vld [vmem:[%s6734_s23 + $0x175c] sm:$0xf] }
  0x7c   : > { %v5064_v60 = vld [vmem:[%s6734_s23 + $0x1838] sm:$0xf]  ;;  %5061 = vst [vmem:[%s6739_s10 + $0x4a0] sm:$0xf] %v5060_v58  ;;  %5063 = vst [vmem:[%s6739_s10 + $0x4cc] sm:$0xf] %v5062_v59 }
  0x7d   : > { %5065 = vst [vmem:[%s6739_s10 + $0x4f8] sm:$0xf] %v5064_v60  ;;  %v5066_v61 = vld [vmem:[%s6734_s23 + $0x1914] sm:$0xf]  ;;  %v5068_v62 = vld [vmem:[%s6734_s23 + $0x19f0] sm:$0xf] }
  0x7e   : > { %v5070_v63 = vld [vmem:[%s6734_s23 + $0x1acc] sm:$0xf]  ;;  %5067 = vst [vmem:[%s6739_s10 + $0x524] sm:$0xf] %v5066_v61  ;;  %5069 = vst [vmem:[%s6739_s10 + $0x550] sm:$0xf] %v5068_v62 }
  0x7f   : > { %5071 = vst [vmem:[%s6739_s10 + $0x57c] sm:$0xf] %v5070_v63 }
  0x80 PF: > { %p5072_p7 = scmp.ge.s32.totalorder %s6630_s30, 1  ;;  %p675_p8 = scmp.lt.s32.totalorder %s6630_s30, 11 }
  0x82   : > { %p676_p9 = pnand %p5072_p7, %p675_p8 }
  0x83   : > { %s682_s11 = sand.u32 (!%p676_p9), 1, %s6606_s24   ;;  %s718_s12 = smul.u32 (!%p676_p9), 176, %s6614_s26 }
  0x84   : > { %679 = sbr.rel (%p676_p9) target bundleno = 1346 (0x542), region = 70  ;;  %p724_p10 = scmp.lt.s32.totalorder (!%p676_p9), %s6618_s27, 1 }
  0x85   : > { %s6117_s13 = smul.u32 (!%p676_p9), 1408, %s682_s11  ;;  %p719_p11 = scmp.lt.s32.totalorder (!%p676_p9), %s718_s12, 879 }
  0x86   : > { %p5074_p12 = scmp.ne.s32.totalorder (!%p676_p9), %s6614_s26, 0 }
  0x87   : > { %s7139_s22 = scalar_lea.vmem (!%p676_p9), [#allocation3], %s6117_s13 }
  0x8b   : > { %s8359_s12 = smov (!%p719_p11, %s718_s12), 879  ;;  %s8361_s27 = smov (!%p724_p10, %s6618_s27), 1 }
  0x8c   : > { %s5073_s15 = sshll.u32 %s8359_s12, 2  ;;  %s726_s21 = scalar_lea.vmem %s8345_s7, %s8361_s27  ;;  %vm732_vm0 = vcmask (!%p5074_p12), 523264   ;;  %v6632_v0 = vmov (!%p5074_p12), 0.0  }
  0x8d   : > { %s7133_s18 = scalar_lea.vmem %s8339_s1, %s5073_s15  ;;  %731 = sbr.rel (%p5074_p12) target bundleno = 157 (0x9d), region = 78  ;;  %733 = vst.msk [vmem:[#allocation2] sm:$0xff] (!%p5074_p12), %vm732_vm0, %v6632_v0  ;;  %734 = vst.msk [vmem:[#allocation2 + $0x8] sm:$0xff] (!%p5074_p12), %vm732_vm0, %v6632_v0 }
  0x8e   : > { %735 = vst.msk [vmem:[#allocation2 + $0x10] sm:$0xff] (!%p5074_p12), %vm732_vm0, %v6632_v0  ;;  %736 = vst.msk [vmem:[#allocation2 + $0x18] sm:$0xff] (!%p5074_p12), %vm732_vm0, %v6632_v0 }
  0x8f   : > { %737 = vst.msk [vmem:[#allocation2 + $0x20] sm:$0xff] (!%p5074_p12), %vm732_vm0, %v6632_v0  ;;  %738 = vst.msk [vmem:[#allocation2 + $0x28] sm:$0xff] (!%p5074_p12), %vm732_vm0, %v6632_v0 }
  0x90   : > { %739 = vst.msk [vmem:[#allocation2 + $0x30] sm:$0xff] (!%p5074_p12), %vm732_vm0, %v6632_v0  ;;  %740 = vst.msk [vmem:[#allocation2 + $0x38] sm:$0xff] (!%p5074_p12), %vm732_vm0, %v6632_v0 }
  0x91   : > { %741 = vst.msk [vmem:[#allocation2 + $0x40] sm:$0xff] (!%p5074_p12), %vm732_vm0, %v6632_v0  ;;  %742 = vst.msk [vmem:[#allocation2 + $0x48] sm:$0xff] (!%p5074_p12), %vm732_vm0, %v6632_v0 }
  0x92   : > { %743 = vst.msk [vmem:[#allocation2 + $0x50] sm:$0xff] (!%p5074_p12), %vm732_vm0, %v6632_v0  ;;  %744 = vst.msk [vmem:[#allocation2 + $0x58] sm:$0xff] (!%p5074_p12), %vm732_vm0, %v6632_v0 }
  0x93   : > { %745 = vst.msk [vmem:[#allocation2 + $0x60] sm:$0xff] (!%p5074_p12), %vm732_vm0, %v6632_v0  ;;  %746 = vst.msk [vmem:[#allocation2 + $0x68] sm:$0xff] (!%p5074_p12), %vm732_vm0, %v6632_v0 }
  0x94   : > { %747 = vst.msk [vmem:[#allocation2 + $0x70] sm:$0xff] %vm732_vm0, %v6632_v0  ;;  %748 = vst.msk [vmem:[#allocation2 + $0x78] sm:$0xff] %vm732_vm0, %v6632_v0 }
  0x95   : > { %749 = vst.msk [vmem:[#allocation2 + $0x80] sm:$0xff] %vm732_vm0, %v6632_v0  ;;  %750 = vst.msk [vmem:[#allocation2 + $0x88] sm:$0xff] %vm732_vm0, %v6632_v0 }
  0x96   : > { %751 = vst.msk [vmem:[#allocation2 + $0x90] sm:$0xff] %vm732_vm0, %v6632_v0  ;;  %752 = vst.msk [vmem:[#allocation2 + $0x98] sm:$0xff] %vm732_vm0, %v6632_v0 }
  0x97   : > { %753 = vst.msk [vmem:[#allocation2 + $0xa0] sm:$0xff] %vm732_vm0, %v6632_v0  ;;  %754 = vst.msk [vmem:[#allocation2 + $0xa8] sm:$0xff] %vm732_vm0, %v6632_v0 }
  0x98   : > { %755 = vst.msk [vmem:[#allocation2 + $0xb0] sm:$0xff] %vm732_vm0, %v6632_v0  ;;  %756 = vst.msk [vmem:[#allocation2 + $0xb8] sm:$0xff] %vm732_vm0, %v6632_v0 }
  0x99   : > { %757 = vst.msk [vmem:[#allocation2 + $0xc0] sm:$0xff] %vm732_vm0, %v6632_v0  ;;  %758 = vst.msk [vmem:[#allocation2 + $0xc8] sm:$0xff] %vm732_vm0, %v6632_v0 }
  0x9a   : > { %759 = vst.msk [vmem:[#allocation2 + $0xd0] sm:$0xff] %vm732_vm0, %v6632_v0  ;;  %760 = vst.msk [vmem:[#allocation2 + $0xd8] sm:$0xff] %vm732_vm0, %v6632_v0 }
  0x9b   : > { %761 = vst.msk [vmem:[#allocation2 + $0xe0] sm:$0xff] %vm732_vm0, %v6632_v0  ;;  %762 = vst.msk [vmem:[#allocation2 + $0xe8] sm:$0xff] %vm732_vm0, %v6632_v0 }
  0x9c   : > { %763 = vst.msk [vmem:[#allocation2 + $0xf0] sm:$0xff] %vm732_vm0, %v6632_v0  ;;  %764 = vst.msk [vmem:[#allocation2 + $0xf8] sm:$0xff] %vm732_vm0, %v6632_v0 }
  0x9d PF: > { %v6176_v1 = vld [vmem:[%s7133_s18 + $0x40] sm:$0xff]   ;;  %v6178_v3 = vld [vmem:[%s7133_s18 + $0x48] sm:$0xff]   ;;  %v6180_v5 = vld [vmem:[%s7133_s18 + $0x50] sm:$0xff]   ;;  %vm3587_vm1 = vcmask 523264   ;;  %p5339_p13 = scmp.ne.s32.totalorder %s6614_s26, 4 }
  0x9e   : > { %v6177_v2 = vld [vmem:[%s7133_s18] sm:$0xff]   ;;  %5423 = vmatprep.subr.bf16.mxu0 %v6176_v1  ;;  %6099 = vmatprep.subr.bf16.mxu1 %v6176_v1  ;;  %v6179_v4 = vld [vmem:[%s7133_s18 + $0x8] sm:$0xff]   ;;  %v6181_v6 = vld [vmem:[%s7133_s18 + $0x10] sm:$0xff]  }
  0x9f   : > { %5424 = vmatpush3.bf16.msra.mxu0 %v6177_v2  ;;  %6107 = vmatpush3.bf16.msra.mxu1 %v6177_v2  ;;  %v6182_v7 = vld [vmem:[%s7133_s18 + $0x58] sm:$0xff]   ;;  %v6184_v9 = vld [vmem:[%s7133_s18 + $0x60] sm:$0xff]   ;;  %v6186_v11 = vld [vmem:[%s7133_s18 + $0x68] sm:$0xff]  }
  0xa0   : > { %5425 = vmatprep.subr.bf16.mxu0 %v6178_v3  ;;  %6100 = vmatprep.subr.bf16.mxu1 %v6178_v3  ;;  %v6183_v8 = vld [vmem:[%s7133_s18 + $0x18] sm:$0xff]   ;;  %v6185_v10 = vld [vmem:[%s7133_s18 + $0x20] sm:$0xff]   ;;  %v6187_v14 = vld [vmem:[%s7133_s18 + $0x28] sm:$0xff]  }
  0xa1   : > { %v6194_v12 = vld [vmem:[%s7139_s22 + $0x4] ss:$44 sps:$4 sm:$0xff]   ;;  %v6190_v17 = vld [vmem:[%s7133_s18 + $0x78] sm:$0xff]   ;;  %v6192_v20 = vld [vmem:[%s7139_s22] ss:$44 sps:$4 sm:$0xff]  }
  0xa2   : > { %v6197_v13 = vld [vmem:[%s7139_s22 + $0x424] ss:$44 sps:$4 sm:$0xff]   ;;  %2621 = vmatprep.mubr.bf16.mxu0 %v6194_v12  ;;  %v6191_v18 = vld [vmem:[%s7133_s18 + $0x38] sm:$0xff]   ;;  %v6195_v21 = vld [vmem:[%s7139_s22 + $0x420] ss:$44 sps:$4 sm:$0xff]  }
  0xa3   : > { %5426 = vmatpush3.bf16.msra.mxu0 %v6179_v4  ;;  %6108 = vmatpush3.bf16.msra.mxu1 %v6179_v4  ;;  %v6188_v15 = vld [vmem:[%s7133_s18 + $0x70] sm:$0xff]   ;;  %v6198_v19 = vld [vmem:[%s7133_s18 + $0xc0] sm:$0xff]   ;;  %v6202_v25 = vld [vmem:[%s7133_s18 + $0xc8] sm:$0xff]  }
  0xa4   : > { %5427 = vmatprep.subr.bf16.mxu0 %v6180_v5  ;;  %6101 = vmatprep.subr.bf16.mxu1 %v6180_v5  ;;  %v6189_v16 = vld [vmem:[%s7133_s18 + $0x30] sm:$0xff]   ;;  %v6199_v22 = vld [vmem:[%s7133_s18 + $0x140] sm:$0xff]   ;;  %v6204_v26 = vld [vmem:[%s7139_s22 + $0x5c] ss:$44 sps:$4 sm:$0xff]  }
  0xa5   : > { %2717 = vmatprep.mubr.bf16.mxu1 %v6197_v13  ;;  %v6200_v23 = vld [vmem:[%s7133_s18 + $0x80] sm:$0xff]   ;;  %v6206_v27 = vld [vmem:[%s7139_s22 + $0x47c] ss:$44 sps:$4 sm:$0xff]   ;;  %v6210_v33 = vld [vmem:[%s7133_s18 + $0xd0] sm:$0xff]  }
  0xa6   : > { %v6201_v24 = vld [vmem:[%s7133_s18 + $0x100] sm:$0xff]   ;;  %v6213_v28 = vld [vmem:[%s7133_s18 + $0x148] sm:$0xff]   ;;  %v6211_v34 = vld [vmem:[%s7133_s18 + $0x90] sm:$0xff]  }
  0xa7   : > { %5428 = vmatpush3.bf16.msra.mxu0 %v6181_v6  ;;  %6109 = vmatpush3.bf16.msra.mxu1 %v6181_v6  ;;  %v6203_v29 = vld [vmem:[%s7133_s18 + $0x88] sm:$0xff]   ;;  %v6208_v31 = vld [vmem:[%s7139_s22 + $0x58] ss:$44 sps:$4 sm:$0xff]   ;;  %v6216_v36 = vld [vmem:[%s7139_s22 + $0xb4] ss:$44 sps:$4 sm:$0xff]  }
  0xa8   : > { %5429 = vmatprep.subr.bf16.mxu0 %v6182_v7  ;;  %6102 = vmatprep.subr.bf16.mxu1 %v6182_v7  ;;  %v6215_v30 = vld [vmem:[%s7133_s18 + $0x108] sm:$0xff]   ;;  %v6209_v32 = vld [vmem:[%s7139_s22 + $0x478] ss:$44 sps:$4 sm:$0xff]   ;;  %v6218_v37 = vld [vmem:[%s7139_s22 + $0x4d4] ss:$44 sps:$4 sm:$0xff]  }
  0xa9   : > { %v6212_v35 = vld [vmem:[%s7133_s18 + $0xd8] sm:$0xff]   ;;  %v6222_v39 = vld [vmem:[%s7133_s18 + $0xe0] sm:$0xff]   ;;  %v6233_v42 = vld [vmem:[%s7133_s18 + $0x150] sm:$0xff]  }
  0xaa   : > { %v6214_v38 = vld [vmem:[%s7133_s18 + $0x98] sm:$0xff]   ;;  %v6223_v43 = vld [vmem:[%s7133_s18 + $0xa0] sm:$0xff]   ;;  %v6224_v44 = vld [vmem:[%s7133_s18 + $0xe8] sm:$0xff]  }
  0xab   : > { %5430 = vmatpush3.bf16.msra.mxu0 %v6183_v8  ;;  %6110 = vmatpush3.bf16.msra.mxu1 %v6183_v8  ;;  %v6220_v40 = vld [vmem:[%s7139_s22 + $0xb0] ss:$44 sps:$4 sm:$0xff]   ;;  %v6226_v46 = vld [vmem:[%s7139_s22 + $0x10c] ss:$44 sps:$4 sm:$0xff]   ;;  %v6230_v50 = vld [vmem:[%s7139_s22 + $0x108] ss:$44 sps:$4 sm:$0xff]  }
  0xac   : > { %5431 = vmatprep.subr.bf16.mxu0 %v6184_v9  ;;  %6103 = vmatprep.subr.bf16.mxu1 %v6184_v9  ;;  %v6221_v41 = vld [vmem:[%s7139_s22 + $0x4d0] ss:$44 sps:$4 sm:$0xff]   ;;  %v6228_v47 = vld [vmem:[%s7139_s22 + $0x52c] ss:$44 sps:$4 sm:$0xff]   ;;  %v6231_v51 = vld [vmem:[%s7139_s22 + $0x528] ss:$44 sps:$4 sm:$0xff]  }
  0xad   : > { %v6235_v45 = vld [vmem:[%s7133_s18 + $0x110] sm:$0xff]   ;;  %v6225_v48 = vld [vmem:[%s7133_s18 + $0xa8] sm:$0xff]   ;;  %v6244_v52 = vld [vmem:[%s7133_s18 + $0x158] sm:$0xff]  }
  0xae   : > { %v6232_v49 = vld [vmem:[%s7133_s18 + $0xf0] sm:$0xff]   ;;  %v6236_v54 = vld [vmem:[%s7133_s18 + $0xf8] sm:$0xff]   ;;  %v6243_v60 = vld [vmem:[%s7139_s22 + $0x160] ss:$44 sps:$4 sm:$0xff]  }
  0xaf   : > { %5432 = vmatpush3.bf16.msra.mxu0 %v6185_v10  ;;  %6111 = vmatpush3.bf16.msra.mxu1 %v6185_v10  ;;  %v6234_v53 = vld [vmem:[%s7133_s18 + $0xb0] sm:$0xff]   ;;  %v6246_v55 = vld [vmem:[%s7133_s18 + $0x118] sm:$0xff]   ;;  %v6245_v61 = vld [vmem:[%s7133_s18 + $0x1c0] sm:$0xff]  }
  0xb0   : > { %5433 = vmatprep.subr.bf16.mxu0 %v6186_v11  ;;  %6104 = vmatprep.subr.bf16.mxu1 %v6186_v11  ;;  %v6238_v56 = vld [vmem:[%s7139_s22 + $0x164] ss:$44 sps:$4 sm:$0xff]   ;;  %v6242_v57 = vld [vmem:[%s7139_s22 + $0xc] ss:$44 sps:$4 sm:$0xff]   ;;  %v6240_v59 = vld [vmem:[%s7139_s22 + $0x8] ss:$44 sps:$4 sm:$0xff]  }
  0xb1   : > { %v6237_v58 = vld [vmem:[%s7133_s18 + $0xb8] sm:$0xff]   ;;  %v6247_v62 = vld [vmem:[%s7133_s18 + $0x180] sm:$0xff]   ;;  %v6262_v3 = vld [vmem:[%s7133_s18 + $0x1c8] sm:$0xff]  }
  0xb2   : > { %v6248_v63 = vld [vmem:[%s7139_s22 + $0x1bc] ss:$44 sps:$4 sm:$0xff]   ;;  %v6260_v0 = vld [vmem:[%s7133_s18 + $0x160] sm:$0xff]   ;;  %v6278_v11 = vld [vmem:[%s7133_s18 + $0x1d0] sm:$0xff]  }
  0xb3   : > { %5434 = vmatpush3.bf16.msra.mxu0 %v6187_v14  ;;  %6112 = vmatpush3.bf16.msra.mxu1 %v6187_v14  ;;  %v6261_v1 = vld [vmem:[%s7133_s18 + $0x120] sm:$0xff]   ;;  %v6263_v4 = vld [vmem:[%s7133_s18 + $0x188] sm:$0xff]   ;;  %v6279_v12 = vld [vmem:[%s7133_s18 + $0x190] sm:$0xff]  }
  0xb4   : > { %5435 = vmatprep.subr.bf16.mxu0 %v6188_v15  ;;  %6105 = vmatprep.subr.bf16.mxu1 %v6188_v15  ;;  %v6250_v2 = vld [vmem:[%s7139_s22 + $0x64] ss:$44 sps:$4 sm:$0xff]   ;;  %v6270_v6 = vld [vmem:[%s7133_s18 + $0x168] sm:$0xff]   ;;  %v6254_v9 = vld [vmem:[%s7139_s22 + $0x214] ss:$44 sps:$4 sm:$0xff]  }
  0xb5   : > { %v6252_v5 = vld [vmem:[%s7139_s22 + $0x1b8] ss:$44 sps:$4 sm:$0xff]   ;;  %v6271_v7 = vld [vmem:[%s7133_s18 + $0x128] sm:$0xff]   ;;  %v6258_v13 = vld [vmem:[%s7139_s22 + $0x210] ss:$44 sps:$4 sm:$0xff]  }
  0xb6   : > { %v6253_v8 = vld [vmem:[%s7139_s22 + $0x60] ss:$44 sps:$4 sm:$0xff]   ;;  %v6256_v10 = vld [vmem:[%s7139_s22 + $0xbc] ss:$44 sps:$4 sm:$0xff]   ;;  %v6259_v14 = vld [vmem:[%s7139_s22 + $0xb8] ss:$44 sps:$4 sm:$0xff]  }
  0xb7   : > { %5436 = vmatpush3.bf16.msra.mxu0 %v6189_v16  ;;  %6113 = vmatpush3.bf16.msra.mxu1 %v6189_v16  ;;  %v6264_v15 = vld [vmem:[%s7139_s22 + $0x26c] ss:$44 sps:$4 sm:$0xff]   ;;  %v6286_v16 = vld [vmem:[%s7133_s18 + $0x170] sm:$0xff]  }
  0xb8   : > { %5437 = vmatprep.subr.bf16.mxu0 %v6190_v17  ;;  %6106 = vmatprep.subr.bf16.mxu1 %v6190_v17  ;;  %v6287_v17 = vld [vmem:[%s7133_s18 + $0x130] sm:$0xff]  }
  0xbb   : > { %5438 = vmatpush3.bf16.msra.mxu0 %v6191_v18  ;;  %6114 = vmatpush3.bf16.msra.mxu1 %v6191_v18  ;;  %v6266_v18 = vld [vmem:[%s7139_s22 + $0x114] ss:$44 sps:$4 sm:$0xff]  }
  0xbc   : > { %5535 = vmatprep.subr.bf16.mxu1 %v6198_v19  ;;  %5647 = vmatprep.subr.bf16.mxu0 %v6199_v22  ;;  %v6294_v19 = vld [vmem:[%s7133_s18 + $0x178] sm:$0xff]  }
  0xbd   : > { %v6296_v22 = vld [vmem:[%s7133_s18 + $0x138] sm:$0xff]  }
  0xbe   : > { %2622 = vmatmul.mubr.bf16.vlgmr.msra.gmra.mrb[0].mxu0 %v6192_v20  ;;  %2718 = vmatmul.mubr.bf16.vlgmr.msra.gmra.mrb[0].mxu1 %v6195_v21  ;;  %v6295_v20 = vld [vmem:[%s7133_s18 + $0x1d8] sm:$0xff]   ;;  %v6268_v21 = vld [vmem:[%s7139_s22 + $0x268] ss:$44 sps:$4 sm:$0xff]  }
  0xbf   : > { %5536 = vmatpush3.bf16.msra.mxu1 %v6200_v23  ;;  %5648 = vmatpush3.bf16.msra.mxu0 %v6201_v24  ;;  %v6297_v23 = vld [vmem:[%s7133_s18 + $0x198] sm:$0xff]  }
  0xc0   : > { %5537 = vmatprep.subr.bf16.mxu1 %v6202_v25  ;;  %2629 = vmatprep.mubr.bf16.mxu0 %v6204_v26  ;;  %v6269_v24 = vld [vmem:[%s7139_s22 + $0x110] ss:$44 sps:$4 sm:$0xff]   ;;  %v6274_v26 = vld [vmem:[%s7139_s22 + $0x16c] ss:$44 sps:$4 sm:$0xff]  }
  0xc1   : > { %2725 = vmatprep.mubr.bf16.mxu1 %v6206_v27  ;;  %5649 = vmatprep.subr.bf16.mxu0 %v6213_v28  ;;  %v6272_v25 = vld [vmem:[%s7139_s22 + $0x2c4] ss:$44 sps:$4 sm:$0xff]   ;;  %v6276_v28 = vld [vmem:[%s7139_s22 + $0x2c0] ss:$44 sps:$4 sm:$0xff]  }
  0xc2   : > { %v6310_v27 = vld [vmem:[%s7133_s18 + $0x240] sm:$0xff]  }
  0xc3   : > { %5538 = vmatpush3.bf16.msra.mxu1 %v6203_v29  ;;  %5650 = vmatpush3.bf16.msra.mxu0 %v6215_v30  ;;  %v6277_v29 = vld [vmem:[%s7139_s22 + $0x168] ss:$44 sps:$4 sm:$0xff]  }
  0xc4   : > { %5539 = vmatprep.subr.bf16.mxu1 %v6210_v33  ;;  %5651 = vmatprep.subr.bf16.mxu0 %v6233_v42  ;;  %v6280_v30 = vld [vmem:[%s7139_s22 + $0x31c] ss:$44 sps:$4 sm:$0xff]   ;;  %v6282_v33 = vld [vmem:[%s7139_s22 + $0x1c4] ss:$44 sps:$4 sm:$0xff]   ;;  %v6298_v42 = vld [vmem:[%s7139_s22 + $0x3cc] ss:$44 sps:$4 sm:$0xff]  }
  0xc6   : > { %2630 = vmatmul.mubr.bf16.gmra.mrb[4].mxu0 %v6208_v31  ;;  %2726 = vmatmul.mubr.bf16.gmra.mrb[4].mxu1 %v6209_v32  ;;  %v6312_v31 = vld [vmem:[%s7133_s18 + $0x1e0] sm:$0xff]  }
  0xc7   : > { %5540 = vmatpush3.bf16.msra.mxu1 %v6211_v34  ;;  %2637 = vmatprep.mubr.bf16.mxu0 %v6216_v36  ;;  %v6313_v32 = vld [vmem:[%s7133_s18 + $0x1a0] sm:$0xff]  }
  0xc8   : > { %5541 = vmatprep.subr.bf16.mxu1 %v6212_v35  ;;  %2733 = vmatprep.mubr.bf16.mxu1 %v6218_v37  ;;  %v6284_v34 = vld [vmem:[%s7139_s22 + $0x318] ss:$44 sps:$4 sm:$0xff]   ;;  %v6285_v35 = vld [vmem:[%s7139_s22 + $0x1c0] ss:$44 sps:$4 sm:$0xff]   ;;  %v6290_v37 = vld [vmem:[%s7139_s22 + $0x21c] ss:$44 sps:$4 sm:$0xff]  }
  0xc9   : > { %5652 = vmatpush3.bf16.msra.mxu0 %v6235_v45  ;;  %v6288_v36 = vld [vmem:[%s7139_s22 + $0x374] ss:$44 sps:$4 sm:$0xff]  }
  0xca   : > { %5653 = vmatprep.subr.bf16.mxu0 %v6244_v52  ;;  %v6345_v45 = vld [vmem:[%s7133_s18 + $0x1b0] sm:$0xff]  }
  0xcb   : > { %5542 = vmatpush3.bf16.msra.mxu1 %v6214_v38  ;;  %v6328_v38 = vld [vmem:[%s7133_s18 + $0x1e8] sm:$0xff]   ;;  %v6306_v52 = vld [vmem:[%s7139_s22 + $0x10] ss:$44 sps:$4 sm:$0xff]  }
  0xcc   : > { %5543 = vmatprep.subr.bf16.mxu1 %v6222_v39  ;;  %v6329_v39 = vld [vmem:[%s7133_s18 + $0x1a8] sm:$0xff]  }
  0xcd   : > { %5654 = vmatpush3.bf16.msra.mxu0 %v6246_v55  ;;  %v6314_v55 = vld [vmem:[%s7139_s22 + $0x324] ss:$44 sps:$4 sm:$0xff]  }
  0xce   : > { %2638 = vmatmul.mubr.bf16.gmra.mrb[8].mxu0 %v6220_v40  ;;  %2734 = vmatmul.mubr.bf16.gmra.mrb[8].mxu1 %v6221_v41  ;;  %v6292_v40 = vld [vmem:[%s7139_s22 + $0x370] ss:$44 sps:$4 sm:$0xff]   ;;  %v6293_v41 = vld [vmem:[%s7139_s22 + $0x218] ss:$44 sps:$4 sm:$0xff]  }
  0xcf   : > { %5544 = vmatpush3.bf16.msra.mxu1 %v6223_v43  ;;  %2645 = vmatprep.mubr.bf16.mxu0 %v6226_v46  ;;  %v6300_v43 = vld [vmem:[%s7139_s22 + $0x274] ss:$44 sps:$4 sm:$0xff]  }
  0xd0   : > { %5545 = vmatprep.subr.bf16.mxu1 %v6224_v44  ;;  %2741 = vmatprep.mubr.bf16.mxu1 %v6228_v47  ;;  %v6344_v44 = vld [vmem:[%s7133_s18 + $0x1f0] sm:$0xff]  }
  0xd1   : > { %5655 = vmatprep.subr.bf16.mxu0 %v6260_v0  ;;  %v6302_v46 = vld [vmem:[%s7139_s22 + $0x3c8] ss:$44 sps:$4 sm:$0xff]   ;;  %v6303_v47 = vld [vmem:[%s7139_s22 + $0x270] ss:$44 sps:$4 sm:$0xff]  }
  0xd2   : > { %5656 = vmatpush3.bf16.msra.mxu0 %v6261_v1  ;;  %v6322_v0 = vld [vmem:[%s7139_s22 + $0xc4] ss:$44 sps:$4 sm:$0xff]  }
  0xd3   : > { %5546 = vmatpush3.bf16.msra.mxu1 %v6225_v48  ;;  %5657 = vmatprep.subr.bf16.mxu0 %v6270_v6  ;;  %v6304_v48 = vld [vmem:[%s7139_s22 + $0x2cc] ss:$44 sps:$4 sm:$0xff]   ;;  %v6343_v1 = vld [vmem:[%s7133_s18 + $0x210] sm:$0xff]   ;;  %v6374_v6 = vld [vmem:[%s7133_s18 + $0x260] sm:$0xff]  }
  0xd4   : > { %5547 = vmatprep.subr.bf16.mxu1 %v6232_v49  ;;  %v6308_v49 = vld [vmem:[%s7139_s22 + $0x14] ss:$44 sps:$4 sm:$0xff]  }
  0xd6   : > { %2646 = vmatmul.mubr.bf16.gmra.mrb[12].mxu0 %v6230_v50  ;;  %2742 = vmatmul.mubr.bf16.gmra.mrb[12].mxu1 %v6231_v51  ;;  %v6360_v50 = vld [vmem:[%s7133_s18 + $0x1f8] sm:$0xff]  }
  0xd7   : > { %5548 = vmatpush3.bf16.msra.mxu1 %v6234_v53  ;;  %2653 = vmatprep.mubr.bf16.mxu0 %v6238_v56  ;;  %v6361_v51 = vld [vmem:[%s7133_s18 + $0x1b8] sm:$0xff]   ;;  %v6309_v53 = vld [vmem:[%s7139_s22 + $0x2c8] ss:$44 sps:$4 sm:$0xff]  }
  0xd8   : > { %5549 = vmatprep.subr.bf16.mxu1 %v6236_v54  ;;  %2782 = vmatprep.mubr.bf16.mxu1 %v6242_v57  ;;  %v6311_v54 = vld [vmem:[%s7133_s18 + $0x200] sm:$0xff]   ;;  %v6316_v56 = vld [vmem:[%s7139_s22 + $0x6c] ss:$44 sps:$4 sm:$0xff]  }
  0xd9   : > { %5658 = vmatpush3.bf16.msra.mxu0 %v6271_v7  ;;  %v6326_v57 = vld [vmem:[%s7133_s18 + $0x248] sm:$0xff]   ;;  %v6330_v7 = vld [vmem:[%s7139_s22 + $0x3d4] ss:$44 sps:$4 sm:$0xff]  }
  0xda   : > { %5659 = vmatprep.subr.bf16.mxu0 %v6286_v16  ;;  %v6338_v16 = vld [vmem:[%s7139_s22 + $0x174] ss:$44 sps:$4 sm:$0xff]  }
  0xdb   : > { %5550 = vmatpush3.bf16.msra.mxu1 %v6237_v58  ;;  %v7296_v58 = vld [vmem:[%s7133_s18 + $0x280] sm:$0xff]  }
  0xdc   : > { %5759 = vmatprep.subr.bf16.mxu1 %v6245_v61  ;;  %v6318_v61 = vld [vmem:[%s7139_s22 + $0x320] ss:$44 sps:$4 sm:$0xff]  }
  0xdd   : > { %5660 = vmatpush3.bf16.msra.mxu0 %v6287_v17  ;;  %v6405_v17 = vld [vmem:[%s7133_s18 + $0x230] sm:$0xff]  }
  0xde   : > { %2654 = vmatmul.mubr.bf16.gmra.mrb[16].mxu0 %v6243_v60  ;;  %2783 = vmatmul.mubr.bf16.vlgmr.msra.gmra.mrb[16].mxu1 %v6240_v59  ;;  %v6327_v59 = vld [vmem:[%s7133_s18 + $0x208] sm:$0xff]   ;;  %v6342_v60 = vld [vmem:[%s7133_s18 + $0x250] sm:$0xff]  }
  0xdf   : > { %5760 = vmatpush3.bf16.msra.mxu1 %v6247_v62  ;;  %2661 = vmatprep.mubr.bf16.mxu0 %v6248_v63  ;;  %v6319_v62 = vld [vmem:[%s7139_s22 + $0x68] ss:$44 sps:$4 sm:$0xff]  }
  0xe0   : > { %2790 = vmatprep.mubr.bf16.mxu1 %v6250_v2  ;;  %5761 = vmatprep.subr.bf16.mxu1 %v6262_v3  ;;  %v6320_v63 = vld [vmem:[%s7139_s22 + $0x37c] ss:$44 sps:$4 sm:$0xff]  }
  0xe1   : > { %5661 = vmatprep.subr.bf16.mxu0 %v6294_v19  ;;  %v6358_v2 = vld [vmem:[%s7133_s18 + $0x258] sm:$0xff]  }
  0xe2   : > { %5662 = vmatpush3.bf16.msra.mxu0 %v6296_v22  ;;  %v6359_v3 = vld [vmem:[%s7133_s18 + $0x218] sm:$0xff]   ;;  %v6346_v22 = vld [vmem:[%s7139_s22 + $0x484] ss:$44 sps:$4 sm:$0xff]  }
  0xe3   : > { %5762 = vmatpush3.bf16.msra.mxu1 %v6263_v4  ;;  %5871 = vmatprep.subr.bf16.mxu0 %v6310_v27  ;;  %v6324_v4 = vld [vmem:[%s7139_s22 + $0x378] ss:$44 sps:$4 sm:$0xff]  }
  0xe4   : > { %5763 = vmatprep.subr.bf16.mxu1 %v6278_v11  ;;  %v6334_v11 = vld [vmem:[%s7139_s22 + $0x3d0] ss:$44 sps:$4 sm:$0xff]  }
  0xe5   : > { %v6420_v19 = vld [vmem:[%s7133_s18 + $0x238] sm:$0xff]   ;;  %v6354_v27 = vld [vmem:[%s7139_s22 + $0x224] ss:$44 sps:$4 sm:$0xff]  }
  0xe6   : > { %2662 = vmatmul.mubr.bf16.gmra.mrb[20].mxu0 %v6252_v5  ;;  %2791 = vmatmul.mubr.bf16.gmra.mrb[20].mxu1 %v6253_v8  ;;  %v6325_v5 = vld [vmem:[%s7139_s22 + $0xc0] ss:$44 sps:$4 sm:$0xff]   ;;  %v6332_v8 = vld [vmem:[%s7139_s22 + $0x11c] ss:$44 sps:$4 sm:$0xff]  }
  0xe7   : > { %2669 = vmatprep.mubr.bf16.mxu0 %v6254_v9  ;;  %2798 = vmatprep.mubr.bf16.mxu1 %v6256_v10  ;;  %v6375_v9 = vld [vmem:[%s7133_s18 + $0x220] sm:$0xff]   ;;  %v6389_v10 = vld [vmem:[%s7133_s18 + $0x268] sm:$0xff]  }
  0xe8   : > { %5764 = vmatpush3.bf16.msra.mxu1 %v6279_v12  ;;  %v6390_v12 = vld [vmem:[%s7133_s18 + $0x228] sm:$0xff]  }
  0xe9   : > { %5765 = vmatprep.subr.bf16.mxu1 %v6295_v20  ;;  %v6340_v20 = vld [vmem:[%s7139_s22 + $0x428] ss:$44 sps:$4 sm:$0xff]  }
  0xec   : > { %5766 = vmatpush3.bf16.msra.mxu1 %v6297_v23  ;;  %v6348_v23 = vld [vmem:[%s7139_s22 + $0x1cc] ss:$44 sps:$4 sm:$0xff]  }
  0xed   : > { %5767 = vmatprep.subr.bf16.mxu1 %v6312_v31  ;;  %v6364_v31 = vld [vmem:[%s7139_s22 + $0x27c] ss:$44 sps:$4 sm:$0xff]  }
  0xee   : > { %2670 = vmatmul.mubr.bf16.gmra.mrb[24].mxu0 %v6258_v13  ;;  %2799 = vmatmul.mubr.bf16.gmra.mrb[24].mxu1 %v6259_v14  ;;  %v6335_v13 = vld [vmem:[%s7139_s22 + $0x118] ss:$44 sps:$4 sm:$0xff]   ;;  %v6404_v14 = vld [vmem:[%s7133_s18 + $0x270] sm:$0xff]  }
  0xef   : > { %2677 = vmatprep.mubr.bf16.mxu0 %v6264_v15  ;;  %2806 = vmatprep.mubr.bf16.mxu1 %v6266_v18  ;;  %v6336_v15 = vld [vmem:[%s7139_s22 + $0x42c] ss:$44 sps:$4 sm:$0xff]  }
  0xf0   : > { %5768 = vmatpush3.bf16.msra.mxu1 %v6313_v32  ;;  %v6419_v18 = vld [vmem:[%s7133_s18 + $0x278] sm:$0xff]  }
  0xf1   : > { %5769 = vmatprep.subr.bf16.mxu1 %v6328_v38  ;;  %v6366_v32 = vld [vmem:[%s7139_s22 + $0x530] ss:$44 sps:$4 sm:$0xff]   ;;  %v6377_v38 = vld [vmem:[%s7139_s22 + $0x32c] ss:$44 sps:$4 sm:$0xff]  }
  0xf4   : > { %5770 = vmatpush3.bf16.msra.mxu1 %v6329_v39  ;;  %v6379_v39 = vld [vmem:[%s7139_s22 + $0x74] ss:$44 sps:$4 sm:$0xff]  }
  0xf5   : > { %5771 = vmatprep.subr.bf16.mxu1 %v6344_v44  ;;  %v6383_v44 = vld [vmem:[%s7139_s22 + $0x384] ss:$44 sps:$4 sm:$0xff]  }
  0xf6   : > { %2678 = vmatmul.mubr.bf16.gmra.mrb[28].mxu0 %v6268_v21  ;;  %2807 = vmatmul.mubr.bf16.gmra.mrb[28].mxu1 %v6269_v24  ;;  %v6341_v21 = vld [vmem:[%s7139_s22 + $0x170] ss:$44 sps:$4 sm:$0xff]   ;;  %v6350_v24 = vld [vmem:[%s7139_s22 + $0x480] ss:$44 sps:$4 sm:$0xff]  }
  0xf7   : > { %2685 = vmatprep.mubr.bf16.mxu0 %v6272_v25  ;;  %2814 = vmatprep.mubr.bf16.mxu1 %v6274_v26  ;;  %v6351_v25 = vld [vmem:[%s7139_s22 + $0x1c8] ss:$44 sps:$4 sm:$0xff]  }
  0xf8   : > { %5772 = vmatpush3.bf16.msra.mxu1 %v6345_v45  ;;  %v6352_v26 = vld [vmem:[%s7139_s22 + $0x4dc] ss:$44 sps:$4 sm:$0xff]   ;;  %v6385_v45 = vld [vmem:[%s7139_s22 + $0xcc] ss:$44 sps:$4 sm:$0xff]  }
  0xf9   : > { %5773 = vmatprep.subr.bf16.mxu1 %v6360_v50  ;;  %v6392_v50 = vld [vmem:[%s7139_s22 + $0x3dc] ss:$44 sps:$4 sm:$0xff]  }
  0xfc   : > { %5774 = vmatpush3.bf16.msra.mxu1 %v6361_v51  ;;  %v6394_v51 = vld [vmem:[%s7139_s22 + $0x124] ss:$44 sps:$4 sm:$0xff]  }
  0xfd   : > { %6051 = vmatprep.subr.bf16.mxu1 %v7296_v58 }
  0xfe   : > { %2686 = vmatmul.mubr.bf16.gmra.mrb[32].mxu0 %v6276_v28  ;;  %2815 = vmatmul.mubr.bf16.gmra.mrb[32].mxu1 %v6277_v29  ;;  %v6356_v28 = vld [vmem:[%s7139_s22 + $0x4d8] ss:$44 sps:$4 sm:$0xff]   ;;  %v6357_v29 = vld [vmem:[%s7139_s22 + $0x220] ss:$44 sps:$4 sm:$0xff]  }
  0xff   : > { %2693 = vmatprep.mubr.bf16.mxu0 %v6280_v30  ;;  %2822 = vmatprep.mubr.bf16.mxu1 %v6282_v33  ;;  %v6362_v30 = vld [vmem:[%s7139_s22 + $0x534] ss:$44 sps:$4 sm:$0xff]   ;;  %v6367_v33 = vld [vmem:[%s7139_s22 + $0x278] ss:$44 sps:$4 sm:$0xff]  }
 0x106   : > { %2694 = vmatmul.mubr.bf16.gmra.mrb[36].mxu0 %v6284_v34  ;;  %2823 = vmatmul.mubr.bf16.gmra.mrb[36].mxu1 %v6285_v35  ;;  %v6368_v34 = vld [vmem:[%s7139_s22 + $0x2d4] ss:$44 sps:$4 sm:$0xff]   ;;  %v6372_v35 = vld [vmem:[%s7139_s22 + $0x1c] ss:$44 sps:$4 sm:$0xff]  }
 0x107   : > { %2701 = vmatprep.mubr.bf16.mxu0 %v6288_v36  ;;  %2830 = vmatprep.mubr.bf16.mxu1 %v6290_v37  ;;  %v6370_v36 = vld [vmem:[%s7139_s22 + $0x18] ss:$44 sps:$4 sm:$0xff]   ;;  %v6373_v37 = vld [vmem:[%s7139_s22 + $0x2d0] ss:$44 sps:$4 sm:$0xff]  }
 0x10e   : > { %2702 = vmatmul.mubr.bf16.gmra.mrb[40].mxu0 %v6292_v40  ;;  %2831 = vmatmul.mubr.bf16.gmra.mrb[40].mxu1 %v6293_v41  ;;  %v6391_v40 = vld [vmem:[%s7133_s18 + $0x288] sm:$0xff]   ;;  %v6406_v41 = vld [vmem:[%s7133_s18 + $0x290] sm:$0xff]  }
 0x10f   : > { %2709 = vmatprep.mubr.bf16.mxu0 %v6298_v42  ;;  %2838 = vmatprep.mubr.bf16.mxu1 %v6300_v43  ;;  %v6381_v42 = vld [vmem:[%s7139_s22 + $0x328] ss:$44 sps:$4 sm:$0xff]   ;;  %v6382_v43 = vld [vmem:[%s7139_s22 + $0x70] ss:$44 sps:$4 sm:$0xff]  }
 0x116   : > { %2710 = vmatmul.mubr.bf16.gmra.mrb[44].mxu0 %v6302_v46  ;;  %2839 = vmatmul.mubr.bf16.gmra.mrb[44].mxu1 %v6303_v47  ;;  %v6421_v46 = vld [vmem:[%s7133_s18 + $0x298] sm:$0xff]   ;;  %v6434_v47 = vld [vmem:[%s7133_s18 + $0x2a0] sm:$0xff]  }
 0x117   : > { %2846 = vmatprep.mubr.bf16.mxu1 %v6304_v48  ;;  %2943 = vmatprep.mubr.bf16.mxu0 %v6308_v49  ;;  %v6387_v48 = vld [vmem:[%s7139_s22 + $0x380] ss:$44 sps:$4 sm:$0xff]   ;;  %v6388_v49 = vld [vmem:[%s7139_s22 + $0xc8] ss:$44 sps:$4 sm:$0xff]  }
 0x11e   : > { %2847 = vmatmul.mubr.bf16.gmra.mrb[48].mxu1 %v6309_v53  ;;  %2944 = vmatmul.mubr.bf16.vlgmr.msra.gmra.mrb[48].mxu0 %v6306_v52  ;;  %v6447_v52 = vld [vmem:[%s7133_s18 + $0x2a8] sm:$0xff]   ;;  %v6460_v53 = vld [vmem:[%s7133_s18 + $0x2b0] sm:$0xff]  }
 0x11f   : > { %5872 = vmatpush3.bf16.msra.mxu0 %v6311_v54  ;;  %2854 = vmatprep.mubr.bf16.mxu1 %v6314_v55  ;;  %v6396_v54 = vld [vmem:[%s7139_s22 + $0x3d8] ss:$44 sps:$4 sm:$0xff]   ;;  %v6397_v55 = vld [vmem:[%s7139_s22 + $0x120] ss:$44 sps:$4 sm:$0xff]  }
 0x120   : > { %2951 = vmatprep.mubr.bf16.mxu0 %v6316_v56  ;;  %5873 = vmatprep.subr.bf16.mxu0 %v6326_v57  ;;  %v6398_v56 = vld [vmem:[%s7139_s22 + $0x434] ss:$44 sps:$4 sm:$0xff]   ;;  %v6400_v57 = vld [vmem:[%s7139_s22 + $0x17c] ss:$44 sps:$4 sm:$0xff]  }
 0x123   : > { %5874 = vmatpush3.bf16.msra.mxu0 %v6327_v59  ;;  %v6402_v59 = vld [vmem:[%s7139_s22 + $0x430] ss:$44 sps:$4 sm:$0xff]  }
 0x124   : > { %5875 = vmatprep.subr.bf16.mxu0 %v6342_v60  ;;  %v6403_v60 = vld [vmem:[%s7139_s22 + $0x178] ss:$44 sps:$4 sm:$0xff]  }
 0x126   : > { %2855 = vmatmul.mubr.bf16.gmra.mrb[52].mxu1 %v6318_v61  ;;  %2952 = vmatmul.mubr.bf16.gmra.mrb[52].mxu0 %v6319_v62  ;;  %v6407_v61 = vld [vmem:[%s7139_s22 + $0x48c] ss:$44 sps:$4 sm:$0xff]   ;;  %v6409_v62 = vld [vmem:[%s7139_s22 + $0x1d4] ss:$44 sps:$4 sm:$0xff]  }
 0x127   : > { %2862 = vmatprep.mubr.bf16.mxu1 %v6320_v63  ;;  %2959 = vmatprep.mubr.bf16.mxu0 %v6322_v0  ;;  %v6411_v63 = vld [vmem:[%s7139_s22 + $0x488] ss:$44 sps:$4 sm:$0xff]   ;;  %v6412_v0 = vld [vmem:[%s7139_s22 + $0x1d0] ss:$44 sps:$4 sm:$0xff]  }
 0x128   : > { %5876 = vmatpush3.bf16.msra.mxu0 %v6343_v1  ;;  %v6413_v1 = vld [vmem:[%s7139_s22 + $0x4e4] ss:$44 sps:$4 sm:$0xff]  }
 0x129   : > { %5877 = vmatprep.subr.bf16.mxu0 %v6358_v2  ;;  %v6415_v2 = vld [vmem:[%s7139_s22 + $0x22c] ss:$44 sps:$4 sm:$0xff]  }
 0x12c   : > { %5878 = vmatpush3.bf16.msra.mxu0 %v6359_v3  ;;  %v6417_v3 = vld [vmem:[%s7139_s22 + $0x4e0] ss:$44 sps:$4 sm:$0xff]  }
 0x12d   : > { %5879 = vmatprep.subr.bf16.mxu0 %v6374_v6  ;;  %v6424_v6 = vld [vmem:[%s7139_s22 + $0x284] ss:$44 sps:$4 sm:$0xff]  }
 0x12e   : > { %2863 = vmatmul.mubr.bf16.gmra.mrb[56].mxu1 %v6324_v4  ;;  %2960 = vmatmul.mubr.bf16.gmra.mrb[56].mxu0 %v6325_v5  ;;  %v6418_v4 = vld [vmem:[%s7139_s22 + $0x228] ss:$44 sps:$4 sm:$0xff]  }
 0x12f   : > { %2870 = vmatprep.mubr.bf16.mxu1 %v6330_v7  ;;  %2967 = vmatprep.mubr.bf16.mxu0 %v6332_v8  ;;  %v6422_v5 = vld [vmem:[%s7139_s22 + $0x53c] ss:$44 sps:$4 sm:$0xff]  }
 0x130   : > { %5880 = vmatpush3.bf16.msra.mxu0 %v6375_v9 }
 0x131   : > { %5881 = vmatprep.subr.bf16.mxu0 %v6389_v10 }
 0x134   : > { %5882 = vmatpush3.bf16.msra.mxu0 %v6390_v12  ;;  %v6427_v12 = vld [vmem:[%s7139_s22 + $0x280] ss:$44 sps:$4 sm:$0xff]  }
 0x135   : > { %5883 = vmatprep.subr.bf16.mxu0 %v6404_v14 }
 0x136   : > { %2871 = vmatmul.mubr.bf16.gmra.mrb[60].mxu1 %v6334_v11  ;;  %2968 = vmatmul.mubr.bf16.gmra.mrb[60].mxu0 %v6335_v13  ;;  %v6426_v11 = vld [vmem:[%s7139_s22 + $0x538] ss:$44 sps:$4 sm:$0xff]  }
 0x137   : > { %2878 = vmatprep.mubr.bf16.mxu1 %v6336_v15  ;;  %2975 = vmatprep.mubr.bf16.mxu0 %v6338_v16 }
 0x138   : > { %5884 = vmatpush3.bf16.msra.mxu0 %v6405_v17  ;;  %v6428_v17 = vld [vmem:[%s7139_s22 + $0x2dc] ss:$44 sps:$4 sm:$0xff]  }
 0x139   : > { %5885 = vmatprep.subr.bf16.mxu0 %v6419_v18  ;;  %v6432_v18 = vld [vmem:[%s7139_s22 + $0x24] ss:$44 sps:$4 sm:$0xff]  }
 0x13c   : > { %5886 = vmatpush3.bf16.msra.mxu0 %v6420_v19 }
 0x13e   : > { %2879 = vmatmul.mubr.bf16.gmra.mrb[64].mxu1 %v6340_v20  ;;  %2976 = vmatmul.mubr.bf16.gmra.mrb[64].mxu0 %v6341_v21 }
 0x13f   : > { %2886 = vmatprep.mubr.bf16.mxu1 %v6346_v22  ;;  %2983 = vmatprep.mubr.bf16.mxu0 %v6348_v23 }
 0x146   : > { %2887 = vmatmul.mubr.bf16.gmra.mrb[68].mxu1 %v6350_v24  ;;  %2984 = vmatmul.mubr.bf16.gmra.mrb[68].mxu0 %v6351_v25 }
 0x147   : > { %2894 = vmatprep.mubr.bf16.mxu1 %v6352_v26  ;;  %2991 = vmatprep.mubr.bf16.mxu0 %v6354_v27  ;;  %v6430_v27 = vld [vmem:[%s7139_s22 + $0x20] ss:$44 sps:$4 sm:$0xff]  }
 0x14e   : > { %2895 = vmatmul.mubr.bf16.gmra.mrb[72].mxu1 %v6356_v28  ;;  %2992 = vmatmul.mubr.bf16.gmra.mrb[72].mxu0 %v6357_v29  ;;  %v6433_v28 = vld [vmem:[%s7139_s22 + $0x2d8] ss:$44 sps:$4 sm:$0xff]  }
 0x14f   : > { %2902 = vmatprep.mubr.bf16.mxu1 %v6362_v30  ;;  %2999 = vmatprep.mubr.bf16.mxu0 %v6364_v31 }
 0x156   : > { %2903 = vmatmul.mubr.bf16.gmra.mrb[76].mxu1 %v6366_v32  ;;  %3000 = vmatmul.mubr.bf16.gmra.mrb[76].mxu0 %v6367_v33  ;;  %v6435_v33 = vld [vmem:[%s7139_s22 + $0x334] ss:$44 sps:$4 sm:$0xff]  }
 0x157   : > { %3007 = vmatprep.mubr.bf16.mxu0 %v6368_v34  ;;  %3104 = vmatprep.mubr.bf16.mxu1 %v6372_v35  ;;  %v6437_v34 = vld [vmem:[%s7139_s22 + $0x7c] ss:$44 sps:$4 sm:$0xff]  }
 0x15e   : > { %3008 = vmatmul.mubr.bf16.gmra.mrb[80].mxu0 %v6373_v37  ;;  %3105 = vmatmul.mubr.bf16.vlgmr.msra.gmra.mrb[80].mxu1 %v6370_v36 }
 0x15f   : > { %6052 = vmatpush3.bf16.msra.mxu1 %v7296_v58  ;;  %3015 = vmatprep.mubr.bf16.mxu0 %v6377_v38  ;;  %v6473_v58 = vld [vmem:[%s7133_s18 + $0x2b8] sm:$0xff]  }
 0x160   : > { %3112 = vmatprep.mubr.bf16.mxu1 %v6379_v39  ;;  %6053 = vmatprep.subr.bf16.mxu1 %v6391_v40 }
 0x163   : > { %6054 = vmatpush3.bf16.msra.mxu1 %v6391_v40 }
 0x164   : > { %6055 = vmatprep.subr.bf16.mxu1 %v6406_v41 }
 0x166   : > { %3016 = vmatmul.mubr.bf16.gmra.mrb[84].mxu0 %v6381_v42  ;;  %3113 = vmatmul.mubr.bf16.gmra.mrb[84].mxu1 %v6382_v43  ;;  %v6439_v43 = vld [vmem:[%s7139_s22 + $0x330] ss:$44 sps:$4 sm:$0xff]  }
 0x167   : > { %3023 = vmatprep.mubr.bf16.mxu0 %v6383_v44  ;;  %3120 = vmatprep.mubr.bf16.mxu1 %v6385_v45  ;;  %v6440_v44 = vld [vmem:[%s7139_s22 + $0x78] ss:$44 sps:$4 sm:$0xff]  }
 0x168   : > { %6056 = vmatpush3.bf16.msra.mxu1 %v6406_v41 }
 0x169   : > { %6057 = vmatprep.subr.bf16.mxu1 %v6421_v46 }
 0x16c   : > { %6058 = vmatpush3.bf16.msra.mxu1 %v6421_v46 }
 0x16d   : > { %6059 = vmatprep.subr.bf16.mxu1 %v6434_v47 }
 0x16e   : > { %3024 = vmatmul.mubr.bf16.gmra.mrb[88].mxu0 %v6387_v48  ;;  %3121 = vmatmul.mubr.bf16.gmra.mrb[88].mxu1 %v6388_v49  ;;  %v6441_v49 = vld [vmem:[%s7139_s22 + $0x38c] ss:$44 sps:$4 sm:$0xff]  }
 0x16f   : > { %3031 = vmatprep.mubr.bf16.mxu0 %v6392_v50  ;;  %3128 = vmatprep.mubr.bf16.mxu1 %v6394_v51  ;;  %v6443_v50 = vld [vmem:[%s7139_s22 + $0xd4] ss:$44 sps:$4 sm:$0xff]  }
 0x170   : > { %6060 = vmatpush3.bf16.msra.mxu1 %v6434_v47 }
 0x171   : > { %6061 = vmatprep.subr.bf16.mxu1 %v6447_v52 }
 0x174   : > { %6062 = vmatpush3.bf16.msra.mxu1 %v6447_v52 }
 0x175   : > { %6063 = vmatprep.subr.bf16.mxu1 %v6460_v53 }
 0x176   : > { %3032 = vmatmul.mubr.bf16.gmra.mrb[92].mxu0 %v6396_v54  ;;  %3129 = vmatmul.mubr.bf16.gmra.mrb[92].mxu1 %v6397_v55 }
 0x177   : > { %3039 = vmatprep.mubr.bf16.mxu0 %v6398_v56  ;;  %3136 = vmatprep.mubr.bf16.mxu1 %v6400_v57 }
 0x178   : > { %6064 = vmatpush3.bf16.msra.mxu1 %v6460_v53 }
 0x179   : > { %6065 = vmatprep.subr.bf16.mxu1 %v6473_v58 }
 0x17c   : > { %6066 = vmatpush3.bf16.msra.mxu1 %v6473_v58 }
 0x17e   : > { %3040 = vmatmul.mubr.bf16.gmra.mrb[96].mxu0 %v6402_v59  ;;  %3137 = vmatmul.mubr.bf16.gmra.mrb[96].mxu1 %v6403_v60  ;;  %v6445_v59 = vld [vmem:[%s7139_s22 + $0x388] ss:$44 sps:$4 sm:$0xff]   ;;  %v6446_v60 = vld [vmem:[%s7139_s22 + $0xd0] ss:$44 sps:$4 sm:$0xff]  }
 0x17f   : > { %3047 = vmatprep.mubr.bf16.mxu0 %v6407_v61  ;;  %3144 = vmatprep.mubr.bf16.mxu1 %v6409_v62 }
 0x186   : > { %3048 = vmatmul.mubr.bf16.gmra.mrb[100].mxu0 %v6411_v63  ;;  %3145 = vmatmul.mubr.bf16.gmra.mrb[100].mxu1 %v6412_v0 }
 0x187   : > { %3055 = vmatprep.mubr.bf16.mxu0 %v6413_v1  ;;  %3152 = vmatprep.mubr.bf16.mxu1 %v6415_v2  ;;  %v6448_v1 = vld [vmem:[%s7139_s22 + $0x3e4] ss:$44 sps:$4 sm:$0xff]   ;;  %v6450_v2 = vld [vmem:[%s7139_s22 + $0x12c] ss:$44 sps:$4 sm:$0xff]  }
 0x18e   : > { %3056 = vmatmul.mubr.bf16.gmra.mrb[104].mxu0 %v6417_v3  ;;  %3153 = vmatmul.mubr.bf16.gmra.mrb[104].mxu1 %v6418_v4 }
 0x18f   : > { %3063 = vmatprep.mubr.bf16.mxu0 %v6422_v5  ;;  %3160 = vmatprep.mubr.bf16.mxu1 %v6424_v6 }
 0x191   : > { %v5439_v7 = vpop.f32.mrb[0].mxu0  ;;  %v5511_v8 = vpop.f32.mrb[0].mxu1 }
 0x192   : > { %v5440_v9 = vpop.f32.mrb[1].mxu0  ;;  %v5512_v10 = vpop.f32.mrb[1].mxu1 }
 0x193   : > { %v7378_v13 = vadd.f32 %v5440_v9, %v5439_v7  ;;  %v5442_v14 = vpop.f32.mrb[2].mxu0  ;;  %v7380_v15 = vadd.f32 %v5512_v10, %v5511_v8  ;;  %v5514_v16 = vpop.f32.mrb[2].mxu1 }
 0x194   : > { %v5443_v19 = vpop.f32.mrb[3].mxu0  ;;  %v5515_v20 = vpop.f32.mrb[3].mxu1 }
 0x195   : > { %v7384_v21 = vadd.f32 %v5443_v19, %v5442_v14  ;;  %v7386_v22 = vadd.f32 %v5515_v20, %v5514_v16  ;;  %v6454_v19 = vld [vmem:[%s7139_s22 + $0x43c] ss:$44 sps:$4 sm:$0xff]   ;;  %v6456_v20 = vld [vmem:[%s7139_s22 + $0x184] ss:$44 sps:$4 sm:$0xff]  }
 0x196   : > { %3064 = vmatmul.mubr.bf16.gmra.mrb[108].mxu0 %v6426_v11  ;;  %3161 = vmatmul.mubr.bf16.gmra.mrb[108].mxu1 %v6427_v12  ;;  %v6452_v11 = vld [vmem:[%s7139_s22 + $0x3e0] ss:$44 sps:$4 sm:$0xff]   ;;  %v6453_v12 = vld [vmem:[%s7139_s22 + $0x128] ss:$44 sps:$4 sm:$0xff]  }
 0x197   : > { %3168 = vmatprep.mubr.bf16.mxu1 %v6428_v17  ;;  %3265 = vmatprep.mubr.bf16.mxu0 %v6432_v18 }
 0x199   : > { %v5445_v23 = vpop.f32.mrb[4].mxu0  ;;  %v5517_v24 = vpop.f32.mrb[4].mxu1 }
 0x19a   : > { %v5446_v25 = vpop.f32.mrb[5].mxu0  ;;  %v5518_v26 = vpop.f32.mrb[5].mxu1 }
 0x19b   : > { %v7390_v29 = vadd.f32 %v5446_v25, %v5445_v23  ;;  %v5448_v30 = vpop.f32.mrb[6].mxu0  ;;  %v7392_v31 = vadd.f32 %v5518_v26, %v5517_v24  ;;  %v5520_v32 = vpop.f32.mrb[6].mxu1 }
 0x19c   : > { %v5449_v35 = vpop.f32.mrb[7].mxu0  ;;  %v5521_v36 = vpop.f32.mrb[7].mxu1 }
 0x19d   : > { %v7396_v37 = vadd.f32 %v5449_v35, %v5448_v30  ;;  %v7398_v38 = vadd.f32 %v5521_v36, %v5520_v32  ;;  %v6458_v35 = vld [vmem:[%s7139_s22 + $0x438] ss:$44 sps:$4 sm:$0xff]   ;;  %v6459_v36 = vld [vmem:[%s7139_s22 + $0x180] ss:$44 sps:$4 sm:$0xff]  }
 0x19e   : > { %3169 = vmatmul.mubr.bf16.gmra.mrb[112].mxu1 %v6433_v28  ;;  %3266 = vmatmul.mubr.bf16.vlgmr.msra.gmra.mrb[112].mxu0 %v6430_v27 }
 0x19f   : > { %3176 = vmatprep.mubr.bf16.mxu1 %v6435_v33  ;;  %3273 = vmatprep.mubr.bf16.mxu0 %v6437_v34 }
 0x1a1   : > { %v5451_v39 = vpop.f32.mrb[8].mxu0  ;;  %v5523_v40 = vpop.f32.mrb[8].mxu1 }
 0x1a2   : > { %v5452_v41 = vpop.f32.mrb[9].mxu0  ;;  %v5524_v42 = vpop.f32.mrb[9].mxu1 }
 0x1a3   : > { %v7402_v45 = vadd.f32 %v5452_v41, %v5451_v39  ;;  %v5454_v46 = vpop.f32.mrb[10].mxu0  ;;  %v7404_v47 = vadd.f32 %v5524_v42, %v5523_v40  ;;  %v5526_v48 = vpop.f32.mrb[10].mxu1  ;;  %v6461_v42 = vld [vmem:[%s7139_s22 + $0x494] ss:$44 sps:$4 sm:$0xff]  }
 0x1a4   : > { %v5455_v51 = vpop.f32.mrb[11].mxu0  ;;  %v5527_v52 = vpop.f32.mrb[11].mxu1 }
 0x1a5   : > { %v7408_v53 = vadd.f32 %v5455_v51, %v5454_v46  ;;  %v7410_v54 = vadd.f32 %v5527_v52, %v5526_v48 }
 0x1a6   : > { %3177 = vmatmul.mubr.bf16.gmra.mrb[116].mxu1 %v6439_v43  ;;  %3274 = vmatmul.mubr.bf16.gmra.mrb[116].mxu0 %v6440_v44  ;;  %v6463_v43 = vld [vmem:[%s7139_s22 + $0x1dc] ss:$44 sps:$4 sm:$0xff]  }
 0x1a7   : > { %3184 = vmatprep.mubr.bf16.mxu1 %v6441_v49  ;;  %3281 = vmatprep.mubr.bf16.mxu0 %v6443_v50 }
 0x1a9   : > { %v5457_v55 = vpop.f32.mrb[12].mxu0  ;;  %v5529_v56 = vpop.f32.mrb[12].mxu1 }
 0x1aa   : > { %v5458_v57 = vpop.f32.mrb[13].mxu0  ;;  %v5530_v58 = vpop.f32.mrb[13].mxu1 }
 0x1ab   : > { %v7414_v61 = vadd.f32 %v5458_v57, %v5457_v55  ;;  %v5460_v62 = vpop.f32.mrb[14].mxu0  ;;  %v7416_v63 = vadd.f32 %v5530_v58, %v5529_v56  ;;  %v5532_v0 = vpop.f32.mrb[14].mxu1  ;;  %v6465_v57 = vld [vmem:[%s7139_s22 + $0x490] ss:$44 sps:$4 sm:$0xff]   ;;  %v6466_v58 = vld [vmem:[%s7139_s22 + $0x1d8] ss:$44 sps:$4 sm:$0xff]  }
 0x1ac   : > { %v5461_v3 = vpop.f32.mrb[15].mxu0  ;;  %v5533_v4 = vpop.f32.mrb[15].mxu1 }
 0x1ad   : > { %v7420_v5 = vadd.f32 %v5461_v3, %v5460_v62  ;;  %v7422_v6 = vadd.f32 %v5533_v4, %v5532_v0  ;;  %v6467_v0 = vld [vmem:[%s7139_s22 + $0x4ec] ss:$44 sps:$4 sm:$0xff]  }
 0x1ae   : > { %3185 = vmatmul.mubr.bf16.gmra.mrb[120].mxu1 %v6445_v59  ;;  %3282 = vmatmul.mubr.bf16.gmra.mrb[120].mxu0 %v6446_v60 }
 0x1af   : > { %3192 = vmatprep.mubr.bf16.mxu1 %v6448_v1  ;;  %3289 = vmatprep.mubr.bf16.mxu0 %v6450_v2  ;;  %v6469_v1 = vld [vmem:[%s7139_s22 + $0x234] ss:$44 sps:$4 sm:$0xff]  }
 0x1b1   : > { %v5463_v7 = vpop.f32.mrb[16].mxu0  ;;  %v5551_v8 = vpop.f32.mrb[16].mxu1 }
 0x1b2   : > { %v5464_v9 = vpop.f32.mrb[17].mxu0  ;;  %v5552_v10 = vpop.f32.mrb[17].mxu1 }
 0x1b3   : > { %v7426_v14 = vadd.f32 %v5464_v9, %v5463_v7  ;;  %v5553_v16 = vadd.f32 %v5552_v10, %v5551_v8  ;;  %v5466_v17 = vpop.f32.mrb[18].mxu0  ;;  %v5554_v18 = vpop.f32.mrb[18].mxu1 }
 0x1b4   : > { %v5467_v23 = vpop.f32.mrb[19].mxu0  ;;  %v5555_v24 = vpop.f32.mrb[19].mxu1 }
 0x1b5   : > { %v7431_v25 = vadd.f32 %v5553_v16, %v7378_v13  ;;  %v7433_v26 = vadd.f32 %v5467_v23, %v5466_v17  ;;  %v5556_v27 = vadd.f32 %v5555_v24, %v5554_v18  ;;  %v6471_v16 = vld [vmem:[%s7139_s22 + $0x4e8] ss:$44 sps:$4 sm:$0xff]   ;;  %v6472_v17 = vld [vmem:[%s7139_s22 + $0x230] ss:$44 sps:$4 sm:$0xff]   ;;  %v6476_v24 = vld [vmem:[%s7139_s22 + $0x28c] ss:$44 sps:$4 sm:$0xff]  }
 0x1b6   : > { %3193 = vmatmul.mubr.bf16.gmra.mrb[124].mxu1 %v6452_v11  ;;  %3290 = vmatmul.mubr.bf16.gmra.mrb[124].mxu0 %v6453_v12  ;;  %v6474_v23 = vld [vmem:[%s7139_s22 + $0x544] ss:$44 sps:$4 sm:$0xff]  }
 0x1b7   : > { %v7436_v28 = vadd.f32 %v5556_v27, %v7384_v21  ;;  %3200 = vmatprep.mubr.bf16.mxu1 %v6454_v19  ;;  %3297 = vmatprep.mubr.bf16.mxu0 %v6456_v20 }
 0x1b9   : > { %v5469_v30 = vpop.f32.mrb[20].mxu0  ;;  %v5557_v32 = vpop.f32.mrb[20].mxu1 }
 0x1ba   : > { %v5470_v33 = vpop.f32.mrb[21].mxu0  ;;  %v5558_v34 = vpop.f32.mrb[21].mxu1 }
 0x1bb   : > { %v7440_v13 = vadd.f32 %v5470_v33, %v5469_v30  ;;  %v5559_v39 = vadd.f32 %v5558_v34, %v5557_v32  ;;  %v5472_v40 = vpop.f32.mrb[22].mxu0  ;;  %v5560_v41 = vpop.f32.mrb[22].mxu1 }
 0x1bc   : > { %v5473_v44 = vpop.f32.mrb[23].mxu0  ;;  %v5561_v21 = vpop.f32.mrb[23].mxu1 }
 0x1bd   : > { %v7445_v46 = vadd.f32 %v5559_v39, %v7390_v29  ;;  %v7447_v48 = vadd.f32 %v5473_v44, %v5472_v40  ;;  %v5562_v49 = vadd.f32 %v5561_v21, %v5560_v41  ;;  %v6478_v41 = vld [vmem:[%s7139_s22 + $0x540] ss:$44 sps:$4 sm:$0xff]  }
 0x1be   : > { %3201 = vmatmul.mubr.bf16.gmra.mrb[128].mxu1 %v6458_v35  ;;  %3298 = vmatmul.mubr.bf16.gmra.mrb[128].mxu0 %v6459_v36 }
 0x1bf   : > { %v7450_v50 = vadd.f32 %v5562_v49, %v7396_v37  ;;  %3208 = vmatprep.mubr.bf16.mxu1 %v6461_v42  ;;  %3305 = vmatprep.mubr.bf16.mxu0 %v6463_v43  ;;  %v6479_v42 = vld [vmem:[%s7139_s22 + $0x288] ss:$44 sps:$4 sm:$0xff]   ;;  %v6480_v49 = vld [vmem:[%s7139_s22 + $0x2e4] ss:$44 sps:$4 sm:$0xff]  }
 0x1c1   : > { %v5475_v51 = vpop.f32.mrb[24].mxu0  ;;  %v5563_v52 = vpop.f32.mrb[24].mxu1 }
 0x1c2   : > { %v5476_v55 = vpop.f32.mrb[25].mxu0  ;;  %v5564_v56 = vpop.f32.mrb[25].mxu1 }
 0x1c3   : > { %v7454_v29 = vadd.f32 %v5476_v55, %v5475_v51  ;;  %v5565_v59 = vadd.f32 %v5564_v56, %v5563_v52  ;;  %v5478_v60 = vpop.f32.mrb[26].mxu0  ;;  %v5566_v62 = vpop.f32.mrb[26].mxu1  ;;  %v6482_v51 = vld [vmem:[%s7139_s22 + $0x28] ss:$44 sps:$4 sm:$0xff]  }
 0x1c4   : > { %v5479_v2 = vpop.f32.mrb[27].mxu0  ;;  %v5567_v37 = vpop.f32.mrb[27].mxu1 }
 0x1c5   : > { %v7459_v3 = vadd.f32 %v5565_v59, %v7402_v45  ;;  %v7461_v4 = vadd.f32 %v5479_v2, %v5478_v60  ;;  %v5568_v7 = vadd.f32 %v5567_v37, %v5566_v62  ;;  %v6484_v2 = vld [vmem:[%s7139_s22 + $0x80] ss:$44 sps:$4 sm:$0xff]  }
 0x1c6   : > { %3209 = vmatmul.mubr.bf16.gmra.mrb[132].mxu1 %v6465_v57  ;;  %3306 = vmatmul.mubr.bf16.gmra.mrb[132].mxu0 %v6466_v58 }
 0x1c7   : > { %v7464_v8 = vadd.f32 %v5568_v7, %v7408_v53  ;;  %3216 = vmatprep.mubr.bf16.mxu1 %v6467_v0  ;;  %3313 = vmatprep.mubr.bf16.mxu0 %v6469_v1  ;;  %v6483_v1 = vld [vmem:[%s7139_s22 + $0x2e0] ss:$44 sps:$4 sm:$0xff]  }
 0x1c9   : > { %v5481_v9 = vpop.f32.mrb[28].mxu0  ;;  %v5569_v10 = vpop.f32.mrb[28].mxu1 }
 0x1ca   : > { %v5482_v11 = vpop.f32.mrb[29].mxu0  ;;  %v5570_v12 = vpop.f32.mrb[29].mxu1 }
 0x1cb   : > { %v7468_v45 = vadd.f32 %v5482_v11, %v5481_v9  ;;  %v5571_v18 = vadd.f32 %v5570_v12, %v5569_v10  ;;  %v5484_v19 = vpop.f32.mrb[30].mxu0  ;;  %v5572_v20 = vpop.f32.mrb[30].mxu1  ;;  %v6485_v10 = vld [vmem:[%s7139_s22 + $0x33c] ss:$44 sps:$4 sm:$0xff]   ;;  %v6487_v11 = vld [vmem:[%s7139_s22 + $0xd8] ss:$44 sps:$4 sm:$0xff]  }
 0x1cc   : > { %v5485_v27 = vpop.f32.mrb[31].mxu0  ;;  %v5573_v53 = vpop.f32.mrb[31].mxu1 }
 0x1cd   : > { %v7473_v30 = vadd.f32 %v5571_v18, %v7414_v61  ;;  %v7475_v32 = vadd.f32 %v5485_v27, %v5484_v19  ;;  %v5574_v33 = vadd.f32 %v5573_v53, %v5572_v20  ;;  %v6488_v53 = vld [vmem:[%s7139_s22 + $0x338] ss:$44 sps:$4 sm:$0xff]  }
 0x1ce   : > { %3217 = vmatmul.mubr.bf16.gmra.mrb[136].mxu1 %v6471_v16  ;;  %3314 = vmatmul.mubr.bf16.gmra.mrb[136].mxu0 %v6472_v17 }
 0x1cf   : > { %v7478_v34 = vadd.f32 %v5574_v33, %v7420_v5  ;;  %3224 = vmatprep.mubr.bf16.mxu1 %v6474_v23  ;;  %3321 = vmatprep.mubr.bf16.mxu0 %v6476_v24  ;;  %v6489_v33 = vld [vmem:[%s7139_s22 + $0x130] ss:$44 sps:$4 sm:$0xff]  }
 0x1d1   : > { %v5487_v35 = vpop.f32.mrb[32].mxu0  ;;  %v5575_v36 = vpop.f32.mrb[32].mxu1 }
 0x1d2   : > { %v5488_v39 = vpop.f32.mrb[33].mxu0  ;;  %v5576_v40 = vpop.f32.mrb[33].mxu1 }
 0x1d3   : > { %v7482_v61 = vadd.f32 %v5488_v39, %v5487_v35  ;;  %v5577_v43 = vadd.f32 %v5576_v40, %v5575_v36  ;;  %v5490_v44 = vpop.f32.mrb[34].mxu0  ;;  %v5578_v21 = vpop.f32.mrb[34].mxu1  ;;  %v6490_v40 = vld [vmem:[%s7139_s22 + $0x394] ss:$44 sps:$4 sm:$0xff]  }
 0x1d4   : > { %v5491_v52 = vpop.f32.mrb[35].mxu0  ;;  %v5579_v5 = vpop.f32.mrb[35].mxu1 }
 0x1d5   : > { %v7487_v55 = vadd.f32 %v5577_v43, %v7426_v14  ;;  %v7489_v56 = vadd.f32 %v5491_v52, %v5490_v44  ;;  %v5580_v57 = vadd.f32 %v5579_v5, %v5578_v21 }
 0x1d6   : > { %3225 = vmatmul.mubr.bf16.gmra.mrb[140].mxu1 %v6478_v41  ;;  %3322 = vmatmul.mubr.bf16.gmra.mrb[140].mxu0 %v6479_v42  ;;  %v6492_v41 = vld [vmem:[%s7139_s22 + $0x188] ss:$44 sps:$4 sm:$0xff]  }
 0x1d7   : > { %v7492_v58 = vadd.f32 %v5580_v57, %v7433_v26  ;;  %3329 = vmatprep.mubr.bf16.mxu0 %v6480_v49  ;;  %6067 = vmatprep.mubr.bf16.mxu1 %v6482_v51 }
 0x1d9   : > { %v5493_v59 = vpop.f32.mrb[36].mxu0  ;;  %v5581_v60 = vpop.f32.mrb[36].mxu1 }
 0x1da   : > { %v5494_v62 = vpop.f32.mrb[37].mxu0  ;;  %v5582_v0 = vpop.f32.mrb[37].mxu1 }
 0x1db   : > { %v7496_v14 = vadd.f32 %v5494_v62, %v5493_v59  ;;  %v5583_v37 = vadd.f32 %v5582_v0, %v5581_v60  ;;  %v5496_v7 = vpop.f32.mrb[38].mxu0  ;;  %v5584_v9 = vpop.f32.mrb[38].mxu1  ;;  %v6493_v59 = vld [vmem:[%s7139_s22 + $0x390] ss:$44 sps:$4 sm:$0xff]   ;;  %v6494_v60 = vld [vmem:[%s7139_s22 + $0x1e0] ss:$44 sps:$4 sm:$0xff]  }
 0x1dc   : > { %v5497_v12 = vpop.f32.mrb[39].mxu0  ;;  %v5585_v26 = vpop.f32.mrb[39].mxu1 }
 0x1dd   : > { %v7501_v16 = vadd.f32 %v5583_v37, %v7440_v13  ;;  %v7503_v17 = vadd.f32 %v5497_v12, %v5496_v7  ;;  %v5586_v18 = vadd.f32 %v5585_v26, %v5584_v9  ;;  %v6497_v37 = vld [vmem:[%s7139_s22 + $0x238] ss:$44 sps:$4 sm:$0xff]  }
 0x1de   : > { %3330 = vmatmul.mubr.bf16.gmra.mrb[144].mxu0 %v6483_v1  ;;  %6068 = vmatmul.mubr.bf16.vlgmr.msra.gmra.mrb[144].mxu1 %v6484_v2  ;;  %v6495_v2 = vld [vmem:[%s7139_s22 + $0x3ec] ss:$44 sps:$4 sm:$0xff]  }
 0x1df   : > { %v7506_v19 = vadd.f32 %v5586_v18, %v7447_v48  ;;  %3337 = vmatprep.mubr.bf16.mxu0 %v6485_v10  ;;  %6071 = vmatprep.mubr.bf16.mxu1 %v6487_v11 }
 0x1e1   : > { %v5499_v20 = vpop.f32.mrb[40].mxu0  ;;  %v5587_v23 = vpop.f32.mrb[40].mxu1 }
 0x1e2   : > { %v5500_v24 = vpop.f32.mrb[41].mxu0  ;;  %v5588_v27 = vpop.f32.mrb[41].mxu1 }
 0x1e3   : > { %v7510_v13 = vadd.f32 %v5500_v24, %v5499_v20  ;;  %v5589_v35 = vadd.f32 %v5588_v27, %v5587_v23  ;;  %v5502_v36 = vpop.f32.mrb[42].mxu0  ;;  %v5590_v39 = vpop.f32.mrb[42].mxu1  ;;  %v6498_v24 = vld [vmem:[%s7139_s22 + $0x3e8] ss:$44 sps:$4 sm:$0xff]   ;;  %v6499_v27 = vld [vmem:[%s7139_s22 + $0x290] ss:$44 sps:$4 sm:$0xff]  }
 0x1e4   : > { %v5503_v42 = vpop.f32.mrb[43].mxu0  ;;  %v5591_v48 = vpop.f32.mrb[43].mxu1 }
 0x1e5   : > { %v7515_v43 = vadd.f32 %v5589_v35, %v7454_v29  ;;  %v7517_v44 = vadd.f32 %v5503_v42, %v5502_v36  ;;  %v5592_v21 = vadd.f32 %v5591_v48, %v5590_v39  ;;  %v6500_v36 = vld [vmem:[%s7139_s22 + $0x444] ss:$44 sps:$4 sm:$0xff]   ;;  %v6502_v39 = vld [vmem:[%s7139_s22 + $0x2e8] ss:$44 sps:$4 sm:$0xff]  }
 0x1e6   : > { %3338 = vmatmul.mubr.bf16.gmra.mrb[148].mxu0 %v6488_v53  ;;  %6072 = vmatmul.mubr.bf16.gmra.mrb[148].mxu1 %v6489_v33 }
 0x1e7   : > { %v7520_v49 = vadd.f32 %v5592_v21, %v7461_v4  ;;  %3345 = vmatprep.mubr.bf16.mxu0 %v6490_v40  ;;  %6075 = vmatprep.mubr.bf16.mxu1 %v6492_v41 }
 0x1e9   : > { %v5505_v51 = vpop.f32.mrb[44].mxu0  ;;  %v5593_v52 = vpop.f32.mrb[44].mxu1 }
 0x1ea   : > { %v5506_v5 = vpop.f32.mrb[45].mxu0  ;;  %v5594_v57 = vpop.f32.mrb[45].mxu1 }
 0x1eb   : > { %v7524_v29 = vadd.f32 %v5506_v5, %v5505_v51  ;;  %v5595_v62 = vadd.f32 %v5594_v57, %v5593_v52  ;;  %v5508_v0 = vpop.f32.mrb[46].mxu0  ;;  %v5596_v1 = vpop.f32.mrb[46].mxu1 }
 0x1ec   : > { %v5509_v7 = vpop.f32.mrb[47].mxu0  ;;  %v5597_v4 = vpop.f32.mrb[47].mxu1 }
 0x1ed   : > { %v7529_v9 = vadd.f32 %v5595_v62, %v7468_v45  ;;  %v7531_v10 = vadd.f32 %v5509_v7, %v5508_v0  ;;  %v5598_v11 = vadd.f32 %v5597_v4, %v5596_v1  ;;  %v6507_v7 = vld [vmem:[%s7139_s22 + $0x398] ss:$44 sps:$4 sm:$0xff]  }
 0x1ee   : > { %3346 = vmatmul.mubr.bf16.gmra.mrb[152].mxu0 %v6493_v59  ;;  %6076 = vmatmul.mubr.bf16.gmra.mrb[152].mxu1 %v6494_v60  ;;  %v6504_v60 = vld [vmem:[%s7139_s22 + $0x340] ss:$44 sps:$4 sm:$0xff]  }
 0x1ef   : > { %v7534_v12 = vadd.f32 %v5598_v11, %v7475_v32  ;;  %3353 = vmatprep.mubr.bf16.mxu0 %v6495_v2  ;;  %6079 = vmatprep.mubr.bf16.mxu1 %v6497_v37  ;;  %v6505_v37 = vld [vmem:[%s7139_s22 + $0x49c] ss:$44 sps:$4 sm:$0xff]  }
 0x1f1   : > { %v5599_v26 = vpop.f32.mrb[48].mxu1  ;;  %v5663_v18 = vpop.f32.mrb[48].mxu0 }
 0x1f2   : > { %v5600_v20 = vpop.f32.mrb[49].mxu1  ;;  %v5664_v23 = vpop.f32.mrb[49].mxu0 }
 0x1f3   : > { %v5601_v45 = vadd.f32 %v5600_v20, %v5599_v26  ;;  %v5665_v53 = vadd.f32 %v5664_v23, %v5663_v18  ;;  %v5602_v33 = vpop.f32.mrb[50].mxu1  ;;  %v5666_v35 = vpop.f32.mrb[50].mxu0 }
 0x1f4   : > { %v5603_v40 = vpop.f32.mrb[51].mxu1  ;;  %v5667_v41 = vpop.f32.mrb[51].mxu0 }
 0x1f5   : > { %v7541_v32 = vadd.f32 %v5601_v45, %v7482_v61  ;;  %v7544_v42 = vadd.f32 %v5665_v53, %v7431_v25  ;;  %v5604_v48 = vadd.f32 %v5603_v40, %v5602_v33  ;;  %v5668_v21 = vadd.f32 %v5667_v41, %v5666_v35  ;;  %v6503_v25 = vld [vmem:[%s7139_s22 + $0x440] ss:$44 sps:$4 sm:$0xff]   ;;  %v6509_v53 = vld [vmem:[%s7139_s22 + $0x3f0] ss:$44 sps:$4 sm:$0xff]   ;;  %v6512_v41 = vld [vmem:[%s7139_s22 + $0x448] ss:$44 sps:$4 sm:$0xff]  }
 0x1f6   : > { %3354 = vmatmul.mubr.bf16.gmra.mrb[156].mxu0 %v6498_v24  ;;  %6080 = vmatmul.mubr.bf16.gmra.mrb[156].mxu1 %v6499_v27  ;;  %v6510_v40 = vld [vmem:[%s7139_s22 + $0x4f4] ss:$44 sps:$4 sm:$0xff]  }
 0x1f7   : > { %v7547_v51 = vadd.f32 %v5604_v48, %v7489_v56  ;;  %v7550_v52 = vadd.f32 %v5668_v21, %v7436_v28  ;;  %3361 = vmatprep.mubr.bf16.mxu0 %v6500_v36  ;;  %6083 = vmatprep.mubr.bf16.mxu1 %v6502_v39 }
 0x1f9   : > { %v5605_v5 = vpop.f32.mrb[52].mxu1  ;;  %v5669_v61 = vpop.f32.mrb[52].mxu0 }
 0x1fa   : > { %v5606_v57 = vpop.f32.mrb[53].mxu1  ;;  %v5670_v59 = vpop.f32.mrb[53].mxu0 }
 0x1fb   : > { %v5607_v62 = vadd.f32 %v5606_v57, %v5605_v5  ;;  %v5671_v0 = vadd.f32 %v5670_v59, %v5669_v61  ;;  %v5608_v1 = vpop.f32.mrb[54].mxu1  ;;  %v5672_v2 = vpop.f32.mrb[54].mxu0 }
 0x1fc   : > { %v5609_v4 = vpop.f32.mrb[55].mxu1  ;;  %v5673_v56 = vpop.f32.mrb[55].mxu0 }
 0x1fd   : > { %v7557_v28 = vadd.f32 %v5607_v62, %v7496_v14  ;;  %v7560_v11 = vadd.f32 %v5671_v0, %v7445_v46  ;;  %v5610_v26 = vadd.f32 %v5609_v4, %v5608_v1  ;;  %v5674_v18 = vadd.f32 %v5673_v56, %v5672_v2  ;;  %v6508_v46 = vld [vmem:[%s7139_s22 + $0x498] ss:$44 sps:$4 sm:$0xff]   ;;  %v6514_v0 = vld [vmem:[%s7139_s22 + $0x4a0] ss:$44 sps:$4 sm:$0xff]  }
 0x1fe   : > { %3362 = vmatmul.mubr.bf16.gmra.mrb[160].mxu0 %v6503_v25  ;;  %6084 = vmatmul.mubr.bf16.gmra.mrb[160].mxu1 %v6504_v60  ;;  %v6515_v4 = vld [vmem:[%s7139_s22 + $0x54c] ss:$44 sps:$4 sm:$0xff]  }
 0x1ff   : > { %v7563_v20 = vadd.f32 %v5610_v26, %v7503_v17  ;;  %v7566_v23 = vadd.f32 %v5674_v18, %v7450_v50  ;;  %3369 = vmatprep.mubr.bf16.mxu0 %v6505_v37  ;;  %6087 = vmatprep.mubr.bf16.mxu1 %v6507_v7  ;;  %v6517_v56 = vld [vmem:[%s7139_s22 + $0x4f8] ss:$44 sps:$4 sm:$0xff]  }
 0x201   : > { %v5611_v24 = vpop.f32.mrb[56].mxu1  ;;  %v5675_v14 = vpop.f32.mrb[56].mxu0 }
 0x202   : > { %v5612_v27 = vpop.f32.mrb[57].mxu1  ;;  %v5676_v45 = vpop.f32.mrb[57].mxu0 }
 0x203   : > { %v5613_v33 = vadd.f32 %v5612_v27, %v5611_v24  ;;  %v5677_v35 = vadd.f32 %v5676_v45, %v5675_v14  ;;  %v5614_v36 = vpop.f32.mrb[58].mxu1  ;;  %v5678_v39 = vpop.f32.mrb[58].mxu0 }
 0x204   : > { %v5615_v48 = vpop.f32.mrb[59].mxu1  ;;  %v5679_v17 = vpop.f32.mrb[59].mxu0 }
 0x205   : > { %v7573_v50 = vadd.f32 %v5613_v33, %v7510_v13  ;;  %v7576_v21 = vadd.f32 %v5677_v35, %v7459_v3  ;;  %v5616_v5 = vadd.f32 %v5615_v48, %v5614_v36  ;;  %v5680_v61 = vadd.f32 %v5679_v17, %v5678_v39  ;;  %v6513_v3 = vld [vmem:[%s7139_s22 + $0x4f0] ss:$44 sps:$4 sm:$0xff]   ;;  %v6518_v35 = vld [vmem:[%s7139_s22 + $0x548] ss:$44 sps:$4 sm:$0xff]  }
 0x206   : > { %3370 = vmatmul.mubr.bf16.gmra.mrb[164].mxu0 %v6508_v46  ;;  %6088 = vmatmul.mubr.bf16.gmra.mrb[164].mxu1 %v6509_v53  ;;  %v6519_v36 = vld [vmem:[%s7139_s22 + $0x550] ss:$44 sps:$4 sm:$0xff]  }
 0x207   : > { %v7579_v57 = vadd.f32 %v5616_v5, %v7517_v44  ;;  %v7582_v59 = vadd.f32 %v5680_v61, %v7464_v8  ;;  %3377 = vmatprep.mubr.bf16.mxu0 %v6510_v40  ;;  %6091 = vmatprep.mubr.bf16.mxu1 %v6512_v41 }
 0x209   : > { %v5617_v25 = vpop.f32.mrb[60].mxu1  ;;  %v5681_v13 = vpop.f32.mrb[60].mxu0 }
 0x20a   : > { %v5618_v60 = vpop.f32.mrb[61].mxu1  ;;  %v5682_v62 = vpop.f32.mrb[61].mxu0 }
 0x20b   : > { %v5619_v1 = vadd.f32 %v5618_v60, %v5617_v25  ;;  %v5683_v2 = vadd.f32 %v5682_v62, %v5681_v13  ;;  %v5620_v37 = vpop.f32.mrb[62].mxu1  ;;  %v5684_v7 = vpop.f32.mrb[62].mxu0 }
 0x20c   : > { %v5621_v26 = vpop.f32.mrb[63].mxu1  ;;  %v5685_v44 = vpop.f32.mrb[63].mxu0 }
 0x20d   : > { %v7589_v8 = vadd.f32 %v5619_v1, %v7524_v29  ;;  %v7592_v18 = vadd.f32 %v5683_v2, %v7473_v30  ;;  %v5622_v24 = vadd.f32 %v5621_v26, %v5620_v37  ;;  %v5686_v14 = vadd.f32 %v5685_v44, %v5684_v7 }
 0x20e   : > { %3378 = vmatmul.mubr.bf16.gmra.mrb[168].mxu0 %v6513_v3  ;;  %6092 = vmatmul.mubr.bf16.gmra.mrb[168].mxu1 %v6514_v0 }
 0x20f   : > { %v7595_v27 = vadd.f32 %v5622_v24, %v7531_v10  ;;  %v7598_v45 = vadd.f32 %v5686_v14, %v7478_v34  ;;  %3385 = vmatprep.mubr.bf16.mxu0 %v6515_v4  ;;  %6095 = vmatprep.mubr.bf16.mxu1 %v6517_v56 }
 0x211   : > { %v5623_v46 = vpop.f32.mrb[64].mxu1  ;;  %v5687_v53 = vpop.f32.mrb[64].mxu0 }
 0x212   : > { %v5624_v33 = vpop.f32.mrb[65].mxu1  ;;  %v5688_v29 = vpop.f32.mrb[65].mxu0 }
 0x213   : > { %v5625_v30 = vadd.f32 %v5624_v33, %v5623_v46  ;;  %v5689_v39 = vadd.f32 %v5688_v29, %v5687_v53  ;;  %v5626_v40 = vpop.f32.mrb[66].mxu1  ;;  %v5690_v41 = vpop.f32.mrb[66].mxu0 }
 0x214   : > { %v5627_v48 = vpop.f32.mrb[67].mxu1  ;;  %v5691_v17 = vpop.f32.mrb[67].mxu0 }
 0x215   : > { %v7603_v10 = vadd.f32 %v5625_v30, %v7380_v15  ;;  %v7606_v34 = vadd.f32 %v5689_v39, %v7487_v55  ;;  %v5628_v5 = vadd.f32 %v5627_v48, %v5626_v40  ;;  %v5692_v61 = vadd.f32 %v5691_v17, %v5690_v41 }
 0x216   : > { %3386 = vmatmul.mubr.bf16.gmra.mrb[172].mxu0 %v6518_v35  ;;  %6096 = vmatmul.mubr.bf16.gmra.mrb[172].mxu1 %v6519_v36 }
 0x217   : > { %v7609_v25 = vadd.f32 %v5628_v5, %v7386_v22  ;;  %v7612_v13 = vadd.f32 %v5692_v61, %v7492_v58 }
 0x219   : > { %v5629_v60 = vpop.f32.mrb[68].mxu1  ;;  %v5693_v62 = vpop.f32.mrb[68].mxu0 }
 0x21a   : > { %v5630_v3 = vpop.f32.mrb[69].mxu1  ;;  %v5694_v0 = vpop.f32.mrb[69].mxu0 }
 0x21b   : > { %v5631_v1 = vadd.f32 %v5630_v3, %v5629_v60  ;;  %v5695_v15 = vadd.f32 %v5694_v0, %v5693_v62  ;;  %v5632_v2 = vpop.f32.mrb[70].mxu1  ;;  %v5696_v37 = vpop.f32.mrb[70].mxu0 }
 0x21c   : > { %v5633_v55 = vpop.f32.mrb[71].mxu1  ;;  %v5697_v7 = vpop.f32.mrb[71].mxu0 }
 0x21d   : > { %v7615_v4 = vadd.f32 %v5631_v1, %v7392_v31  ;;  %v7618_v56 = vadd.f32 %v5695_v15, %v7501_v16  ;;  %v5634_v22 = vadd.f32 %v5633_v55, %v5632_v2  ;;  %v5698_v26 = vadd.f32 %v5697_v7, %v5696_v37 }
 0x21f   : > { %v7621_v58 = vadd.f32 %v5634_v22, %v7398_v38  ;;  %v7624_v44 = vadd.f32 %v5698_v26, %v7506_v19 }
 0x221   : > { %v5635_v24 = vpop.f32.mrb[72].mxu1  ;;  %v5699_v14 = vpop.f32.mrb[72].mxu0 }
 0x222   : > { %v5636_v46 = vpop.f32.mrb[73].mxu1  ;;  %v5700_v53 = vpop.f32.mrb[73].mxu0 }
 0x223   : > { %v5637_v33 = vadd.f32 %v5636_v46, %v5635_v24  ;;  %v5701_v29 = vadd.f32 %v5700_v53, %v5699_v14  ;;  %v5638_v35 = vpop.f32.mrb[74].mxu1  ;;  %v5702_v31 = vpop.f32.mrb[74].mxu0 }
 0x224   : > { %v5639_v36 = vpop.f32.mrb[75].mxu1  ;;  %v5703_v30 = vpop.f32.mrb[75].mxu0 }
 0x225   : > { %v7627_v16 = vadd.f32 %v5637_v33, %v7404_v47  ;;  %v7630_v39 = vadd.f32 %v5701_v29, %v7515_v43  ;;  %v5640_v38 = vadd.f32 %v5639_v36, %v5638_v35  ;;  %v5704_v40 = vadd.f32 %v5703_v30, %v5702_v31 }
 0x227   : > { %v7633_v19 = vadd.f32 %v5640_v38, %v7410_v54  ;;  %v7636_v41 = vadd.f32 %v5704_v40, %v7520_v49 }
 0x229   : > { %v5641_v48 = vpop.f32.mrb[76].mxu1  ;;  %v5705_v17 = vpop.f32.mrb[76].mxu0 }
 0x22a   : > { %v5642_v5 = vpop.f32.mrb[77].mxu1  ;;  %v5706_v61 = vpop.f32.mrb[77].mxu0 }
 0x22b   : > { %v5643_v60 = vadd.f32 %v5642_v5, %v5641_v48  ;;  %v5707_v62 = vadd.f32 %v5706_v61, %v5705_v17  ;;  %v5644_v3 = vpop.f32.mrb[78].mxu1  ;;  %v5708_v47 = vpop.f32.mrb[78].mxu0 }
 0x22c   : > { %v5645_v0 = vpop.f32.mrb[79].mxu1  ;;  %v5709_v1 = vpop.f32.mrb[79].mxu0 }
 0x22d   : > { %v7639_v43 = vadd.f32 %v5643_v60, %v7416_v63  ;;  %v7642_v15 = vadd.f32 %v5707_v62, %v7529_v9  ;;  %v5646_v54 = vadd.f32 %v5645_v0, %v5644_v3  ;;  %v5710_v2 = vadd.f32 %v5709_v1, %v5708_v47 }
 0x22f   : > { %v7645_v49 = vadd.f32 %v5646_v54, %v7422_v6  ;;  %v7648_v37 = vadd.f32 %v5710_v2, %v7534_v12 }
 0x231   : > { %v5711_v55 = vpop.f32.mrb[80].mxu0  ;;  %v5775_v7 = vpop.f32.mrb[80].mxu1 }
 0x232   : > { %v5712_v22 = vpop.f32.mrb[81].mxu0  ;;  %v5776_v26 = vpop.f32.mrb[81].mxu1 }
 0x233   : > { %v5713_v24 = vadd.f32 %v5712_v22, %v5711_v55  ;;  %v5777_v14 = vadd.f32 %v5776_v26, %v5775_v7  ;;  %v5714_v46 = vpop.f32.mrb[82].mxu0  ;;  %v5778_v63 = vpop.f32.mrb[82].mxu1 }
 0x234   : > { %v5715_v53 = vpop.f32.mrb[83].mxu0  ;;  %v5779_v33 = vpop.f32.mrb[83].mxu1 }
 0x235   : > { %v7651_v9 = vadd.f32 %v5713_v24, %v7541_v32  ;;  %v7654_v29 = vadd.f32 %v5777_v14, %v7544_v42  ;;  %v5716_v6 = vadd.f32 %v5715_v53, %v5714_v46  ;;  %v5780_v35 = vadd.f32 %v5779_v33, %v5778_v63 }
 0x237   : > { %v7657_v12 = vadd.f32 %v5716_v6, %v7547_v51  ;;  %v7660_v31 = vadd.f32 %v5780_v35, %v7550_v52 }
 0x239   : > { %v5717_v36 = vpop.f32.mrb[84].mxu0  ;;  %v5781_v30 = vpop.f32.mrb[84].mxu1 }
 0x23a   : > { %v5718_v38 = vpop.f32.mrb[85].mxu0  ;;  %v5782_v40 = vpop.f32.mrb[85].mxu1 }
 0x23b   : > { %v5719_v48 = vadd.f32 %v5718_v38, %v5717_v36  ;;  %v5783_v17 = vadd.f32 %v5782_v40, %v5781_v30  ;;  %v5720_v5 = vpop.f32.mrb[86].mxu0  ;;  %v5784_v32 = vpop.f32.mrb[86].mxu1 }
 0x23c   : > { %v5721_v61 = vpop.f32.mrb[87].mxu0  ;;  %v5785_v60 = vpop.f32.mrb[87].mxu1 }
 0x23d   : > { %v7663_v42 = vadd.f32 %v5719_v48, %v7557_v28  ;;  %v7666_v62 = vadd.f32 %v5783_v17, %v7560_v11  ;;  %v5722_v51 = vadd.f32 %v5721_v61, %v5720_v5  ;;  %v5786_v3 = vadd.f32 %v5785_v60, %v5784_v32 }
 0x23f   : > { %v7669_v52 = vadd.f32 %v5722_v51, %v7563_v20  ;;  %v7672_v47 = vadd.f32 %v5786_v3, %v7566_v23 }
 0x241   : > { %v5723_v0 = vpop.f32.mrb[88].mxu0  ;;  %v5787_v1 = vpop.f32.mrb[88].mxu1 }
 0x242   : > { %v5724_v54 = vpop.f32.mrb[89].mxu0  ;;  %v5788_v2 = vpop.f32.mrb[89].mxu1 }
 0x243   : > { %v5725_v55 = vadd.f32 %v5724_v54, %v5723_v0  ;;  %v5789_v7 = vadd.f32 %v5788_v2, %v5787_v1  ;;  %v5726_v22 = vpop.f32.mrb[90].mxu0  ;;  %v5790_v28 = vpop.f32.mrb[90].mxu1 }
 0x244   : > { %v5727_v26 = vpop.f32.mrb[91].mxu0  ;;  %v5791_v24 = vpop.f32.mrb[91].mxu1 }
 0x245   : > { %v7675_v11 = vadd.f32 %v5725_v55, %v7573_v50  ;;  %v7678_v14 = vadd.f32 %v5789_v7, %v7576_v21  ;;  %v5728_v20 = vadd.f32 %v5727_v26, %v5726_v22  ;;  %v5792_v46 = vadd.f32 %v5791_v24, %v5790_v28 }
 0x247   : > { %v7681_v23 = vadd.f32 %v5728_v20, %v7579_v57  ;;  %v7684_v63 = vadd.f32 %v5792_v46, %v7582_v59 }
 0x249   : > { %v5729_v53 = vpop.f32.mrb[92].mxu0  ;;  %v5793_v33 = vpop.f32.mrb[92].mxu1 }
 0x24a   : > { %v5730_v6 = vpop.f32.mrb[93].mxu0  ;;  %v5794_v35 = vpop.f32.mrb[93].mxu1 }
 0x24b   : > { %v5731_v36 = vadd.f32 %v5730_v6, %v5729_v53  ;;  %v5795_v30 = vadd.f32 %v5794_v35, %v5793_v33  ;;  %v5732_v38 = vpop.f32.mrb[94].mxu0  ;;  %v5796_v50 = vpop.f32.mrb[94].mxu1 }
 0x24c   : > { %v5733_v40 = vpop.f32.mrb[95].mxu0  ;;  %v5797_v48 = vpop.f32.mrb[95].mxu1 }
 0x24d   : > { %v7687_v21 = vadd.f32 %v5731_v36, %v7589_v8  ;;  %v7690_v17 = vadd.f32 %v5795_v30, %v7592_v18  ;;  %v5734_v57 = vadd.f32 %v5733_v40, %v5732_v38  ;;  %v5798_v5 = vadd.f32 %v5797_v48, %v5796_v50 }
 0x24f   : > { %v7693_v59 = vadd.f32 %v5734_v57, %v7595_v27  ;;  %v7696_v32 = vadd.f32 %v5798_v5, %v7598_v45 }
 0x251   : > { %v5735_v61 = vpop.f32.mrb[96].mxu0  ;;  %v5799_v60 = vpop.f32.mrb[96].mxu1 }
 0x252   : > { %v5736_v51 = vpop.f32.mrb[97].mxu0  ;;  %v5800_v3 = vpop.f32.mrb[97].mxu1 }
 0x253   : > { %v5737_v0 = vadd.f32 %v5736_v51, %v5735_v61  ;;  %v5801_v1 = vadd.f32 %v5800_v3, %v5799_v60  ;;  %v5738_v54 = vpop.f32.mrb[98].mxu0  ;;  %v5802_v8 = vpop.f32.mrb[98].mxu1 }
 0x254   : > { %v5739_v2 = vpop.f32.mrb[99].mxu0  ;;  %v5803_v55 = vpop.f32.mrb[99].mxu1 }
 0x255   : > { %v7699_v18 = vadd.f32 %v5737_v0, %v7603_v10  ;;  %v7702_v7 = vadd.f32 %v5801_v1, %v7606_v34  ;;  %v5740_v27 = vadd.f32 %v5739_v2, %v5738_v54  ;;  %v5804_v22 = vadd.f32 %v5803_v55, %v5802_v8 }
 0x257   : > { %v7705_v45 = vadd.f32 %v5740_v27, %v7609_v25  ;;  %v7708_v28 = vadd.f32 %v5804_v22, %v7612_v13 }
 0x259   : > { %v5741_v26 = vpop.f32.mrb[100].mxu0  ;;  %v5805_v24 = vpop.f32.mrb[100].mxu1 }
 0x25a   : > { %v5742_v20 = vpop.f32.mrb[101].mxu0  ;;  %v5806_v46 = vpop.f32.mrb[101].mxu1 }
 0x25b   : > { %v5743_v53 = vadd.f32 %v5742_v20, %v5741_v26  ;;  %v5807_v33 = vadd.f32 %v5806_v46, %v5805_v24  ;;  %v5744_v6 = vpop.f32.mrb[102].mxu0  ;;  %v5808_v10 = vpop.f32.mrb[102].mxu1 }
 0x25c   : > { %v5745_v35 = vpop.f32.mrb[103].mxu0  ;;  %v5809_v36 = vpop.f32.mrb[103].mxu1 }
 0x25d   : > { %v7711_v34 = vadd.f32 %v5743_v53, %v7615_v4  ;;  %v7714_v30 = vadd.f32 %v5807_v33, %v7618_v56  ;;  %v5746_v25 = vadd.f32 %v5745_v35, %v5744_v6  ;;  %v5810_v38 = vadd.f32 %v5809_v36, %v5808_v10 }
 0x25f   : > { %v7717_v13 = vadd.f32 %v5746_v25, %v7621_v58  ;;  %v7720_v50 = vadd.f32 %v5810_v38, %v7624_v44 }
 0x261   : > { %v5747_v40 = vpop.f32.mrb[104].mxu0  ;;  %v5811_v48 = vpop.f32.mrb[104].mxu1 }
 0x262   : > { %v5748_v57 = vpop.f32.mrb[105].mxu0  ;;  %v5812_v5 = vpop.f32.mrb[105].mxu1 }
 0x263   : > { %v5749_v61 = vadd.f32 %v5748_v57, %v5747_v40  ;;  %v5813_v60 = vadd.f32 %v5812_v5, %v5811_v48  ;;  %v5750_v51 = vpop.f32.mrb[106].mxu0  ;;  %v5814_v4 = vpop.f32.mrb[106].mxu1 }
 0x264   : > { %v5751_v3 = vpop.f32.mrb[107].mxu0  ;;  %v5815_v0 = vpop.f32.mrb[107].mxu1 }
 0x265   : > { %v7723_v56 = vadd.f32 %v5749_v61, %v7627_v16  ;;  %v7726_v1 = vadd.f32 %v5813_v60, %v7630_v39  ;;  %v5752_v58 = vadd.f32 %v5751_v3, %v5750_v51  ;;  %v5816_v54 = vadd.f32 %v5815_v0, %v5814_v4 }
 0x267   : > { %v7729_v44 = vadd.f32 %v5752_v58, %v7633_v19  ;;  %v7732_v8 = vadd.f32 %v5816_v54, %v7636_v41 }
 0x269   : > { %v5753_v2 = vpop.f32.mrb[108].mxu0  ;;  %v5817_v55 = vpop.f32.mrb[108].mxu1 }
 0x26a   : > { %v5754_v27 = vpop.f32.mrb[109].mxu0  ;;  %v5818_v22 = vpop.f32.mrb[109].mxu1 }
 0x26b   : > { %v5755_v26 = vadd.f32 %v5754_v27, %v5753_v2  ;;  %v5819_v24 = vadd.f32 %v5818_v22, %v5817_v55  ;;  %v5756_v20 = vpop.f32.mrb[110].mxu0  ;;  %v5820_v16 = vpop.f32.mrb[110].mxu1 }
 0x26c   : > { %v5757_v46 = vpop.f32.mrb[111].mxu0  ;;  %v5821_v53 = vpop.f32.mrb[111].mxu1 }
 0x26d   : > { %v7735_v39 = vadd.f32 %v5755_v26, %v7639_v43  ;;  %v7738_v33 = vadd.f32 %v5819_v24, %v7642_v15  ;;  %v5758_v19 = vadd.f32 %v5757_v46, %v5756_v20  ;;  %v5822_v6 = vadd.f32 %v5821_v53, %v5820_v16 }
 0x26f   : > { %v7741_v41 = vadd.f32 %v5758_v19, %v7645_v49  ;;  %v7744_v10 = vadd.f32 %v5822_v6, %v7648_v37 }
 0x271   : > { %v5823_v35 = vpop.f32.mrb[112].mxu1  ;;  %v5887_v36 = vpop.f32.mrb[112].mxu0 }
 0x272   : > { %v5824_v25 = vpop.f32.mrb[113].mxu1  ;;  %v5888_v38 = vpop.f32.mrb[113].mxu0 }
 0x273   : > { %v5825_v40 = vadd.f32 %v5824_v25, %v5823_v35  ;;  %v5889_v48 = vadd.f32 %v5888_v38, %v5887_v36  ;;  %v5826_v57 = vpop.f32.mrb[114].mxu1  ;;  %v5890_v43 = vpop.f32.mrb[114].mxu0 }
 0x274   : > { %v5827_v5 = vpop.f32.mrb[115].mxu1  ;;  %v5891_v61 = vpop.f32.mrb[115].mxu0 }
 0x275   : > { %v7747_v15 = vadd.f32 %v5825_v40, %v7651_v9  ;;  %v5828_v60 = vadd.f32 %v5827_v5, %v5826_v57  ;;  %v5892_v51 = vadd.f32 %v5891_v61, %v5890_v43  ;;  %v7750_v49 = vadd.f32 %v5889_v48, %v7654_v29 }
 0x277   : > { %v7753_v37 = vadd.f32 %v5828_v60, %v7657_v12  ;;  %v7756_v4 = vadd.f32 %v5892_v51, %v7660_v31 }
 0x279   : > { %v5829_v3 = vpop.f32.mrb[116].mxu1  ;;  %v5893_v0 = vpop.f32.mrb[116].mxu0 }
 0x27a   : > { %v5830_v58 = vpop.f32.mrb[117].mxu1  ;;  %v5894_v54 = vpop.f32.mrb[117].mxu0 }
 0x27b   : > { %v5831_v2 = vadd.f32 %v5830_v58, %v5829_v3  ;;  %v5895_v55 = vadd.f32 %v5894_v54, %v5893_v0  ;;  %v5832_v27 = vpop.f32.mrb[118].mxu1  ;;  %v5896_v9 = vpop.f32.mrb[118].mxu0 }
 0x27c   : > { %v5833_v22 = vpop.f32.mrb[119].mxu1  ;;  %v5897_v26 = vpop.f32.mrb[119].mxu0 }
 0x27d   : > { %v7759_v24 = vadd.f32 %v5831_v2, %v7663_v42  ;;  %v5834_v29 = vadd.f32 %v5833_v22, %v5832_v27  ;;  %v5898_v20 = vadd.f32 %v5897_v26, %v5896_v9  ;;  %v7762_v12 = vadd.f32 %v5895_v55, %v7666_v62 }
 0x27f   : > { %v7765_v31 = vadd.f32 %v5834_v29, %v7669_v52  ;;  %v7768_v16 = vadd.f32 %v5898_v20, %v7672_v47 }
 0x281   : > { %v5835_v46 = vpop.f32.mrb[120].mxu1  ;;  %v5899_v53 = vpop.f32.mrb[120].mxu0 }
 0x282   : > { %v5836_v19 = vpop.f32.mrb[121].mxu1  ;;  %v5900_v6 = vpop.f32.mrb[121].mxu0 }
 0x283   : > { %v5837_v35 = vadd.f32 %v5836_v19, %v5835_v46  ;;  %v5901_v36 = vadd.f32 %v5900_v6, %v5899_v53  ;;  %v5838_v25 = vpop.f32.mrb[122].mxu1  ;;  %v5902_v42 = vpop.f32.mrb[122].mxu0 }
 0x284   : > { %v5839_v38 = vpop.f32.mrb[123].mxu1  ;;  %v5903_v40 = vpop.f32.mrb[123].mxu0 }
 0x285   : > { %v7771_v48 = vadd.f32 %v5837_v35, %v7675_v11  ;;  %v5840_v62 = vadd.f32 %v5839_v38, %v5838_v25  ;;  %v5904_v57 = vadd.f32 %v5903_v40, %v5902_v42  ;;  %v7774_v52 = vadd.f32 %v5901_v36, %v7678_v14 }
 0x287   : > { %v7777_v47 = vadd.f32 %v5840_v62, %v7681_v23  ;;  %v7780_v43 = vadd.f32 %v5904_v57, %v7684_v63 }
 0x289   : > { %v5841_v5 = vpop.f32.mrb[124].mxu1  ;;  %v5905_v61 = vpop.f32.mrb[124].mxu0 }
 0x28a   : > { %v5842_v60 = vpop.f32.mrb[125].mxu1  ;;  %v5906_v51 = vpop.f32.mrb[125].mxu0 }
 0x28b   : > { %v5843_v3 = vadd.f32 %v5842_v60, %v5841_v5  ;;  %v5907_v0 = vadd.f32 %v5906_v51, %v5905_v61  ;;  %v5844_v58 = vpop.f32.mrb[126].mxu1  ;;  %v5908_v11 = vpop.f32.mrb[126].mxu0 }
 0x28c   : > { %v5845_v54 = vpop.f32.mrb[127].mxu1  ;;  %v5909_v2 = vpop.f32.mrb[127].mxu0 }
 0x28d   : > { %v7783_v55 = vadd.f32 %v5843_v3, %v7687_v21  ;;  %v5846_v14 = vadd.f32 %v5845_v54, %v5844_v58  ;;  %v5910_v27 = vadd.f32 %v5909_v2, %v5908_v11  ;;  %v7786_v23 = vadd.f32 %v5907_v0, %v7690_v17 }
 0x28f   : > { %v7789_v63 = vadd.f32 %v5846_v14, %v7693_v59  ;;  %v7792_v9 = vadd.f32 %v5910_v27, %v7696_v32 }
 0x291   : > { %v5847_v22 = vpop.f32.mrb[128].mxu1  ;;  %v5911_v26 = vpop.f32.mrb[128].mxu0 }
 0x292   : > { %v5848_v29 = vpop.f32.mrb[129].mxu1  ;;  %v5912_v20 = vpop.f32.mrb[129].mxu0 }
 0x293   : > { %v5849_v46 = vadd.f32 %v5848_v29, %v5847_v22  ;;  %v5913_v53 = vadd.f32 %v5912_v20, %v5911_v26  ;;  %v5850_v19 = vpop.f32.mrb[130].mxu1  ;;  %v5914_v21 = vpop.f32.mrb[130].mxu0 }
 0x294   : > { %v5851_v6 = vpop.f32.mrb[131].mxu1  ;;  %v5915_v35 = vpop.f32.mrb[131].mxu0 }
 0x295   : > { %v7795_v36 = vadd.f32 %v5849_v46, %v7699_v18  ;;  %v5852_v17 = vadd.f32 %v5851_v6, %v5850_v19  ;;  %v5916_v25 = vadd.f32 %v5915_v35, %v5914_v21  ;;  %v7798_v59 = vadd.f32 %v5913_v53, %v7702_v7 }
 0x297   : > { %v7801_v32 = vadd.f32 %v5852_v17, %v7705_v45  ;;  %v7804_v42 = vadd.f32 %v5916_v25, %v7708_v28 }
 0x299   : > { %v5853_v38 = vpop.f32.mrb[132].mxu1  ;;  %v5917_v40 = vpop.f32.mrb[132].mxu0 }
 0x29a   : > { %v5854_v62 = vpop.f32.mrb[133].mxu1  ;;  %v5918_v57 = vpop.f32.mrb[133].mxu0 }
 0x29b   : > { %v5855_v5 = vadd.f32 %v5854_v62, %v5853_v38  ;;  %v5919_v61 = vadd.f32 %v5918_v57, %v5917_v40  ;;  %v5856_v60 = vpop.f32.mrb[134].mxu1  ;;  %v5920_v18 = vpop.f32.mrb[134].mxu0 }
 0x29c   : > { %v5857_v51 = vpop.f32.mrb[135].mxu1  ;;  %v5921_v3 = vpop.f32.mrb[135].mxu0 }
 0x29d   : > { %v7807_v0 = vadd.f32 %v5855_v5, %v7711_v34  ;;  %v5858_v7 = vadd.f32 %v5857_v51, %v5856_v60  ;;  %v5922_v58 = vadd.f32 %v5921_v3, %v5920_v18  ;;  %v7810_v45 = vadd.f32 %v5919_v61, %v7714_v30  ;;  %v767_v3 = vld [vmem:[#allocation2 + $0x10] sm:$0xff] }
 0x29f   : > { %v7813_v28 = vadd.f32 %v5858_v7, %v7717_v13  ;;  %v7816_v11 = vadd.f32 %v5922_v58, %v7720_v50 }
 0x2a1   : > { %v5859_v54 = vpop.f32.mrb[136].mxu1  ;;  %v5923_v2 = vpop.f32.mrb[136].mxu0 }
 0x2a2   : > { %v5860_v14 = vpop.f32.mrb[137].mxu1  ;;  %v5924_v27 = vpop.f32.mrb[137].mxu0 }
 0x2a3   : > { %v5861_v22 = vadd.f32 %v5860_v14, %v5859_v54  ;;  %v5925_v26 = vadd.f32 %v5924_v27, %v5923_v2  ;;  %v5862_v29 = vpop.f32.mrb[138].mxu1  ;;  %v5926_v34 = vpop.f32.mrb[138].mxu0  ;;  %v765_v2 = vld [vmem:[#allocation2] sm:$0xff] }
 0x2a4   : > { %v5863_v20 = vpop.f32.mrb[139].mxu1  ;;  %v5927_v46 = vpop.f32.mrb[139].mxu0 }
 0x2a5   : > { %v7819_v53 = vadd.f32 %v5861_v22, %v7723_v56  ;;  %v5864_v30 = vadd.f32 %v5863_v20, %v5862_v29  ;;  %v5928_v19 = vadd.f32 %v5927_v46, %v5926_v34  ;;  %v7822_v13 = vadd.f32 %v5925_v26, %v7726_v1  ;;  %v768_v22 = vld [vmem:[#allocation2 + $0x18] sm:$0xff]  ;;  %v766_v34 = vld [vmem:[#allocation2 + $0x8] sm:$0xff] }
 0x2a7   : > { %v7825_v50 = vadd.f32 %v5864_v30, %v7729_v44  ;;  %v7828_v21 = vadd.f32 %v5928_v19, %v7732_v8 }
 0x2a9   : > { %v5865_v6 = vpop.f32.mrb[140].mxu1  ;;  %v5929_v35 = vpop.f32.mrb[140].mxu0 }
 0x2aa   : > { %v5866_v17 = vpop.f32.mrb[141].mxu1  ;;  %v5930_v25 = vpop.f32.mrb[141].mxu0 }
 0x2ab   : > { %v5867_v38 = vadd.f32 %v5866_v17, %v5865_v6  ;;  %v5931_v40 = vadd.f32 %v5930_v25, %v5929_v35  ;;  %v5868_v62 = vpop.f32.mrb[142].mxu1  ;;  %v5932_v56 = vpop.f32.mrb[142].mxu0  ;;  %v771_v17 = vld [vmem:[#allocation2 + $0x30] sm:$0xff] }
 0x2ac   : > { %v5869_v57 = vpop.f32.mrb[143].mxu1  ;;  %v5933_v5 = vpop.f32.mrb[143].mxu0 }
 0x2ad   : > { %v7831_v61 = vadd.f32 %v5867_v38, %v7735_v39  ;;  %v5870_v1 = vadd.f32 %v5869_v57, %v5868_v62  ;;  %v5934_v60 = vadd.f32 %v5933_v5, %v5932_v56  ;;  %v7834_v44 = vadd.f32 %v5931_v40, %v7738_v33  ;;  %v769_v38 = vld [vmem:[#allocation2 + $0x20] sm:$0xff]  ;;  %v772_v5 = vld [vmem:[#allocation2 + $0x38] sm:$0xff] }
 0x2af   : > { %v7837_v8 = vadd.f32 %v5870_v1, %v7741_v41  ;;  %v7840_v18 = vadd.f32 %v5934_v60, %v7744_v10 }
 0x2b1   : > { %v5935_v51 = vpop.f32.mrb[144].mxu0  ;;  %v6069_v7 = vpop.f32.mrb[144].mxu1 }
 0x2b2   : > { %v3437_v58 = vadd.f32 %v6069_v7, %v7762_v12  ;;  %v5936_v54 = vpop.f32.mrb[145].mxu0  ;;  %v3428_v39 = vpop.f32.mrb[145].mxu1 }
 0x2b3   : > { %v5937_v14 = vadd.f32 %v5936_v54, %v5935_v51  ;;  %v3429_v27 = vadd.f32 %v3428_v39, %v7750_v49  ;;  %v5938_v33 = vpop.f32.mrb[146].mxu0  ;;  %v6070_v26 = vpop.f32.mrb[146].mxu1 }
 0x2b4   : > { %v3557_v41 = vadd.f32 %v3437_v58, %v767_v3  ;;  %v3440_v29 = vadd.f32 %v6070_v26, %v7768_v16  ;;  %v5939_v10 = vpop.f32.mrb[147].mxu0  ;;  %v3431_v20 = vpop.f32.mrb[147].mxu1  ;;  %v770_v3 = vld [vmem:[#allocation2 + $0x28] sm:$0xff] }
 0x2b5   : > { %v3555_v46 = vadd.f32 %v3429_v27, %v765_v2  ;;  %v5940_v30 = vadd.f32 %v5939_v10, %v5938_v33  ;;  %v3432_v12 = vadd.f32 %v3431_v20, %v7756_v4  ;;  %v7847_v19 = vadd.f32 %v5937_v14, %v7747_v15  ;;  %v775_v27 = vld [vmem:[#allocation2 + $0x50] sm:$0xff] }
 0x2b6   : > { %3590 = vst.msk [vmem:[#allocation2 + $0x10] sm:$0xff] %vm3587_vm1, %v3557_v41  ;;  %v3558_v6 = vadd.f32 %v3440_v29, %v768_v22  ;;  %v773_v22 = vld [vmem:[#allocation2 + $0x40] sm:$0xff] }
 0x2b7   : > { %3588 = vst.msk [vmem:[#allocation2] sm:$0xff] %vm3587_vm1, %v3555_v46  ;;  %v3556_v49 = vadd.f32 %v3432_v12, %v766_v34  ;;  %v7852_v35 = vadd.f32 %v5940_v30, %v7753_v37  ;;  %v776_v34 = vld [vmem:[#allocation2 + $0x58] sm:$0xff]  ;;  %v774_v12 = vld [vmem:[#allocation2 + $0x48] sm:$0xff] }
 0x2b8   : > { %3591 = vst.msk [vmem:[#allocation2 + $0x18] sm:$0xff] %vm3587_vm1, %v3558_v6 }
 0x2b9   : > { %3589 = vst.msk [vmem:[#allocation2 + $0x8] sm:$0xff] %vm3587_vm1, %v3556_v49  ;;  %v5941_v16 = vpop.f32.mrb[148].mxu0  ;;  %v6073_v25 = vpop.f32.mrb[148].mxu1 }
 0x2ba   : > { %v3453_v4 = vadd.f32 %v6073_v25, %v7786_v23  ;;  %v5942_v15 = vpop.f32.mrb[149].mxu0  ;;  %v3444_v40 = vpop.f32.mrb[149].mxu1 }
 0x2bb   : > { %v5943_v62 = vadd.f32 %v5942_v15, %v5941_v16  ;;  %v3445_v56 = vadd.f32 %v3444_v40, %v7774_v52  ;;  %v5944_v57 = vpop.f32.mrb[150].mxu0  ;;  %v6074_v1 = vpop.f32.mrb[150].mxu1  ;;  %v779_v15 = vld [vmem:[#allocation2 + $0x70] sm:$0xff]  ;;  %v777_v40 = vld [vmem:[#allocation2 + $0x60] sm:$0xff] }
 0x2bc   : > { %v3561_v37 = vadd.f32 %v3453_v4, %v771_v17  ;;  %v3456_v60 = vadd.f32 %v6074_v1, %v7792_v9  ;;  %v5945_v51 = vpop.f32.mrb[151].mxu0  ;;  %v3447_v7 = vpop.f32.mrb[151].mxu1  ;;  %v780_v1 = vld [vmem:[#allocation2 + $0x78] sm:$0xff] }
 0x2bd   : > { %v3559_v58 = vadd.f32 %v3445_v56, %v769_v38  ;;  %v5946_v54 = vadd.f32 %v5945_v51, %v5944_v57  ;;  %v3448_v2 = vadd.f32 %v3447_v7, %v7780_v43  ;;  %v7861_v23 = vadd.f32 %v5943_v62, %v7759_v24 }
 0x2be   : > { %3594 = vst.msk [vmem:[#allocation2 + $0x30] sm:$0xff] %vm3587_vm1, %v3561_v37  ;;  %v3562_v39 = vadd.f32 %v3456_v60, %v772_v5 }
 0x2bf   : > { %3592 = vst.msk [vmem:[#allocation2 + $0x20] sm:$0xff] %vm3587_vm1, %v3559_v58  ;;  %v3560_v52 = vadd.f32 %v3448_v2, %v770_v3  ;;  %v7866_v14 = vadd.f32 %v5946_v54, %v7765_v31  ;;  %v778_v3 = vld [vmem:[#allocation2 + $0x68] sm:$0xff] }
 0x2c0   : > { %3595 = vst.msk [vmem:[#allocation2 + $0x38] sm:$0xff] %vm3587_vm1, %v3562_v39 }
 0x2c1   : > { %3593 = vst.msk [vmem:[#allocation2 + $0x28] sm:$0xff] %vm3587_vm1, %v3560_v52  ;;  %v5947_v9 = vpop.f32.mrb[152].mxu0  ;;  %v6077_v33 = vpop.f32.mrb[152].mxu1 }
 0x2c2   : > { %v3469_v43 = vadd.f32 %v6077_v33, %v7810_v45  ;;  %v5948_v24 = vpop.f32.mrb[153].mxu0  ;;  %v3460_v26 = vpop.f32.mrb[153].mxu1 }
 0x2c3   : > { %v5949_v41 = vadd.f32 %v5948_v24, %v5947_v9  ;;  %v3461_v29 = vadd.f32 %v3460_v26, %v7798_v59  ;;  %v5950_v10 = vpop.f32.mrb[154].mxu0  ;;  %v6078_v20 = vpop.f32.mrb[154].mxu1  ;;  %v783_v9 = vld [vmem:[#allocation2 + $0x90] sm:$0xff] }
 0x2c4   : > { %v3565_v31 = vadd.f32 %v3469_v43, %v775_v27  ;;  %v3472_v46 = vadd.f32 %v6078_v20, %v7816_v11  ;;  %v5951_v30 = vpop.f32.mrb[155].mxu0  ;;  %v3463_v6 = vpop.f32.mrb[155].mxu1  ;;  %v781_v43 = vld [vmem:[#allocation2 + $0x80] sm:$0xff]  ;;  %v782_v20 = vld [vmem:[#allocation2 + $0x88] sm:$0xff] }
 0x2c5   : > { %v3563_v49 = vadd.f32 %v3461_v29, %v773_v22  ;;  %v5952_v16 = vadd.f32 %v5951_v30, %v5950_v10  ;;  %v3464_v17 = vadd.f32 %v3463_v6, %v7804_v42  ;;  %v7875_v45 = vadd.f32 %v5949_v41, %v7771_v48  ;;  %v784_v41 = vld [vmem:[#allocation2 + $0x98] sm:$0xff] }
 0x2c6   : > { %3598 = vst.msk [vmem:[#allocation2 + $0x50] sm:$0xff] %vm3587_vm1, %v3565_v31  ;;  %v3566_v25 = vadd.f32 %v3472_v46, %v776_v34 }
 0x2c7   : > { %3596 = vst.msk [vmem:[#allocation2 + $0x40] sm:$0xff] %vm3587_vm1, %v3563_v49  ;;  %v3564_v59 = vadd.f32 %v3464_v17, %v774_v12  ;;  %v7880_v4 = vadd.f32 %v5952_v16, %v7777_v47  ;;  %v787_v16 = vld [vmem:[#allocation2 + $0xb0] sm:$0xff] }
 0x2c8   : > { %3599 = vst.msk [vmem:[#allocation2 + $0x58] sm:$0xff] %vm3587_vm1, %v3566_v25 }
 0x2c9   : > { %3597 = vst.msk [vmem:[#allocation2 + $0x48] sm:$0xff] %vm3587_vm1, %v3564_v59  ;;  %v5953_v11 = vpop.f32.mrb[156].mxu0  ;;  %v6081_v38 = vpop.f32.mrb[156].mxu1 }
 0x2ca   : > { %v3485_v42 = vadd.f32 %v6081_v38, %v7834_v44  ;;  %v5954_v48 = vpop.f32.mrb[157].mxu0  ;;  %v3476_v62 = vpop.f32.mrb[157].mxu1 }
 0x2cb   : > { %v5955_v56 = vadd.f32 %v5954_v48, %v5953_v11  ;;  %v3477_v57 = vadd.f32 %v3476_v62, %v7822_v13  ;;  %v5956_v5 = vpop.f32.mrb[158].mxu0  ;;  %v6082_v37 = vpop.f32.mrb[158].mxu1 }
 0x2cc   : > { %v3569_v47 = vadd.f32 %v3485_v42, %v779_v15  ;;  %v3488_v60 = vadd.f32 %v6082_v37, %v7840_v18  ;;  %v5957_v51 = vpop.f32.mrb[159].mxu0  ;;  %v3479_v7 = vpop.f32.mrb[159].mxu1  ;;  %v788_v42 = vld [vmem:[#allocation2 + $0xb8] sm:$0xff] }
 0x2cd   : > { %v3567_v58 = vadd.f32 %v3477_v57, %v777_v40  ;;  %v5958_v54 = vadd.f32 %v5957_v51, %v5956_v5  ;;  %v3480_v2 = vadd.f32 %v3479_v7, %v7828_v21  ;;  %v3356_v44 = vadd.f32 %v5955_v56, %v7783_v55  ;;  %v786_v56 = vld [vmem:[#allocation2 + $0xa8] sm:$0xff]  ;;  %v791_v7 = vld [vmem:[#allocation2 + $0xd0] sm:$0xff] }
 0x2ce   : > { %3602 = vst.msk [vmem:[#allocation2 + $0x70] sm:$0xff] %vm3587_vm1, %v3569_v47  ;;  %v3570_v39 = vadd.f32 %v3488_v60, %v780_v1 }
 0x2cf   : > { %3600 = vst.msk [vmem:[#allocation2 + $0x60] sm:$0xff] %vm3587_vm1, %v3567_v58  ;;  %v3568_v13 = vadd.f32 %v3480_v2, %v778_v3  ;;  %v3359_v52 = vadd.f32 %v5958_v54, %v7789_v63 }
 0x2d0   : > { %3603 = vst.msk [vmem:[#allocation2 + $0x78] sm:$0xff] %vm3587_vm1, %v3570_v39 }
 0x2d1   : > { %3601 = vst.msk [vmem:[#allocation2 + $0x68] sm:$0xff] %vm3587_vm1, %v3568_v13  ;;  %v5959_v18 = vpop.f32.mrb[160].mxu0  ;;  %v6085_v27 = vpop.f32.mrb[160].mxu1 }
 0x2d2   : > { %v3501_v33 = vadd.f32 %v6085_v27, %v7861_v23  ;;  %v5960_v21 = vpop.f32.mrb[161].mxu0  ;;  %v3492_v55 = vpop.f32.mrb[161].mxu1 }
 0x2d3   : > { %v5961_v24 = vadd.f32 %v5960_v21, %v5959_v18  ;;  %v3493_v22 = vadd.f32 %v3492_v55, %v7847_v19  ;;  %v5962_v26 = vpop.f32.mrb[162].mxu0  ;;  %v6086_v29 = vpop.f32.mrb[162].mxu1 }
 0x2d4   : > { %v3573_v10 = vadd.f32 %v3501_v33, %v783_v9  ;;  %v3504_v63 = vadd.f32 %v6086_v29, %v7866_v14  ;;  %v5963_v34 = vpop.f32.mrb[163].mxu0  ;;  %v3495_v31 = vpop.f32.mrb[163].mxu1 }
 0x2d5   : > { %v3571_v46 = vadd.f32 %v3493_v22, %v781_v43  ;;  %v5964_v30 = vadd.f32 %v5963_v34, %v5962_v26  ;;  %v3496_v12 = vadd.f32 %v3495_v31, %v7852_v35  ;;  %v3364_v23 = vadd.f32 %v5961_v24, %v7795_v36  ;;  %v785_v35 = vld [vmem:[#allocation2 + $0xa0] sm:$0xff] }
 0x2d6   : > { %3606 = vst.msk [vmem:[#allocation2 + $0x90] sm:$0xff] %vm3587_vm1, %v3573_v10  ;;  %v3574_v6 = vadd.f32 %v3504_v63, %v784_v41 }
 0x2d7   : > { %3604 = vst.msk [vmem:[#allocation2 + $0x80] sm:$0xff] %vm3587_vm1, %v3571_v46  ;;  %v3572_v19 = vadd.f32 %v3496_v12, %v782_v20  ;;  %v3367_v49 = vadd.f32 %v5964_v30, %v7801_v32  ;;  %v793_v20 = vld [vmem:[#allocation2 + $0xe0] sm:$0xff] }
 0x2d8   : > { %3607 = vst.msk [vmem:[#allocation2 + $0x98] sm:$0xff] %vm3587_vm1, %v3574_v6  ;;  %v794_v6 = vld [vmem:[#allocation2 + $0xe8] sm:$0xff] }
 0x2d9   : > { %3605 = vst.msk [vmem:[#allocation2 + $0x88] sm:$0xff] %vm3587_vm1, %v3572_v19  ;;  %v5965_v14 = vpop.f32.mrb[164].mxu0  ;;  %v6089_v17 = vpop.f32.mrb[164].mxu1 }
 0x2da   : > { %v3517_v25 = vadd.f32 %v6089_v17, %v3356_v44  ;;  %v5966_v59 = vpop.f32.mrb[165].mxu0  ;;  %v3508_v11 = vpop.f32.mrb[165].mxu1  ;;  %v795_v17 = vld [vmem:[#allocation2 + $0xf0] sm:$0xff] }
 0x2db   : > { %v5967_v36 = vadd.f32 %v5966_v59, %v5965_v14  ;;  %v3509_v15 = vadd.f32 %v3508_v11, %v7875_v45  ;;  %v5968_v38 = vpop.f32.mrb[166].mxu0  ;;  %v6090_v48 = vpop.f32.mrb[166].mxu1  ;;  %v796_v11 = vld [vmem:[#allocation2 + $0xf8] sm:$0xff] }
 0x2dc   : > { %v3577_v40 = vadd.f32 %v3517_v25, %v787_v16  ;;  %v3520_v62 = vadd.f32 %v6090_v48, %v3359_v52  ;;  %v5969_v32 = vpop.f32.mrb[167].mxu0  ;;  %v3511_v57 = vpop.f32.mrb[167].mxu1  ;;  %v792_v52 = vld [vmem:[#allocation2 + $0xd8] sm:$0xff]  ;;  %v6524_v48 = vld [vmem:[%s8341_s3] ss:$16 sps:$4 sm:$0xff] (!%p5339_p13)  }
 0x2dd   : > { %v3575_v5 = vadd.f32 %v3509_v15, %v785_v35  ;;  %v5970_v1 = vadd.f32 %v5969_v32, %v5968_v38  ;;  %v3512_v37 = vadd.f32 %v3511_v57, %v7880_v4  ;;  %v3372_v47 = vadd.f32 %v5967_v36, %v7807_v0  ;;  %v789_v4 = vld [vmem:[#allocation2 + $0xc0] sm:$0xff]  ;;  %v6528_v32 = vld [vmem:[%s8341_s3 + $0x2c] ss:$16 sps:$4 sm:$0xff] (!%p5339_p13)   ;;  %v6531_v57 = vld [vmem:[%s8341_s3 + $0x28] ss:$16 sps:$4 sm:$0xff] (!%p5339_p13)  }
 0x2de   : > { %3610 = vst.msk [vmem:[#allocation2 + $0xb0] sm:$0xff] %vm3587_vm1, %v3577_v40  ;;  %v3578_v60 = vadd.f32 %v3520_v62, %v788_v42  ;;  %v6633_v42 = vmov (!%p5339_p13), 0   ;;  %v6525_v40 = vld [vmem:[%s8341_s3 + $0x8] ss:$16 sps:$4 sm:$0xff] (!%p5339_p13)   ;;  %v6526_v62 = vld [vmem:[%s8341_s3 + $0x24] ss:$16 sps:$4 sm:$0xff] (!%p5339_p13)  }
 0x2df   : > { %3608 = vst.msk [vmem:[#allocation2 + $0xa0] sm:$0xff] %vm3587_vm1, %v3575_v5  ;;  %v3576_v45 = vadd.f32 %v3512_v37, %v786_v56  ;;  %v3375_v51 = vadd.f32 %v5970_v1, %v7813_v28  ;;  %v790_v28 = vld [vmem:[#allocation2 + $0xc8] sm:$0xff]  ;;  %3942 = vmatprep.mubr.bf16.mxu0 (!%p5339_p13), %v6633_v42  ;;  %4135 = vmatprep.mubr.bf16.mxu1 (!%p5339_p13), %v6633_v42  ;;  %v6530_v56 = vld [vmem:[%s8341_s3 + $0x20] ss:$16 sps:$4 sm:$0xff] (!%p5339_p13)   ;;  %v6532_v5 = vld [vmem:[%s8341_s3 + $0x44] ss:$16 sps:$4 sm:$0xff] (!%p5339_p13)  }
 0x2e0   : > { %3611 = vst.msk [vmem:[#allocation2 + $0xb8] sm:$0xff] %vm3587_vm1, %v3578_v60  ;;  %v6534_v1 = vld [vmem:[%s8341_s3 + $0x4c] ss:$16 sps:$4 sm:$0xff] (!%p5339_p13)   ;;  %v6536_v37 = vld [vmem:[%s8341_s3 + $0x40] ss:$16 sps:$4 sm:$0xff] (!%p5339_p13)  }
 0x2e1   : > { %3609 = vst.msk [vmem:[#allocation2 + $0xa8] sm:$0xff] %vm3587_vm1, %v3576_v45  ;;  %v5971_v3 = vpop.f32.mrb[168].mxu0  ;;  %v6093_v58 = vpop.f32.mrb[168].mxu1  ;;  %v6538_v60 = vld [vmem:[%s8341_s3 + $0x64] ss:$16 sps:$4 sm:$0xff] (!%p5339_p13)  }
 0x2e2   : > { %v3533_v54 = vadd.f32 %v6093_v58, %v3372_v47  ;;  %v5972_v2 = vpop.f32.mrb[169].mxu0  ;;  %v3524_v44 = vpop.f32.mrb[169].mxu1  ;;  %v6537_v47 = vld [vmem:[%s8341_s3 + $0x48] ss:$16 sps:$4 sm:$0xff] (!%p5339_p13)   ;;  %v6540_v45 = vld [vmem:[%s8341_s3 + $0x6c] ss:$16 sps:$4 sm:$0xff] (!%p5339_p13)  }
 0x2e3   : > { %v5973_v0 = vadd.f32 %v5972_v2, %v5971_v3  ;;  %v3525_v39 = vadd.f32 %v3524_v44, %v3364_v23  ;;  %v5974_v13 = vpop.f32.mrb[170].mxu0  ;;  %v6094_v18 = vpop.f32.mrb[170].mxu1  ;;  %v6542_v3 = vld [vmem:[%s8341_s3 + $0x60] ss:$16 sps:$4 sm:$0xff] (!%p5339_p13)  }
 0x2e4   : > { %v3581_v9 = vadd.f32 %v3533_v54, %v791_v7  ;;  %v3536_v27 = vadd.f32 %v6094_v18, %v3375_v51  ;;  %v5975_v33 = vpop.f32.mrb[171].mxu0  ;;  %v3527_v21 = vpop.f32.mrb[171].mxu1  ;;  %v3624_v51 = vld [vmem:[#allocation2] sm:$0xff] (!%p5339_p13)  ;;  %v3625_v7 = vld [vmem:[#allocation2 + $0x8] sm:$0xff] (!%p5339_p13)  ;;  %v3626_v44 = vld [vmem:[#allocation2 + $0x10] sm:$0xff] (!%p5339_p13) }
 0x2e5   : > { %v3579_v43 = vadd.f32 %v3525_v39, %v789_v4  ;;  %v5976_v55 = vadd.f32 %v5975_v33, %v5974_v13  ;;  %v3528_v24 = vadd.f32 %v3527_v21, %v3367_v49  ;;  %v3380_v22 = vadd.f32 %v5973_v0, %v7819_v53  ;;  %v7975_v58 = vld [vmem:[%s8340_s2] ss:$0 sm:$0xff] (!%p5339_p13)  ;;  %v6543_v54 = vld [vmem:[%s8341_s3 + $0x68] ss:$16 sps:$4 sm:$0xff] (!%p5339_p13)  }
 0x2e6   : > { %3614 = vst.msk [vmem:[#allocation2 + $0xd0] sm:$0xff] %vm3587_vm1, %v3581_v9  ;;  %v3582_v26 = vadd.f32 %v3536_v27, %v792_v52  ;;  %v3663_v2 = vadd.f32 (!%p5339_p13), %v7975_v58, %v3624_v51  ;;  %v3664_v4 = vadd.f32 (!%p5339_p13), %v7975_v58, %v3625_v7  ;;  %v3627_v0 = vld [vmem:[#allocation2 + $0x18] sm:$0xff] (!%p5339_p13)  ;;  %v3665_v52 = vadd.f32 (!%p5339_p13), %v7975_v58, %v3626_v44  ;;  %v3629_v21 = vld [vmem:[#allocation2 + $0x28] sm:$0xff] (!%p5339_p13)  ;;  %v3642_v7 = vld [vmem:[#allocation2 + $0x90] sm:$0xff] (!%p5339_p13) }
 0x2e7   : > { %3612 = vst.msk [vmem:[#allocation2 + $0xc0] sm:$0xff] %vm3587_vm1, %v3579_v43  ;;  %v3580_v41 = vadd.f32 %v3528_v24, %v790_v28  ;;  %v3383_v29 = vadd.f32 %v5976_v55, %v7825_v50  ;;  %v3666_v18 = vadd.f32 (!%p5339_p13), %v7975_v58, %v3627_v0  ;;  %v3628_v28 = vld [vmem:[#allocation2 + $0x20] sm:$0xff] (!%p5339_p13)  ;;  %v3630_v43 = vld [vmem:[#allocation2 + $0x30] sm:$0xff] (!%p5339_p13) }
 0x2e8   : > { %3615 = vst.msk [vmem:[#allocation2 + $0xd8] sm:$0xff] %vm3587_vm1, %v3582_v26  ;;  %v3695_v39 = vmax.f32 (!%p5339_p13), %v3663_v2, 0.0  ;;  %v3696_v13 = vmax.f32 (!%p5339_p13), %v3664_v4, 0.0  ;;  %v3697_v27 = vmax.f32 (!%p5339_p13), %v3665_v52, 0.0  ;;  %v3667_v24 = vadd.f32 (!%p5339_p13), %v7975_v58, %v3628_v28  ;;  %v3631_v26 = vld [vmem:[#allocation2 + $0x38] sm:$0xff] (!%p5339_p13)  ;;  %v3645_v52 = vld [vmem:[#allocation2 + $0xa8] sm:$0xff] (!%p5339_p13) }
 0x2e9   : > { %3613 = vst.msk [vmem:[#allocation2 + $0xc8] sm:$0xff] %vm3587_vm1, %v3580_v41  ;;  %v5977_v10 = vpop.f32.mrb[172].mxu0  ;;  %v6097_v63 = vpop.f32.mrb[172].mxu1  ;;  %v3698_v33 = vmax.f32 (!%p5339_p13), %v3666_v18, 0.0  ;;  %v3632_v41 = vld [vmem:[#allocation2 + $0x40] sm:$0xff] (!%p5339_p13)  ;;  %v3681_v4 = vadd.f32 (!%p5339_p13), %v7975_v58, %v3642_v7  ;;  %v6558_v7 = vld [vmem:[%s8343_s5 + $0x18] sm:$0xff] (!%p5339_p13)  }
 0x2ea   : > { %v5978_v34 = vpop.f32.mrb[173].mxu0  ;;  %v3540_v31 = vpop.f32.mrb[173].mxu1  ;;  %v3727_v9 = vpack.c.bf16 (!%p5339_p13), %v3696_v13, %v3695_v39  ;;  %v3644_v13 = vld [vmem:[#allocation2 + $0xa0] sm:$0xff] (!%p5339_p13) }
 0x2eb   : > { %v5979_v46 = vadd.f32 %v5978_v34, %v5977_v10  ;;  %v3541_v30 = vadd.f32 %v3540_v31, %v3380_v22  ;;  %v5980_v53 = vpop.f32.mrb[174].mxu0  ;;  %v6098_v12 = vpop.f32.mrb[174].mxu1  ;;  %v3728_v55 = vpack.c.bf16 (!%p5339_p13), %v3698_v33, %v3697_v27  ;;  %v3668_v22 = vadd.f32 (!%p5339_p13), %v7975_v58, %v3629_v21  ;;  %v3646_v21 = vld [vmem:[#allocation2 + $0xb0] sm:$0xff] (!%p5339_p13) }
 0x2ec   : > { %v5981_v23 = vpop.f32.mrb[175].mxu0  ;;  %v3543_v19 = vpop.f32.mrb[175].mxu1  ;;  %v3699_v10 = vmax.f32 (!%p5339_p13), %v3667_v24, 0.0  ;;  %v3669_v34 = vadd.f32 (!%p5339_p13), %v7975_v58, %v3630_v43  ;;  %v3671_v31 = vadd.f32 (!%p5339_p13), %v7975_v58, %v3632_v41  ;;  %v3713_v0 = vmax.f32 (!%p5339_p13), %v3681_v4, 0.0  ;;  %v3647_v43 = vld [vmem:[#allocation2 + $0xb8] sm:$0xff] (!%p5339_p13)  ;;  %v6561_v4 = vld [vmem:[%s8343_s5 + $0xe0] sm:$0xff] (!%p5339_p13)  }
 0x2ed   : > { %v3388_v49 = vadd.f32 %v5979_v46, %v7831_v61  ;;  %v3583_v14 = vadd.f32 %v3541_v30, %v793_v20  ;;  %v5982_v50 = vadd.f32 %v5981_v23, %v5980_v53  ;;  %v3544_v16 = vadd.f32 %v3543_v19, %v3383_v29  ;;  %v6520_v61 = vld [vmem:[%s8341_s3 + $0x4] ss:$16 sps:$4 sm:$0xff] (!%p5339_p13)   ;;  %v3633_v29 = vld [vmem:[#allocation2 + $0x48] sm:$0xff] (!%p5339_p13) }
 0x2ee   : > { %3910 = vmatprep.subr.bf16.mxu0 (!%p5339_p13), %v6520_v61  ;;  %v3670_v20 = vadd.f32 (!%p5339_p13), %v7975_v58, %v3631_v26  ;;  %v3672_v46 = vadd.f32 (!%p5339_p13), %v7975_v58, %v3633_v29  ;;  %v3701_v53 = vmax.f32 (!%p5339_p13), %v3669_v34, 0.0  ;;  %v3703_v23 = vmax.f32 (!%p5339_p13), %v3671_v31, 0.0  ;;  %v3648_v29 = vld [vmem:[#allocation2 + $0xc0] sm:$0xff] (!%p5339_p13) }
 0x2ef   : > { %v3549_v25 = vadd.f32 %v6097_v63, %v3388_v49  ;;  %3616 = vst.msk [vmem:[#allocation2 + $0xe0] sm:$0xff] %vm3587_vm1, %v3583_v14  ;;  %v3391_v59 = vadd.f32 %v5982_v50, %v7837_v8  ;;  %v3584_v35 = vadd.f32 %v3544_v16, %v794_v6  ;;  %3623 = sbr.rel (%p5339_p13) target bundleno = 1346 (0x542), region = 82  ;;  %v6522_v8 = vld [vmem:[%s8341_s3 + $0xc] ss:$16 sps:$4 sm:$0xff] (!%p5339_p13)   ;;  %3911 = vmatpush1.bf16.msra.mxu0 (!%p5339_p13), %v6524_v48  ;;  %v3700_v63 = vmax.f32 (!%p5339_p13), %v3668_v22, 0.0  ;;  %v3634_v49 = vld [vmem:[#allocation2 + $0x50] sm:$0xff] (!%p5339_p13) }
 0x2f0   : > { %4103 = vmatprep.subr.bf16.mxu1 (!%p5339_p13), %v6522_v8  ;;  %3912 = vmatprep.subr.bf16.mxu0 (!%p5339_p13), %v6526_v62  ;;  %v3704_v6 = vmax.f32 (!%p5339_p13), %v3672_v46, 0.0  ;;  %v3635_v14 = vld [vmem:[#allocation2 + $0x58] sm:$0xff] (!%p5339_p13)  ;;  %v3673_v16 = vadd.f32 (!%p5339_p13), %v7975_v58, %v3634_v49  ;;  %v3638_v48 = vld [vmem:[#allocation2 + $0x70] sm:$0xff] (!%p5339_p13)  ;;  %v3684_v27 = vadd.f32 (!%p5339_p13), %v7975_v58, %v3645_v52  ;;  %v3685_v24 = vadd.f32 (!%p5339_p13), %v7975_v58, %v3646_v21  ;;  %v6566_v52 = vld [vmem:[%s8343_s5 + $0x28] sm:$0xff] (!%p5339_p13)  }
 0x2f1   : > { %v3585_v36 = vadd.f32 %v3549_v25, %v795_v17  ;;  %v3552_v15 = vadd.f32 %v6098_v12, %v3391_v59  ;;  %3617 = vst.msk [vmem:[#allocation2 + $0xe8] sm:$0xff] %vm3587_vm1, %v3584_v35  ;;  %4104 = vmatpush1.bf16.msra.mxu1 (!%p5339_p13), %v6525_v40  ;;  %v3729_v30 = vpack.c.bf16 (!%p5339_p13), %v3700_v63, %v3699_v10  ;;  %v3702_v12 = vmax.f32 (!%p5339_p13), %v3670_v20, 0.0  ;;  %v3636_v35 = vld [vmem:[#allocation2 + $0x60] sm:$0xff] (!%p5339_p13)  ;;  %v3639_v40 = vld [vmem:[#allocation2 + $0x78] sm:$0xff] (!%p5339_p13)  ;;  %v3649_v10 = vld [vmem:[#allocation2 + $0xc8] sm:$0xff] (!%p5339_p13) }
 0x2f2   : > { %4105 = vmatprep.subr.bf16.mxu1 (!%p5339_p13), %v6528_v32  ;;  %v3731_v50 = vpack.c.bf16 (!%p5339_p13), %v3704_v6, %v3703_v23  ;;  %v3674_v17 = vadd.f32 (!%p5339_p13), %v7975_v58, %v3635_v14  ;;  %v3705_v25 = vmax.f32 (!%p5339_p13), %v3673_v16, 0.0  ;;  %v3677_v32 = vadd.f32 (!%p5339_p13), %v7975_v58, %v3638_v48  ;;  %v6570_v21 = vld [vmem:[%s8343_s5 + $0x30] sm:$0xff] (!%p5339_p13)  }
 0x2f3   : > { %3618 = vst.msk [vmem:[#allocation2 + $0xf0] sm:$0xff] %vm3587_vm1, %v3585_v36  ;;  %v3586_v38 = vadd.f32 %v3552_v15, %v796_v11  ;;  %3913 = vmatpush1.bf16.msra.mxu0 (!%p5339_p13), %v6530_v56  ;;  %v3730_v19 = vpack.c.bf16 (!%p5339_p13), %v3702_v12, %v3701_v53  ;;  %v3637_v11 = vld [vmem:[#allocation2 + $0x68] sm:$0xff] (!%p5339_p13)  ;;  %v3675_v15 = vadd.f32 (!%p5339_p13), %v7975_v58, %v3636_v35  ;;  %v3716_v28 = vmax.f32 (!%p5339_p13), %v3684_v27, 0.0  ;;  %v3651_v53 = vld [vmem:[#allocation2 + $0xd8] sm:$0xff] (!%p5339_p13) }
 0x2f4   : > { %3914 = vmatprep.subr.bf16.mxu0 (!%p5339_p13), %v6532_v5  ;;  %v3706_v59 = vmax.f32 (!%p5339_p13), %v3674_v17, 0.0  ;;  %v3678_v56 = vadd.f32 (!%p5339_p13), %v7975_v58, %v3639_v40  ;;  %v3686_v22 = vadd.f32 (!%p5339_p13), %v7975_v58, %v3647_v43  ;;  %v3717_v26 = vmax.f32 (!%p5339_p13), %v3685_v24, 0.0  ;;  %v6571_v43 = vld [vmem:[%s8343_s5 + $0xb0] sm:$0xff] (!%p5339_p13)  }
 0x2f5   : > { %3619 = vst.msk [vmem:[#allocation2 + $0xf8] sm:$0xff] %vm3587_vm1, %v3586_v38  ;;  %4106 = vmatpush1.bf16.msra.mxu1 (!%p5339_p13), %v6531_v57  ;;  %v3676_v38 = vadd.f32 (!%p5339_p13), %v7975_v58, %v3637_v11  ;;  %v3707_v61 = vmax.f32 (!%p5339_p13), %v3675_v15, 0.0  ;;  %v3709_v57 = vmax.f32 (!%p5339_p13), %v3677_v32, 0.0  ;;  %v3687_v34 = vadd.f32 (!%p5339_p13), %v7975_v58, %v3648_v29  ;;  %v6544_v15 = vld [vmem:[%s8343_s5 + $0x40] sm:$0xff] (!%p5339_p13)  }
 0x2f6   : > { %4107 = vmatprep.subr.bf16.mxu1 %v6534_v1  ;;  %v3732_v36 = vpack.c.bf16 %v3706_v59, %v3705_v25  ;;  %v3710_v5 = vmax.f32 %v3678_v56, 0.0  ;;  %v3640_v1 = vld [vmem:[#allocation2 + $0x80] sm:$0xff]  ;;  %v3718_v41 = vmax.f32 %v3686_v22, 0.0  ;;  %v3688_v20 = vadd.f32 %v7975_v58, %v3649_v10 }
 0x2f7   : > { %3915 = vmatpush1.bf16.msra.mxu0 %v6536_v37  ;;  %v3708_v8 = vmax.f32 %v3676_v38, 0.0  ;;  %v3641_v37 = vld [vmem:[#allocation2 + $0x88] sm:$0xff]  ;;  %v3719_v31 = vmax.f32 %v3687_v34, 0.0  ;;  %v3690_v6 = vadd.f32 %v7975_v58, %v3651_v53  ;;  %v3652_v14 = vld [vmem:[#allocation2 + $0xe0] sm:$0xff] }
 0x2f8   : > { %3916 = vmatprep.subr.bf16.mxu0 %v6538_v60  ;;  %v3679_v60 = vadd.f32 %v7975_v58, %v3640_v1  ;;  %v3738_v63 = vpack.c.bf16 %v3718_v41, %v3717_v26  ;;  %v3720_v46 = vmax.f32 %v3688_v20, 0.0  ;;  %v3691_v17 = vadd.f32 %v7975_v58, %v3652_v14  ;;  %v6545_v38 = vld [vmem:[%s8343_s5 + $0xc0] sm:$0xff]   ;;  %v6550_v1 = vld [vmem:[%s8343_s5 + $0x8] sm:$0xff]  }
 0x2f9   : > { %4108 = vmatpush1.bf16.msra.mxu1 %v6537_v47  ;;  %v3733_v62 = vpack.c.bf16 %v3708_v8, %v3707_v61  ;;  %v3734_v47 = vpack.c.bf16 %v3710_v5, %v3709_v57  ;;  %v3722_v49 = vmax.f32 %v3690_v6, 0.0  ;;  %v6546_v61 = vld [vmem:[%s8343_s5] sm:$0xff]   ;;  %v6549_v5 = vld [vmem:[%s8343_s5 + $0xc8] sm:$0xff]  }
 0x2fa   : > { %4109 = vmatprep.subr.bf16.mxu1 %v6540_v45  ;;  %v3680_v45 = vadd.f32 %v7975_v58, %v3641_v37  ;;  %v3711_v51 = vmax.f32 %v3679_v60, 0.0  ;;  %v3739_v12 = vpack.c.bf16 %v3720_v46, %v3719_v31  ;;  %v3723_v59 = vmax.f32 %v3691_v17, 0.0  ;;  %v3654_v11 = vld [vmem:[#allocation2 + $0xf0] sm:$0xff]  ;;  %v6547_v8 = vld [vmem:[%s8343_s5 + $0x80] sm:$0xff]  }
 0x2fb   : > { %3917 = vmatpush1.bf16.msra.mxu0 %v6542_v3  ;;  %v3693_v40 = vadd.f32 %v7975_v58, %v3654_v11  ;;  %v6552_v37 = vld [vmem:[%s8343_s5 + $0x50] sm:$0xff]   ;;  %v3760_v22 = vld [vmem:[%s8342_s4] sm:$0xf] }
 0x2fc   : > { %v3712_v3 = vmax.f32 %v3680_v45, 0.0  ;;  %6007 = vmatprep.subr.bf16.mxu0 %v6544_v15  ;;  %v6554_v60 = vld [vmem:[%s8343_s5 + $0x10] sm:$0xff]  }
 0x2fd   : > { %4110 = vmatpush1.bf16.msra.mxu1 %v6543_v54  ;;  %v3643_v54 = vld [vmem:[#allocation2 + $0x98] sm:$0xff]  ;;  %v3725_v32 = vmax.f32 %v3693_v40, 0.0  ;;  %v6555_v45 = vld [vmem:[%s8343_s5 + $0x90] sm:$0xff]  }
 0x2fe   : > { %5357 = vmatmul.mubr.msk.bf16.vlgmr.msra.gmra.mrb[0].mxu0 %vm3587_vm1, %v3727_v9  ;;  %v3735_v2 = vpack.c.bf16 %v3712_v3, %v3711_v51  ;;  %v3682_v44 = vadd.f32 %v7975_v58, %v3643_v54  ;;  %6029 = vmatprep.subr.bf16.mxu1 %v6545_v38  ;;  %v6556_v51 = vld [vmem:[%s8343_s5 + $0x58] sm:$0xff]  }
 0x2ff   : > { %3952 = vmatprep.mubr.bf16.mxu0 %v6633_v42  ;;  %6008 = vmatpush3.bf16.msra.mxu0 %v6546_v61  ;;  %v6557_v3 = vld [vmem:[%s8343_s5 + $0xd8] sm:$0xff]  }
 0x300   : > { %5373 = vmatmul.mubr.msk.bf16.vlgmr.msra.gmra.mrb[0].mxu1 %vm3587_vm1, %v3727_v9  ;;  %v3714_v39 = vmax.f32 %v3682_v44, 0.0  ;;  %v3683_v9 = vadd.f32 %v7975_v58, %v3644_v13  ;;  %v6559_v54 = vld [vmem:[%s8343_s5 + $0x98] sm:$0xff]   ;;  %v6562_v44 = vld [vmem:[%s8343_s5 + $0x20] sm:$0xff]   ;;  %v6565_v13 = vld [vmem:[%s8343_s5 + $0xe8] sm:$0xff]  }
 0x301   : > { %4145 = vmatprep.mubr.bf16.mxu1 %v6633_v42  ;;  %6030 = vmatpush3.bf16.msra.mxu1 %v6547_v8 }
 0x302   : > { %v3736_v18 = vpack.c.bf16 %v3714_v39, %v3713_v0  ;;  %v3715_v33 = vmax.f32 %v3683_v9, 0.0  ;;  %6031 = vmatprep.subr.bf16.mxu1 %v6549_v5  ;;  %v6563_v0 = vld [vmem:[%s8343_s5 + $0xa0] sm:$0xff]   ;;  %v6564_v39 = vld [vmem:[%s8343_s5 + $0x68] sm:$0xff]   ;;  %v3762_v9 = vlaneseq }
 0x304   : > { %v3763_v27 = vshrl.u32 %v3762_v9, 7 }
 0x306   : > { %5358 = vmatmul.mubr.msk.bf16.gmra.mrb[4].mxu0 %vm3587_vm1, %v3728_v55  ;;  %v3772_v24 = vsub.s32 2, %v3763_v27  ;;  %v3768_v26 = vsub.s32 1, %v3763_v27  ;;  %v3776_v41 = vsub.s32 3, %v3763_v27 }
 0x307   : > { %3962 = vmatprep.mubr.bf16.mxu0 %v6633_v42 }
 0x308   : > { %5374 = vmatmul.mubr.msk.bf16.gmra.mrb[4].mxu1 %vm3587_vm1, %v3728_v55  ;;  %v3737_v55 = vpack.c.bf16 %v3716_v28, %v3715_v33  ;;  %v6568_v33 = vld [vmem:[%s8343_s5 + $0x70] sm:$0xff]   ;;  %v8163_v10 = vrot.slane %v3760_v22, %v3772_v24  ;;  %v8167_v34 = vrot.slane %v3760_v22, %v3776_v41  ;;  %v6575_v41 = vld [vmem:[%s8343_s5 + $0xb8] sm:$0xff]  }
 0x309   : > { %4155 = vmatprep.mubr.bf16.mxu1 %v6633_v42  ;;  %v6569_v28 = vld [vmem:[%s8343_s5 + $0xf0] sm:$0xff]  }
 0x30e   : > { %5359 = vmatmul.mubr.msk.bf16.gmra.mrb[8].mxu0 %vm3587_vm1, %v3729_v30 }
 0x30f   : > { %3972 = vmatprep.mubr.bf16.mxu0 %v6633_v42 }
 0x310   : > { %5375 = vmatmul.mubr.msk.bf16.gmra.mrb[8].mxu1 %vm3587_vm1, %v3729_v30  ;;  %v3650_v30 = vld [vmem:[#allocation2 + $0xd0] sm:$0xff] }
 0x311   : > { %4165 = vmatprep.mubr.bf16.mxu1 %v6633_v42  ;;  %v3689_v23 = vadd.f32 %v7975_v58, %v3650_v30 }
 0x316   : > { %5360 = vmatmul.mubr.msk.bf16.gmra.mrb[12].mxu0 %vm3587_vm1, %v3730_v19 }
 0x317   : > { %3982 = vmatprep.mubr.bf16.mxu0 %v6633_v42 }
 0x318   : > { %5376 = vmatmul.mubr.msk.bf16.gmra.mrb[12].mxu1 %vm3587_vm1, %v3730_v19  ;;  %v3721_v19 = vmax.f32 %v3689_v23, 0.0 }
 0x319   : > { %4175 = vmatprep.mubr.bf16.mxu1 %v6633_v42 }
 0x31a   : > { %v3740_v16 = vpack.c.bf16 %v3722_v49, %v3721_v19 }
 0x31e   : > { %5361 = vmatmul.mubr.msk.bf16.gmra.mrb[16].mxu0 %vm3587_vm1, %v3731_v50 }
 0x31f   : > { %3992 = vmatprep.mubr.bf16.mxu0 %v6633_v42 }
 0x320   : > { %5377 = vmatmul.mubr.msk.bf16.gmra.mrb[16].mxu1 %vm3587_vm1, %v3731_v50  ;;  %v3653_v50 = vld [vmem:[#allocation2 + $0xe8] sm:$0xff] }
 0x321   : > { %4185 = vmatprep.mubr.bf16.mxu1 %v6633_v42  ;;  %v3692_v25 = vadd.f32 %v7975_v58, %v3653_v50 }
 0x323   : > { %v3724_v35 = vmax.f32 %v3692_v25, 0.0 }
 0x325   : > { %v3741_v48 = vpack.c.bf16 %v3724_v35, %v3723_v59 }
 0x326   : > { %5362 = vmatmul.mubr.msk.bf16.gmra.mrb[20].mxu0 %vm3587_vm1, %v3732_v36 }
 0x327   : > { %4002 = vmatprep.mubr.bf16.mxu0 %v6633_v42 }
 0x328   : > { %5378 = vmatmul.mubr.msk.bf16.gmra.mrb[20].mxu1 %vm3587_vm1, %v3732_v36  ;;  %v3655_v36 = vld [vmem:[#allocation2 + $0xf8] sm:$0xff] }
 0x329   : > { %4195 = vmatprep.mubr.bf16.mxu1 %v6633_v42 }
 0x32e   : > { %5363 = vmatmul.mubr.msk.bf16.gmra.mrb[24].mxu0 %vm3587_vm1, %v3733_v62 }
 0x32f   : > { %4012 = vmatprep.mubr.bf16.mxu0 %v6633_v42 }
 0x330   : > { %5379 = vmatmul.mubr.msk.bf16.gmra.mrb[24].mxu1 %vm3587_vm1, %v3733_v62  ;;  %v3694_v62 = vadd.f32 %v7975_v58, %v3655_v36  ;;  %v6548_v58 = vld [vmem:[%s8343_s5 + $0x48] sm:$0xff]  }
 0x331   : > { %4205 = vmatprep.mubr.bf16.mxu1 %v6633_v42  ;;  %6009 = vmatprep.subr.bf16.mxu0 %v6548_v58 }
 0x332   : > { %v3726_v56 = vmax.f32 %v3694_v62, 0.0  ;;  %6010 = vmatpush3.bf16.msra.mxu0 %v6550_v1 }
 0x333   : > { %6011 = vmatprep.subr.bf16.mxu0 %v6552_v37 }
 0x334   : > { %v3742_v57 = vpack.c.bf16 %v3726_v56, %v3725_v32 }
 0x336   : > { %5364 = vmatmul.mubr.msk.bf16.gmra.mrb[28].mxu0 %vm3587_vm1, %v3734_v47 }
 0x337   : > { %4022 = vmatprep.mubr.bf16.mxu0 %v6633_v42  ;;  %6012 = vmatpush3.bf16.msra.mxu0 %v6554_v60 }
 0x338   : > { %5380 = vmatmul.mubr.msk.bf16.gmra.mrb[28].mxu1 %vm3587_vm1, %v3734_v47  ;;  %v6553_v47 = vld [vmem:[%s8343_s5 + $0xd0] sm:$0xff]   ;;  %6013 = vmatprep.subr.bf16.mxu0 %v6556_v51 }
 0x339   : > { %4215 = vmatprep.mubr.bf16.mxu1 %v6633_v42 }
 0x33b   : > { %6014 = vmatpush3.bf16.msra.mxu0 %v6558_v7 }
 0x33e   : > { %5365 = vmatmul.mubr.msk.bf16.gmra.mrb[32].mxu0 %vm3587_vm1, %v3735_v2 }
 0x33f   : > { %4032 = vmatprep.mubr.bf16.mxu0 %v6633_v42 }
 0x340   : > { %5381 = vmatmul.mubr.msk.bf16.gmra.mrb[32].mxu1 %vm3587_vm1, %v3735_v2  ;;  %v6560_v2 = vld [vmem:[%s8343_s5 + $0x60] sm:$0xff]  }
 0x341   : > { %4225 = vmatprep.mubr.bf16.mxu1 %v6633_v42  ;;  %6015 = vmatprep.subr.bf16.mxu0 %v6560_v2 }
 0x342   : > { %6016 = vmatpush3.bf16.msra.mxu0 %v6562_v44 }
 0x343   : > { %6017 = vmatprep.subr.bf16.mxu0 %v6564_v39 }
 0x346   : > { %5366 = vmatmul.mubr.msk.bf16.gmra.mrb[36].mxu0 %vm3587_vm1, %v3736_v18 }
 0x347   : > { %4042 = vmatprep.mubr.bf16.mxu0 %v6633_v42  ;;  %6018 = vmatpush3.bf16.msra.mxu0 %v6566_v52 }
 0x348   : > { %5382 = vmatmul.mubr.msk.bf16.gmra.mrb[36].mxu1 %vm3587_vm1, %v3736_v18  ;;  %v6567_v18 = vld [vmem:[%s8343_s5 + $0xa8] sm:$0xff]   ;;  %6019 = vmatprep.subr.bf16.mxu0 %v6568_v33 }
 0x349   : > { %4235 = vmatprep.mubr.bf16.mxu1 %v6633_v42 }
 0x34b   : > { %6020 = vmatpush3.bf16.msra.mxu0 %v6570_v21  ;;  %v6573_v21 = vld [vmem:[%s8343_s5 + $0xf8] sm:$0xff]  }
 0x34e   : > { %5367 = vmatmul.mubr.msk.bf16.gmra.mrb[40].mxu0 %vm3587_vm1, %v3737_v55 }
 0x34f   : > { %4052 = vmatprep.mubr.bf16.mxu0 %v6633_v42 }
 0x350   : > { %5383 = vmatmul.mubr.msk.bf16.gmra.mrb[40].mxu1 %vm3587_vm1, %v3737_v55  ;;  %v3764_v55 = vsub.s32 0, %v3763_v27 }
 0x351   : > { %4245 = vmatprep.mubr.bf16.mxu1 %v6633_v42 }
 0x352   : > { %v8161_v29 = vrot.slane %v3760_v22, %v3764_v55 }
 0x356   : > { %5368 = vmatmul.mubr.msk.bf16.gmra.mrb[44].mxu0 %vm3587_vm1, %v3738_v63 }
 0x357   : > { %4062 = vmatprep.mubr.bf16.mxu0 %v6633_v42 }
 0x358   : > { %5384 = vmatmul.mubr.msk.bf16.gmra.mrb[44].mxu1 %vm3587_vm1, %v3738_v63  ;;  %v8165_v63 = vrot.slane %v3760_v22, %v3768_v26  ;;  %v6574_v26 = vld [vmem:[%s8343_s5 + $0x38] sm:$0xff]  }
 0x359   : > { %4255 = vmatprep.mubr.bf16.mxu1 %v6633_v42 }
 0x35e   : > { %5369 = vmatmul.mubr.msk.bf16.gmra.mrb[48].mxu0 %vm3587_vm1, %v3739_v12 }
 0x35f   : > { %4072 = vmatprep.mubr.bf16.mxu0 %v6633_v42 }
 0x360   : > { %5385 = vmatmul.mubr.msk.bf16.gmra.mrb[48].mxu1 %vm3587_vm1, %v3739_v12 }
 0x361   : > { %4265 = vmatprep.mubr.bf16.mxu1 %v6633_v42 }
 0x366   : > { %5370 = vmatmul.mubr.msk.bf16.gmra.mrb[52].mxu0 %vm3587_vm1, %v3740_v16 }
 0x367   : > { %4082 = vmatprep.mubr.bf16.mxu0 %v6633_v42 }
 0x368   : > { %5386 = vmatmul.mubr.msk.bf16.gmra.mrb[52].mxu1 %vm3587_vm1, %v3740_v16 }
 0x369   : > { %4275 = vmatprep.mubr.bf16.mxu1 %v6633_v42 }
 0x36e   : > { %5371 = vmatmul.mubr.msk.bf16.gmra.mrb[56].mxu0 %vm3587_vm1, %v3741_v48 }
 0x36f   : > { %4092 = vmatprep.mubr.bf16.mxu0 %v6633_v42 }
 0x370   : > { %5387 = vmatmul.mubr.msk.bf16.gmra.mrb[56].mxu1 %vm3587_vm1, %v3741_v48 }
 0x371   : > { %4285 = vmatprep.mubr.bf16.mxu1 %v6633_v42  ;;  %v6551_v42 = vld [vmem:[%s8343_s5 + $0x88] sm:$0xff]  }
 0x372   : > { %6032 = vmatpush3.bf16.msra.mxu1 %v6551_v42 }
 0x373   : > { %6033 = vmatprep.subr.bf16.mxu1 %v6553_v47 }
 0x376   : > { %5372 = vmatmul.mubr.msk.bf16.gmra.mrb[60].mxu0 %vm3587_vm1, %v3742_v57  ;;  %6034 = vmatpush3.bf16.msra.mxu1 %v6555_v45 }
 0x377   : > { %6035 = vmatprep.subr.bf16.mxu1 %v6557_v3 }
 0x378   : > { %5388 = vmatmul.mubr.msk.bf16.gmra.mrb[60].mxu1 %vm3587_vm1, %v3742_v57 }
 0x37a   : > { %6036 = vmatpush3.bf16.msra.mxu1 %v6559_v54 }
 0x37b   : > { %6037 = vmatprep.subr.bf16.mxu1 %v6561_v4 }
 0x37e   : > { %6038 = vmatpush3.bf16.msra.mxu1 %v6563_v0 }
 0x37f   : > { %6039 = vmatprep.subr.bf16.mxu1 %v6565_v13 }
 0x382   : > { %6040 = vmatpush3.bf16.msra.mxu1 %v6567_v18 }
 0x383   : > { %6041 = vmatprep.subr.bf16.mxu1 %v6569_v28  ;;  %v6572_v28 = vld [vmem:[%s8343_s5 + $0x78] sm:$0xff]  }
 0x384   : > { %6021 = vmatprep.subr.bf16.mxu0 %v6572_v28 }
 0x385   : > { %6022 = vmatpush3.bf16.msra.mxu0 %v6574_v26 }
 0x386   : > { %6042 = vmatpush3.bf16.msra.mxu1 %v6571_v43 }
 0x387   : > { %6043 = vmatprep.subr.bf16.mxu1 %v6573_v21 }
 0x38a   : > { %6044 = vmatpush3.bf16.msra.mxu1 %v6575_v41 }
 0x3d1   : > { %v3944_v20 = vpop.f32.mrb[0].mxu0 }
 0x3d2   : > { %v3945_v46 = vadd.f32 %v3944_v20, %v8161_v29  ;;  %v3946_v53 = vpop.f32.mrb[1].mxu0 }
 0x3d3   : > { %v4137_v31 = vpop.f32.mrb[0].mxu1  ;;  %v3947_v23 = vadd.f32 %v3946_v53, %v8165_v63  ;;  %v3948_v19 = vpop.f32.mrb[2].mxu0 }
 0x3d4   : > { %v4138_v30 = vadd.f32 %v4137_v31, %v8163_v10  ;;  %v4139_v12 = vpop.f32.mrb[1].mxu1  ;;  %v3949_v14 = vadd.f32 %v3948_v19, %v8161_v29  ;;  %v3950_v16 = vpop.f32.mrb[3].mxu0  ;;  %v4296_v35 = vmax.f32 %v3945_v46, 0.0 }
 0x3d5   : > { %v4140_v6 = vadd.f32 %v4139_v12, %v8167_v34  ;;  %v4141_v49 = vpop.f32.mrb[2].mxu1  ;;  %v3951_v25 = vadd.f32 %v3950_v16, %v8165_v63  ;;  %v4297_v38 = vmax.f32 %v3947_v23, 0.0 }
 0x3d6   : > { %v4142_v50 = vadd.f32 %v4141_v49, %v8163_v10  ;;  %v4143_v17 = vpop.f32.mrb[3].mxu1  ;;  %v4298_v11 = vmax.f32 %v4138_v30, 0.0  ;;  %v4300_v36 = vmax.f32 %v3949_v14, 0.0 }
 0x3d7   : > { %v4144_v59 = vadd.f32 %v4143_v17, %v8167_v34  ;;  %v4299_v61 = vmax.f32 %v4140_v6, 0.0  ;;  %v4301_v8 = vmax.f32 %v3951_v25, 0.0 }
 0x3d8   : > { %v4302_v15 = vmax.f32 %v4142_v50, 0.0  ;;  %v4424_v40 = vadd.f32 %v4300_v36, %v4296_v35 }
 0x3d9   : > { %v4303_v48 = vmax.f32 %v4144_v59, 0.0  ;;  %v4461_v32 = vadd.f32 %v4301_v8, %v4297_v38  ;;  %v3954_v57 = vpop.f32.mrb[4].mxu0 }
 0x3da   : > { %v4498_v62 = vadd.f32 %v4302_v15, %v4298_v11  ;;  %v3955_v5 = vadd.f32 %v3954_v57, %v8161_v29  ;;  %v3956_v42 = vpop.f32.mrb[5].mxu0 }
 0x3db   : > { %v4535_v56 = vadd.f32 %v4303_v48, %v4299_v61  ;;  %v4147_v58 = vpop.f32.mrb[4].mxu1  ;;  %v3957_v47 = vadd.f32 %v3956_v42, %v8165_v63  ;;  %v3958_v45 = vpop.f32.mrb[6].mxu0 }
 0x3dc   : > { %v4148_v1 = vadd.f32 %v4147_v58, %v8163_v10  ;;  %v4149_v37 = vpop.f32.mrb[5].mxu1  ;;  %v4304_v3 = vmax.f32 %v3955_v5, 0.0  ;;  %v3959_v54 = vadd.f32 %v3958_v45, %v8161_v29  ;;  %v3960_v4 = vpop.f32.mrb[7].mxu0 }
 0x3dd   : > { %v4150_v60 = vadd.f32 %v4149_v37, %v8167_v34  ;;  %v4151_v51 = vpop.f32.mrb[6].mxu1  ;;  %v4305_v0 = vmax.f32 %v3957_v47, 0.0  ;;  %v3961_v13 = vadd.f32 %v3960_v4, %v8165_v63 }
 0x3de   : > { %v4306_v7 = vmax.f32 %v4148_v1, 0.0  ;;  %v4152_v2 = vadd.f32 %v4151_v51, %v8163_v10  ;;  %v4153_v44 = vpop.f32.mrb[7].mxu1  ;;  %v4425_v18 = vadd.f32 %v4424_v40, %v4304_v3  ;;  %v4308_v27 = vmax.f32 %v3959_v54, 0.0 }
 0x3df   : > { %v4307_v39 = vmax.f32 %v4150_v60, 0.0  ;;  %v4154_v52 = vadd.f32 %v4153_v44, %v8167_v34  ;;  %v4462_v43 = vadd.f32 %v4461_v32, %v4305_v0  ;;  %v4309_v24 = vmax.f32 %v3961_v13, 0.0 }
 0x3e0   : > { %v4499_v9 = vadd.f32 %v4498_v62, %v4306_v7  ;;  %v4310_v33 = vmax.f32 %v4152_v2, 0.0  ;;  %v4426_v20 = vadd.f32 %v4425_v18, %v4308_v27 }
 0x3e1   : > { %v4536_v55 = vadd.f32 %v4535_v56, %v4307_v39  ;;  %v4311_v22 = vmax.f32 %v4154_v52, 0.0  ;;  %v4463_v46 = vadd.f32 %v4462_v43, %v4309_v24  ;;  %v3964_v53 = vpop.f32.mrb[8].mxu0 }
 0x3e2   : > { %v4500_v31 = vadd.f32 %v4499_v9, %v4310_v33  ;;  %v3965_v23 = vadd.f32 %v3964_v53, %v8161_v29  ;;  %v3966_v19 = vpop.f32.mrb[9].mxu0 }
 0x3e3   : > { %v4537_v30 = vadd.f32 %v4536_v55, %v4311_v22  ;;  %v4157_v12 = vpop.f32.mrb[8].mxu1  ;;  %v3967_v14 = vadd.f32 %v3966_v19, %v8165_v63  ;;  %v3968_v16 = vpop.f32.mrb[10].mxu0 }
 0x3e4   : > { %v4158_v6 = vadd.f32 %v4157_v12, %v8163_v10  ;;  %v4159_v49 = vpop.f32.mrb[9].mxu1  ;;  %v4312_v25 = vmax.f32 %v3965_v23, 0.0  ;;  %v3969_v35 = vadd.f32 %v3968_v16, %v8161_v29  ;;  %v3970_v36 = vpop.f32.mrb[11].mxu0 }
 0x3e5   : > { %v4160_v50 = vadd.f32 %v4159_v49, %v8167_v34  ;;  %v4161_v17 = vpop.f32.mrb[10].mxu1  ;;  %v4313_v38 = vmax.f32 %v3967_v14, 0.0  ;;  %v3971_v8 = vadd.f32 %v3970_v36, %v8165_v63 }
 0x3e6   : > { %v4314_v59 = vmax.f32 %v4158_v6, 0.0  ;;  %v4162_v11 = vadd.f32 %v4161_v17, %v8163_v10  ;;  %v4163_v15 = vpop.f32.mrb[11].mxu1  ;;  %v4427_v40 = vadd.f32 %v4426_v20, %v4312_v25  ;;  %v4316_v32 = vmax.f32 %v3969_v35, 0.0 }
 0x3e7   : > { %v4315_v61 = vmax.f32 %v4160_v50, 0.0  ;;  %v4164_v48 = vadd.f32 %v4163_v15, %v8167_v34  ;;  %v4464_v57 = vadd.f32 %v4463_v46, %v4313_v38  ;;  %v4317_v5 = vmax.f32 %v3971_v8, 0.0 }
 0x3e8   : > { %v4501_v62 = vadd.f32 %v4500_v31, %v4314_v59  ;;  %v4318_v56 = vmax.f32 %v4162_v11, 0.0  ;;  %v4428_v42 = vadd.f32 %v4427_v40, %v4316_v32 }
 0x3e9   : > { %v4538_v58 = vadd.f32 %v4537_v30, %v4315_v61  ;;  %v4319_v1 = vmax.f32 %v4164_v48, 0.0  ;;  %v4465_v47 = vadd.f32 %v4464_v57, %v4317_v5  ;;  %v3974_v45 = vpop.f32.mrb[12].mxu0 }
 0x3ea   : > { %v4502_v37 = vadd.f32 %v4501_v62, %v4318_v56  ;;  %v3975_v3 = vadd.f32 %v3974_v45, %v8161_v29  ;;  %v3976_v54 = vpop.f32.mrb[13].mxu0 }
 0x3eb   : > { %v4539_v60 = vadd.f32 %v4538_v58, %v4319_v1  ;;  %v4167_v51 = vpop.f32.mrb[12].mxu1  ;;  %v3977_v4 = vadd.f32 %v3976_v54, %v8165_v63  ;;  %v3978_v0 = vpop.f32.mrb[14].mxu0 }
 0x3ec   : > { %v4168_v7 = vadd.f32 %v4167_v51, %v8163_v10  ;;  %v4169_v2 = vpop.f32.mrb[13].mxu1  ;;  %v4320_v13 = vmax.f32 %v3975_v3, 0.0  ;;  %v3979_v18 = vadd.f32 %v3978_v0, %v8161_v29  ;;  %v3980_v27 = vpop.f32.mrb[15].mxu0 }
 0x3ed   : > { %v4170_v44 = vadd.f32 %v4169_v2, %v8167_v34  ;;  %v4171_v39 = vpop.f32.mrb[14].mxu1  ;;  %v4321_v28 = vmax.f32 %v3977_v4, 0.0  ;;  %v3981_v43 = vadd.f32 %v3980_v27, %v8165_v63 }
 0x3ee   : > { %v4322_v52 = vmax.f32 %v4168_v7, 0.0  ;;  %v4172_v9 = vadd.f32 %v4171_v39, %v8163_v10  ;;  %v4173_v33 = vpop.f32.mrb[15].mxu1  ;;  %v4429_v24 = vadd.f32 %v4428_v42, %v4320_v13  ;;  %v4324_v26 = vmax.f32 %v3979_v18, 0.0 }
 0x3ef   : > { %v4323_v21 = vmax.f32 %v4170_v44, 0.0  ;;  %v4174_v55 = vadd.f32 %v4173_v33, %v8167_v34  ;;  %v4466_v20 = vadd.f32 %v4465_v47, %v4321_v28  ;;  %v4325_v46 = vmax.f32 %v3981_v43, 0.0 }
 0x3f0   : > { %v4503_v22 = vadd.f32 %v4502_v37, %v4322_v52  ;;  %v4326_v41 = vmax.f32 %v4172_v9, 0.0  ;;  %v4430_v53 = vadd.f32 %v4429_v24, %v4324_v26 }
 0x3f1   : > { %v4540_v31 = vadd.f32 %v4539_v60, %v4323_v21  ;;  %v4327_v30 = vmax.f32 %v4174_v55, 0.0  ;;  %v4467_v23 = vadd.f32 %v4466_v20, %v4325_v46  ;;  %v3984_v19 = vpop.f32.mrb[16].mxu0 }
 0x3f2   : > { %v4504_v12 = vadd.f32 %v4503_v22, %v4326_v41  ;;  %v3985_v14 = vadd.f32 %v3984_v19, %v8161_v29  ;;  %v3986_v16 = vpop.f32.mrb[17].mxu0 }
 0x3f3   : > { %v4541_v6 = vadd.f32 %v4540_v31, %v4327_v30  ;;  %v4177_v49 = vpop.f32.mrb[16].mxu1  ;;  %v3987_v25 = vadd.f32 %v3986_v16, %v8165_v63  ;;  %v3988_v35 = vpop.f32.mrb[18].mxu0 }
 0x3f4   : > { %v4178_v50 = vadd.f32 %v4177_v49, %v8163_v10  ;;  %v4179_v17 = vpop.f32.mrb[17].mxu1  ;;  %v4328_v36 = vmax.f32 %v3985_v14, 0.0  ;;  %v3989_v38 = vadd.f32 %v3988_v35, %v8161_v29  ;;  %v3990_v8 = vpop.f32.mrb[19].mxu0 }
 0x3f5   : > { %v4180_v59 = vadd.f32 %v4179_v17, %v8167_v34  ;;  %v4181_v11 = vpop.f32.mrb[18].mxu1  ;;  %v4329_v40 = vmax.f32 %v3987_v25, 0.0  ;;  %v3991_v32 = vadd.f32 %v3990_v8, %v8165_v63 }
 0x3f6   : > { %v4330_v15 = vmax.f32 %v4178_v50, 0.0  ;;  %v4182_v61 = vadd.f32 %v4181_v11, %v8163_v10  ;;  %v4183_v48 = vpop.f32.mrb[19].mxu1  ;;  %v4431_v57 = vadd.f32 %v4430_v53, %v4328_v36  ;;  %v4332_v5 = vmax.f32 %v3989_v38, 0.0 }
 0x3f7   : > { %v4331_v62 = vmax.f32 %v4180_v59, 0.0  ;;  %v4184_v56 = vadd.f32 %v4183_v48, %v8167_v34  ;;  %v4468_v42 = vadd.f32 %v4467_v23, %v4329_v40  ;;  %v4333_v47 = vmax.f32 %v3991_v32, 0.0 }
 0x3f8   : > { %v4505_v58 = vadd.f32 %v4504_v12, %v4330_v15  ;;  %v4334_v1 = vmax.f32 %v4182_v61, 0.0  ;;  %v4432_v45 = vadd.f32 %v4431_v57, %v4332_v5 }
 0x3f9   : > { %v4542_v37 = vadd.f32 %v4541_v6, %v4331_v62  ;;  %v4335_v60 = vmax.f32 %v4184_v56, 0.0  ;;  %v4469_v3 = vadd.f32 %v4468_v42, %v4333_v47  ;;  %v3994_v54 = vpop.f32.mrb[20].mxu0 }
 0x3fa   : > { %v4506_v51 = vadd.f32 %v4505_v58, %v4334_v1  ;;  %v3995_v4 = vadd.f32 %v3994_v54, %v8161_v29  ;;  %v3996_v0 = vpop.f32.mrb[21].mxu0 }
 0x3fb   : > { %v4543_v7 = vadd.f32 %v4542_v37, %v4335_v60  ;;  %v4187_v2 = vpop.f32.mrb[20].mxu1  ;;  %v3997_v13 = vadd.f32 %v3996_v0, %v8165_v63  ;;  %v3998_v18 = vpop.f32.mrb[22].mxu0 }
 0x3fc   : > { %v4188_v44 = vadd.f32 %v4187_v2, %v8163_v10  ;;  %v4189_v39 = vpop.f32.mrb[21].mxu1  ;;  %v4336_v27 = vmax.f32 %v3995_v4, 0.0  ;;  %v3999_v28 = vadd.f32 %v3998_v18, %v8161_v29  ;;  %v4000_v43 = vpop.f32.mrb[23].mxu0 }
 0x3fd   : > { %v4190_v52 = vadd.f32 %v4189_v39, %v8167_v34  ;;  %v4191_v9 = vpop.f32.mrb[22].mxu1  ;;  %v4337_v24 = vmax.f32 %v3997_v13, 0.0  ;;  %v4001_v26 = vadd.f32 %v4000_v43, %v8165_v63 }
 0x3fe   : > { %v4338_v33 = vmax.f32 %v4188_v44, 0.0  ;;  %v4192_v21 = vadd.f32 %v4191_v9, %v8163_v10  ;;  %v4193_v55 = vpop.f32.mrb[23].mxu1  ;;  %v4433_v20 = vadd.f32 %v4432_v45, %v4336_v27  ;;  %v4340_v46 = vmax.f32 %v3999_v28, 0.0 }
 0x3ff   : > { %v4339_v22 = vmax.f32 %v4190_v52, 0.0  ;;  %v4194_v41 = vadd.f32 %v4193_v55, %v8167_v34  ;;  %v4470_v53 = vadd.f32 %v4469_v3, %v4337_v24  ;;  %v4341_v23 = vmax.f32 %v4001_v26, 0.0 }
 0x400   : > { %v4507_v31 = vadd.f32 %v4506_v51, %v4338_v33  ;;  %v4342_v30 = vmax.f32 %v4192_v21, 0.0  ;;  %v4434_v19 = vadd.f32 %v4433_v20, %v4340_v46 }
 0x401   : > { %v4544_v12 = vadd.f32 %v4543_v7, %v4339_v22  ;;  %v4343_v6 = vmax.f32 %v4194_v41, 0.0  ;;  %v4471_v14 = vadd.f32 %v4470_v53, %v4341_v23  ;;  %v4004_v16 = vpop.f32.mrb[24].mxu0 }
 0x402   : > { %v4508_v49 = vadd.f32 %v4507_v31, %v4342_v30  ;;  %v4005_v25 = vadd.f32 %v4004_v16, %v8161_v29  ;;  %v4006_v35 = vpop.f32.mrb[25].mxu0 }
 0x403   : > { %v4545_v50 = vadd.f32 %v4544_v12, %v4343_v6  ;;  %v4197_v17 = vpop.f32.mrb[24].mxu1  ;;  %v4007_v36 = vadd.f32 %v4006_v35, %v8165_v63  ;;  %v4008_v38 = vpop.f32.mrb[26].mxu0 }
 0x404   : > { %v4198_v59 = vadd.f32 %v4197_v17, %v8163_v10  ;;  %v4199_v11 = vpop.f32.mrb[25].mxu1  ;;  %v4344_v8 = vmax.f32 %v4005_v25, 0.0  ;;  %v4009_v40 = vadd.f32 %v4008_v38, %v8161_v29  ;;  %v4010_v32 = vpop.f32.mrb[27].mxu0 }
 0x405   : > { %v4200_v15 = vadd.f32 %v4199_v11, %v8167_v34  ;;  %v4201_v61 = vpop.f32.mrb[26].mxu1  ;;  %v4345_v57 = vmax.f32 %v4007_v36, 0.0  ;;  %v4011_v5 = vadd.f32 %v4010_v32, %v8165_v63 }
 0x406   : > { %v4346_v48 = vmax.f32 %v4198_v59, 0.0  ;;  %v4202_v62 = vadd.f32 %v4201_v61, %v8163_v10  ;;  %v4203_v56 = vpop.f32.mrb[27].mxu1  ;;  %v4435_v42 = vadd.f32 %v4434_v19, %v4344_v8  ;;  %v4348_v47 = vmax.f32 %v4009_v40, 0.0 }
 0x407   : > { %v4347_v58 = vmax.f32 %v4200_v15, 0.0  ;;  %v4204_v1 = vadd.f32 %v4203_v56, %v8167_v34  ;;  %v4472_v45 = vadd.f32 %v4471_v14, %v4345_v57  ;;  %v4349_v3 = vmax.f32 %v4011_v5, 0.0 }
 0x408   : > { %v4509_v37 = vadd.f32 %v4508_v49, %v4346_v48  ;;  %v4350_v60 = vmax.f32 %v4202_v62, 0.0  ;;  %v4436_v54 = vadd.f32 %v4435_v42, %v4348_v47 }
 0x409   : > { %v4546_v51 = vadd.f32 %v4545_v50, %v4347_v58  ;;  %v4351_v7 = vmax.f32 %v4204_v1, 0.0  ;;  %v4473_v4 = vadd.f32 %v4472_v45, %v4349_v3  ;;  %v4014_v0 = vpop.f32.mrb[28].mxu0 }
 0x40a   : > { %v4510_v2 = vadd.f32 %v4509_v37, %v4350_v60  ;;  %v4015_v13 = vadd.f32 %v4014_v0, %v8161_v29  ;;  %v4016_v18 = vpop.f32.mrb[29].mxu0 }
 0x40b   : > { %v4547_v44 = vadd.f32 %v4546_v51, %v4351_v7  ;;  %v4207_v39 = vpop.f32.mrb[28].mxu1  ;;  %v4017_v27 = vadd.f32 %v4016_v18, %v8165_v63  ;;  %v4018_v28 = vpop.f32.mrb[30].mxu0 }
 0x40c   : > { %v4208_v52 = vadd.f32 %v4207_v39, %v8163_v10  ;;  %v4209_v9 = vpop.f32.mrb[29].mxu1  ;;  %v4352_v43 = vmax.f32 %v4015_v13, 0.0  ;;  %v4019_v24 = vadd.f32 %v4018_v28, %v8161_v29  ;;  %v4020_v26 = vpop.f32.mrb[31].mxu0 }
 0x40d   : > { %v4210_v33 = vadd.f32 %v4209_v9, %v8167_v34  ;;  %v4211_v21 = vpop.f32.mrb[30].mxu1  ;;  %v4353_v20 = vmax.f32 %v4017_v27, 0.0  ;;  %v4021_v46 = vadd.f32 %v4020_v26, %v8165_v63 }
 0x40e   : > { %v4354_v55 = vmax.f32 %v4208_v52, 0.0  ;;  %v4212_v22 = vadd.f32 %v4211_v21, %v8163_v10  ;;  %v4213_v41 = vpop.f32.mrb[31].mxu1  ;;  %v4437_v53 = vadd.f32 %v4436_v54, %v4352_v43  ;;  %v4356_v23 = vmax.f32 %v4019_v24, 0.0 }
 0x40f   : > { %v4355_v31 = vmax.f32 %v4210_v33, 0.0  ;;  %v4214_v30 = vadd.f32 %v4213_v41, %v8167_v34  ;;  %v4474_v19 = vadd.f32 %v4473_v4, %v4353_v20  ;;  %v4357_v14 = vmax.f32 %v4021_v46, 0.0 }
 0x410   : > { %v4511_v12 = vadd.f32 %v4510_v2, %v4354_v55  ;;  %v4358_v6 = vmax.f32 %v4212_v22, 0.0  ;;  %v4438_v16 = vadd.f32 %v4437_v53, %v4356_v23 }
 0x411   : > { %v4548_v49 = vadd.f32 %v4547_v44, %v4355_v31  ;;  %v4359_v50 = vmax.f32 %v4214_v30, 0.0  ;;  %v4475_v25 = vadd.f32 %v4474_v19, %v4357_v14  ;;  %v4024_v35 = vpop.f32.mrb[32].mxu0 }
 0x412   : > { %v4512_v17 = vadd.f32 %v4511_v12, %v4358_v6  ;;  %v4025_v36 = vadd.f32 %v4024_v35, %v8161_v29  ;;  %v4026_v38 = vpop.f32.mrb[33].mxu0 }
 0x413   : > { %v4549_v59 = vadd.f32 %v4548_v49, %v4359_v50  ;;  %v4217_v11 = vpop.f32.mrb[32].mxu1  ;;  %v4027_v8 = vadd.f32 %v4026_v38, %v8165_v63  ;;  %v4028_v40 = vpop.f32.mrb[34].mxu0 }
 0x414   : > { %v4218_v15 = vadd.f32 %v4217_v11, %v8163_v10  ;;  %v4219_v61 = vpop.f32.mrb[33].mxu1  ;;  %v4360_v32 = vmax.f32 %v4025_v36, 0.0  ;;  %v4029_v57 = vadd.f32 %v4028_v40, %v8161_v29  ;;  %v4030_v5 = vpop.f32.mrb[35].mxu0 }
 0x415   : > { %v4220_v48 = vadd.f32 %v4219_v61, %v8167_v34  ;;  %v4221_v62 = vpop.f32.mrb[34].mxu1  ;;  %v4361_v42 = vmax.f32 %v4027_v8, 0.0  ;;  %v4031_v47 = vadd.f32 %v4030_v5, %v8165_v63 }
 0x416   : > { %v4362_v56 = vmax.f32 %v4218_v15, 0.0  ;;  %v4222_v58 = vadd.f32 %v4221_v62, %v8163_v10  ;;  %v4223_v1 = vpop.f32.mrb[35].mxu1  ;;  %v4439_v45 = vadd.f32 %v4438_v16, %v4360_v32  ;;  %v4364_v3 = vmax.f32 %v4029_v57, 0.0 }
 0x417   : > { %v4363_v37 = vmax.f32 %v4220_v48, 0.0  ;;  %v4224_v60 = vadd.f32 %v4223_v1, %v8167_v34  ;;  %v4476_v54 = vadd.f32 %v4475_v25, %v4361_v42  ;;  %v4365_v4 = vmax.f32 %v4031_v47, 0.0 }
 0x418   : > { %v4513_v51 = vadd.f32 %v4512_v17, %v4362_v56  ;;  %v4366_v7 = vmax.f32 %v4222_v58, 0.0  ;;  %v4440_v0 = vadd.f32 %v4439_v45, %v4364_v3 }
 0x419   : > { %v4550_v2 = vadd.f32 %v4549_v59, %v4363_v37  ;;  %v4367_v44 = vmax.f32 %v4224_v60, 0.0  ;;  %v4477_v13 = vadd.f32 %v4476_v54, %v4365_v4  ;;  %v4034_v18 = vpop.f32.mrb[36].mxu0 }
 0x41a   : > { %v4514_v39 = vadd.f32 %v4513_v51, %v4366_v7  ;;  %v4035_v27 = vadd.f32 %v4034_v18, %v8161_v29  ;;  %v4036_v28 = vpop.f32.mrb[37].mxu0 }
 0x41b   : > { %v4551_v52 = vadd.f32 %v4550_v2, %v4367_v44  ;;  %v4227_v9 = vpop.f32.mrb[36].mxu1  ;;  %v4037_v43 = vadd.f32 %v4036_v28, %v8165_v63  ;;  %v4038_v24 = vpop.f32.mrb[38].mxu0 }
 0x41c   : > { %v4228_v33 = vadd.f32 %v4227_v9, %v8163_v10  ;;  %v4229_v21 = vpop.f32.mrb[37].mxu1  ;;  %v4368_v26 = vmax.f32 %v4035_v27, 0.0  ;;  %v4039_v20 = vadd.f32 %v4038_v24, %v8161_v29  ;;  %v4040_v46 = vpop.f32.mrb[39].mxu0 }
 0x41d   : > { %v4230_v55 = vadd.f32 %v4229_v21, %v8167_v34  ;;  %v4231_v22 = vpop.f32.mrb[38].mxu1  ;;  %v4369_v53 = vmax.f32 %v4037_v43, 0.0  ;;  %v4041_v23 = vadd.f32 %v4040_v46, %v8165_v63 }
 0x41e   : > { %v4370_v41 = vmax.f32 %v4228_v33, 0.0  ;;  %v4232_v31 = vadd.f32 %v4231_v22, %v8163_v10  ;;  %v4233_v30 = vpop.f32.mrb[39].mxu1  ;;  %v4441_v19 = vadd.f32 %v4440_v0, %v4368_v26  ;;  %v4372_v14 = vmax.f32 %v4039_v20, 0.0 }
 0x41f   : > { %v4371_v12 = vmax.f32 %v4230_v55, 0.0  ;;  %v4234_v6 = vadd.f32 %v4233_v30, %v8167_v34  ;;  %v4478_v16 = vadd.f32 %v4477_v13, %v4369_v53  ;;  %v4373_v25 = vmax.f32 %v4041_v23, 0.0 }
 0x420   : > { %v4515_v49 = vadd.f32 %v4514_v39, %v4370_v41  ;;  %v4374_v50 = vmax.f32 %v4232_v31, 0.0  ;;  %v4442_v35 = vadd.f32 %v4441_v19, %v4372_v14 }
 0x421   : > { %v4552_v17 = vadd.f32 %v4551_v52, %v4371_v12  ;;  %v4375_v59 = vmax.f32 %v4234_v6, 0.0  ;;  %v4479_v36 = vadd.f32 %v4478_v16, %v4373_v25  ;;  %v4044_v38 = vpop.f32.mrb[40].mxu0 }
 0x422   : > { %v4516_v11 = vadd.f32 %v4515_v49, %v4374_v50  ;;  %v4045_v8 = vadd.f32 %v4044_v38, %v8161_v29  ;;  %v4046_v40 = vpop.f32.mrb[41].mxu0 }
 0x423   : > { %v4553_v15 = vadd.f32 %v4552_v17, %v4375_v59  ;;  %v4237_v61 = vpop.f32.mrb[40].mxu1  ;;  %v4047_v32 = vadd.f32 %v4046_v40, %v8165_v63  ;;  %v4048_v57 = vpop.f32.mrb[42].mxu0 }
 0x424   : > { %v4238_v48 = vadd.f32 %v4237_v61, %v8163_v10  ;;  %v4239_v62 = vpop.f32.mrb[41].mxu1  ;;  %v4376_v5 = vmax.f32 %v4045_v8, 0.0  ;;  %v4049_v42 = vadd.f32 %v4048_v57, %v8161_v29  ;;  %v4050_v47 = vpop.f32.mrb[43].mxu0 }
 0x425   : > { %v4240_v56 = vadd.f32 %v4239_v62, %v8167_v34  ;;  %v4241_v58 = vpop.f32.mrb[42].mxu1  ;;  %v4377_v45 = vmax.f32 %v4047_v32, 0.0  ;;  %v4051_v3 = vadd.f32 %v4050_v47, %v8165_v63 }
 0x426   : > { %v4378_v1 = vmax.f32 %v4238_v48, 0.0  ;;  %v4242_v37 = vadd.f32 %v4241_v58, %v8163_v10  ;;  %v4243_v60 = vpop.f32.mrb[43].mxu1  ;;  %v4443_v54 = vadd.f32 %v4442_v35, %v4376_v5  ;;  %v4380_v4 = vmax.f32 %v4049_v42, 0.0 }
 0x427   : > { %v4379_v51 = vmax.f32 %v4240_v56, 0.0  ;;  %v4244_v7 = vadd.f32 %v4243_v60, %v8167_v34  ;;  %v4480_v0 = vadd.f32 %v4479_v36, %v4377_v45  ;;  %v4381_v13 = vmax.f32 %v4051_v3, 0.0 }
 0x428   : > { %v4517_v2 = vadd.f32 %v4516_v11, %v4378_v1  ;;  %v4382_v44 = vmax.f32 %v4242_v37, 0.0  ;;  %v4444_v18 = vadd.f32 %v4443_v54, %v4380_v4 }
 0x429   : > { %v4554_v39 = vadd.f32 %v4553_v15, %v4379_v51  ;;  %v4383_v52 = vmax.f32 %v4244_v7, 0.0  ;;  %v4481_v27 = vadd.f32 %v4480_v0, %v4381_v13  ;;  %v4054_v28 = vpop.f32.mrb[44].mxu0 }
 0x42a   : > { %v4518_v9 = vadd.f32 %v4517_v2, %v4382_v44  ;;  %v4055_v43 = vadd.f32 %v4054_v28, %v8161_v29  ;;  %v4056_v24 = vpop.f32.mrb[45].mxu0 }
 0x42b   : > { %v4555_v33 = vadd.f32 %v4554_v39, %v4383_v52  ;;  %v4247_v21 = vpop.f32.mrb[44].mxu1  ;;  %v4057_v26 = vadd.f32 %v4056_v24, %v8165_v63  ;;  %v4058_v20 = vpop.f32.mrb[46].mxu0 }
 0x42c   : > { %v4248_v55 = vadd.f32 %v4247_v21, %v8163_v10  ;;  %v4249_v22 = vpop.f32.mrb[45].mxu1  ;;  %v4384_v46 = vmax.f32 %v4055_v43, 0.0  ;;  %v4059_v53 = vadd.f32 %v4058_v20, %v8161_v29  ;;  %v4060_v23 = vpop.f32.mrb[47].mxu0 }
 0x42d   : > { %v4250_v41 = vadd.f32 %v4249_v22, %v8167_v34  ;;  %v4251_v31 = vpop.f32.mrb[46].mxu1  ;;  %v4385_v19 = vmax.f32 %v4057_v26, 0.0  ;;  %v4061_v14 = vadd.f32 %v4060_v23, %v8165_v63 }
 0x42e   : > { %v4386_v30 = vmax.f32 %v4248_v55, 0.0  ;;  %v4252_v12 = vadd.f32 %v4251_v31, %v8163_v10  ;;  %v4253_v6 = vpop.f32.mrb[47].mxu1  ;;  %v4445_v16 = vadd.f32 %v4444_v18, %v4384_v46  ;;  %v4388_v25 = vmax.f32 %v4059_v53, 0.0 }
 0x42f   : > { %v4387_v49 = vmax.f32 %v4250_v41, 0.0  ;;  %v4254_v50 = vadd.f32 %v4253_v6, %v8167_v34  ;;  %v4482_v35 = vadd.f32 %v4481_v27, %v4385_v19  ;;  %v4389_v36 = vmax.f32 %v4061_v14, 0.0 }
 0x430   : > { %v4519_v17 = vadd.f32 %v4518_v9, %v4386_v30  ;;  %v4390_v59 = vmax.f32 %v4252_v12, 0.0  ;;  %v4446_v38 = vadd.f32 %v4445_v16, %v4388_v25 }
 0x431   : > { %v4556_v11 = vadd.f32 %v4555_v33, %v4387_v49  ;;  %v4391_v15 = vmax.f32 %v4254_v50, 0.0  ;;  %v4483_v8 = vadd.f32 %v4482_v35, %v4389_v36  ;;  %v4064_v40 = vpop.f32.mrb[48].mxu0 }
 0x432   : > { %v4520_v61 = vadd.f32 %v4519_v17, %v4390_v59  ;;  %v4065_v32 = vadd.f32 %v4064_v40, %v8161_v29  ;;  %v4066_v57 = vpop.f32.mrb[49].mxu0 }
 0x433   : > { %v4557_v48 = vadd.f32 %v4556_v11, %v4391_v15  ;;  %v4257_v62 = vpop.f32.mrb[48].mxu1  ;;  %v4067_v5 = vadd.f32 %v4066_v57, %v8165_v63  ;;  %v4068_v42 = vpop.f32.mrb[50].mxu0 }
 0x434   : > { %v4258_v56 = vadd.f32 %v4257_v62, %v8163_v10  ;;  %v4259_v58 = vpop.f32.mrb[49].mxu1  ;;  %v4392_v47 = vmax.f32 %v4065_v32, 0.0  ;;  %v4069_v45 = vadd.f32 %v4068_v42, %v8161_v29  ;;  %v4070_v3 = vpop.f32.mrb[51].mxu0 }
 0x435   : > { %v4260_v1 = vadd.f32 %v4259_v58, %v8167_v34  ;;  %v4261_v37 = vpop.f32.mrb[50].mxu1  ;;  %v4393_v54 = vmax.f32 %v4067_v5, 0.0  ;;  %v4071_v4 = vadd.f32 %v4070_v3, %v8165_v63 }
 0x436   : > { %v4394_v60 = vmax.f32 %v4258_v56, 0.0  ;;  %v4262_v51 = vadd.f32 %v4261_v37, %v8163_v10  ;;  %v4263_v7 = vpop.f32.mrb[51].mxu1  ;;  %v4447_v0 = vadd.f32 %v4446_v38, %v4392_v47  ;;  %v4396_v13 = vmax.f32 %v4069_v45, 0.0 }
 0x437   : > { %v4395_v2 = vmax.f32 %v4260_v1, 0.0  ;;  %v4264_v44 = vadd.f32 %v4263_v7, %v8167_v34  ;;  %v4484_v18 = vadd.f32 %v4483_v8, %v4393_v54  ;;  %v4397_v27 = vmax.f32 %v4071_v4, 0.0 }
 0x438   : > { %v4521_v39 = vadd.f32 %v4520_v61, %v4394_v60  ;;  %v4398_v52 = vmax.f32 %v4262_v51, 0.0  ;;  %v4448_v28 = vadd.f32 %v4447_v0, %v4396_v13 }
 0x439   : > { %v4558_v9 = vadd.f32 %v4557_v48, %v4395_v2  ;;  %v4399_v33 = vmax.f32 %v4264_v44, 0.0  ;;  %v4485_v43 = vadd.f32 %v4484_v18, %v4397_v27  ;;  %v4074_v24 = vpop.f32.mrb[52].mxu0 }
 0x43a   : > { %v4522_v21 = vadd.f32 %v4521_v39, %v4398_v52  ;;  %v4075_v26 = vadd.f32 %v4074_v24, %v8161_v29  ;;  %v4076_v20 = vpop.f32.mrb[53].mxu0 }
 0x43b   : > { %v4559_v55 = vadd.f32 %v4558_v9, %v4399_v33  ;;  %v4267_v22 = vpop.f32.mrb[52].mxu1  ;;  %v4077_v46 = vadd.f32 %v4076_v20, %v8165_v63  ;;  %v4078_v53 = vpop.f32.mrb[54].mxu0 }
 0x43c   : > { %v4268_v41 = vadd.f32 %v4267_v22, %v8163_v10  ;;  %v4269_v31 = vpop.f32.mrb[53].mxu1  ;;  %v4400_v23 = vmax.f32 %v4075_v26, 0.0  ;;  %v4079_v19 = vadd.f32 %v4078_v53, %v8161_v29  ;;  %v4080_v14 = vpop.f32.mrb[55].mxu0 }
 0x43d   : > { %v4270_v30 = vadd.f32 %v4269_v31, %v8167_v34  ;;  %v4271_v12 = vpop.f32.mrb[54].mxu1  ;;  %v4401_v16 = vmax.f32 %v4077_v46, 0.0  ;;  %v4081_v25 = vadd.f32 %v4080_v14, %v8165_v63 }
 0x43e   : > { %v4402_v6 = vmax.f32 %v4268_v41, 0.0  ;;  %v4272_v49 = vadd.f32 %v4271_v12, %v8163_v10  ;;  %v4273_v50 = vpop.f32.mrb[55].mxu1  ;;  %v4449_v35 = vadd.f32 %v4448_v28, %v4400_v23  ;;  %v4404_v36 = vmax.f32 %v4079_v19, 0.0 }
 0x43f   : > { %v4403_v17 = vmax.f32 %v4270_v30, 0.0  ;;  %v4274_v59 = vadd.f32 %v4273_v50, %v8167_v34  ;;  %v4486_v38 = vadd.f32 %v4485_v43, %v4401_v16  ;;  %v4405_v8 = vmax.f32 %v4081_v25, 0.0 }
 0x440   : > { %v4523_v11 = vadd.f32 %v4522_v21, %v4402_v6  ;;  %v4406_v15 = vmax.f32 %v4272_v49, 0.0  ;;  %v4450_v40 = vadd.f32 %v4449_v35, %v4404_v36 }
 0x441   : > { %v4560_v61 = vadd.f32 %v4559_v55, %v4403_v17  ;;  %v4407_v48 = vmax.f32 %v4274_v59, 0.0  ;;  %v4487_v32 = vadd.f32 %v4486_v38, %v4405_v8  ;;  %v4084_v57 = vpop.f32.mrb[56].mxu0 }
 0x442   : > { %v4524_v62 = vadd.f32 %v4523_v11, %v4406_v15  ;;  %v4085_v5 = vadd.f32 %v4084_v57, %v8161_v29  ;;  %v4086_v42 = vpop.f32.mrb[57].mxu0 }
 0x443   : > { %v4561_v56 = vadd.f32 %v4560_v61, %v4407_v48  ;;  %v4277_v58 = vpop.f32.mrb[56].mxu1  ;;  %v4087_v47 = vadd.f32 %v4086_v42, %v8165_v63  ;;  %v4088_v45 = vpop.f32.mrb[58].mxu0 }
 0x444   : > { %v4278_v1 = vadd.f32 %v4277_v58, %v8163_v10  ;;  %v4279_v37 = vpop.f32.mrb[57].mxu1  ;;  %v4408_v3 = vmax.f32 %v4085_v5, 0.0  ;;  %v4089_v54 = vadd.f32 %v4088_v45, %v8161_v29  ;;  %v4090_v4 = vpop.f32.mrb[59].mxu0 }
 0x445   : > { %v4280_v60 = vadd.f32 %v4279_v37, %v8167_v34  ;;  %v4281_v51 = vpop.f32.mrb[58].mxu1  ;;  %v4409_v0 = vmax.f32 %v4087_v47, 0.0  ;;  %v4091_v13 = vadd.f32 %v4090_v4, %v8165_v63 }
 0x446   : > { %v4410_v7 = vmax.f32 %v4278_v1, 0.0  ;;  %v4282_v2 = vadd.f32 %v4281_v51, %v8163_v10  ;;  %v4283_v44 = vpop.f32.mrb[59].mxu1  ;;  %v4451_v18 = vadd.f32 %v4450_v40, %v4408_v3  ;;  %v4412_v27 = vmax.f32 %v4089_v54, 0.0 }
 0x447   : > { %v4411_v39 = vmax.f32 %v4280_v60, 0.0  ;;  %v4284_v52 = vadd.f32 %v4283_v44, %v8167_v34  ;;  %v4488_v28 = vadd.f32 %v4487_v32, %v4409_v0  ;;  %v4413_v43 = vmax.f32 %v4091_v13, 0.0 }
 0x448   : > { %v4525_v9 = vadd.f32 %v4524_v62, %v4410_v7  ;;  %v4414_v33 = vmax.f32 %v4282_v2, 0.0  ;;  %v4452_v24 = vadd.f32 %v4451_v18, %v4412_v27 }
 0x449   : > { %v4562_v21 = vadd.f32 %v4561_v56, %v4411_v39  ;;  %v4415_v55 = vmax.f32 %v4284_v52, 0.0  ;;  %v4489_v26 = vadd.f32 %v4488_v28, %v4413_v43  ;;  %v4094_v20 = vpop.f32.mrb[60].mxu0 }
 0x44a   : > { %v4526_v22 = vadd.f32 %v4525_v9, %v4414_v33  ;;  %v4095_v46 = vadd.f32 %v4094_v20, %v8161_v29  ;;  %v4096_v53 = vpop.f32.mrb[61].mxu0 }
 0x44b   : > { %v4563_v41 = vadd.f32 %v4562_v21, %v4415_v55  ;;  %v4287_v31 = vpop.f32.mrb[60].mxu1  ;;  %v4097_v23 = vadd.f32 %v4096_v53, %v8165_v63  ;;  %v4098_v19 = vpop.f32.mrb[62].mxu0 }
 0x44c   : > { %v4288_v30 = vadd.f32 %v4287_v31, %v8163_v10  ;;  %v4289_v12 = vpop.f32.mrb[61].mxu1  ;;  %v4416_v14 = vmax.f32 %v4095_v46, 0.0  ;;  %v4099_v16 = vadd.f32 %v4098_v19, %v8161_v29  ;;  %v4100_v25 = vpop.f32.mrb[63].mxu0  ;;  %v3743_v19 = vld [vmem:[%s8344_s6] sm:$0x1] }
 0x44d   : > { %v4290_v6 = vadd.f32 %v4289_v12, %v8167_v34  ;;  %v4291_v49 = vpop.f32.mrb[62].mxu1  ;;  %v4417_v35 = vmax.f32 %v4097_v23, 0.0  ;;  %v4101_v36 = vadd.f32 %v4100_v25, %v8165_v63 }
 0x44e   : > { %v4418_v50 = vmax.f32 %v4288_v30, 0.0  ;;  %v4292_v17 = vadd.f32 %v4291_v49, %v8163_v10  ;;  %v4293_v59 = vpop.f32.mrb[63].mxu1  ;;  %v4453_v38 = vadd.f32 %v4452_v24, %v4416_v14  ;;  %v4420_v8 = vmax.f32 %v4099_v16, 0.0 }
 0x44f   : > { %v4419_v11 = vmax.f32 %v4290_v6, 0.0  ;;  %v4294_v15 = vadd.f32 %v4293_v59, %v8167_v34  ;;  %v4490_v40 = vadd.f32 %v4489_v26, %v4417_v35  ;;  %v4421_v32 = vmax.f32 %v4101_v36, 0.0 }
 0x450   : > { %v4527_v61 = vadd.f32 %v4526_v22, %v4418_v50  ;;  %v4422_v48 = vmax.f32 %v4292_v17, 0.0  ;;  %v4454_v57 = vadd.f32 %v4453_v38, %v4420_v8 }
 0x451   : > { %v4564_v62 = vadd.f32 %v4563_v41, %v4419_v11  ;;  %v4423_v56 = vmax.f32 %v4294_v15, 0.0  ;;  %v4491_v58 = vadd.f32 %v4490_v40, %v4421_v32 }
 0x452   : > { %v4528_v29 = vadd.f32 %v4527_v61, %v4422_v48  ;;  %v4455_v5 = vrot.slane %v4454_v57, 4 }
 0x453   : > { %v4565_v10 = vadd.f32 %v4564_v62, %v4423_v56  ;;  %v4492_v42 = vrot.slane %v4491_v58, 4 }
 0x454   : > { %v4529_v1 = vrot.slane %v4528_v29, 4  ;;  %v4456_v47 = vadd.f32 %v4455_v5, %v4454_v57 }
 0x455   : > { %v4566_v37 = vrot.slane %v4565_v10, 4  ;;  %v4493_v60 = vadd.f32 %v4492_v42, %v4491_v58 }
 0x456   : > { %v4530_v63 = vadd.f32 %v4529_v1, %v4528_v29  ;;  %v4457_v45 = vrot.slane %v4456_v47, 2 }
 0x457   : > { %v4567_v34 = vadd.f32 %v4566_v37, %v4565_v10  ;;  %v4494_v3 = vrot.slane %v4493_v60, 2 }
 0x458   : > { %v4531_v51 = vrot.slane %v4530_v63, 2  ;;  %v4458_v54 = vadd.f32 %v4457_v45, %v4456_v47 }
 0x459   : > { %v4568_v7 = vrot.slane %v4567_v34, 2  ;;  %v4495_v4 = vadd.f32 %v4494_v3, %v4493_v60 }
 0x45a   : > { %v4532_v2 = vadd.f32 %v4531_v51, %v4530_v63  ;;  %v4459_v0 = vrot.slane %v4458_v54, 1 }
 0x45b   : > { %v4569_v44 = vadd.f32 %v4568_v7, %v4567_v34  ;;  %v4496_v13 = vrot.slane %v4495_v4, 1 }
 0x45c   : > { %v4533_v39 = vrot.slane %v4532_v2, 1  ;;  %v4460_v18 = vadd.f32 %v4459_v0, %v4458_v54 }
 0x45d   : > { %v4570_v52 = vrot.slane %v4569_v44, 1  ;;  %v4497_v27 = vadd.f32 %v4496_v13, %v4495_v4 }
 0x45e   : > { %v4534_v9 = vadd.f32 %v4533_v39, %v4532_v2  ;;  %v4572_v28 = vmul.f32 0.00390625, %v4460_v18 }
 0x45f   : > { %v4571_v33 = vadd.f32 %v4570_v52, %v4569_v44  ;;  %v4573_v43 = vmul.f32 0.00390625, %v4497_v27 }
 0x460   : > { %v4574_v21 = vmul.f32 0.00390625, %v4534_v9  ;;  %v4576_v26 = vpack.c.bf16 %v4572_v28, %v4572_v28 }
 0x461   : > { %v4575_v55 = vmul.f32 0.00390625, %v4571_v33  ;;  %v4577_v24 = vpack.c.bf16 %v4573_v43, %v4573_v43 }
 0x462   : > { %v4578_v41 = vpack.c.bf16 %v4574_v21, %v4574_v21 }
 0x463   : > { %v4579_v22 = vpack.c.bf16 %v4575_v55, %v4575_v55  ;;  %4868 = vmatprep.mubr.bf16.mxu0 %v4577_v24 }
 0x464   : > { %4869 = vmatmul.mubr.bf16.vlgmr.msra.gmra.mrb[64].mxu0 %v4576_v26 }
 0x465   : > { %4908 = vmatprep.mubr.bf16.mxu1 %v4579_v22 }
 0x466   : > { %4909 = vmatmul.mubr.bf16.vlgmr.msra.gmra.mrb[64].mxu1 %v4578_v41 }
 0x537   : > { %v6023_v20 = vpop.f32.mrb[64].mxu0 }
 0x538   : > { %v6024_v46 = vpop.f32.mrb[65].mxu0 }
 0x539   : > { %v6045_v31 = vpop.f32.mrb[64].mxu1  ;;  %v6025_v53 = vadd.f32 %v6024_v46, %v6023_v20  ;;  %v6026_v23 = vpop.f32.mrb[66].mxu0 }
 0x53a   : > { %v6046_v30 = vpop.f32.mrb[65].mxu1  ;;  %v6027_v49 = vpop.f32.mrb[67].mxu0 }
 0x53b   : > { %v6047_v12 = vadd.f32 %v6046_v30, %v6045_v31  ;;  %v6048_v6 = vpop.f32.mrb[66].mxu1 }
 0x53c   : > { %v6049_v14 = vpop.f32.mrb[67].mxu1 }
 0x53d   : > { %v4911_v50 = vadd.f32 %v6047_v12, %v6025_v53 }
 0x53f   : > { %v4916_v16 = vadd.f32 %v4911_v50, %v3743_v19 }
 0x541   : > { %4917 = vst [vmem:[%s726_s21] sm:$0x1] %v4916_v16 }
 0x542 PF: > { %s17_s30 = sadd.s32 1, %s6630_s30   ;;  %s8346_s24 = smov %s6610_s25 }
 0x543   : > { %p14_p0 = scmp.ge.s32.totalorder %s17_s30, 12   ;;  %s8347_s25 = smov %s6725_s14 }
 0x544   : > { %s8348_s26 = smov %s6622_s28  ;;  %s8349_s27 = smov %s6626_s29 }
 0x545   : > { %s8350_s28 = smov %s8353_s8  ;;  %s8351_s29 = smov %s8357_s9 }
 0x546   :  { %16 = sbr.rel (!%p14_p0) target bundleno = 4 (0x4), region = 126 }

// kernel: two_stream_forward.5
= control target key start
LH: loop header
LB: loop body
LE: loop exit
PB: predicated region body
PF: predicated region fallthrough
CT: control target
= control target key end

     0   :  { %vm31_vm0 = vcmask 1041408   ;;  %vm62_vm1 = vcmask 1024   ;;  %s124_s0 = inlined_call_operand.vmem [shape: f32[2,128], index: 0, kind: input, shape index: {}]   ;;  %s125_s2 = inlined_call_operand.vmem [shape: f32[1,128], index: 2, kind: input, shape index: {}]   ;;  %s126_s1 = inlined_call_operand.vmem [shape: f32[2,128], index: 1, kind: input, shape index: {}]   ;;  %s127_s3 = inlined_call_operand.vmem [shape: f32[1,128], index: 3, kind: input, shape index: {}]   ;;  %s128_s4 = inlined_call_operand.<no memory space> [shape: f32[1,1], index: 4, kind: input, shape index: {}]   ;;  %s129_s5 = inlined_call_operand.vmem [shape: f32[2,1], index: 5, kind: output, shape index: {}]  }
   0x1   :  { %v22_v0 = vld [vmem:[%s124_s0] sm:$0x3]  ;;  %v10_v8 = vstv %s128_s4 }
   0x2   :  { %v68_v1 = vld [vmem:[%s125_s2] ss:$0 sm:$0xff]  ;;  %11 = vst [vmem:[#allocation2] sm:$0x1] %v10_v8 }
   0x3   :  { %v35_v2 = vld [vmem:[%s126_s1] sm:$0x3]  ;;  %v30_v3 = vmul.f32 %v68_v1, %v22_v0 }
   0x4   :  { %v69_v4 = vld [vmem:[%s127_s3] ss:$0 sm:$0xff] }
   0x5   :  { %v43_v5 = vmul.f32 %v69_v4, %v35_v2  ;;  %v32_v6 = vsel %vm31_vm0, %v30_v3, 0.0 }
   0x6   :  { %33 = vadd.xlane.f32.xlu0 %v32_v6 }
   0x7   :  { %v44_v7 = vsel %vm31_vm0, %v43_v5, 0.0 }
   0x9   :  { %v70_v10 = vld [vmem:[#allocation2] ss:$0 sm:$0xff] }
   0xa   :  { %45 = vadd.xlane.f32.xlu0 %v44_v7 }
  0x93   :  { %v34_v9 = vpop.xlane.xlu0 %33 }
  0x97   :  { %v46_v11 = vpop.xlane.xlu0 %45 }
  0x98   :  { %v47_v12 = vadd.f32 %v46_v11, %v34_v9 }
  0x9a   :  { %v55_v13 = vadd.f32 %v70_v10, %v47_v12 }
  0x9c   :  { %v71_v14 = vmul.f32 -1.442695, %v55_v13 }
  0x9e   :  { %72 = vpow2.f32 %v71_v14 }
  0xa8   :  { %v73_v15 = vpop.eup %72 }
  0xa9   :  { %v59_v16 = vadd.f32 1.0, %v73_v15 }
  0xab   :  { %74 = vrcp.f32 %v59_v16 }
  0xb5   :  { %v75_v17 = vpop.eup %74 }
  0xb6   :  { %63 = vst.msk [vmem:[%s129_s5] sm:$0x3] %vm62_vm1, %v75_v17 }

// kernel: two_stream_forward.3
= control target key start
LH: loop header
LB: loop body
LE: loop exit
PB: predicated region body
PF: predicated region fallthrough
CT: control target
= control target key end

     0   :  { %s6533_s24 = smov 0   ;;  %s6535_s25 = smov 0   ;;  %s8420_s0 = inlined_call_operand.vmem [shape: bf16[512,147], index: 0, kind: input, shape index: {}]   ;;  %s8421_s1 = inlined_call_operand.vmem [shape: bf16[147,64], index: 1, kind: input, shape index: {}]   ;;  %s8422_s2 = inlined_call_operand.vmem [shape: f32[1,64], index: 2, kind: input, shape index: {}]   ;;  %s8423_s3 = inlined_call_operand.vmem [shape: bf16[64,2048], index: 3, kind: input, shape index: {}]   ;;  %s8424_s4 = inlined_call_operand.vmem [shape: f32[1,2048], index: 4, kind: input, shape index: {}]   ;;  %s8425_s5 = inlined_call_operand.vmem [shape: bf16[2048,128], index: 5, kind: input, shape index: {}]   ;;  %s8426_s6 = inlined_call_operand.vmem [shape: f32[1,128], index: 6, kind: input, shape index: {}]   ;;  %s8427_s7 = inlined_call_operand.vmem [shape: f32[2,1,128], index: 7, kind: output, shape index: {}]  }
   0x1   :  { %s6537_s26 = smov 0  }
   0x2 LB: > { %s29_s27 = sadd.s32 1, %s6484_s25  ;;  %p5688_p0 = scmp.ge.s32.totalorder %s6488_s26, 1  ;;  %s6488_s26 = sphi %s6537_s26, %s17_s26   ;;  %s6484_s25 = sphi %s6535_s25, %s8429_s25   ;;  %s6480_s24 = sphi %s6533_s24, %s8428_s24  }
   0x3   : > { %p31_p1 = scmp.ge.s32.totalorder %s29_s27, 2  ;;  %p269_p2 = scmp.lt.s32.totalorder %s6488_s26, 3 }
   0x5   : > { %s8431_s27 = smov (%p31_p1, %s29_s27), 0  ;;  %p270_p3 = pnand %p5688_p0, %p269_p2 }
   0x6   : > { %v6277_v0 = vld [vmem:[%s8421_s1] sm:$0xff] (!%p270_p3)   ;;  %v6490_v1 = vmov (!%p270_p3), 0   ;;  %v6278_v2 = vld [vmem:[%s8421_s1 + $0x8] sm:$0xff] (!%p270_p3)   ;;  %v6279_v3 = vld [vmem:[%s8421_s1 + $0x10] sm:$0xff] (!%p270_p3)   ;;  %s5689_s11 = sshll.u32 (!%p270_p3), %s6480_s24, 5  ;;  %vm652_vm0 = vcmask (!%p270_p3), 154624  }
   0x7   : > { %273 = sbr.rel (%p270_p3) target bundleno = 2137 (0x859), region = 48  ;;  %708 = vmatprep.subr.bf16.mxu0 (!%p270_p3), %v6490_v1  ;;  %1255 = vmatprep.mubr.bf16.mxu1 (!%p270_p3), %v6490_v1  ;;  %p311_p4 = scmp.lt.s32.totalorder (!%p270_p3), %s5689_s11, 63  ;;  %v6280_v4 = vld [vmem:[%s8421_s1 + $0x18] sm:$0xff] (!%p270_p3)   ;;  %v6281_v5 = vld [vmem:[%s8421_s1 + $0x20] sm:$0xff] (!%p270_p3)   ;;  %v6282_v7 = vld [vmem:[%s8421_s1 + $0x28] sm:$0xff] (!%p270_p3)   ;;  %vm701_vm1 = vcmask (!%p270_p3), 1040384  }
   0x8   : > { %709 = vmatpush1.bf16.msra.mxu0 (!%p270_p3), %v6277_v0  ;;  %v6283_v8 = vld [vmem:[%s8421_s1 + $0x30] sm:$0xff] (!%p270_p3)   ;;  %v6284_v9 = vld [vmem:[%s8421_s1 + $0x38] sm:$0xff] (!%p270_p3)   ;;  %vm702_vm2 = vcmask (!%p270_p3), 1041408   ;;  %v6491_v10 = vmov (!%p270_p3), 65535   ;;  %v6285_v12 = vld [vmem:[%s8421_s1 + $0x40] sm:$0xff] (!%p270_p3)   ;;  %vm335_vm3 = vcmask (!%p270_p3), 523264  }
   0x9   : > { %710 = vmatprep.subr.bf16.mxu0 (!%p270_p3), %v6490_v1  ;;  %v703_v11 = vsel (!%p270_p3), %vm701_vm1, 4294967295, %v6491_v10  ;;  %v6286_v13 = vld [vmem:[%s8421_s1 + $0x48] ss:$0 sps:$4 sm:$0x33] (!%p270_p3)   ;;  %v6492_v16 = vmov (!%p270_p3), 0.0   ;;  %v1057_v39 = vld [vmem:[%s8423_s3] sm:$0xff] (!%p270_p3) }
   0xa   : > { %v704_v14 = vsel (!%p270_p3), %vm702_vm2, %v703_v11, 0  ;;  %336 = vst.msk [vmem:[#allocation2] sm:$0xff] (!%p270_p3), %vm335_vm3, %v6492_v16  ;;  %337 = vst.msk [vmem:[#allocation2 + $0x8] sm:$0xff] (!%p270_p3), %vm335_vm3, %v6492_v16  ;;  %v1059_v40 = vld [vmem:[%s8423_s3 + $0x40] sm:$0xff] (!%p270_p3)  ;;  %v1058_v61 = vld [vmem:[%s8423_s3 + $0x8] sm:$0xff] (!%p270_p3)  ;;  %p327_p5 = scmp.lt.s32.totalorder (!%p270_p3), %s6480_s24, 1 }
   0xb   : > { %v706_v15 = vand.u32 (!%p270_p3), %v6286_v13, %v704_v14  ;;  %338 = vst.msk [vmem:[#allocation2 + $0x10] sm:$0xff] (!%p270_p3), %vm335_vm3, %v6492_v16  ;;  %339 = vst.msk [vmem:[#allocation2 + $0x18] sm:$0xff] (!%p270_p3), %vm335_vm3, %v6492_v16  ;;  %v5752_v42 = vcombine.high (!%p270_p3), %v1057_v39, %v1059_v40  ;;  %v5751_v44 = vcombine.low (!%p270_p3), %v1057_v39, %v1059_v40  ;;  %v1061_v45 = vld [vmem:[%s8423_s3 + $0x80] sm:$0xff] (!%p270_p3)  ;;  %v1060_v62 = vld [vmem:[%s8423_s3 + $0x48] sm:$0xff] (!%p270_p3) }
   0xc   : > { %711 = vmatpush1.bf16.msra.mxu0 (!%p270_p3), %v6278_v2  ;;  %340 = vst.msk [vmem:[#allocation2 + $0x20] sm:$0xff] (!%p270_p3), %vm335_vm3, %v6492_v16  ;;  %341 = vst.msk [vmem:[#allocation2 + $0x28] sm:$0xff] (!%p270_p3), %vm335_vm3, %v6492_v16  ;;  %v1063_v46 = vld [vmem:[%s8423_s3 + $0xc0] sm:$0xff] (!%p270_p3)  ;;  %v5753_v63 = vcombine.low (!%p270_p3), %v1058_v61, %v1060_v62  ;;  %v5754_v0 = vcombine.high (!%p270_p3), %v1058_v61, %v1060_v62  ;;  %v1066_v39 = vld [vmem:[%s8423_s3 + $0x108] sm:$0xff] (!%p270_p3) }
   0xd   : > { %712 = vmatprep.subr.bf16.mxu0 (!%p270_p3), %v6490_v1  ;;  %342 = vst.msk [vmem:[#allocation2 + $0x30] sm:$0xff] (!%p270_p3), %vm335_vm3, %v6492_v16  ;;  %343 = vst.msk [vmem:[#allocation2 + $0x38] sm:$0xff] (!%p270_p3), %vm335_vm3, %v6492_v16  ;;  %1223 = vmatprep.subr.bf16.mxu1 (!%p270_p3), %v5752_v42  ;;  %v5756_v47 = vcombine.high (!%p270_p3), %v1061_v45, %v1063_v46  ;;  %v5755_v48 = vcombine.low (!%p270_p3), %v1061_v45, %v1063_v46  ;;  %v1065_v49 = vld [vmem:[%s8423_s3 + $0x100] sm:$0xff] (!%p270_p3)  ;;  %v1068_v40 = vld [vmem:[%s8423_s3 + $0x148] sm:$0xff] (!%p270_p3) }
   0xe   : > { %s8433_s11 = smov (!%p311_p4, %s5689_s11), 63  ;;  %344 = vst.msk [vmem:[#allocation2 + $0x40] sm:$0xff] %vm335_vm3, %v6492_v16  ;;  %345 = vst.msk [vmem:[#allocation2 + $0x48] sm:$0xff] %vm335_vm3, %v6492_v16  ;;  %1224 = vmatpush1.bf16.msra.mxu1 %v5751_v44  ;;  %v1067_v50 = vld [vmem:[%s8423_s3 + $0x140] sm:$0xff]  ;;  %s8435_s24 = smov (!%p327_p5, %s6480_s24), 1 }
   0xf   : > { %s6073_s14 = sshll.u32 %s8433_s11, 3  ;;  %346 = vst.msk [vmem:[#allocation2 + $0x50] sm:$0xff] %vm335_vm3, %v6492_v16  ;;  %347 = vst.msk [vmem:[#allocation2 + $0x58] sm:$0xff] %vm335_vm3, %v6492_v16  ;;  %1225 = vmatprep.subr.bf16.mxu1 %v5756_v47  ;;  %v5760_v52 = vcombine.high %v1065_v49, %v1067_v50  ;;  %v5759_v54 = vcombine.low %v1065_v49, %v1067_v50  ;;  %v1069_v55 = vld [vmem:[%s8423_s3 + $0x180] sm:$0xff]  ;;  %v5762_v47 = vcombine.high %v1066_v39, %v1068_v40  ;;  %v1070_v49 = vld [vmem:[%s8423_s3 + $0x188] sm:$0xff]  ;;  %s329_s16 = scalar_lea.vmem %s8427_s7, %s8435_s24 }
  0x10   : > { %713 = vmatpush1.bf16.msra.mxu0 %v6279_v3  ;;  %s6574_s17 = scalar_lea.vmem %s8420_s0, %s6073_s14  ;;  %348 = vst.msk [vmem:[#allocation2 + $0x60] sm:$0xff] %vm335_vm3, %v6492_v16  ;;  %349 = vst.msk [vmem:[#allocation2 + $0x68] sm:$0xff] %vm335_vm3, %v6492_v16  ;;  %v1071_v56 = vld [vmem:[%s8423_s3 + $0x1c0] sm:$0xff]  ;;  %v1072_v50 = vld [vmem:[%s8423_s3 + $0x1c8] sm:$0xff] }
  0x11   : > { %714 = vmatprep.subr.bf16.mxu0 %v6490_v1  ;;  %v6289_v6 = vld [vmem:[%s6574_s17 + $0x4] ss:$8 sps:$4 sm:$0xff]   ;;  %350 = vst.msk [vmem:[#allocation2 + $0x70] sm:$0xff] %vm335_vm3, %v6492_v16  ;;  %351 = vst.msk [vmem:[#allocation2 + $0x78] sm:$0xff] %vm335_vm3, %v6492_v16  ;;  %v6287_v17 = vld [vmem:[%s6574_s17] ss:$8 sps:$4 sm:$0xff]   ;;  %v5764_v57 = vcombine.high %v1069_v55, %v1071_v56  ;;  %v5763_v58 = vcombine.low %v1069_v55, %v1071_v56  ;;  %v5761_v55 = vcombine.low %v1066_v39, %v1068_v40 }
  0x12   : > { %5734 = vmatprep.mubr.msk.bf16.mxu0 %vm652_vm0, %v6289_v6  ;;  %352 = vst.msk [vmem:[#allocation2 + $0x80] sm:$0xff] %vm335_vm3, %v6492_v16  ;;  %353 = vst.msk [vmem:[#allocation2 + $0x88] sm:$0xff] %vm335_vm3, %v6492_v16  ;;  %v6290_v18 = vld [vmem:[%s6574_s17 + $0x14] ss:$8 sps:$4 sm:$0xff]   ;;  %v6292_v19 = vld [vmem:[%s6574_s17 + $0x10] ss:$8 sps:$4 sm:$0xff]   ;;  %1226 = vmatpush1.bf16.msra.mxu1 %v5755_v48 }
  0x13   : > { %354 = vst.msk [vmem:[#allocation2 + $0x90] sm:$0xff] %vm335_vm3, %v6492_v16  ;;  %355 = vst.msk [vmem:[#allocation2 + $0x98] sm:$0xff] %vm335_vm3, %v6492_v16  ;;  %v6293_v20 = vld [vmem:[%s6574_s17 + $0x24] ss:$8 sps:$4 sm:$0xff]   ;;  %v6295_v21 = vld [vmem:[%s6574_s17 + $0x20] ss:$8 sps:$4 sm:$0xff]   ;;  %1227 = vmatprep.subr.bf16.mxu1 %v5760_v52 }
  0x14   : > { %715 = vmatpush1.bf16.msra.mxu0 %v6280_v4  ;;  %356 = vst.msk [vmem:[#allocation2 + $0xa0] sm:$0xff] %vm335_vm3, %v6492_v16  ;;  %357 = vst.msk [vmem:[#allocation2 + $0xa8] sm:$0xff] %vm335_vm3, %v6492_v16  ;;  %v6296_v22 = vld [vmem:[%s6574_s17 + $0x34] ss:$8 sps:$4 sm:$0xff]   ;;  %v6298_v23 = vld [vmem:[%s6574_s17 + $0x30] ss:$8 sps:$4 sm:$0xff]  }
  0x15   : > { %716 = vmatprep.subr.bf16.mxu0 %v6490_v1  ;;  %358 = vst.msk [vmem:[#allocation2 + $0xb0] sm:$0xff] %vm335_vm3, %v6492_v16  ;;  %359 = vst.msk [vmem:[#allocation2 + $0xb8] sm:$0xff] %vm335_vm3, %v6492_v16  ;;  %v6299_v24 = vld [vmem:[%s6574_s17 + $0x44] ss:$8 sps:$4 sm:$0xff]   ;;  %v6301_v25 = vld [vmem:[%s6574_s17 + $0x40] ss:$8 sps:$4 sm:$0xff]  }
  0x16   : > { %360 = vst.msk [vmem:[#allocation2 + $0xc0] sm:$0xff] %vm335_vm3, %v6492_v16  ;;  %361 = vst.msk [vmem:[#allocation2 + $0xc8] sm:$0xff] %vm335_vm3, %v6492_v16  ;;  %v6302_v26 = vld [vmem:[%s6574_s17 + $0x54] ss:$8 sps:$4 sm:$0xff]   ;;  %v6304_v27 = vld [vmem:[%s6574_s17 + $0x50] ss:$8 sps:$4 sm:$0xff]   ;;  %1228 = vmatpush1.bf16.msra.mxu1 %v5759_v54 }
  0x17   : > { %362 = vst.msk [vmem:[#allocation2 + $0xd0] sm:$0xff] %vm335_vm3, %v6492_v16  ;;  %363 = vst.msk [vmem:[#allocation2 + $0xd8] sm:$0xff] %vm335_vm3, %v6492_v16  ;;  %v6305_v28 = vld [vmem:[%s6574_s17 + $0x64] ss:$8 sps:$4 sm:$0xff]   ;;  %v6307_v29 = vld [vmem:[%s6574_s17 + $0x60] ss:$8 sps:$4 sm:$0xff]   ;;  %1229 = vmatprep.subr.bf16.mxu1 %v5764_v57 }
  0x18   : > { %717 = vmatpush1.bf16.msra.mxu0 %v6281_v5  ;;  %364 = vst.msk [vmem:[#allocation2 + $0xe0] sm:$0xff] %vm335_vm3, %v6492_v16  ;;  %365 = vst.msk [vmem:[#allocation2 + $0xe8] sm:$0xff] %vm335_vm3, %v6492_v16  ;;  %v6308_v30 = vld [vmem:[%s6574_s17 + $0x74] ss:$8 sps:$4 sm:$0xff]   ;;  %v6310_v31 = vld [vmem:[%s6574_s17 + $0x70] ss:$8 sps:$4 sm:$0xff]  }
  0x19   : > { %718 = vmatprep.subr.bf16.mxu0 %v6490_v1  ;;  %366 = vst.msk [vmem:[#allocation2 + $0xf0] sm:$0xff] %vm335_vm3, %v6492_v16  ;;  %367 = vst.msk [vmem:[#allocation2 + $0xf8] sm:$0xff] %vm335_vm3, %v6492_v16  ;;  %v6311_v32 = vld [vmem:[%s6574_s17 + $0x84] ss:$8 sps:$4 sm:$0xff]   ;;  %v6313_v33 = vld [vmem:[%s6574_s17 + $0x80] ss:$8 sps:$4 sm:$0xff]  }
  0x1a   : > { %v6314_v34 = vld [vmem:[%s6574_s17 + $0x94] ss:$8 sps:$4 sm:$0xff]   ;;  %v6316_v35 = vld [vmem:[%s6574_s17 + $0x90] ss:$8 sps:$4 sm:$0xff]   ;;  %v6317_v36 = vld [vmem:[%s6574_s17 + $0xa4] ss:$8 sps:$4 sm:$0xff]   ;;  %1230 = vmatpush1.bf16.msra.mxu1 %v5763_v58 }
  0x1b   : > { %v6319_v37 = vld [vmem:[%s6574_s17 + $0xa0] ss:$8 sps:$4 sm:$0xff]   ;;  %v6320_v38 = vld [vmem:[%s6574_s17 + $0xb4] ss:$8 sps:$4 sm:$0xff]   ;;  %v6322_v41 = vld [vmem:[%s6574_s17 + $0xb0] ss:$8 sps:$4 sm:$0xff]   ;;  %1416 = vmatprep.subr.bf16.mxu1 %v5754_v0 }
  0x1c   : > { %719 = vmatpush1.bf16.msra.mxu0 %v6282_v7  ;;  %v6323_v43 = vld [vmem:[%s6574_s17 + $0xc4] ss:$8 sps:$4 sm:$0xff]   ;;  %v6325_v51 = vld [vmem:[%s6574_s17 + $0xc0] ss:$8 sps:$4 sm:$0xff]   ;;  %v6326_v53 = vld [vmem:[%s6574_s17 + $0xd4] ss:$8 sps:$4 sm:$0xff]  }
  0x1d   : > { %720 = vmatprep.subr.bf16.mxu0 %v6490_v1  ;;  %v6328_v59 = vld [vmem:[%s6574_s17 + $0xd0] ss:$8 sps:$4 sm:$0xff]   ;;  %v6329_v60 = vld [vmem:[%s6574_s17 + $0xe4] ss:$8 sps:$4 sm:$0xff]   ;;  %v6331_v2 = vld [vmem:[%s6574_s17 + $0xe0] ss:$8 sps:$4 sm:$0xff]  }
  0x1e   : > { %v6332_v3 = vld [vmem:[%s6574_s17 + $0xf4] ss:$8 sps:$4 sm:$0xff]   ;;  %v6334_v4 = vld [vmem:[%s6574_s17 + $0xf0] ss:$8 sps:$4 sm:$0xff]   ;;  %v368_v5 = vld [vmem:[#allocation2] sm:$0xff] }
  0x1f   : > { %v369_v7 = vld [vmem:[#allocation2 + $0x8] sm:$0xff]  ;;  %v370_v13 = vld [vmem:[#allocation2 + $0x10] sm:$0xff]  ;;  %v6715_v16 = vld [vmem:[%s8422_s2] ss:$0 sm:$0xff] }
  0x20   : > { %721 = vmatpush1.bf16.msra.mxu0 %v6283_v8  ;;  %v374_v48 = vld [vmem:[#allocation2 + $0x30] sm:$0xff]  ;;  %v375_v54 = vld [vmem:[#allocation2 + $0x38] sm:$0xff] }
  0x21   : > { %722 = vmatprep.subr.bf16.mxu0 %v6490_v1 }
  0x24   : > { %723 = vmatpush1.bf16.msra.mxu0 %v6284_v9 }
  0x25   : > { %724 = vmatprep.subr.bf16.mxu0 %v6490_v1 }
  0x28   : > { %725 = vmatpush1.bf16.msra.mxu0 %v6285_v12 }
  0x29   : > { %726 = vmatprep.subr.bf16.mxu0 %v6490_v1 }
  0x2c   : > { %727 = vmatpush1.bf16.msra.mxu0 %v706_v15  ;;  %v371_v15 = vld [vmem:[#allocation2 + $0x18] sm:$0xff] }
  0x2f   : > { %741 = vmatmul.mubr.bf16.vlgmr.msra.gmra.mrb[0].mxu0 %v6287_v17 }
  0x30   : > { %5735 = vmatprep.mubr.msk.bf16.mxu0 %vm652_vm0, %v6290_v18 }
  0x37   : > { %749 = vmatmul.mubr.bf16.gmra.mrb[4].mxu0 %v6292_v19 }
  0x38   : > { %5736 = vmatprep.mubr.msk.bf16.mxu0 %vm652_vm0, %v6293_v20 }
  0x3f   : > { %757 = vmatmul.mubr.bf16.gmra.mrb[8].mxu0 %v6295_v21 }
  0x40   : > { %5737 = vmatprep.mubr.msk.bf16.mxu0 %vm652_vm0, %v6296_v22 }
  0x47   : > { %765 = vmatmul.mubr.bf16.gmra.mrb[12].mxu0 %v6298_v23 }
  0x48   : > { %5738 = vmatprep.mubr.msk.bf16.mxu0 %vm652_vm0, %v6299_v24 }
  0x4f   : > { %773 = vmatmul.mubr.bf16.gmra.mrb[16].mxu0 %v6301_v25 }
  0x50   : > { %5739 = vmatprep.mubr.msk.bf16.mxu0 %vm652_vm0, %v6302_v26  ;;  %v372_v26 = vld [vmem:[#allocation2 + $0x20] sm:$0xff] }
  0x57   : > { %781 = vmatmul.mubr.bf16.gmra.mrb[20].mxu0 %v6304_v27  ;;  %v1062_v27 = vld [vmem:[%s8423_s3 + $0x88] sm:$0xff] }
  0x58   : > { %5740 = vmatprep.mubr.msk.bf16.mxu0 %vm652_vm0, %v6305_v28  ;;  %v1064_v28 = vld [vmem:[%s8423_s3 + $0xc8] sm:$0xff] }
  0x59   : > { %v5757_v45 = vcombine.low %v1062_v27, %v1064_v28 }
  0x5f   : > { %789 = vmatmul.mubr.bf16.gmra.mrb[24].mxu0 %v6307_v29 }
  0x60   : > { %5741 = vmatprep.mubr.msk.bf16.mxu0 %vm652_vm0, %v6308_v30 }
  0x67   : > { %797 = vmatmul.mubr.bf16.gmra.mrb[28].mxu0 %v6310_v31 }
  0x68   : > { %5742 = vmatprep.mubr.msk.bf16.mxu0 %vm652_vm0, %v6311_v32  ;;  %v373_v32 = vld [vmem:[#allocation2 + $0x28] sm:$0xff] }
  0x6f   : > { %805 = vmatmul.mubr.bf16.gmra.mrb[32].mxu0 %v6313_v33 }
  0x70   : > { %5743 = vmatprep.mubr.msk.bf16.mxu0 %vm652_vm0, %v6314_v34 }
  0x77   : > { %813 = vmatmul.mubr.bf16.gmra.mrb[36].mxu0 %v6316_v35 }
  0x78   : > { %5744 = vmatprep.mubr.msk.bf16.mxu0 %vm652_vm0, %v6317_v36  ;;  %v5758_v36 = vcombine.high %v1062_v27, %v1064_v28 }
  0x7f   : > { %821 = vmatmul.mubr.bf16.gmra.mrb[40].mxu0 %v6319_v37 }
  0x80   : > { %5745 = vmatprep.mubr.msk.bf16.mxu0 %vm652_vm0, %v6320_v38 }
  0x87   : > { %829 = vmatmul.mubr.bf16.gmra.mrb[44].mxu0 %v6322_v41 }
  0x88   : > { %5746 = vmatprep.mubr.msk.bf16.mxu0 %vm652_vm0, %v6323_v43 }
  0x8f   : > { %837 = vmatmul.mubr.bf16.gmra.mrb[48].mxu0 %v6325_v51 }
  0x90   : > { %5747 = vmatprep.mubr.msk.bf16.mxu0 %vm652_vm0, %v6326_v53 }
  0x97   : > { %845 = vmatmul.mubr.bf16.gmra.mrb[52].mxu0 %v6328_v59  ;;  %v5766_v59 = vcombine.high %v1070_v49, %v1072_v50 }
  0x98   : > { %5748 = vmatprep.mubr.msk.bf16.mxu0 %vm652_vm0, %v6329_v60 }
  0x9f   : > { %853 = vmatmul.mubr.bf16.gmra.mrb[56].mxu0 %v6331_v2 }
  0xa0   : > { %5749 = vmatprep.mubr.msk.bf16.mxu0 %vm652_vm0, %v6332_v3  ;;  %v5765_v3 = vcombine.low %v1070_v49, %v1072_v50 }
  0xa7   : > { %861 = vmatmul.mubr.bf16.gmra.mrb[60].mxu0 %v6334_v4 }
 0x102   : > { %v742_v6 = vpop.f32.mrb[0].mxu0 }
 0x103   : > { %v869_v8 = vadd.f32 %v742_v6, %v368_v5  ;;  %v744_v9 = vpop.f32.mrb[1].mxu0  ;;  %v376_v5 = vld [vmem:[#allocation2 + $0x40] sm:$0xff] }
 0x104   : > { %v745_v10 = vpop.f32.mrb[2].mxu0  ;;  %v377_v9 = vld [vmem:[#allocation2 + $0x48] sm:$0xff] }
 0x105   : > { %902 = vst.msk [vmem:[#allocation2] sm:$0xff] %vm335_vm3, %v869_v8  ;;  %v870_v11 = vadd.f32 %v745_v10, %v369_v7  ;;  %v747_v12 = vpop.f32.mrb[3].mxu0 }
 0x107   : > { %903 = vst.msk [vmem:[#allocation2 + $0x8] sm:$0xff] %vm335_vm3, %v870_v11 }
 0x10a   : > { %v750_v14 = vpop.f32.mrb[4].mxu0 }
 0x10b   : > { %v871_v17 = vadd.f32 %v750_v14, %v370_v13  ;;  %v752_v18 = vpop.f32.mrb[5].mxu0 }
 0x10c   : > { %v753_v19 = vpop.f32.mrb[6].mxu0  ;;  %v937_v20 = vld [vmem:[#allocation2] sm:$0xff] }
 0x10d   : > { %904 = vst.msk [vmem:[#allocation2 + $0x10] sm:$0xff] %vm335_vm3, %v871_v17  ;;  %v872_v21 = vadd.f32 %v753_v19, %v371_v15  ;;  %v755_v22 = vpop.f32.mrb[7].mxu0  ;;  %v976_v23 = vadd.f32 %v6715_v16, %v937_v20 }
 0x10e   : > { %v938_v24 = vld [vmem:[#allocation2 + $0x8] sm:$0xff] }
 0x10f   : > { %905 = vst.msk [vmem:[#allocation2 + $0x18] sm:$0xff] %vm335_vm3, %v872_v21  ;;  %v977_v25 = vadd.f32 %v6715_v16, %v938_v24  ;;  %v1008_v29 = vmax.f32 %v976_v23, 0.0  ;;  %v378_v21 = vld [vmem:[#allocation2 + $0x50] sm:$0xff] }
 0x111   : > { %v1009_v30 = vmax.f32 %v977_v25, 0.0  ;;  %v379_v25 = vld [vmem:[#allocation2 + $0x58] sm:$0xff] }
 0x112   : > { %v758_v31 = vpop.f32.mrb[8].mxu0 }
 0x113   : > { %v873_v33 = vadd.f32 %v758_v31, %v372_v26  ;;  %v760_v34 = vpop.f32.mrb[9].mxu0  ;;  %v6727_v35 = vpack.c.bf16 %v1009_v30, %v1008_v29 }
 0x114   : > { %v761_v37 = vpop.f32.mrb[10].mxu0  ;;  %v939_v38 = vld [vmem:[#allocation2 + $0x10] sm:$0xff] }
 0x115   : > { %906 = vst.msk [vmem:[#allocation2 + $0x20] sm:$0xff] %vm335_vm3, %v873_v33  ;;  %v874_v41 = vadd.f32 %v761_v37, %v373_v32  ;;  %v763_v42 = vpop.f32.mrb[11].mxu0  ;;  %5767 = vmatmul.mubr.msk.bf16.vlgmr.msra.gmra.mrb[0].mxu1 %vm335_vm3, %v6727_v35  ;;  %v978_v43 = vadd.f32 %v6715_v16, %v939_v38  ;;  %v380_v37 = vld [vmem:[#allocation2 + $0x60] sm:$0xff] }
 0x116   : > { %1417 = vmatpush1.bf16.msra.mxu1 %v5753_v63  ;;  %1265 = vmatprep.mubr.bf16.mxu1 %v6490_v1  ;;  %v940_v44 = vld [vmem:[#allocation2 + $0x18] sm:$0xff] }
 0x117   : > { %907 = vst.msk [vmem:[#allocation2 + $0x28] sm:$0xff] %vm335_vm3, %v874_v41  ;;  %v979_v46 = vadd.f32 %v6715_v16, %v940_v44  ;;  %1418 = vmatprep.subr.bf16.mxu1 %v5758_v36  ;;  %v1010_v51 = vmax.f32 %v978_v43, 0.0  ;;  %v381_v41 = vld [vmem:[#allocation2 + $0x68] sm:$0xff] }
 0x119   : > { %v1011_v52 = vmax.f32 %v979_v46, 0.0 }
 0x11a   : > { %v766_v53 = vpop.f32.mrb[12].mxu0  ;;  %1419 = vmatpush1.bf16.msra.mxu1 %v5757_v45 }
 0x11b   : > { %v875_v56 = vadd.f32 %v766_v53, %v374_v48  ;;  %v768_v57 = vpop.f32.mrb[13].mxu0  ;;  %v6748_v58 = vpack.c.bf16 %v1011_v52, %v1010_v51  ;;  %1420 = vmatprep.subr.bf16.mxu1 %v5762_v47  ;;  %v382_v52 = vld [vmem:[#allocation2 + $0x70] sm:$0xff] }
 0x11c   : > { %v769_v60 = vpop.f32.mrb[14].mxu0  ;;  %v941_v61 = vld [vmem:[#allocation2 + $0x20] sm:$0xff] }
 0x11d   : > { %908 = vst.msk [vmem:[#allocation2 + $0x30] sm:$0xff] %vm335_vm3, %v875_v56  ;;  %v876_v62 = vadd.f32 %v769_v60, %v375_v54  ;;  %v771_v63 = vpop.f32.mrb[15].mxu0  ;;  %5768 = vmatmul.mubr.msk.bf16.gmra.mrb[4].mxu1 %vm335_vm3, %v6748_v58  ;;  %v980_v0 = vadd.f32 %v6715_v16, %v941_v61  ;;  %v383_v56 = vld [vmem:[#allocation2 + $0x78] sm:$0xff] }
 0x11e   : > { %1275 = vmatprep.mubr.bf16.mxu1 %v6490_v1  ;;  %v942_v2 = vld [vmem:[#allocation2 + $0x28] sm:$0xff]  ;;  %1421 = vmatpush1.bf16.msra.mxu1 %v5761_v55 }
 0x11f   : > { %909 = vst.msk [vmem:[#allocation2 + $0x38] sm:$0xff] %vm335_vm3, %v876_v62  ;;  %v981_v4 = vadd.f32 %v6715_v16, %v942_v2  ;;  %1422 = vmatprep.subr.bf16.mxu1 %v5766_v59  ;;  %v1012_v6 = vmax.f32 %v980_v0, 0.0 }
 0x121   : > { %v1013_v7 = vmax.f32 %v981_v4, 0.0 }
 0x122   : > { %v774_v8 = vpop.f32.mrb[16].mxu0  ;;  %1423 = vmatpush1.bf16.msra.mxu1 %v5765_v3 }
 0x123   : > { %v877_v10 = vadd.f32 %v774_v8, %v376_v5  ;;  %v776_v11 = vpop.f32.mrb[17].mxu0  ;;  %v6757_v12 = vpack.c.bf16 %v1013_v7, %v1012_v6  ;;  %v384_v5 = vld [vmem:[#allocation2 + $0x80] sm:$0xff] }
 0x124   : > { %v777_v13 = vpop.f32.mrb[18].mxu0  ;;  %v943_v14 = vld [vmem:[#allocation2 + $0x30] sm:$0xff] }
 0x125   : > { %910 = vst.msk [vmem:[#allocation2 + $0x40] sm:$0xff] %vm335_vm3, %v877_v10  ;;  %v878_v15 = vadd.f32 %v777_v13, %v377_v9  ;;  %v779_v17 = vpop.f32.mrb[19].mxu0  ;;  %5769 = vmatmul.mubr.msk.bf16.gmra.mrb[8].mxu1 %vm335_vm3, %v6757_v12  ;;  %v982_v18 = vadd.f32 %v6715_v16, %v943_v14  ;;  %v385_v9 = vld [vmem:[#allocation2 + $0x88] sm:$0xff] }
 0x126   : > { %1285 = vmatprep.mubr.bf16.mxu1 %v6490_v1  ;;  %v944_v19 = vld [vmem:[#allocation2 + $0x38] sm:$0xff] }
 0x127   : > { %911 = vst.msk [vmem:[#allocation2 + $0x48] sm:$0xff] %vm335_vm3, %v878_v15  ;;  %v983_v20 = vadd.f32 %v6715_v16, %v944_v19  ;;  %v1014_v22 = vmax.f32 %v982_v18, 0.0 }
 0x129   : > { %v1015_v23 = vmax.f32 %v983_v20, 0.0 }
 0x12a   : > { %v782_v24 = vpop.f32.mrb[20].mxu0 }
 0x12b   : > { %v879_v26 = vadd.f32 %v782_v24, %v378_v21  ;;  %v784_v27 = vpop.f32.mrb[21].mxu0  ;;  %v6766_v28 = vpack.c.bf16 %v1015_v23, %v1014_v22  ;;  %v386_v22 = vld [vmem:[#allocation2 + $0x90] sm:$0xff] }
 0x12c   : > { %v785_v29 = vpop.f32.mrb[22].mxu0  ;;  %v945_v30 = vld [vmem:[#allocation2 + $0x40] sm:$0xff] }
 0x12d   : > { %912 = vst.msk [vmem:[#allocation2 + $0x50] sm:$0xff] %vm335_vm3, %v879_v26  ;;  %v880_v31 = vadd.f32 %v785_v29, %v379_v25  ;;  %v787_v32 = vpop.f32.mrb[23].mxu0  ;;  %5770 = vmatmul.mubr.msk.bf16.gmra.mrb[12].mxu1 %vm335_vm3, %v6766_v28  ;;  %v984_v33 = vadd.f32 %v6715_v16, %v945_v30  ;;  %v387_v26 = vld [vmem:[#allocation2 + $0x98] sm:$0xff] }
 0x12e   : > { %1295 = vmatprep.mubr.bf16.mxu1 %v6490_v1  ;;  %v946_v34 = vld [vmem:[#allocation2 + $0x48] sm:$0xff] }
 0x12f   : > { %913 = vst.msk [vmem:[#allocation2 + $0x58] sm:$0xff] %vm335_vm3, %v880_v31  ;;  %v985_v36 = vadd.f32 %v6715_v16, %v946_v34  ;;  %v1016_v38 = vmax.f32 %v984_v33, 0.0 }
 0x131   : > { %v1017_v39 = vmax.f32 %v985_v36, 0.0 }
 0x132   : > { %v790_v40 = vpop.f32.mrb[24].mxu0 }
 0x133   : > { %v881_v42 = vadd.f32 %v790_v40, %v380_v37  ;;  %v792_v43 = vpop.f32.mrb[25].mxu0  ;;  %v6775_v44 = vpack.c.bf16 %v1017_v39, %v1016_v38  ;;  %v388_v39 = vld [vmem:[#allocation2 + $0xa0] sm:$0xff] }
 0x134   : > { %v793_v45 = vpop.f32.mrb[26].mxu0  ;;  %v947_v46 = vld [vmem:[#allocation2 + $0x50] sm:$0xff]  ;;  %v389_v43 = vld [vmem:[#allocation2 + $0xa8] sm:$0xff] }
 0x135   : > { %914 = vst.msk [vmem:[#allocation2 + $0x60] sm:$0xff] %vm335_vm3, %v881_v42  ;;  %v882_v47 = vadd.f32 %v793_v45, %v381_v41  ;;  %v795_v48 = vpop.f32.mrb[27].mxu0  ;;  %5771 = vmatmul.mubr.msk.bf16.gmra.mrb[16].mxu1 %vm335_vm3, %v6775_v44  ;;  %v986_v49 = vadd.f32 %v6715_v16, %v947_v46 }
 0x136   : > { %1305 = vmatprep.mubr.bf16.mxu1 %v6490_v1  ;;  %v948_v50 = vld [vmem:[#allocation2 + $0x58] sm:$0xff] }
 0x137   : > { %915 = vst.msk [vmem:[#allocation2 + $0x68] sm:$0xff] %vm335_vm3, %v882_v47  ;;  %v987_v51 = vadd.f32 %v6715_v16, %v948_v50  ;;  %v1018_v53 = vmax.f32 %v986_v49, 0.0 }
 0x139   : > { %v1019_v54 = vmax.f32 %v987_v51, 0.0 }
 0x13a   : > { %v798_v55 = vpop.f32.mrb[28].mxu0 }
 0x13b   : > { %v883_v57 = vadd.f32 %v798_v55, %v382_v52  ;;  %v800_v59 = vpop.f32.mrb[29].mxu0  ;;  %v6784_v60 = vpack.c.bf16 %v1019_v54, %v1018_v53  ;;  %v390_v55 = vld [vmem:[#allocation2 + $0xb0] sm:$0xff] }
 0x13c   : > { %v801_v61 = vpop.f32.mrb[30].mxu0  ;;  %v949_v62 = vld [vmem:[#allocation2 + $0x60] sm:$0xff] }
 0x13d   : > { %916 = vst.msk [vmem:[#allocation2 + $0x70] sm:$0xff] %vm335_vm3, %v883_v57  ;;  %v884_v63 = vadd.f32 %v801_v61, %v383_v56  ;;  %v803_v0 = vpop.f32.mrb[31].mxu0  ;;  %5772 = vmatmul.mubr.msk.bf16.gmra.mrb[20].mxu1 %vm335_vm3, %v6784_v60  ;;  %v988_v2 = vadd.f32 %v6715_v16, %v949_v62  ;;  %v391_v61 = vld [vmem:[#allocation2 + $0xb8] sm:$0xff] }
 0x13e   : > { %1315 = vmatprep.mubr.bf16.mxu1 %v6490_v1  ;;  %v950_v3 = vld [vmem:[#allocation2 + $0x68] sm:$0xff] }
 0x13f   : > { %917 = vst.msk [vmem:[#allocation2 + $0x78] sm:$0xff] %vm335_vm3, %v884_v63  ;;  %v989_v4 = vadd.f32 %v6715_v16, %v950_v3  ;;  %v1020_v6 = vmax.f32 %v988_v2, 0.0 }
 0x141   : > { %v1021_v7 = vmax.f32 %v989_v4, 0.0 }
 0x142   : > { %v806_v8 = vpop.f32.mrb[32].mxu0 }
 0x143   : > { %v885_v10 = vadd.f32 %v806_v8, %v384_v5  ;;  %v808_v11 = vpop.f32.mrb[33].mxu0  ;;  %v6793_v13 = vpack.c.bf16 %v1021_v7, %v1020_v6 }
 0x144   : > { %v809_v14 = vpop.f32.mrb[34].mxu0  ;;  %v951_v15 = vld [vmem:[#allocation2 + $0x70] sm:$0xff] }
 0x145   : > { %918 = vst.msk [vmem:[#allocation2 + $0x80] sm:$0xff] %vm335_vm3, %v885_v10  ;;  %v886_v17 = vadd.f32 %v809_v14, %v385_v9  ;;  %v811_v18 = vpop.f32.mrb[35].mxu0  ;;  %5773 = vmatmul.mubr.msk.bf16.gmra.mrb[24].mxu1 %vm335_vm3, %v6793_v13  ;;  %v990_v19 = vadd.f32 %v6715_v16, %v951_v15  ;;  %v392_v9 = vld [vmem:[#allocation2 + $0xc0] sm:$0xff]  ;;  %v393_v15 = vld [vmem:[#allocation2 + $0xc8] sm:$0xff] }
 0x146   : > { %1325 = vmatprep.mubr.bf16.mxu1 %v6490_v1  ;;  %v952_v20 = vld [vmem:[#allocation2 + $0x78] sm:$0xff] }
 0x147   : > { %919 = vst.msk [vmem:[#allocation2 + $0x88] sm:$0xff] %vm335_vm3, %v886_v17  ;;  %v991_v21 = vadd.f32 %v6715_v16, %v952_v20  ;;  %v1022_v23 = vmax.f32 %v990_v19, 0.0 }
 0x149   : > { %v1023_v24 = vmax.f32 %v991_v21, 0.0 }
 0x14a   : > { %v814_v25 = vpop.f32.mrb[36].mxu0 }
 0x14b   : > { %v887_v27 = vadd.f32 %v814_v25, %v386_v22  ;;  %v816_v29 = vpop.f32.mrb[37].mxu0  ;;  %v6802_v30 = vpack.c.bf16 %v1023_v24, %v1022_v23 }
 0x14c   : > { %v817_v31 = vpop.f32.mrb[38].mxu0  ;;  %v953_v32 = vld [vmem:[#allocation2 + $0x80] sm:$0xff] }
 0x14d   : > { %920 = vst.msk [vmem:[#allocation2 + $0x90] sm:$0xff] %vm335_vm3, %v887_v27  ;;  %v888_v33 = vadd.f32 %v817_v31, %v387_v26  ;;  %v819_v34 = vpop.f32.mrb[39].mxu0  ;;  %5774 = vmatmul.mubr.msk.bf16.gmra.mrb[28].mxu1 %vm335_vm3, %v6802_v30  ;;  %v992_v36 = vadd.f32 %v6715_v16, %v953_v32  ;;  %v394_v27 = vld [vmem:[#allocation2 + $0xd0] sm:$0xff] }
 0x14e   : > { %1335 = vmatprep.mubr.bf16.mxu1 %v6490_v1  ;;  %v954_v37 = vld [vmem:[#allocation2 + $0x88] sm:$0xff] }
 0x14f   : > { %921 = vst.msk [vmem:[#allocation2 + $0x98] sm:$0xff] %vm335_vm3, %v888_v33  ;;  %v993_v38 = vadd.f32 %v6715_v16, %v954_v37  ;;  %v1024_v40 = vmax.f32 %v992_v36, 0.0  ;;  %v395_v33 = vld [vmem:[#allocation2 + $0xd8] sm:$0xff] }
 0x151   : > { %v1025_v41 = vmax.f32 %v993_v38, 0.0 }
 0x152   : > { %v822_v42 = vpop.f32.mrb[40].mxu0 }
 0x153   : > { %v889_v45 = vadd.f32 %v822_v42, %v388_v39  ;;  %v824_v46 = vpop.f32.mrb[41].mxu0  ;;  %v6811_v47 = vpack.c.bf16 %v1025_v41, %v1024_v40 }
 0x154   : > { %v825_v48 = vpop.f32.mrb[42].mxu0  ;;  %v955_v49 = vld [vmem:[#allocation2 + $0x90] sm:$0xff]  ;;  %v396_v46 = vld [vmem:[#allocation2 + $0xe0] sm:$0xff] }
 0x155   : > { %922 = vst.msk [vmem:[#allocation2 + $0xa0] sm:$0xff] %vm335_vm3, %v889_v45  ;;  %v890_v50 = vadd.f32 %v825_v48, %v389_v43  ;;  %v827_v51 = vpop.f32.mrb[43].mxu0  ;;  %5775 = vmatmul.mubr.msk.bf16.gmra.mrb[32].mxu1 %vm335_vm3, %v6811_v47  ;;  %v994_v52 = vadd.f32 %v6715_v16, %v955_v49 }
 0x156   : > { %1345 = vmatprep.mubr.bf16.mxu1 %v6490_v1  ;;  %v956_v53 = vld [vmem:[#allocation2 + $0x98] sm:$0xff]  ;;  %v397_v51 = vld [vmem:[#allocation2 + $0xe8] sm:$0xff] }
 0x157   : > { %923 = vst.msk [vmem:[#allocation2 + $0xa8] sm:$0xff] %vm335_vm3, %v890_v50  ;;  %v995_v54 = vadd.f32 %v6715_v16, %v956_v53  ;;  %v1026_v56 = vmax.f32 %v994_v52, 0.0 }
 0x159   : > { %v1027_v57 = vmax.f32 %v995_v54, 0.0 }
 0x15a   : > { %v830_v59 = vpop.f32.mrb[44].mxu0 }
 0x15b   : > { %v891_v62 = vadd.f32 %v830_v59, %v390_v55  ;;  %v832_v63 = vpop.f32.mrb[45].mxu0  ;;  %v6820_v0 = vpack.c.bf16 %v1027_v57, %v1026_v56 }
 0x15c   : > { %v833_v2 = vpop.f32.mrb[46].mxu0  ;;  %v957_v3 = vld [vmem:[#allocation2 + $0xa0] sm:$0xff] }
 0x15d   : > { %924 = vst.msk [vmem:[#allocation2 + $0xb0] sm:$0xff] %vm335_vm3, %v891_v62  ;;  %v892_v4 = vadd.f32 %v833_v2, %v391_v61  ;;  %v835_v5 = vpop.f32.mrb[47].mxu0  ;;  %5776 = vmatmul.mubr.msk.bf16.gmra.mrb[36].mxu1 %vm335_vm3, %v6820_v0  ;;  %v996_v6 = vadd.f32 %v6715_v16, %v957_v3  ;;  %v398_v2 = vld [vmem:[#allocation2 + $0xf0] sm:$0xff] }
 0x15e   : > { %1355 = vmatprep.mubr.bf16.mxu1 %v6490_v1  ;;  %v958_v7 = vld [vmem:[#allocation2 + $0xa8] sm:$0xff] }
 0x15f   : > { %925 = vst.msk [vmem:[#allocation2 + $0xb8] sm:$0xff] %vm335_vm3, %v892_v4  ;;  %v997_v8 = vadd.f32 %v6715_v16, %v958_v7  ;;  %v1028_v10 = vmax.f32 %v996_v6, 0.0  ;;  %v399_v6 = vld [vmem:[#allocation2 + $0xf8] sm:$0xff] }
 0x161   : > { %v1029_v11 = vmax.f32 %v997_v8, 0.0 }
 0x162   : > { %v838_v14 = vpop.f32.mrb[48].mxu0 }
 0x163   : > { %v893_v17 = vadd.f32 %v838_v14, %v392_v9  ;;  %v840_v18 = vpop.f32.mrb[49].mxu0  ;;  %v6829_v19 = vpack.c.bf16 %v1029_v11, %v1028_v10 }
 0x164   : > { %v841_v20 = vpop.f32.mrb[50].mxu0  ;;  %v959_v21 = vld [vmem:[#allocation2 + $0xb0] sm:$0xff] }
 0x165   : > { %926 = vst.msk [vmem:[#allocation2 + $0xc0] sm:$0xff] %vm335_vm3, %v893_v17  ;;  %v894_v22 = vadd.f32 %v841_v20, %v393_v15  ;;  %v843_v23 = vpop.f32.mrb[51].mxu0  ;;  %5777 = vmatmul.mubr.msk.bf16.gmra.mrb[40].mxu1 %vm335_vm3, %v6829_v19  ;;  %v998_v24 = vadd.f32 %v6715_v16, %v959_v21 }
 0x166   : > { %1365 = vmatprep.mubr.bf16.mxu1 %v6490_v1  ;;  %v960_v25 = vld [vmem:[#allocation2 + $0xb8] sm:$0xff] }
 0x167   : > { %927 = vst.msk [vmem:[#allocation2 + $0xc8] sm:$0xff] %vm335_vm3, %v894_v22  ;;  %v999_v26 = vadd.f32 %v6715_v16, %v960_v25  ;;  %v1030_v29 = vmax.f32 %v998_v24, 0.0  ;;  %v2231_v23 = vld [vmem:[%s8423_s3 + $0x18] sm:$0xff] }
 0x168   : > { %v2233_v24 = vld [vmem:[%s8423_s3 + $0x58] sm:$0xff] }
 0x169   : > { %v1031_v31 = vmax.f32 %v999_v26, 0.0  ;;  %v5834_v26 = vcombine.high %v2231_v23, %v2233_v24 }
 0x16a   : > { %v846_v32 = vpop.f32.mrb[52].mxu0 }
 0x16b   : > { %v895_v34 = vadd.f32 %v846_v32, %v394_v27  ;;  %v848_v36 = vpop.f32.mrb[53].mxu0  ;;  %v6838_v37 = vpack.c.bf16 %v1031_v31, %v1030_v29  ;;  %2541 = vmatprep.subr.bf16.mxu1 %v5834_v26  ;;  %v6345_v26 = vld [vmem:[%s8425_s5 + $0x68] sm:$0xff]  }
 0x16c   : > { %v849_v38 = vpop.f32.mrb[54].mxu0  ;;  %v961_v39 = vld [vmem:[#allocation2 + $0xc0] sm:$0xff] }
 0x16d   : > { %928 = vst.msk [vmem:[#allocation2 + $0xd0] sm:$0xff] %vm335_vm3, %v895_v34  ;;  %v896_v40 = vadd.f32 %v849_v38, %v395_v33  ;;  %v851_v41 = vpop.f32.mrb[55].mxu0  ;;  %5778 = vmatmul.mubr.msk.bf16.gmra.mrb[44].mxu1 %vm335_vm3, %v6838_v37  ;;  %v1000_v42 = vadd.f32 %v6715_v16, %v961_v39  ;;  %v2235_v38 = vld [vmem:[%s8423_s3 + $0x98] sm:$0xff] }
 0x16e   : > { %1375 = vmatprep.mubr.bf16.mxu1 %v6490_v1  ;;  %v962_v43 = vld [vmem:[#allocation2 + $0xc8] sm:$0xff]  ;;  %v2237_v39 = vld [vmem:[%s8423_s3 + $0xd8] sm:$0xff] }
 0x16f   : > { %929 = vst.msk [vmem:[#allocation2 + $0xd8] sm:$0xff] %vm335_vm3, %v896_v40  ;;  %v1001_v45 = vadd.f32 %v6715_v16, %v962_v43  ;;  %v1032_v48 = vmax.f32 %v1000_v42, 0.0  ;;  %v5833_v40 = vcombine.low %v2231_v23, %v2233_v24  ;;  %v5838_v41 = vcombine.high %v2235_v38, %v2237_v39  ;;  %v2241_v42 = vld [vmem:[%s8423_s3 + $0x158] sm:$0xff] }
 0x170   : > { %v5837_v43 = vcombine.low %v2235_v38, %v2237_v39 }
 0x171   : > { %v1033_v49 = vmax.f32 %v1001_v45, 0.0 }
 0x172   : > { %v854_v50 = vpop.f32.mrb[56].mxu0 }
 0x173   : > { %v897_v52 = vadd.f32 %v854_v50, %v396_v46  ;;  %v856_v53 = vpop.f32.mrb[57].mxu0  ;;  %v6847_v54 = vpack.c.bf16 %v1033_v49, %v1032_v48  ;;  %v2243_v46 = vld [vmem:[%s8423_s3 + $0x198] sm:$0xff] }
 0x174   : > { %v857_v55 = vpop.f32.mrb[58].mxu0  ;;  %v963_v56 = vld [vmem:[#allocation2 + $0xd0] sm:$0xff]  ;;  %v2245_v48 = vld [vmem:[%s8423_s3 + $0x1d8] sm:$0xff]  ;;  %v6335_v53 = vld [vmem:[%s8425_s5 + $0x40] sm:$0xff]  }
 0x175   : > { %930 = vst.msk [vmem:[#allocation2 + $0xe0] sm:$0xff] %vm335_vm3, %v897_v52  ;;  %v898_v57 = vadd.f32 %v857_v55, %v397_v51  ;;  %v859_v59 = vpop.f32.mrb[59].mxu0  ;;  %5779 = vmatmul.mubr.msk.bf16.gmra.mrb[48].mxu1 %vm335_vm3, %v6847_v54  ;;  %v1002_v61 = vadd.f32 %v6715_v16, %v963_v56  ;;  %v5846_v50 = vcombine.high %v2243_v46, %v2245_v48  ;;  %v1075_v52 = vlaneseq  ;;  %v6336_v55 = vld [vmem:[%s8425_s5] sm:$0xff]  }
 0x176   : > { %1385 = vmatprep.mubr.bf16.mxu1 %v6490_v1  ;;  %v964_v62 = vld [vmem:[#allocation2 + $0xd8] sm:$0xff]  ;;  %v5845_v51 = vcombine.low %v2243_v46, %v2245_v48  ;;  %6074 = vmatprep.subr.bf16.mxu0 %v6335_v53  ;;  %v6338_v59 = vld [vmem:[%s8425_s5 + $0x8] sm:$0xff]  }
 0x177   : > { %931 = vst.msk [vmem:[#allocation2 + $0xe8] sm:$0xff] %vm335_vm3, %v898_v57  ;;  %v1003_v63 = vadd.f32 %v6715_v16, %v964_v62  ;;  %v1034_v3 = vmax.f32 %v1002_v61, 0.0  ;;  %6075 = vmatpush3.bf16.msra.mxu0 %v6336_v55  ;;  %v6936_v56 = vshrl.u32 %v1075_v52, 7  ;;  %v6337_v57 = vld [vmem:[%s8425_s5 + $0x48] sm:$0xff]   ;;  %v6339_v62 = vld [vmem:[%s8425_s5 + $0x50] sm:$0xff]   ;;  %v6349_v52 = vld [vmem:[%s8425_s5 + $0x78] sm:$0xff]  }
 0x178   : > { %6076 = vmatprep.subr.bf16.mxu0 %v6337_v57  ;;  %v6350_v57 = vld [vmem:[%s8425_s5 + $0x38] sm:$0xff]  }
 0x179   : > { %v1035_v4 = vmax.f32 %v1003_v63, 0.0  ;;  %v6946_v61 = vsub.s32 0, %v6936_v56  ;;  %v6954_v63 = vld [vmem:[%s8424_s4] sm:$0xf] }
 0x17a   : > { %v862_v5 = vpop.f32.mrb[60].mxu0 }
 0x17b   : > { %v899_v7 = vadd.f32 %v862_v5, %v398_v2  ;;  %v864_v8 = vpop.f32.mrb[61].mxu0  ;;  %v6856_v9 = vpack.c.bf16 %v1035_v4, %v1034_v3  ;;  %6077 = vmatpush3.bf16.msra.mxu0 %v6338_v59  ;;  %v6957_v2 = vsub.s32 1, %v6936_v56  ;;  %v6340_v3 = vld [vmem:[%s8425_s5 + $0x10] sm:$0xff]   ;;  %v6966_v4 = vrot.slane %v6954_v63, %v6946_v61  ;;  %v6341_v5 = vld [vmem:[%s8425_s5 + $0x58] sm:$0xff]  }
 0x17c   : > { %v865_v10 = vpop.f32.mrb[62].mxu0  ;;  %v965_v11 = vld [vmem:[#allocation2 + $0xe0] sm:$0xff]  ;;  %6078 = vmatprep.subr.bf16.mxu0 %v6339_v62 }
 0x17d   : > { %932 = vst.msk [vmem:[#allocation2 + $0xf0] sm:$0xff] %vm335_vm3, %v899_v7  ;;  %v900_v14 = vadd.f32 %v865_v10, %v399_v6  ;;  %v867_v15 = vpop.f32.mrb[63].mxu0  ;;  %5780 = vmatmul.mubr.msk.bf16.gmra.mrb[52].mxu1 %vm335_vm3, %v6856_v9  ;;  %v1004_v17 = vadd.f32 %v6715_v16, %v965_v11  ;;  %v6973_v6 = vrot.slane %v6954_v63, %v6957_v2  ;;  %v6342_v7 = vld [vmem:[%s8425_s5 + $0x18] sm:$0xff]  }
 0x17e   : > { %1395 = vmatprep.mubr.bf16.mxu1 %v6490_v1  ;;  %v966_v18 = vld [vmem:[#allocation2 + $0xe8] sm:$0xff] }
 0x17f   : > { %933 = vst.msk [vmem:[#allocation2 + $0xf8] sm:$0xff] %vm335_vm3, %v900_v14  ;;  %v1005_v20 = vadd.f32 %v6715_v16, %v966_v18  ;;  %v1036_v21 = vmax.f32 %v1004_v17, 0.0  ;;  %6079 = vmatpush3.bf16.msra.mxu0 %v6340_v3  ;;  %v6343_v14 = vld [vmem:[%s8425_s5 + $0x60] sm:$0xff]  }
 0x180   : > { %6080 = vmatprep.subr.bf16.mxu0 %v6341_v5  ;;  %v6344_v18 = vld [vmem:[%s8425_s5 + $0x20] sm:$0xff]  }
 0x181   : > { %v1037_v22 = vmax.f32 %v1005_v20, 0.0 }
 0x183   : > { %v6871_v25 = vpack.c.bf16 %v1037_v22, %v1036_v21  ;;  %6081 = vmatpush3.bf16.msra.mxu0 %v6342_v7 }
 0x184   : > { %v967_v27 = vld [vmem:[#allocation2 + $0xf0] sm:$0xff]  ;;  %6082 = vmatprep.subr.bf16.mxu0 %v6343_v14 }
 0x185   : > { %5781 = vmatmul.mubr.msk.bf16.gmra.mrb[56].mxu1 %vm335_vm3, %v6871_v25  ;;  %v1006_v29 = vadd.f32 %v6715_v16, %v967_v27 }
 0x186   : > { %1405 = vmatprep.mubr.bf16.mxu1 %v6490_v1  ;;  %v968_v31 = vld [vmem:[#allocation2 + $0xf8] sm:$0xff] }
 0x187   : > { %v1007_v32 = vadd.f32 %v6715_v16, %v968_v31  ;;  %v1038_v33 = vmax.f32 %v1006_v29, 0.0  ;;  %v2239_v16 = vld [vmem:[%s8423_s3 + $0x118] sm:$0xff]  ;;  %6083 = vmatpush3.bf16.msra.mxu0 %v6344_v18  ;;  %v6346_v31 = vld [vmem:[%s8425_s5 + $0x28] sm:$0xff]  }
 0x188   : > { %v5842_v45 = vcombine.high %v2239_v16, %v2241_v42  ;;  %v5841_v49 = vcombine.low %v2239_v16, %v2241_v42  ;;  %6084 = vmatprep.subr.bf16.mxu0 %v6345_v26  ;;  %v6348_v42 = vld [vmem:[%s8425_s5 + $0x30] sm:$0xff]  }
 0x189   : > { %v1039_v34 = vmax.f32 %v1007_v32, 0.0 }
 0x18b   : > { %v6878_v36 = vpack.c.bf16 %v1039_v34, %v1038_v33  ;;  %6085 = vmatpush3.bf16.msra.mxu0 %v6346_v31 }
 0x18d   : > { %5782 = vmatmul.mubr.msk.bf16.gmra.mrb[60].mxu1 %vm335_vm3, %v6878_v36 }
 0x18e   : > { %1448 = vmatprep.mubr.bf16.mxu1 %v6490_v1 }
 0x195   : > { %5783 = vmatmul.mubr.msk.bf16.vlgmr.msra.gmra.mrb[64].mxu1 %vm335_vm3, %v6727_v35 }
 0x196   : > { %1458 = vmatprep.mubr.bf16.mxu1 %v6490_v1  ;;  %2542 = vmatpush1.bf16.msra.mxu1 %v5833_v40  ;;  %v6347_v40 = vld [vmem:[%s8425_s5 + $0x70] sm:$0xff]  }
 0x197   : > { %2543 = vmatprep.subr.bf16.mxu1 %v5838_v41  ;;  %6086 = vmatprep.subr.bf16.mxu0 %v6347_v40 }
 0x198   : > { %6087 = vmatpush3.bf16.msra.mxu0 %v6348_v42 }
 0x199   : > { %6088 = vmatprep.subr.bf16.mxu0 %v6349_v52 }
 0x19a   : > { %2544 = vmatpush1.bf16.msra.mxu1 %v5837_v43 }
 0x19b   : > { %2545 = vmatprep.subr.bf16.mxu1 %v5842_v45 }
 0x19c   : > { %6089 = vmatpush3.bf16.msra.mxu0 %v6350_v57 }
 0x19d   : > { %5784 = vmatmul.mubr.msk.bf16.gmra.mrb[68].mxu1 %vm335_vm3, %v6748_v58 }
 0x19e   : > { %1468 = vmatprep.mubr.bf16.mxu1 %v6490_v1  ;;  %2546 = vmatpush1.bf16.msra.mxu1 %v5841_v49 }
 0x19f   : > { %2547 = vmatprep.subr.bf16.mxu1 %v5846_v50 }
 0x1a2   : > { %2548 = vmatpush1.bf16.msra.mxu1 %v5845_v51 }
 0x1a5   : > { %5785 = vmatmul.mubr.msk.bf16.gmra.mrb[72].mxu1 %vm335_vm3, %v6757_v12 }
 0x1a6   : > { %1478 = vmatprep.mubr.bf16.mxu1 %v6490_v1 }
 0x1ad   : > { %5786 = vmatmul.mubr.msk.bf16.gmra.mrb[76].mxu1 %vm335_vm3, %v6766_v28 }
 0x1ae   : > { %1488 = vmatprep.mubr.bf16.mxu1 %v6490_v1 }
 0x1b5   : > { %5787 = vmatmul.mubr.msk.bf16.gmra.mrb[80].mxu1 %vm335_vm3, %v6775_v44 }
 0x1b6   : > { %1498 = vmatprep.mubr.bf16.mxu1 %v6490_v1 }
 0x1bd   : > { %5788 = vmatmul.mubr.msk.bf16.gmra.mrb[84].mxu1 %vm335_vm3, %v6784_v60 }
 0x1be   : > { %1508 = vmatprep.mubr.bf16.mxu1 %v6490_v1 }
 0x1c5   : > { %5789 = vmatmul.mubr.msk.bf16.gmra.mrb[88].mxu1 %vm335_vm3, %v6793_v13 }
 0x1c6   : > { %1518 = vmatprep.mubr.bf16.mxu1 %v6490_v1 }
 0x1cd   : > { %5790 = vmatmul.mubr.msk.bf16.gmra.mrb[92].mxu1 %vm335_vm3, %v6802_v30 }
 0x1ce   : > { %1528 = vmatprep.mubr.bf16.mxu1 %v6490_v1 }
 0x1d5   : > { %5791 = vmatmul.mubr.msk.bf16.gmra.mrb[96].mxu1 %vm335_vm3, %v6811_v47 }
 0x1d6   : > { %1538 = vmatprep.mubr.bf16.mxu1 %v6490_v1 }
 0x1dd   : > { %5792 = vmatmul.mubr.msk.bf16.gmra.mrb[100].mxu1 %vm335_vm3, %v6820_v0 }
 0x1de   : > { %1548 = vmatprep.mubr.bf16.mxu1 %v6490_v1 }
 0x1e5   : > { %5793 = vmatmul.mubr.msk.bf16.gmra.mrb[104].mxu1 %vm335_vm3, %v6829_v19 }
 0x1e6   : > { %1558 = vmatprep.mubr.bf16.mxu1 %v6490_v1 }
 0x1e8   : > { %v1257_v8 = vpop.f32.mrb[0].mxu1 }
 0x1e9   : > { %v1258_v10 = vadd.f32 %v1257_v8, %v6966_v4  ;;  %v1259_v11 = vpop.f32.mrb[1].mxu1 }
 0x1ea   : > { %v1260_v15 = vadd.f32 %v1259_v11, %v6973_v6  ;;  %v1261_v17 = vpop.f32.mrb[2].mxu1 }
 0x1eb   : > { %v1262_v20 = vadd.f32 %v1261_v17, %v6966_v4  ;;  %v1263_v21 = vpop.f32.mrb[3].mxu1  ;;  %v1609_v23 = vmax.f32 %v1258_v10, 0.0 }
 0x1ec   : > { %v1264_v22 = vadd.f32 %v1263_v21, %v6973_v6  ;;  %v1610_v27 = vmax.f32 %v1260_v15, 0.0 }
 0x1ed   : > { %v1613_v24 = vmax.f32 %v1262_v20, 0.0  ;;  %5794 = vmatmul.mubr.msk.bf16.gmra.mrb[108].mxu1 %vm335_vm3, %v6838_v37 }
 0x1ee   : > { %v1614_v29 = vmax.f32 %v1264_v22, 0.0  ;;  %1568 = vmatprep.mubr.bf16.mxu1 %v6490_v1 }
 0x1ef   : > { %v1737_v32 = vadd.f32 %v1613_v24, %v1609_v23 }
 0x1f0   : > { %v1774_v33 = vadd.f32 %v1614_v29, %v1610_v27  ;;  %v1267_v34 = vpop.f32.mrb[4].mxu1 }
 0x1f1   : > { %v1268_v38 = vadd.f32 %v1267_v34, %v6966_v4  ;;  %v1269_v39 = vpop.f32.mrb[5].mxu1  ;;  %v3356_v34 = vld [vmem:[%s8423_s3 + $0x28] sm:$0xff] }
 0x1f2   : > { %v1270_v41 = vadd.f32 %v1269_v39, %v6973_v6  ;;  %v1271_v16 = vpop.f32.mrb[6].mxu1 }
 0x1f3   : > { %v1617_v43 = vmax.f32 %v1268_v38, 0.0  ;;  %v1272_v45 = vadd.f32 %v1271_v16, %v6966_v4  ;;  %v1273_v46 = vpop.f32.mrb[7].mxu1  ;;  %v3358_v38 = vld [vmem:[%s8423_s3 + $0x68] sm:$0xff] }
 0x1f4   : > { %v1618_v48 = vmax.f32 %v1270_v41, 0.0  ;;  %v1274_v49 = vadd.f32 %v1273_v46, %v6973_v6  ;;  %v5914_v16 = vcombine.high %v3356_v34, %v3358_v38 }
 0x1f5   : > { %v1738_v50 = vadd.f32 %v1737_v32, %v1617_v43  ;;  %v1621_v51 = vmax.f32 %v1272_v45, 0.0  ;;  %5795 = vmatmul.mubr.msk.bf16.gmra.mrb[112].mxu1 %vm335_vm3, %v6847_v54 }
 0x1f6   : > { %v1775_v53 = vadd.f32 %v1774_v33, %v1618_v48  ;;  %v1622_v55 = vmax.f32 %v1274_v49, 0.0  ;;  %1578 = vmatprep.mubr.bf16.mxu1 %v6490_v1  ;;  %3666 = vmatprep.subr.bf16.mxu1 %v5914_v16  ;;  %v3364_v16 = vld [vmem:[%s8423_s3 + $0x128] sm:$0xff] }
 0x1f7   : > { %v1739_v59 = vadd.f32 %v1738_v50, %v1621_v51 }
 0x1f8   : > { %v1776_v62 = vadd.f32 %v1775_v53, %v1622_v55  ;;  %v1277_v3 = vpop.f32.mrb[8].mxu1 }
 0x1f9   : > { %v1278_v5 = vadd.f32 %v1277_v3, %v6966_v4  ;;  %v1279_v7 = vpop.f32.mrb[9].mxu1 }
 0x1fa   : > { %v1280_v8 = vadd.f32 %v1279_v7, %v6973_v6  ;;  %v1281_v10 = vpop.f32.mrb[10].mxu1 }
 0x1fb   : > { %v1625_v11 = vmax.f32 %v1278_v5, 0.0  ;;  %v1282_v14 = vadd.f32 %v1281_v10, %v6966_v4  ;;  %v1283_v15 = vpop.f32.mrb[11].mxu1 }
 0x1fc   : > { %v1626_v17 = vmax.f32 %v1280_v8, 0.0  ;;  %v1284_v18 = vadd.f32 %v1283_v15, %v6973_v6 }
 0x1fd   : > { %v1740_v20 = vadd.f32 %v1739_v59, %v1625_v11  ;;  %v1629_v21 = vmax.f32 %v1282_v14, 0.0  ;;  %5796 = vmatmul.mubr.msk.bf16.gmra.mrb[116].mxu1 %vm335_vm3, %v6856_v9 }
 0x1fe   : > { %v1777_v22 = vadd.f32 %v1776_v62, %v1626_v17  ;;  %v1630_v23 = vmax.f32 %v1284_v18, 0.0  ;;  %1588 = vmatprep.mubr.bf16.mxu1 %v6490_v1 }
 0x1ff   : > { %v1741_v24 = vadd.f32 %v1740_v20, %v1629_v21  ;;  %v3360_v21 = vld [vmem:[%s8423_s3 + $0xa8] sm:$0xff] }
 0x200   : > { %v1778_v26 = vadd.f32 %v1777_v22, %v1630_v23  ;;  %v1287_v27 = vpop.f32.mrb[12].mxu1  ;;  %v3362_v22 = vld [vmem:[%s8423_s3 + $0xe8] sm:$0xff] }
 0x201   : > { %v1288_v29 = vadd.f32 %v1287_v27, %v6966_v4  ;;  %v1289_v31 = vpop.f32.mrb[13].mxu1 }
 0x202   : > { %v1290_v32 = vadd.f32 %v1289_v31, %v6973_v6  ;;  %v1291_v33 = vpop.f32.mrb[14].mxu1 }
 0x203   : > { %v1633_v39 = vmax.f32 %v1288_v29, 0.0  ;;  %v1292_v40 = vadd.f32 %v1291_v33, %v6966_v4  ;;  %v1293_v41 = vpop.f32.mrb[15].mxu1  ;;  %v5913_v29 = vcombine.low %v3356_v34, %v3358_v38 }
 0x204   : > { %v1634_v42 = vmax.f32 %v1290_v32, 0.0  ;;  %v1294_v43 = vadd.f32 %v1293_v41, %v6973_v6 }
 0x205   : > { %v1742_v45 = vadd.f32 %v1741_v24, %v1633_v39  ;;  %v1637_v46 = vmax.f32 %v1292_v40, 0.0  ;;  %5797 = vmatmul.mubr.msk.bf16.gmra.mrb[120].mxu1 %vm335_vm3, %v6871_v25  ;;  %v5918_v39 = vcombine.high %v3360_v21, %v3362_v22 }
 0x206   : > { %v1779_v48 = vadd.f32 %v1778_v26, %v1634_v42  ;;  %v1638_v49 = vmax.f32 %v1294_v43, 0.0  ;;  %1598 = vmatprep.mubr.bf16.mxu1 %v6490_v1  ;;  %v3366_v42 = vld [vmem:[%s8423_s3 + $0x168] sm:$0xff] }
 0x207   : > { %v1743_v50 = vadd.f32 %v1742_v45, %v1637_v46  ;;  %v5917_v46 = vcombine.low %v3360_v21, %v3362_v22 }
 0x208   : > { %v1780_v51 = vadd.f32 %v1779_v48, %v1638_v49  ;;  %v1297_v52 = vpop.f32.mrb[16].mxu1  ;;  %v5922_v49 = vcombine.high %v3364_v16, %v3366_v42 }
 0x209   : > { %v1298_v53 = vadd.f32 %v1297_v52, %v6966_v4  ;;  %v1299_v55 = vpop.f32.mrb[17].mxu1  ;;  %v3368_v52 = vld [vmem:[%s8423_s3 + $0x1a8] sm:$0xff] }
 0x20a   : > { %v1300_v57 = vadd.f32 %v1299_v55, %v6973_v6  ;;  %v1301_v59 = vpop.f32.mrb[18].mxu1 }
 0x20b   : > { %v1641_v62 = vmax.f32 %v1298_v53, 0.0  ;;  %v1302_v3 = vadd.f32 %v1301_v59, %v6966_v4  ;;  %v1303_v5 = vpop.f32.mrb[19].mxu1  ;;  %v3370_v53 = vld [vmem:[%s8423_s3 + $0x1e8] sm:$0xff] }
 0x20c   : > { %v1642_v7 = vmax.f32 %v1300_v57, 0.0  ;;  %v1304_v8 = vadd.f32 %v1303_v5, %v6973_v6  ;;  %v5925_v21 = vcombine.low %v3368_v52, %v3370_v53 }
 0x20d   : > { %v1744_v10 = vadd.f32 %v1743_v50, %v1641_v62  ;;  %v1645_v11 = vmax.f32 %v1302_v3, 0.0  ;;  %5798 = vmatmul.mubr.msk.bf16.gmra.mrb[124].mxu1 %vm335_vm3, %v6878_v36  ;;  %v5921_v3 = vcombine.low %v3364_v16, %v3366_v42 }
 0x20e   : > { %v1781_v14 = vadd.f32 %v1780_v51, %v1642_v7  ;;  %v1646_v15 = vmax.f32 %v1304_v8, 0.0  ;;  %2573 = vmatprep.mubr.bf16.mxu1 %v6490_v1 }
 0x20f   : > { %v1745_v17 = vadd.f32 %v1744_v10, %v1645_v11  ;;  %v5926_v10 = vcombine.high %v3368_v52, %v3370_v53 }
 0x210   : > { %v1782_v18 = vadd.f32 %v1781_v14, %v1646_v15  ;;  %v1307_v20 = vpop.f32.mrb[20].mxu1 }
 0x211   : > { %v1308_v23 = vadd.f32 %v1307_v20, %v6966_v4  ;;  %v1309_v24 = vpop.f32.mrb[21].mxu1 }
 0x212   : > { %v1310_v26 = vadd.f32 %v1309_v24, %v6973_v6  ;;  %v1311_v27 = vpop.f32.mrb[22].mxu1 }
 0x213   : > { %v1649_v31 = vmax.f32 %v1308_v23, 0.0  ;;  %v1312_v32 = vadd.f32 %v1311_v27, %v6966_v4  ;;  %v1313_v33 = vpop.f32.mrb[23].mxu1 }
 0x214   : > { %v1650_v40 = vmax.f32 %v1310_v26, 0.0  ;;  %v1314_v41 = vadd.f32 %v1313_v33, %v6973_v6 }
 0x215   : > { %v1746_v43 = vadd.f32 %v1745_v17, %v1649_v31  ;;  %v1653_v45 = vmax.f32 %v1312_v32, 0.0  ;;  %5863 = vmatmul.mubr.msk.bf16.vlgmr.msra.gmra.mrb[128].mxu1 %vm335_vm3, %v6727_v35 }
 0x216   : > { %v1783_v34 = vadd.f32 %v1782_v18, %v1650_v40  ;;  %v1654_v38 = vmax.f32 %v1314_v41, 0.0  ;;  %2583 = vmatprep.mubr.bf16.mxu1 %v6490_v1  ;;  %3667 = vmatpush1.bf16.msra.mxu1 %v5913_v29 }
 0x217   : > { %v1747_v48 = vadd.f32 %v1746_v43, %v1653_v45  ;;  %3668 = vmatprep.subr.bf16.mxu1 %v5918_v39 }
 0x218   : > { %v1784_v50 = vadd.f32 %v1783_v34, %v1654_v38  ;;  %v1317_v51 = vpop.f32.mrb[24].mxu1 }
 0x219   : > { %v1318_v55 = vadd.f32 %v1317_v51, %v6966_v4  ;;  %v1319_v57 = vpop.f32.mrb[25].mxu1 }
 0x21a   : > { %v1320_v59 = vadd.f32 %v1319_v57, %v6973_v6  ;;  %v1321_v62 = vpop.f32.mrb[26].mxu1  ;;  %3669 = vmatpush1.bf16.msra.mxu1 %v5917_v46 }
 0x21b   : > { %v1657_v5 = vmax.f32 %v1318_v55, 0.0  ;;  %v1322_v7 = vadd.f32 %v1321_v62, %v6966_v4  ;;  %v1323_v8 = vpop.f32.mrb[27].mxu1  ;;  %3670 = vmatprep.subr.bf16.mxu1 %v5922_v49 }
 0x21c   : > { %v1658_v11 = vmax.f32 %v1320_v59, 0.0  ;;  %v1324_v14 = vadd.f32 %v1323_v8, %v6973_v6 }
 0x21d   : > { %v1748_v15 = vadd.f32 %v1747_v48, %v1657_v5  ;;  %v1661_v17 = vmax.f32 %v1322_v7, 0.0  ;;  %5864 = vmatmul.mubr.msk.bf16.gmra.mrb[132].mxu1 %vm335_vm3, %v6748_v58 }
 0x21e   : > { %v1785_v18 = vadd.f32 %v1784_v50, %v1658_v11  ;;  %v1662_v20 = vmax.f32 %v1324_v14, 0.0  ;;  %2593 = vmatprep.mubr.bf16.mxu1 %v6490_v1  ;;  %3671 = vmatpush1.bf16.msra.mxu1 %v5921_v3 }
 0x21f   : > { %v1749_v22 = vadd.f32 %v1748_v15, %v1661_v17  ;;  %3672 = vmatprep.subr.bf16.mxu1 %v5926_v10 }
 0x220   : > { %v1786_v23 = vadd.f32 %v1785_v18, %v1662_v20  ;;  %v1327_v24 = vpop.f32.mrb[28].mxu1 }
 0x221   : > { %v1328_v26 = vadd.f32 %v1327_v24, %v6966_v4  ;;  %v1329_v27 = vpop.f32.mrb[29].mxu1 }
 0x222   : > { %v1330_v29 = vadd.f32 %v1329_v27, %v6973_v6  ;;  %v1331_v31 = vpop.f32.mrb[30].mxu1  ;;  %3673 = vmatpush1.bf16.msra.mxu1 %v5925_v21 }
 0x223   : > { %v1665_v32 = vmax.f32 %v1328_v26, 0.0  ;;  %v1332_v33 = vadd.f32 %v1331_v31, %v6966_v4  ;;  %v1333_v39 = vpop.f32.mrb[31].mxu1 }
 0x224   : > { %v1666_v40 = vmax.f32 %v1330_v29, 0.0  ;;  %v1334_v41 = vadd.f32 %v1333_v39, %v6973_v6 }
 0x225   : > { %v1750_v16 = vadd.f32 %v1749_v22, %v1665_v32  ;;  %v1669_v42 = vmax.f32 %v1332_v33, 0.0  ;;  %5865 = vmatmul.mubr.msk.bf16.gmra.mrb[136].mxu1 %vm335_vm3, %v6757_v12 }
 0x226   : > { %v1787_v43 = vadd.f32 %v1786_v23, %v1666_v40  ;;  %v1670_v45 = vmax.f32 %v1334_v41, 0.0  ;;  %2603 = vmatprep.mubr.bf16.mxu1 %v6490_v1 }
 0x227   : > { %v1751_v34 = vadd.f32 %v1750_v16, %v1669_v42 }
 0x228   : > { %v1788_v38 = vadd.f32 %v1787_v43, %v1670_v45  ;;  %v1337_v46 = vpop.f32.mrb[32].mxu1 }
 0x229   : > { %v1338_v48 = vadd.f32 %v1337_v46, %v6966_v4  ;;  %v1339_v49 = vpop.f32.mrb[33].mxu1 }
 0x22a   : > { %v1340_v50 = vadd.f32 %v1339_v49, %v6973_v6  ;;  %v1341_v51 = vpop.f32.mrb[34].mxu1 }
 0x22b   : > { %v1673_v52 = vmax.f32 %v1338_v48, 0.0  ;;  %v1342_v53 = vadd.f32 %v1341_v51, %v6966_v4  ;;  %v1343_v55 = vpop.f32.mrb[35].mxu1 }
 0x22c   : > { %v1674_v57 = vmax.f32 %v1340_v50, 0.0  ;;  %v1344_v59 = vadd.f32 %v1343_v55, %v6973_v6 }
 0x22d   : > { %v1752_v62 = vadd.f32 %v1751_v34, %v1673_v52  ;;  %v1677_v3 = vmax.f32 %v1342_v53, 0.0  ;;  %5866 = vmatmul.mubr.msk.bf16.gmra.mrb[140].mxu1 %vm335_vm3, %v6766_v28 }
 0x22e   : > { %v1789_v5 = vadd.f32 %v1788_v38, %v1674_v57  ;;  %v1678_v7 = vmax.f32 %v1344_v59, 0.0  ;;  %2613 = vmatprep.mubr.bf16.mxu1 %v6490_v1 }
 0x22f   : > { %v1753_v8 = vadd.f32 %v1752_v62, %v1677_v3 }
 0x230   : > { %v1790_v10 = vadd.f32 %v1789_v5, %v1678_v7  ;;  %v1347_v11 = vpop.f32.mrb[36].mxu1 }
 0x231   : > { %v1348_v14 = vadd.f32 %v1347_v11, %v6966_v4  ;;  %v1349_v15 = vpop.f32.mrb[37].mxu1 }
 0x232   : > { %v1350_v17 = vadd.f32 %v1349_v15, %v6973_v6  ;;  %v1351_v18 = vpop.f32.mrb[38].mxu1 }
 0x233   : > { %v1681_v20 = vmax.f32 %v1348_v14, 0.0  ;;  %v1352_v21 = vadd.f32 %v1351_v18, %v6966_v4  ;;  %v1353_v22 = vpop.f32.mrb[39].mxu1 }
 0x234   : > { %v1682_v23 = vmax.f32 %v1350_v17, 0.0  ;;  %v1354_v24 = vadd.f32 %v1353_v22, %v6973_v6 }
 0x235   : > { %v1754_v26 = vadd.f32 %v1753_v8, %v1681_v20  ;;  %v1685_v27 = vmax.f32 %v1352_v21, 0.0  ;;  %5867 = vmatmul.mubr.msk.bf16.gmra.mrb[144].mxu1 %vm335_vm3, %v6775_v44 }
 0x236   : > { %v1791_v29 = vadd.f32 %v1790_v10, %v1682_v23  ;;  %v1686_v31 = vmax.f32 %v1354_v24, 0.0  ;;  %2623 = vmatprep.mubr.bf16.mxu1 %v6490_v1 }
 0x237   : > { %v1755_v32 = vadd.f32 %v1754_v26, %v1685_v27 }
 0x238   : > { %v1792_v33 = vadd.f32 %v1791_v29, %v1686_v31  ;;  %v1357_v39 = vpop.f32.mrb[40].mxu1 }
 0x239   : > { %v1358_v40 = vadd.f32 %v1357_v39, %v6966_v4  ;;  %v1359_v41 = vpop.f32.mrb[41].mxu1 }
 0x23a   : > { %v1360_v16 = vadd.f32 %v1359_v41, %v6973_v6  ;;  %v1361_v42 = vpop.f32.mrb[42].mxu1 }
 0x23b   : > { %v1689_v43 = vmax.f32 %v1358_v40, 0.0  ;;  %v1362_v45 = vadd.f32 %v1361_v42, %v6966_v4  ;;  %v1363_v34 = vpop.f32.mrb[43].mxu1 }
 0x23c   : > { %v1690_v38 = vmax.f32 %v1360_v16, 0.0  ;;  %v1364_v46 = vadd.f32 %v1363_v34, %v6973_v6 }
 0x23d   : > { %v1756_v48 = vadd.f32 %v1755_v32, %v1689_v43  ;;  %v1693_v49 = vmax.f32 %v1362_v45, 0.0  ;;  %5868 = vmatmul.mubr.msk.bf16.gmra.mrb[148].mxu1 %vm335_vm3, %v6784_v60 }
 0x23e   : > { %v1793_v50 = vadd.f32 %v1792_v33, %v1690_v38  ;;  %v1694_v51 = vmax.f32 %v1364_v46, 0.0  ;;  %2633 = vmatprep.mubr.bf16.mxu1 %v6490_v1 }
 0x23f   : > { %v1757_v52 = vadd.f32 %v1756_v48, %v1693_v49 }
 0x240   : > { %v1794_v53 = vadd.f32 %v1793_v50, %v1694_v51  ;;  %v1367_v55 = vpop.f32.mrb[44].mxu1 }
 0x241   : > { %v1368_v57 = vadd.f32 %v1367_v55, %v6966_v4  ;;  %v1369_v59 = vpop.f32.mrb[45].mxu1 }
 0x242   : > { %v1370_v62 = vadd.f32 %v1369_v59, %v6973_v6  ;;  %v1371_v3 = vpop.f32.mrb[46].mxu1 }
 0x243   : > { %v1697_v5 = vmax.f32 %v1368_v57, 0.0  ;;  %v1372_v7 = vadd.f32 %v1371_v3, %v6966_v4  ;;  %v1373_v8 = vpop.f32.mrb[47].mxu1 }
 0x244   : > { %v1698_v10 = vmax.f32 %v1370_v62, 0.0  ;;  %v1374_v11 = vadd.f32 %v1373_v8, %v6973_v6 }
 0x245   : > { %v1758_v14 = vadd.f32 %v1757_v52, %v1697_v5  ;;  %v1701_v15 = vmax.f32 %v1372_v7, 0.0  ;;  %5869 = vmatmul.mubr.msk.bf16.gmra.mrb[152].mxu1 %vm335_vm3, %v6793_v13 }
 0x246   : > { %v1795_v17 = vadd.f32 %v1794_v53, %v1698_v10  ;;  %v1702_v18 = vmax.f32 %v1374_v11, 0.0  ;;  %2643 = vmatprep.mubr.bf16.mxu1 %v6490_v1  ;;  %v6351_v10 = vld [vmem:[%s8425_s5 + $0xc0] sm:$0xff]  }
 0x247   : > { %v1759_v20 = vadd.f32 %v1758_v14, %v1701_v15  ;;  %6096 = vmatprep.subr.bf16.mxu0 %v6351_v10 }
 0x248   : > { %v1796_v21 = vadd.f32 %v1795_v17, %v1702_v18  ;;  %v1377_v22 = vpop.f32.mrb[48].mxu1 }
 0x249   : > { %v1378_v23 = vadd.f32 %v1377_v22, %v6966_v4  ;;  %v1379_v24 = vpop.f32.mrb[49].mxu1 }
 0x24a   : > { %v1380_v26 = vadd.f32 %v1379_v24, %v6973_v6  ;;  %v1381_v27 = vpop.f32.mrb[50].mxu1 }
 0x24b   : > { %v1705_v29 = vmax.f32 %v1378_v23, 0.0  ;;  %v1382_v31 = vadd.f32 %v1381_v27, %v6966_v4  ;;  %v1383_v32 = vpop.f32.mrb[51].mxu1 }
 0x24c   : > { %v1706_v33 = vmax.f32 %v1380_v26, 0.0  ;;  %v1384_v39 = vadd.f32 %v1383_v32, %v6973_v6 }
 0x24d   : > { %v1760_v40 = vadd.f32 %v1759_v20, %v1705_v29  ;;  %v1709_v41 = vmax.f32 %v1382_v31, 0.0  ;;  %5870 = vmatmul.mubr.msk.bf16.gmra.mrb[156].mxu1 %vm335_vm3, %v6802_v30 }
 0x24e   : > { %v1797_v16 = vadd.f32 %v1796_v21, %v1706_v33  ;;  %v1710_v42 = vmax.f32 %v1384_v39, 0.0  ;;  %2653 = vmatprep.mubr.bf16.mxu1 %v6490_v1 }
 0x24f   : > { %v1761_v43 = vadd.f32 %v1760_v40, %v1709_v41  ;;  %v7137_v41 = vsub.s32 2, %v6936_v56 }
 0x250   : > { %v1798_v45 = vadd.f32 %v1797_v16, %v1710_v42  ;;  %v1387_v34 = vpop.f32.mrb[52].mxu1 }
 0x251   : > { %v1388_v38 = vadd.f32 %v1387_v34, %v6966_v4  ;;  %v1389_v46 = vpop.f32.mrb[53].mxu1 }
 0x252   : > { %v1390_v48 = vadd.f32 %v1389_v46, %v6973_v6  ;;  %v1391_v49 = vpop.f32.mrb[54].mxu1 }
 0x253   : > { %v1713_v50 = vmax.f32 %v1388_v38, 0.0  ;;  %v1392_v51 = vadd.f32 %v1391_v49, %v6966_v4  ;;  %v1393_v52 = vpop.f32.mrb[55].mxu1 }
 0x254   : > { %v1714_v53 = vmax.f32 %v1390_v48, 0.0  ;;  %v1394_v55 = vadd.f32 %v1393_v52, %v6973_v6 }
 0x255   : > { %v1762_v57 = vadd.f32 %v1761_v43, %v1713_v50  ;;  %v1717_v59 = vmax.f32 %v1392_v51, 0.0  ;;  %5871 = vmatmul.mubr.msk.bf16.gmra.mrb[160].mxu1 %vm335_vm3, %v6811_v47  ;;  %v7141_v43 = vsub.s32 3, %v6936_v56  ;;  %v7149_v51 = vrot.slane %v6954_v63, %v7137_v41 }
 0x256   : > { %v1799_v62 = vadd.f32 %v1798_v45, %v1714_v53  ;;  %v1718_v3 = vmax.f32 %v1394_v55, 0.0  ;;  %2663 = vmatprep.mubr.bf16.mxu1 %v6490_v1 }
 0x257   : > { %v1763_v5 = vadd.f32 %v1762_v57, %v1717_v59  ;;  %v7153_v56 = vrot.slane %v6954_v63, %v7141_v43 }
 0x258   : > { %v1800_v7 = vadd.f32 %v1799_v62, %v1718_v3  ;;  %v1397_v8 = vpop.f32.mrb[56].mxu1 }
 0x259   : > { %v1398_v11 = vadd.f32 %v1397_v8, %v6966_v4  ;;  %v1399_v14 = vpop.f32.mrb[57].mxu1 }
 0x25a   : > { %v1400_v15 = vadd.f32 %v1399_v14, %v6973_v6  ;;  %v1401_v17 = vpop.f32.mrb[58].mxu1 }
 0x25b   : > { %v1721_v18 = vmax.f32 %v1398_v11, 0.0  ;;  %v1402_v20 = vadd.f32 %v1401_v17, %v6966_v4  ;;  %v1403_v21 = vpop.f32.mrb[59].mxu1 }
 0x25c   : > { %v1722_v22 = vmax.f32 %v1400_v15, 0.0  ;;  %v1404_v23 = vadd.f32 %v1403_v21, %v6973_v6 }
 0x25d   : > { %v1764_v24 = vadd.f32 %v1763_v5, %v1721_v18  ;;  %v1725_v26 = vmax.f32 %v1402_v20, 0.0  ;;  %5872 = vmatmul.mubr.msk.bf16.gmra.mrb[164].mxu1 %vm335_vm3, %v6820_v0 }
 0x25e   : > { %v1801_v27 = vadd.f32 %v1800_v7, %v1722_v22  ;;  %v1726_v29 = vmax.f32 %v1404_v23, 0.0  ;;  %2673 = vmatprep.mubr.bf16.mxu1 %v6490_v1 }
 0x25f   : > { %v1765_v31 = vadd.f32 %v1764_v24, %v1725_v26 }
 0x260   : > { %v1802_v32 = vadd.f32 %v1801_v27, %v1726_v29  ;;  %v1407_v33 = vpop.f32.mrb[60].mxu1 }
 0x261   : > { %v1408_v39 = vadd.f32 %v1407_v33, %v6966_v4  ;;  %v1409_v40 = vpop.f32.mrb[61].mxu1 }
 0x262   : > { %v1410_v16 = vadd.f32 %v1409_v40, %v6973_v6  ;;  %v1411_v42 = vpop.f32.mrb[62].mxu1 }
 0x263   : > { %v1729_v45 = vmax.f32 %v1408_v39, 0.0  ;;  %v1412_v34 = vadd.f32 %v1411_v42, %v6966_v4  ;;  %v1413_v38 = vpop.f32.mrb[63].mxu1 }
 0x264   : > { %v1730_v46 = vmax.f32 %v1410_v16, 0.0  ;;  %v1414_v48 = vadd.f32 %v1413_v38, %v6973_v6 }
 0x265   : > { %v1766_v49 = vadd.f32 %v1765_v31, %v1729_v45  ;;  %v1733_v50 = vmax.f32 %v1412_v34, 0.0  ;;  %5873 = vmatmul.mubr.msk.bf16.gmra.mrb[168].mxu1 %vm335_vm3, %v6829_v19 }
 0x266   : > { %v1803_v52 = vadd.f32 %v1802_v32, %v1730_v46  ;;  %v1734_v53 = vmax.f32 %v1414_v48, 0.0  ;;  %2683 = vmatprep.mubr.bf16.mxu1 %v6490_v1 }
 0x267   : > { %v1767_v4 = vadd.f32 %v1766_v49, %v1733_v50 }
 0x268   : > { %v1804_v55 = vadd.f32 %v1803_v52, %v1734_v53  ;;  %v1450_v6 = vpop.f32.mrb[64].mxu1 }
 0x269   : > { %v1768_v57 = vrot.slane %v1767_v4, 4  ;;  %v1451_v59 = vadd.f32 %v1450_v6, %v7149_v51  ;;  %v1452_v62 = vpop.f32.mrb[65].mxu1 }
 0x26a   : > { %v1805_v3 = vrot.slane %v1804_v55, 4  ;;  %v1453_v5 = vadd.f32 %v1452_v62, %v7153_v56  ;;  %v1454_v7 = vpop.f32.mrb[66].mxu1  ;;  %v7178_v62 = vld [vmem:[%s8423_s3 + $0x50] sm:$0xff] }
 0x26b   : > { %v1769_v8 = vadd.f32 %v1768_v57, %v1767_v4  ;;  %v1455_v10 = vadd.f32 %v1454_v7, %v7149_v51  ;;  %v1456_v11 = vpop.f32.mrb[67].mxu1  ;;  %v1611_v17 = vmax.f32 %v1451_v59, 0.0  ;;  %v7173_v59 = vld [vmem:[%s8423_s3 + $0x10] sm:$0xff] }
 0x26c   : > { %v1806_v14 = vadd.f32 %v1805_v3, %v1804_v55  ;;  %v1457_v63 = vadd.f32 %v1456_v11, %v7153_v56  ;;  %v1612_v20 = vmax.f32 %v1453_v5, 0.0 }
 0x26d   : > { %v1770_v15 = vrot.slane %v1769_v8, 2  ;;  %v1615_v18 = vmax.f32 %v1455_v10, 0.0  ;;  %5874 = vmatmul.mubr.msk.bf16.gmra.mrb[172].mxu1 %vm335_vm3, %v6838_v37 }
 0x26e   : > { %v1616_v21 = vmax.f32 %v1457_v63, 0.0  ;;  %2693 = vmatprep.mubr.bf16.mxu1 %v6490_v1  ;;  %v1807_v22 = vrot.slane %v1806_v14, 2  ;;  %v6353_v63 = vld [vmem:[%s8425_s5 + $0xc8] sm:$0xff]  }
 0x26f   : > { %v1771_v23 = vadd.f32 %v1770_v15, %v1769_v8  ;;  %v1811_v24 = vadd.f32 %v1615_v18, %v1611_v17  ;;  %v6352_v8 = vld [vmem:[%s8425_s5 + $0x80] sm:$0xff]   ;;  %v5831_v15 = vcombine.low %v7173_v59, %v7178_v62 }
 0x270   : > { %v1848_v26 = vadd.f32 %v1616_v21, %v1612_v20  ;;  %v1460_v27 = vpop.f32.mrb[68].mxu1  ;;  %v1808_v29 = vadd.f32 %v1807_v22, %v1806_v14 }
 0x271   : > { %v1772_v31 = vrot.slane %v1771_v23, 1  ;;  %v1461_v32 = vadd.f32 %v1460_v27, %v7149_v51  ;;  %v1462_v33 = vpop.f32.mrb[69].mxu1 }
 0x272   : > { %v1463_v39 = vadd.f32 %v1462_v33, %v7153_v56  ;;  %v1464_v40 = vpop.f32.mrb[70].mxu1  ;;  %v1809_v16 = vrot.slane %v1808_v29, 1 }
 0x273   : > { %v1773_v42 = vadd.f32 %v1772_v31, %v1771_v23  ;;  %v1619_v45 = vmax.f32 %v1461_v32, 0.0  ;;  %v1465_v34 = vadd.f32 %v1464_v40, %v7149_v51  ;;  %v1466_v38 = vpop.f32.mrb[71].mxu1  ;;  %v6355_v31 = vld [vmem:[%s8425_s5 + $0xd0] sm:$0xff]  }
 0x274   : > { %v1620_v46 = vmax.f32 %v1463_v39, 0.0  ;;  %v1467_v48 = vadd.f32 %v1466_v38, %v7153_v56  ;;  %v1810_v49 = vadd.f32 %v1809_v16, %v1808_v29  ;;  %v6357_v38 = vld [vmem:[%s8425_s5 + $0xd8] sm:$0xff]  }
 0x275   : > { %v1812_v50 = vadd.f32 %v1811_v24, %v1619_v45  ;;  %v1623_v52 = vmax.f32 %v1465_v34, 0.0  ;;  %5875 = vmatmul.mubr.msk.bf16.gmra.mrb[176].mxu1 %vm335_vm3, %v6847_v54  ;;  %v1885_v53 = vmul.f32 0.00390625, %v1773_v42  ;;  %v6356_v42 = vld [vmem:[%s8425_s5 + $0x90] sm:$0xff]  }
 0x276   : > { %v1849_v4 = vadd.f32 %v1848_v26, %v1620_v46  ;;  %v1624_v55 = vmax.f32 %v1467_v48, 0.0  ;;  %v1886_v6 = vmul.f32 0.00390625, %v1810_v49  ;;  %2703 = vmatprep.mubr.bf16.mxu1 %v6490_v1  ;;  %v6354_v26 = vld [vmem:[%s8425_s5 + $0x88] sm:$0xff]  }
 0x277   : > { %v1813_v57 = vadd.f32 %v1812_v50, %v1623_v52  ;;  %v1889_v14 = vpack.c.bf16 %v1885_v53, %v1885_v53 }
 0x278   : > { %v1470_v3 = vpop.f32.mrb[72].mxu1  ;;  %v1850_v5 = vadd.f32 %v1849_v4, %v1624_v55  ;;  %v1890_v7 = vpack.c.bf16 %v1886_v6, %v1886_v6  ;;  %v6358_v55 = vld [vmem:[%s8425_s5 + $0x98] sm:$0xff]  }
 0x279   : > { %v1471_v10 = vadd.f32 %v1470_v3, %v7149_v51  ;;  %v1472_v11 = vpop.f32.mrb[73].mxu1  ;;  %v6359_v3 = vld [vmem:[%s8425_s5 + $0xe0] sm:$0xff]  }
 0x27a   : > { %v1473_v17 = vadd.f32 %v1472_v11, %v7153_v56  ;;  %v1474_v18 = vpop.f32.mrb[74].mxu1  ;;  %2181 = vmatprep.mubr.bf16.mxu0 %v1890_v7 }
 0x27b   : > { %v1627_v20 = vmax.f32 %v1471_v10, 0.0  ;;  %v1475_v21 = vadd.f32 %v1474_v18, %v7149_v51  ;;  %v1476_v22 = vpop.f32.mrb[75].mxu1  ;;  %2182 = vmatmul.mubr.bf16.vlgmr.msra.gmra.mrb[64].mxu0 %v1889_v14  ;;  %v6360_v14 = vld [vmem:[%s8425_s5 + $0xa0] sm:$0xff]   ;;  %v6361_v18 = vld [vmem:[%s8425_s5 + $0xe8] sm:$0xff]  }
 0x27c   : > { %v1628_v23 = vmax.f32 %v1473_v17, 0.0  ;;  %v1477_v24 = vadd.f32 %v1476_v22, %v7153_v56  ;;  %6097 = vmatpush3.bf16.msra.mxu0 %v6352_v8 }
 0x27d   : > { %v1814_v27 = vadd.f32 %v1813_v57, %v1627_v20  ;;  %v1631_v29 = vmax.f32 %v1475_v21, 0.0  ;;  %5876 = vmatmul.mubr.msk.bf16.gmra.mrb[180].mxu1 %vm335_vm3, %v6856_v9  ;;  %6098 = vmatprep.subr.bf16.mxu0 %v6353_v63 }
 0x27e   : > { %v1851_v32 = vadd.f32 %v1850_v5, %v1628_v23  ;;  %v1632_v33 = vmax.f32 %v1477_v24, 0.0  ;;  %2713 = vmatprep.mubr.bf16.mxu1 %v6490_v1 }
 0x27f   : > { %v1815_v39 = vadd.f32 %v1814_v27, %v1631_v29  ;;  %v6362_v29 = vld [vmem:[%s8425_s5 + $0xa8] sm:$0xff]  }
 0x280   : > { %v1852_v40 = vadd.f32 %v1851_v32, %v1632_v33  ;;  %v1480_v16 = vpop.f32.mrb[76].mxu1  ;;  %6099 = vmatpush3.bf16.msra.mxu0 %v6354_v26  ;;  %v6363_v33 = vld [vmem:[%s8425_s5 + $0xf0] sm:$0xff]  }
 0x281   : > { %v1481_v45 = vadd.f32 %v1480_v16, %v7149_v51  ;;  %v1482_v34 = vpop.f32.mrb[77].mxu1  ;;  %6100 = vmatprep.subr.bf16.mxu0 %v6355_v31 }
 0x282   : > { %v1483_v46 = vadd.f32 %v1482_v34, %v7153_v56  ;;  %v1484_v48 = vpop.f32.mrb[78].mxu1  ;;  %v6364_v34 = vld [vmem:[%s8425_s5 + $0xb0] sm:$0xff]  }
 0x283   : > { %v1635_v49 = vmax.f32 %v1481_v45, 0.0  ;;  %v1485_v50 = vadd.f32 %v1484_v48, %v7149_v51  ;;  %v1486_v52 = vpop.f32.mrb[79].mxu1  ;;  %v6365_v48 = vld [vmem:[%s8425_s5 + $0xf8] sm:$0xff]  }
 0x284   : > { %v1636_v53 = vmax.f32 %v1483_v46, 0.0  ;;  %v1487_v4 = vadd.f32 %v1486_v52, %v7153_v56  ;;  %6101 = vmatpush3.bf16.msra.mxu0 %v6356_v42 }
 0x285   : > { %v1816_v6 = vadd.f32 %v1815_v39, %v1635_v49  ;;  %v1639_v57 = vmax.f32 %v1485_v50, 0.0  ;;  %5877 = vmatmul.mubr.msk.bf16.gmra.mrb[184].mxu1 %vm335_vm3, %v6871_v25  ;;  %6102 = vmatprep.subr.bf16.mxu0 %v6357_v38 }
 0x286   : > { %v1853_v5 = vadd.f32 %v1852_v40, %v1636_v53  ;;  %v1640_v7 = vmax.f32 %v1487_v4, 0.0  ;;  %2723 = vmatprep.mubr.bf16.mxu1 %v6490_v1 }
 0x287   : > { %v1817_v8 = vadd.f32 %v1816_v6, %v1639_v57  ;;  %v6366_v57 = vld [vmem:[%s8425_s5 + $0xb8] sm:$0xff]  }
 0x288   : > { %v1854_v10 = vadd.f32 %v1853_v5, %v1640_v7  ;;  %v1490_v11 = vpop.f32.mrb[80].mxu1  ;;  %6103 = vmatpush3.bf16.msra.mxu0 %v6358_v55  ;;  %v5832_v7 = vcombine.high %v7173_v59, %v7178_v62  ;;  %v2242_v59 = vld [vmem:[%s8423_s3 + $0x190] sm:$0xff] }
 0x289   : > { %v1491_v63 = vadd.f32 %v1490_v11, %v7149_v51  ;;  %v1492_v17 = vpop.f32.mrb[81].mxu1  ;;  %6104 = vmatprep.subr.bf16.mxu0 %v6359_v3  ;;  %v2244_v62 = vld [vmem:[%s8423_s3 + $0x1d0] sm:$0xff] }
 0x28a   : > { %v1493_v20 = vadd.f32 %v1492_v17, %v7153_v56  ;;  %v1494_v21 = vpop.f32.mrb[82].mxu1 }
 0x28b   : > { %v1643_v22 = vmax.f32 %v1491_v63, 0.0  ;;  %v1495_v23 = vadd.f32 %v1494_v21, %v7149_v51  ;;  %v1496_v24 = vpop.f32.mrb[83].mxu1 }
 0x28c   : > { %v1644_v26 = vmax.f32 %v1493_v20, 0.0  ;;  %v1497_v27 = vadd.f32 %v1496_v24, %v7153_v56  ;;  %6105 = vmatpush3.bf16.msra.mxu0 %v6360_v14 }
 0x28d   : > { %v1818_v31 = vadd.f32 %v1817_v8, %v1643_v22  ;;  %v1647_v32 = vmax.f32 %v1495_v23, 0.0  ;;  %5878 = vmatmul.mubr.msk.bf16.gmra.mrb[188].mxu1 %vm335_vm3, %v6878_v36  ;;  %6106 = vmatprep.subr.bf16.mxu0 %v6361_v18 }
 0x28e   : > { %v1855_v39 = vadd.f32 %v1854_v10, %v1644_v26  ;;  %v1648_v40 = vmax.f32 %v1497_v27, 0.0  ;;  %3698 = vmatprep.mubr.bf16.mxu1 %v6490_v1 }
 0x28f   : > { %v1819_v16 = vadd.f32 %v1818_v31, %v1647_v32 }
 0x290   : > { %v1856_v42 = vadd.f32 %v1855_v39, %v1648_v40  ;;  %v1500_v45 = vpop.f32.mrb[84].mxu1  ;;  %6107 = vmatpush3.bf16.msra.mxu0 %v6362_v29 }
 0x291   : > { %v1501_v38 = vadd.f32 %v1500_v45, %v7149_v51  ;;  %v1502_v46 = vpop.f32.mrb[85].mxu1  ;;  %6108 = vmatprep.subr.bf16.mxu0 %v6363_v33 }
 0x292   : > { %v1503_v49 = vadd.f32 %v1502_v46, %v7153_v56  ;;  %v1504_v50 = vpop.f32.mrb[86].mxu1 }
 0x293   : > { %v1651_v52 = vmax.f32 %v1501_v38, 0.0  ;;  %v1505_v53 = vadd.f32 %v1504_v50, %v7149_v51  ;;  %v1506_v4 = vpop.f32.mrb[87].mxu1 }
 0x294   : > { %v1652_v55 = vmax.f32 %v1503_v49, 0.0  ;;  %v1507_v6 = vadd.f32 %v1506_v4, %v7153_v56  ;;  %6109 = vmatpush3.bf16.msra.mxu0 %v6364_v34 }
 0x295   : > { %v1820_v3 = vadd.f32 %v1819_v16, %v1651_v52  ;;  %v1655_v5 = vmax.f32 %v1505_v53, 0.0  ;;  %5943 = vmatmul.mubr.msk.bf16.vlgmr.msra.gmra.mrb[192].mxu1 %vm335_vm3, %v6727_v35  ;;  %6110 = vmatprep.subr.bf16.mxu0 %v6365_v48 }
 0x296   : > { %v1857_v8 = vadd.f32 %v1856_v42, %v1652_v55  ;;  %v1656_v10 = vmax.f32 %v1507_v6, 0.0  ;;  %3708 = vmatprep.mubr.bf16.mxu1 %v6490_v1 }
 0x297   : > { %v1821_v11 = vadd.f32 %v1820_v3, %v1655_v5 }
 0x298   : > { %v1858_v14 = vadd.f32 %v1857_v8, %v1656_v10  ;;  %v1510_v63 = vpop.f32.mrb[88].mxu1  ;;  %6111 = vmatpush3.bf16.msra.mxu0 %v6366_v57 }
 0x299   : > { %v1511_v17 = vadd.f32 %v1510_v63, %v7149_v51  ;;  %v1512_v18 = vpop.f32.mrb[89].mxu1  ;;  %2348 = vmatprep.subr.bf16.mxu0 %v5832_v7 }
 0x29a   : > { %v1513_v20 = vadd.f32 %v1512_v18, %v7153_v56  ;;  %v1514_v21 = vpop.f32.mrb[90].mxu1 }
 0x29b   : > { %v1659_v22 = vmax.f32 %v1511_v17, 0.0  ;;  %v1515_v23 = vadd.f32 %v1514_v21, %v7149_v51  ;;  %v1516_v24 = vpop.f32.mrb[91].mxu1 }
 0x29c   : > { %v1660_v26 = vmax.f32 %v1513_v20, 0.0  ;;  %v1517_v27 = vadd.f32 %v1516_v24, %v7153_v56 }
 0x29d   : > { %v1822_v29 = vadd.f32 %v1821_v11, %v1659_v22  ;;  %v1663_v31 = vmax.f32 %v1515_v23, 0.0  ;;  %5944 = vmatmul.mubr.msk.bf16.gmra.mrb[196].mxu1 %vm335_vm3, %v6748_v58 }
 0x29e   : > { %v1859_v32 = vadd.f32 %v1858_v14, %v1660_v26  ;;  %v1664_v33 = vmax.f32 %v1517_v27, 0.0  ;;  %3718 = vmatprep.mubr.bf16.mxu1 %v6490_v1 }
 0x29f   : > { %v1823_v39 = vadd.f32 %v1822_v29, %v1663_v31 }
 0x2a0   : > { %v1860_v40 = vadd.f32 %v1859_v32, %v1664_v33  ;;  %v1520_v16 = vpop.f32.mrb[92].mxu1 }
 0x2a1   : > { %v1521_v42 = vadd.f32 %v1520_v16, %v7149_v51  ;;  %v1522_v45 = vpop.f32.mrb[93].mxu1 }
 0x2a2   : > { %v1523_v34 = vadd.f32 %v1522_v45, %v7153_v56  ;;  %v1524_v38 = vpop.f32.mrb[94].mxu1 }
 0x2a3   : > { %v1667_v46 = vmax.f32 %v1521_v42, 0.0  ;;  %v1525_v48 = vadd.f32 %v1524_v38, %v7149_v51  ;;  %v1526_v49 = vpop.f32.mrb[95].mxu1 }
 0x2a4   : > { %v1668_v50 = vmax.f32 %v1523_v34, 0.0  ;;  %v1527_v52 = vadd.f32 %v1526_v49, %v7153_v56 }
 0x2a5   : > { %v1824_v53 = vadd.f32 %v1823_v39, %v1667_v46  ;;  %v1671_v4 = vmax.f32 %v1525_v48, 0.0  ;;  %5945 = vmatmul.mubr.msk.bf16.gmra.mrb[200].mxu1 %vm335_vm3, %v6757_v12 }
 0x2a6   : > { %v1861_v55 = vadd.f32 %v1860_v40, %v1668_v50  ;;  %v1672_v6 = vmax.f32 %v1527_v52, 0.0  ;;  %3728 = vmatprep.mubr.bf16.mxu1 %v6490_v1 }
 0x2a7   : > { %v1825_v57 = vadd.f32 %v1824_v53, %v1671_v4 }
 0x2a8   : > { %v1862_v3 = vadd.f32 %v1861_v55, %v1672_v6  ;;  %v1530_v5 = vpop.f32.mrb[96].mxu1 }
 0x2a9   : > { %v1531_v7 = vadd.f32 %v1530_v5, %v7149_v51  ;;  %v1532_v8 = vpop.f32.mrb[97].mxu1 }
 0x2aa   : > { %v1533_v10 = vadd.f32 %v1532_v8, %v7153_v56  ;;  %v1534_v11 = vpop.f32.mrb[98].mxu1 }
 0x2ab   : > { %v1675_v14 = vmax.f32 %v1531_v7, 0.0  ;;  %v1535_v63 = vadd.f32 %v1534_v11, %v7149_v51  ;;  %v1536_v17 = vpop.f32.mrb[99].mxu1 }
 0x2ac   : > { %v1676_v18 = vmax.f32 %v1533_v10, 0.0  ;;  %v1537_v20 = vadd.f32 %v1536_v17, %v7153_v56 }
 0x2ad   : > { %v1826_v21 = vadd.f32 %v1825_v57, %v1675_v14  ;;  %v1679_v22 = vmax.f32 %v1535_v63, 0.0  ;;  %5946 = vmatmul.mubr.msk.bf16.gmra.mrb[204].mxu1 %vm335_vm3, %v6766_v28 }
 0x2ae   : > { %v1863_v23 = vadd.f32 %v1862_v3, %v1676_v18  ;;  %v1680_v24 = vmax.f32 %v1537_v20, 0.0  ;;  %3738 = vmatprep.mubr.bf16.mxu1 %v6490_v1 }
 0x2af   : > { %v1827_v26 = vadd.f32 %v1826_v21, %v1679_v22 }
 0x2b0   : > { %v1864_v27 = vadd.f32 %v1863_v23, %v1680_v24  ;;  %v1540_v29 = vpop.f32.mrb[100].mxu1 }
 0x2b1   : > { %v1541_v31 = vadd.f32 %v1540_v29, %v7149_v51  ;;  %v1542_v32 = vpop.f32.mrb[101].mxu1 }
 0x2b2   : > { %v1543_v33 = vadd.f32 %v1542_v32, %v7153_v56  ;;  %v1544_v39 = vpop.f32.mrb[102].mxu1 }
 0x2b3   : > { %v1683_v40 = vmax.f32 %v1541_v31, 0.0  ;;  %v1545_v16 = vadd.f32 %v1544_v39, %v7149_v51  ;;  %v1546_v42 = vpop.f32.mrb[103].mxu1 }
 0x2b4   : > { %v1684_v45 = vmax.f32 %v1543_v33, 0.0  ;;  %v1547_v34 = vadd.f32 %v1546_v42, %v7153_v56 }
 0x2b5   : > { %v1828_v38 = vadd.f32 %v1827_v26, %v1683_v40  ;;  %v1687_v46 = vmax.f32 %v1545_v16, 0.0  ;;  %5947 = vmatmul.mubr.msk.bf16.gmra.mrb[208].mxu1 %vm335_vm3, %v6775_v44 }
 0x2b6   : > { %v1865_v48 = vadd.f32 %v1864_v27, %v1684_v45  ;;  %v1688_v49 = vmax.f32 %v1547_v34, 0.0  ;;  %3748 = vmatprep.mubr.bf16.mxu1 %v6490_v1 }
 0x2b7   : > { %v1829_v50 = vadd.f32 %v1828_v38, %v1687_v46 }
 0x2b8   : > { %v1866_v52 = vadd.f32 %v1865_v48, %v1688_v49  ;;  %v1550_v53 = vpop.f32.mrb[104].mxu1 }
 0x2b9   : > { %v1551_v4 = vadd.f32 %v1550_v53, %v7149_v51  ;;  %v1552_v55 = vpop.f32.mrb[105].mxu1 }
 0x2ba   : > { %v1553_v6 = vadd.f32 %v1552_v55, %v7153_v56  ;;  %v1554_v57 = vpop.f32.mrb[106].mxu1 }
 0x2bb   : > { %v1691_v3 = vmax.f32 %v1551_v4, 0.0  ;;  %v1555_v5 = vadd.f32 %v1554_v57, %v7149_v51  ;;  %v1556_v7 = vpop.f32.mrb[107].mxu1 }
 0x2bc   : > { %v1692_v8 = vmax.f32 %v1553_v6, 0.0  ;;  %v1557_v10 = vadd.f32 %v1556_v7, %v7153_v56 }
 0x2bd   : > { %v1830_v11 = vadd.f32 %v1829_v50, %v1691_v3  ;;  %v1695_v14 = vmax.f32 %v1555_v5, 0.0  ;;  %5948 = vmatmul.mubr.msk.bf16.gmra.mrb[212].mxu1 %vm335_vm3, %v6784_v60 }
 0x2be   : > { %v1867_v63 = vadd.f32 %v1866_v52, %v1692_v8  ;;  %v1696_v17 = vmax.f32 %v1557_v10, 0.0  ;;  %3758 = vmatprep.mubr.bf16.mxu1 %v6490_v1 }
 0x2bf   : > { %v1831_v18 = vadd.f32 %v1830_v11, %v1695_v14 }
 0x2c0   : > { %v1868_v20 = vadd.f32 %v1867_v63, %v1696_v17  ;;  %v1560_v21 = vpop.f32.mrb[108].mxu1 }
 0x2c1   : > { %v1561_v22 = vadd.f32 %v1560_v21, %v7149_v51  ;;  %v1562_v23 = vpop.f32.mrb[109].mxu1 }
 0x2c2   : > { %v1563_v24 = vadd.f32 %v1562_v23, %v7153_v56  ;;  %v1564_v26 = vpop.f32.mrb[110].mxu1 }
 0x2c3   : > { %v1699_v27 = vmax.f32 %v1561_v22, 0.0  ;;  %v1565_v29 = vadd.f32 %v1564_v26, %v7149_v51  ;;  %v1566_v31 = vpop.f32.mrb[111].mxu1 }
 0x2c4   : > { %v1700_v32 = vmax.f32 %v1563_v24, 0.0  ;;  %v1567_v33 = vadd.f32 %v1566_v31, %v7153_v56 }
 0x2c5   : > { %v1832_v39 = vadd.f32 %v1831_v18, %v1699_v27  ;;  %v1703_v40 = vmax.f32 %v1565_v29, 0.0  ;;  %5949 = vmatmul.mubr.msk.bf16.gmra.mrb[216].mxu1 %vm335_vm3, %v6793_v13 }
 0x2c6   : > { %v1869_v16 = vadd.f32 %v1868_v20, %v1700_v32  ;;  %v1704_v42 = vmax.f32 %v1567_v33, 0.0  ;;  %3768 = vmatprep.mubr.bf16.mxu1 %v6490_v1 }
 0x2c7   : > { %v1833_v45 = vadd.f32 %v1832_v39, %v1703_v40 }
 0x2c8   : > { %v1870_v34 = vadd.f32 %v1869_v16, %v1704_v42  ;;  %v1570_v38 = vpop.f32.mrb[112].mxu1 }
 0x2c9   : > { %v1571_v46 = vadd.f32 %v1570_v38, %v7149_v51  ;;  %v1572_v48 = vpop.f32.mrb[113].mxu1 }
 0x2ca   : > { %v1573_v49 = vadd.f32 %v1572_v48, %v7153_v56  ;;  %v1574_v50 = vpop.f32.mrb[114].mxu1 }
 0x2cb   : > { %v1707_v52 = vmax.f32 %v1571_v46, 0.0  ;;  %v1575_v53 = vadd.f32 %v1574_v50, %v7149_v51  ;;  %v1576_v4 = vpop.f32.mrb[115].mxu1 }
 0x2cc   : > { %v1708_v55 = vmax.f32 %v1573_v49, 0.0  ;;  %v1577_v6 = vadd.f32 %v1576_v4, %v7153_v56 }
 0x2cd   : > { %v1834_v57 = vadd.f32 %v1833_v45, %v1707_v52  ;;  %v1711_v3 = vmax.f32 %v1575_v53, 0.0  ;;  %5950 = vmatmul.mubr.msk.bf16.gmra.mrb[220].mxu1 %vm335_vm3, %v6802_v30 }
 0x2ce   : > { %v1871_v5 = vadd.f32 %v1870_v34, %v1708_v55  ;;  %v1712_v7 = vmax.f32 %v1577_v6, 0.0  ;;  %3778 = vmatprep.mubr.bf16.mxu1 %v6490_v1 }
 0x2cf   : > { %v1835_v8 = vadd.f32 %v1834_v57, %v1711_v3 }
 0x2d0   : > { %v1872_v10 = vadd.f32 %v1871_v5, %v1712_v7  ;;  %v1580_v11 = vpop.f32.mrb[116].mxu1 }
 0x2d1   : > { %v1581_v14 = vadd.f32 %v1580_v11, %v7149_v51  ;;  %v1582_v63 = vpop.f32.mrb[117].mxu1 }
 0x2d2   : > { %v1583_v17 = vadd.f32 %v1582_v63, %v7153_v56  ;;  %v1584_v18 = vpop.f32.mrb[118].mxu1 }
 0x2d3   : > { %v1715_v20 = vmax.f32 %v1581_v14, 0.0  ;;  %v1585_v21 = vadd.f32 %v1584_v18, %v7149_v51  ;;  %v1586_v22 = vpop.f32.mrb[119].mxu1 }
 0x2d4   : > { %v1716_v23 = vmax.f32 %v1583_v17, 0.0  ;;  %v1587_v24 = vadd.f32 %v1586_v22, %v7153_v56 }
 0x2d5   : > { %v1836_v26 = vadd.f32 %v1835_v8, %v1715_v20  ;;  %v1719_v27 = vmax.f32 %v1585_v21, 0.0  ;;  %5951 = vmatmul.mubr.msk.bf16.gmra.mrb[224].mxu1 %vm335_vm3, %v6811_v47 }
 0x2d6   : > { %v1873_v29 = vadd.f32 %v1872_v10, %v1716_v23  ;;  %v1720_v31 = vmax.f32 %v1587_v24, 0.0  ;;  %3788 = vmatprep.mubr.bf16.mxu1 %v6490_v1  ;;  %v2246_v10 = vld [vmem:[%s8424_s4 + $0x4] sm:$0xf] }
 0x2d7   : > { %v1837_v32 = vadd.f32 %v1836_v26, %v1719_v27  ;;  %v7330_v22 = vrot.slane %v2246_v10, %v7137_v41  ;;  %v7333_v26 = vrot.slane %v2246_v10, %v7141_v43 }
 0x2d8   : > { %v1874_v33 = vadd.f32 %v1873_v29, %v1720_v31  ;;  %v1590_v39 = vpop.f32.mrb[120].mxu1 }
 0x2d9   : > { %v1591_v40 = vadd.f32 %v1590_v39, %v7149_v51  ;;  %v1592_v16 = vpop.f32.mrb[121].mxu1 }
 0x2da   : > { %v1593_v42 = vadd.f32 %v1592_v16, %v7153_v56  ;;  %v1594_v45 = vpop.f32.mrb[122].mxu1 }
 0x2db   : > { %v1723_v34 = vmax.f32 %v1591_v40, 0.0  ;;  %v1595_v38 = vadd.f32 %v1594_v45, %v7149_v51  ;;  %v1596_v46 = vpop.f32.mrb[123].mxu1 }
 0x2dc   : > { %v1724_v48 = vmax.f32 %v1593_v42, 0.0  ;;  %v1597_v49 = vadd.f32 %v1596_v46, %v7153_v56 }
 0x2dd   : > { %v1838_v50 = vadd.f32 %v1837_v32, %v1723_v34  ;;  %v1727_v52 = vmax.f32 %v1595_v38, 0.0  ;;  %5952 = vmatmul.mubr.msk.bf16.gmra.mrb[228].mxu1 %vm335_vm3, %v6820_v0 }
 0x2de   : > { %v1875_v53 = vadd.f32 %v1874_v33, %v1724_v48  ;;  %v1728_v4 = vmax.f32 %v1597_v49, 0.0  ;;  %3798 = vmatprep.mubr.bf16.mxu1 %v6490_v1 }
 0x2df   : > { %v1839_v55 = vadd.f32 %v1838_v50, %v1727_v52 }
 0x2e0   : > { %v1876_v6 = vadd.f32 %v1875_v53, %v1728_v4  ;;  %v1600_v57 = vpop.f32.mrb[124].mxu1 }
 0x2e1   : > { %v1601_v3 = vadd.f32 %v1600_v57, %v7149_v51  ;;  %v1602_v5 = vpop.f32.mrb[125].mxu1 }
 0x2e2   : > { %v1603_v7 = vadd.f32 %v1602_v5, %v7153_v56  ;;  %v1604_v8 = vpop.f32.mrb[126].mxu1 }
 0x2e3   : > { %v1731_v11 = vmax.f32 %v1601_v3, 0.0  ;;  %v1605_v14 = vadd.f32 %v1604_v8, %v7149_v51  ;;  %v1606_v63 = vpop.f32.mrb[127].mxu1 }
 0x2e4   : > { %v1732_v17 = vmax.f32 %v1603_v7, 0.0  ;;  %v1607_v18 = vadd.f32 %v1606_v63, %v7153_v56 }
 0x2e5   : > { %v1840_v20 = vadd.f32 %v1839_v55, %v1731_v11  ;;  %v1735_v21 = vmax.f32 %v1605_v14, 0.0  ;;  %5953 = vmatmul.mubr.msk.bf16.gmra.mrb[232].mxu1 %vm335_vm3, %v6829_v19 }
 0x2e6   : > { %v1877_v23 = vadd.f32 %v1876_v6, %v1732_v17  ;;  %v1736_v24 = vmax.f32 %v1607_v18, 0.0  ;;  %3808 = vmatprep.mubr.bf16.mxu1 %v6490_v1 }
 0x2e7   : > { %v1841_v51 = vadd.f32 %v1840_v20, %v1735_v21 }
 0x2e8   : > { %v1878_v27 = vadd.f32 %v1877_v23, %v1736_v24  ;;  %v2575_v29 = vpop.f32.mrb[128].mxu1 }
 0x2e9   : > { %v1842_v31 = vrot.slane %v1841_v51, 4  ;;  %v2576_v56 = vadd.f32 %v2575_v29, %v7330_v22  ;;  %v2577_v32 = vpop.f32.mrb[129].mxu1 }
 0x2ea   : > { %v1879_v33 = vrot.slane %v1878_v27, 4  ;;  %v2578_v39 = vadd.f32 %v2577_v32, %v7333_v26  ;;  %v2579_v40 = vpop.f32.mrb[130].mxu1 }
 0x2eb   : > { %v1843_v16 = vadd.f32 %v1842_v31, %v1841_v51  ;;  %v2580_v42 = vadd.f32 %v2579_v40, %v7330_v22  ;;  %v2581_v45 = vpop.f32.mrb[131].mxu1  ;;  %v2736_v48 = vmax.f32 %v2576_v56, 0.0 }
 0x2ec   : > { %v1880_v34 = vadd.f32 %v1879_v33, %v1878_v27  ;;  %v2582_v38 = vadd.f32 %v2581_v45, %v7333_v26  ;;  %v2737_v52 = vmax.f32 %v2578_v39, 0.0  ;;  %v2234_v33 = vld [vmem:[%s8423_s3 + $0x90] sm:$0xff] }
 0x2ed   : > { %v1844_v46 = vrot.slane %v1843_v16, 2  ;;  %v2740_v49 = vmax.f32 %v2580_v42, 0.0  ;;  %5954 = vmatmul.mubr.msk.bf16.gmra.mrb[236].mxu1 %vm335_vm3, %v6838_v37  ;;  %v2236_v39 = vld [vmem:[%s8423_s3 + $0xd0] sm:$0xff] }
 0x2ee   : > { %v1881_v50 = vrot.slane %v1880_v34, 2  ;;  %v2741_v53 = vmax.f32 %v2582_v38, 0.0  ;;  %3818 = vmatprep.mubr.bf16.mxu1 %v6490_v1 }
 0x2ef   : > { %v1845_v4 = vadd.f32 %v1844_v46, %v1843_v16  ;;  %v2936_v55 = vadd.f32 %v2740_v49, %v2736_v48  ;;  %v5836_v48 = vcombine.high %v2234_v33, %v2236_v39 }
 0x2f0   : > { %v2973_v6 = vadd.f32 %v2741_v53, %v2737_v52  ;;  %v2585_v57 = vpop.f32.mrb[132].mxu1  ;;  %v1882_v3 = vadd.f32 %v1881_v50, %v1880_v34  ;;  %v2238_v52 = vld [vmem:[%s8423_s3 + $0x110] sm:$0xff] }
 0x2f1   : > { %v1846_v5 = vrot.slane %v1845_v4, 1  ;;  %v2586_v7 = vadd.f32 %v2585_v57, %v7330_v22  ;;  %v2587_v8 = vpop.f32.mrb[133].mxu1  ;;  %v2240_v53 = vld [vmem:[%s8423_s3 + $0x150] sm:$0xff] }
 0x2f2   : > { %v2588_v10 = vadd.f32 %v2587_v8, %v7333_v26  ;;  %v2589_v11 = vpop.f32.mrb[134].mxu1  ;;  %v1883_v14 = vrot.slane %v1882_v3, 1 }
 0x2f3   : > { %v2744_v63 = vmax.f32 %v2586_v7, 0.0  ;;  %v2590_v17 = vadd.f32 %v2589_v11, %v7330_v22  ;;  %v2591_v18 = vpop.f32.mrb[135].mxu1  ;;  %v1847_v20 = vadd.f32 %v1846_v5, %v1845_v4  ;;  %v5835_v5 = vcombine.low %v2234_v33, %v2236_v39 }
 0x2f4   : > { %v2745_v21 = vmax.f32 %v2588_v10, 0.0  ;;  %v2592_v23 = vadd.f32 %v2591_v18, %v7333_v26  ;;  %v1884_v24 = vadd.f32 %v1883_v14, %v1882_v3  ;;  %v5840_v10 = vcombine.high %v2238_v52, %v2240_v53 }
 0x2f5   : > { %v2937_v51 = vadd.f32 %v2936_v55, %v2744_v63  ;;  %v2748_v27 = vmax.f32 %v2590_v17, 0.0  ;;  %5955 = vmatmul.mubr.msk.bf16.gmra.mrb[240].mxu1 %vm335_vm3, %v6847_v54  ;;  %v1887_v29 = vmul.f32 0.00390625, %v1847_v20  ;;  %v5839_v18 = vcombine.low %v2238_v52, %v2240_v53 }
 0x2f6   : > { %v2974_v31 = vadd.f32 %v2973_v6, %v2745_v21  ;;  %v2749_v56 = vmax.f32 %v2592_v23, 0.0  ;;  %v1888_v32 = vmul.f32 0.00390625, %v1884_v24  ;;  %3828 = vmatprep.mubr.bf16.mxu1 %v6490_v1  ;;  %v5844_v23 = vcombine.high %v2242_v59, %v2244_v62 }
 0x2f7   : > { %v2938_v40 = vadd.f32 %v2937_v51, %v2748_v27  ;;  %v1891_v46 = vpack.c.bf16 %v1887_v29, %v1887_v29  ;;  %v5843_v33 = vcombine.low %v2242_v59, %v2244_v62 }
 0x2f8   : > { %v2975_v16 = vadd.f32 %v2974_v31, %v2749_v56  ;;  %v2595_v42 = vpop.f32.mrb[136].mxu1  ;;  %v1892_v45 = vpack.c.bf16 %v1888_v32, %v1888_v32 }
 0x2f9   : > { %v2596_v34 = vadd.f32 %v2595_v42, %v7330_v22  ;;  %v2597_v38 = vpop.f32.mrb[137].mxu1 }
 0x2fa   : > { %v2598_v49 = vadd.f32 %v2597_v38, %v7333_v26  ;;  %2221 = vmatprep.mubr.bf16.mxu0 %v1892_v45  ;;  %v2599_v50 = vpop.f32.mrb[138].mxu1 }
 0x2fb   : > { %v2752_v4 = vmax.f32 %v2596_v34, 0.0  ;;  %v2600_v55 = vadd.f32 %v2599_v50, %v7330_v22  ;;  %2222 = vmatmul.mubr.bf16.vlgmr.msra.gmra.mrb[68].mxu0 %v1891_v46  ;;  %v2601_v6 = vpop.f32.mrb[139].mxu1 }
 0x2fc   : > { %v2753_v57 = vmax.f32 %v2598_v49, 0.0  ;;  %2349 = vmatpush1.bf16.msra.mxu0 %v5831_v15  ;;  %v2602_v3 = vadd.f32 %v2601_v6, %v7333_v26  ;;  %2380 = vmatprep.mubr.bf16.mxu0 %v6490_v1 }
 0x2fd   : > { %v2939_v7 = vadd.f32 %v2938_v40, %v2752_v4  ;;  %v2756_v8 = vmax.f32 %v2600_v55, 0.0  ;;  %5956 = vmatmul.mubr.msk.bf16.gmra.mrb[244].mxu1 %vm335_vm3, %v6856_v9  ;;  %2350 = vmatprep.subr.bf16.mxu0 %v5836_v48 }
 0x2fe   : > { %v2976_v11 = vadd.f32 %v2975_v16, %v2753_v57  ;;  %v2757_v14 = vmax.f32 %v2602_v3, 0.0  ;;  %3838 = vmatprep.mubr.bf16.mxu1 %v6490_v1 }
 0x2ff   : > { %v2940_v15 = vadd.f32 %v2939_v7, %v2756_v8 }
 0x300   : > { %v2977_v63 = vadd.f32 %v2976_v11, %v2757_v14  ;;  %2351 = vmatpush1.bf16.msra.mxu0 %v5835_v5  ;;  %v2605_v17 = vpop.f32.mrb[140].mxu1 }
 0x301   : > { %v2606_v20 = vadd.f32 %v2605_v17, %v7330_v22  ;;  %v2607_v21 = vpop.f32.mrb[141].mxu1  ;;  %2352 = vmatprep.subr.bf16.mxu0 %v5840_v10 }
 0x302   : > { %v2608_v24 = vadd.f32 %v2607_v21, %v7333_v26  ;;  %v2609_v51 = vpop.f32.mrb[142].mxu1 }
 0x303   : > { %v2760_v27 = vmax.f32 %v2606_v20, 0.0  ;;  %v2610_v29 = vadd.f32 %v2609_v51, %v7330_v22  ;;  %v2611_v31 = vpop.f32.mrb[143].mxu1 }
 0x304   : > { %v2761_v56 = vmax.f32 %v2608_v24, 0.0  ;;  %2353 = vmatpush1.bf16.msra.mxu0 %v5839_v18  ;;  %v2612_v32 = vadd.f32 %v2611_v31, %v7333_v26 }
 0x305   : > { %v2941_v39 = vadd.f32 %v2940_v15, %v2760_v27  ;;  %v2764_v40 = vmax.f32 %v2610_v29, 0.0  ;;  %5957 = vmatmul.mubr.msk.bf16.gmra.mrb[248].mxu1 %vm335_vm3, %v6871_v25  ;;  %2354 = vmatprep.subr.bf16.mxu0 %v5844_v23 }
 0x306   : > { %v2978_v16 = vadd.f32 %v2977_v63, %v2761_v56  ;;  %v2765_v42 = vmax.f32 %v2612_v32, 0.0  ;;  %3848 = vmatprep.mubr.bf16.mxu1 %v6490_v1 }
 0x307   : > { %v2942_v45 = vadd.f32 %v2941_v39, %v2764_v40 }
 0x308   : > { %v2979_v34 = vadd.f32 %v2978_v16, %v2765_v42  ;;  %2355 = vmatpush1.bf16.msra.mxu0 %v5843_v33  ;;  %v2615_v38 = vpop.f32.mrb[144].mxu1 }
 0x309   : > { %v2616_v46 = vadd.f32 %v2615_v38, %v7330_v22  ;;  %v2617_v48 = vpop.f32.mrb[145].mxu1 }
 0x30a   : > { %v2618_v49 = vadd.f32 %v2617_v48, %v7333_v26  ;;  %v2619_v50 = vpop.f32.mrb[146].mxu1 }
 0x30b   : > { %v2768_v52 = vmax.f32 %v2616_v46, 0.0  ;;  %5847 = vmatmul.mubr.msk.bf16.vlgmr.msra.gmra.mrb[72].mxu0 %vm335_vm3, %v6727_v35  ;;  %v2620_v53 = vadd.f32 %v2619_v50, %v7330_v22  ;;  %v2621_v4 = vpop.f32.mrb[147].mxu1 }
 0x30c   : > { %v2769_v55 = vmax.f32 %v2618_v49, 0.0  ;;  %v2622_v6 = vadd.f32 %v2621_v4, %v7333_v26  ;;  %2390 = vmatprep.mubr.bf16.mxu0 %v6490_v1 }
 0x30d   : > { %v2943_v57 = vadd.f32 %v2942_v45, %v2768_v52  ;;  %v2772_v3 = vmax.f32 %v2620_v53, 0.0  ;;  %5958 = vmatmul.mubr.msk.bf16.gmra.mrb[252].mxu1 %vm335_vm3, %v6878_v36 }
 0x30e   : > { %v2980_v5 = vadd.f32 %v2979_v34, %v2769_v55  ;;  %v2773_v7 = vmax.f32 %v2622_v6, 0.0 }
 0x30f   : > { %v2944_v8 = vadd.f32 %v2943_v57, %v2772_v3 }
 0x310   : > { %v2981_v10 = vadd.f32 %v2980_v5, %v2773_v7  ;;  %v2625_v11 = vpop.f32.mrb[148].mxu1 }
 0x311   : > { %v2626_v14 = vadd.f32 %v2625_v11, %v7330_v22  ;;  %v2627_v59 = vpop.f32.mrb[149].mxu1 }
 0x312   : > { %v2628_v62 = vadd.f32 %v2627_v59, %v7333_v26  ;;  %v2629_v15 = vpop.f32.mrb[150].mxu1 }
 0x313   : > { %v2776_v63 = vmax.f32 %v2626_v14, 0.0  ;;  %5848 = vmatmul.mubr.msk.bf16.gmra.mrb[76].mxu0 %vm335_vm3, %v6748_v58  ;;  %v2630_v17 = vadd.f32 %v2629_v15, %v7330_v22  ;;  %v2631_v18 = vpop.f32.mrb[151].mxu1 }
 0x314   : > { %v2777_v20 = vmax.f32 %v2628_v62, 0.0  ;;  %v2632_v21 = vadd.f32 %v2631_v18, %v7333_v26  ;;  %2400 = vmatprep.mubr.bf16.mxu0 %v6490_v1 }
 0x315   : > { %v2945_v23 = vadd.f32 %v2944_v8, %v2776_v63  ;;  %v2780_v24 = vmax.f32 %v2630_v17, 0.0 }
 0x316   : > { %v2982_v51 = vadd.f32 %v2981_v10, %v2777_v20  ;;  %v2781_v27 = vmax.f32 %v2632_v21, 0.0 }
 0x317   : > { %v2946_v29 = vadd.f32 %v2945_v23, %v2780_v24 }
 0x318   : > { %v2983_v31 = vadd.f32 %v2982_v51, %v2781_v27  ;;  %v2635_v56 = vpop.f32.mrb[152].mxu1 }
 0x319   : > { %v2636_v32 = vadd.f32 %v2635_v56, %v7330_v22  ;;  %v2637_v33 = vpop.f32.mrb[153].mxu1 }
 0x31a   : > { %v2638_v39 = vadd.f32 %v2637_v33, %v7333_v26  ;;  %v2639_v40 = vpop.f32.mrb[154].mxu1 }
 0x31b   : > { %v2784_v16 = vmax.f32 %v2636_v32, 0.0  ;;  %5849 = vmatmul.mubr.msk.bf16.gmra.mrb[80].mxu0 %vm335_vm3, %v6757_v12  ;;  %v2640_v42 = vadd.f32 %v2639_v40, %v7330_v22  ;;  %v2641_v45 = vpop.f32.mrb[155].mxu1 }
 0x31c   : > { %v2785_v34 = vmax.f32 %v2638_v39, 0.0  ;;  %v2642_v38 = vadd.f32 %v2641_v45, %v7333_v26  ;;  %2410 = vmatprep.mubr.bf16.mxu0 %v6490_v1 }
 0x31d   : > { %v2947_v46 = vadd.f32 %v2946_v29, %v2784_v16  ;;  %v2788_v48 = vmax.f32 %v2640_v42, 0.0 }
 0x31e   : > { %v2984_v49 = vadd.f32 %v2983_v31, %v2785_v34  ;;  %v2789_v50 = vmax.f32 %v2642_v38, 0.0 }
 0x31f   : > { %v2948_v52 = vadd.f32 %v2947_v46, %v2788_v48 }
 0x320   : > { %v2985_v53 = vadd.f32 %v2984_v49, %v2789_v50  ;;  %v2645_v4 = vpop.f32.mrb[156].mxu1 }
 0x321   : > { %v2646_v55 = vadd.f32 %v2645_v4, %v7330_v22  ;;  %v2647_v6 = vpop.f32.mrb[157].mxu1 }
 0x322   : > { %v2648_v57 = vadd.f32 %v2647_v6, %v7333_v26  ;;  %v2649_v3 = vpop.f32.mrb[158].mxu1 }
 0x323   : > { %v2792_v5 = vmax.f32 %v2646_v55, 0.0  ;;  %5850 = vmatmul.mubr.msk.bf16.gmra.mrb[84].mxu0 %vm335_vm3, %v6766_v28  ;;  %v2650_v7 = vadd.f32 %v2649_v3, %v7330_v22  ;;  %v2651_v8 = vpop.f32.mrb[159].mxu1 }
 0x324   : > { %v2793_v10 = vmax.f32 %v2648_v57, 0.0  ;;  %v2652_v11 = vadd.f32 %v2651_v8, %v7333_v26  ;;  %2420 = vmatprep.mubr.bf16.mxu0 %v6490_v1 }
 0x325   : > { %v2949_v14 = vadd.f32 %v2948_v52, %v2792_v5  ;;  %v2796_v59 = vmax.f32 %v2650_v7, 0.0 }
 0x326   : > { %v2986_v62 = vadd.f32 %v2985_v53, %v2793_v10  ;;  %v2797_v15 = vmax.f32 %v2652_v11, 0.0 }
 0x327   : > { %v2950_v63 = vadd.f32 %v2949_v14, %v2796_v59 }
 0x328   : > { %v2987_v17 = vadd.f32 %v2986_v62, %v2797_v15  ;;  %v2655_v18 = vpop.f32.mrb[160].mxu1 }
 0x329   : > { %v2656_v20 = vadd.f32 %v2655_v18, %v7330_v22  ;;  %v2657_v21 = vpop.f32.mrb[161].mxu1 }
 0x32a   : > { %v2658_v23 = vadd.f32 %v2657_v21, %v7333_v26  ;;  %v2659_v24 = vpop.f32.mrb[162].mxu1 }
 0x32b   : > { %v2800_v51 = vmax.f32 %v2656_v20, 0.0  ;;  %5851 = vmatmul.mubr.msk.bf16.gmra.mrb[88].mxu0 %vm335_vm3, %v6775_v44  ;;  %v2660_v27 = vadd.f32 %v2659_v24, %v7330_v22  ;;  %v2661_v29 = vpop.f32.mrb[163].mxu1 }
 0x32c   : > { %v2801_v31 = vmax.f32 %v2658_v23, 0.0  ;;  %v2662_v56 = vadd.f32 %v2661_v29, %v7333_v26  ;;  %2430 = vmatprep.mubr.bf16.mxu0 %v6490_v1 }
 0x32d   : > { %v2951_v32 = vadd.f32 %v2950_v63, %v2800_v51  ;;  %v2804_v33 = vmax.f32 %v2660_v27, 0.0 }
 0x32e   : > { %v2988_v39 = vadd.f32 %v2987_v17, %v2801_v31  ;;  %v2805_v40 = vmax.f32 %v2662_v56, 0.0 }
 0x32f   : > { %v2952_v16 = vadd.f32 %v2951_v32, %v2804_v33 }
 0x330   : > { %v2989_v42 = vadd.f32 %v2988_v39, %v2805_v40  ;;  %v2665_v45 = vpop.f32.mrb[164].mxu1 }
 0x331   : > { %v2666_v34 = vadd.f32 %v2665_v45, %v7330_v22  ;;  %v2667_v38 = vpop.f32.mrb[165].mxu1 }
 0x332   : > { %v2668_v46 = vadd.f32 %v2667_v38, %v7333_v26  ;;  %v2669_v48 = vpop.f32.mrb[166].mxu1 }
 0x333   : > { %v2808_v49 = vmax.f32 %v2666_v34, 0.0  ;;  %5852 = vmatmul.mubr.msk.bf16.gmra.mrb[92].mxu0 %vm335_vm3, %v6784_v60  ;;  %v2670_v50 = vadd.f32 %v2669_v48, %v7330_v22  ;;  %v2671_v52 = vpop.f32.mrb[167].mxu1 }
 0x334   : > { %v2809_v53 = vmax.f32 %v2668_v46, 0.0  ;;  %v2672_v4 = vadd.f32 %v2671_v52, %v7333_v26  ;;  %2440 = vmatprep.mubr.bf16.mxu0 %v6490_v1 }
 0x335   : > { %v2953_v55 = vadd.f32 %v2952_v16, %v2808_v49  ;;  %v2812_v6 = vmax.f32 %v2670_v50, 0.0 }
 0x336   : > { %v2990_v57 = vadd.f32 %v2989_v42, %v2809_v53  ;;  %v2813_v3 = vmax.f32 %v2672_v4, 0.0 }
 0x337   : > { %v2954_v5 = vadd.f32 %v2953_v55, %v2812_v6 }
 0x338   : > { %v2991_v7 = vadd.f32 %v2990_v57, %v2813_v3  ;;  %v2675_v8 = vpop.f32.mrb[168].mxu1 }
 0x339   : > { %v2676_v10 = vadd.f32 %v2675_v8, %v7330_v22  ;;  %v2677_v11 = vpop.f32.mrb[169].mxu1 }
 0x33a   : > { %v2678_v14 = vadd.f32 %v2677_v11, %v7333_v26  ;;  %v2679_v59 = vpop.f32.mrb[170].mxu1 }
 0x33b   : > { %v2816_v62 = vmax.f32 %v2676_v10, 0.0  ;;  %5853 = vmatmul.mubr.msk.bf16.gmra.mrb[96].mxu0 %vm335_vm3, %v6793_v13  ;;  %v2680_v15 = vadd.f32 %v2679_v59, %v7330_v22  ;;  %v2681_v63 = vpop.f32.mrb[171].mxu1 }
 0x33c   : > { %v2817_v17 = vmax.f32 %v2678_v14, 0.0  ;;  %v2682_v18 = vadd.f32 %v2681_v63, %v7333_v26  ;;  %2450 = vmatprep.mubr.bf16.mxu0 %v6490_v1 }
 0x33d   : > { %v2955_v20 = vadd.f32 %v2954_v5, %v2816_v62  ;;  %v2820_v21 = vmax.f32 %v2680_v15, 0.0 }
 0x33e   : > { %v2992_v23 = vadd.f32 %v2991_v7, %v2817_v17  ;;  %v2821_v24 = vmax.f32 %v2682_v18, 0.0 }
 0x33f   : > { %v2956_v51 = vadd.f32 %v2955_v20, %v2820_v21 }
 0x340   : > { %v2993_v27 = vadd.f32 %v2992_v23, %v2821_v24  ;;  %v2685_v29 = vpop.f32.mrb[172].mxu1 }
 0x341   : > { %v2686_v31 = vadd.f32 %v2685_v29, %v7330_v22  ;;  %v2687_v56 = vpop.f32.mrb[173].mxu1 }
 0x342   : > { %v2688_v32 = vadd.f32 %v2687_v56, %v7333_v26  ;;  %v2689_v33 = vpop.f32.mrb[174].mxu1 }
 0x343   : > { %v2824_v39 = vmax.f32 %v2686_v31, 0.0  ;;  %5854 = vmatmul.mubr.msk.bf16.gmra.mrb[100].mxu0 %vm335_vm3, %v6802_v30  ;;  %v2690_v40 = vadd.f32 %v2689_v33, %v7330_v22  ;;  %v2691_v16 = vpop.f32.mrb[175].mxu1 }
 0x344   : > { %v2825_v42 = vmax.f32 %v2688_v32, 0.0  ;;  %v2692_v45 = vadd.f32 %v2691_v16, %v7333_v26  ;;  %2460 = vmatprep.mubr.bf16.mxu0 %v6490_v1 }
 0x345   : > { %v2957_v34 = vadd.f32 %v2956_v51, %v2824_v39  ;;  %v2828_v38 = vmax.f32 %v2690_v40, 0.0 }
 0x346   : > { %v2994_v46 = vadd.f32 %v2993_v27, %v2825_v42  ;;  %v2829_v48 = vmax.f32 %v2692_v45, 0.0 }
 0x347   : > { %v2958_v49 = vadd.f32 %v2957_v34, %v2828_v38 }
 0x348   : > { %v2995_v50 = vadd.f32 %v2994_v46, %v2829_v48  ;;  %v2695_v52 = vpop.f32.mrb[176].mxu1 }
 0x349   : > { %v2696_v53 = vadd.f32 %v2695_v52, %v7330_v22  ;;  %v2697_v4 = vpop.f32.mrb[177].mxu1 }
 0x34a   : > { %v2698_v55 = vadd.f32 %v2697_v4, %v7333_v26  ;;  %v2699_v6 = vpop.f32.mrb[178].mxu1  ;;  %v6368_v4 = vld [vmem:[%s8425_s5 + $0x280] sm:$0xff]  }
 0x34b   : > { %v2832_v57 = vmax.f32 %v2696_v53, 0.0  ;;  %5855 = vmatmul.mubr.msk.bf16.gmra.mrb[104].mxu0 %vm335_vm3, %v6811_v47  ;;  %v2700_v3 = vadd.f32 %v2699_v6, %v7330_v22  ;;  %v2701_v5 = vpop.f32.mrb[179].mxu1 }
 0x34c   : > { %v2833_v7 = vmax.f32 %v2698_v55, 0.0  ;;  %v2702_v8 = vadd.f32 %v2701_v5, %v7333_v26  ;;  %2470 = vmatprep.mubr.bf16.mxu0 %v6490_v1 }
 0x34d   : > { %v2959_v10 = vadd.f32 %v2958_v49, %v2832_v57  ;;  %v2836_v11 = vmax.f32 %v2700_v3, 0.0 }
 0x34e   : > { %v2996_v14 = vadd.f32 %v2995_v50, %v2833_v7  ;;  %v2837_v59 = vmax.f32 %v2702_v8, 0.0  ;;  %v6090_v62 = vpop.f32.mrb[64].mxu0  ;;  %v6367_v50 = vld [vmem:[%s8425_s5 + $0x2c0] sm:$0xff]  }
 0x34f   : > { %v2960_v15 = vadd.f32 %v2959_v10, %v2836_v11  ;;  %v6091_v63 = vpop.f32.mrb[65].mxu0  ;;  %6184 = vmatprep.subr.bf16.mxu1 %v6367_v50  ;;  %v6369_v10 = vld [vmem:[%s8425_s5 + $0x2c8] sm:$0xff]  }
 0x350   : > { %v2997_v17 = vadd.f32 %v2996_v14, %v2837_v59  ;;  %v7451_v18 = vadd.f32 %v6091_v63, %v6090_v62  ;;  %v6093_v20 = vpop.f32.mrb[66].mxu0  ;;  %v2705_v21 = vpop.f32.mrb[180].mxu1  ;;  %6185 = vmatpush3.bf16.msra.mxu1 %v6368_v4  ;;  %v6370_v59 = vld [vmem:[%s8425_s5 + $0x288] sm:$0xff]  }
 0x351   : > { %v2706_v23 = vadd.f32 %v2705_v21, %v7330_v22  ;;  %v6094_v24 = vpop.f32.mrb[67].mxu0  ;;  %v2707_v51 = vpop.f32.mrb[181].mxu1  ;;  %6186 = vmatprep.subr.bf16.mxu1 %v6369_v10  ;;  %v6371_v21 = vld [vmem:[%s8425_s5 + $0x2d0] sm:$0xff]  }
 0x352   : > { %v2708_v27 = vadd.f32 %v2707_v51, %v7333_v26  ;;  %v2709_v29 = vpop.f32.mrb[182].mxu1  ;;  %v3371_v51 = vld [vmem:[%s8424_s4 + $0x8] sm:$0xf] }
 0x353   : > { %v2840_v31 = vmax.f32 %v2706_v23, 0.0  ;;  %5856 = vmatmul.mubr.msk.bf16.gmra.mrb[108].mxu0 %vm335_vm3, %v6820_v0  ;;  %v2710_v56 = vadd.f32 %v2709_v29, %v7330_v22  ;;  %v2711_v32 = vpop.f32.mrb[183].mxu1 }
 0x354   : > { %v2841_v33 = vmax.f32 %v2708_v27, 0.0  ;;  %v2712_v39 = vadd.f32 %v2711_v32, %v7333_v26  ;;  %2480 = vmatprep.mubr.bf16.mxu0 %v6490_v1  ;;  %6187 = vmatpush3.bf16.msra.mxu1 %v6370_v59  ;;  %v6372_v27 = vld [vmem:[%s8425_s5 + $0x290] sm:$0xff]  }
 0x355   : > { %v2961_v40 = vadd.f32 %v2960_v15, %v2840_v31  ;;  %v2844_v16 = vmax.f32 %v2710_v56, 0.0  ;;  %6188 = vmatprep.subr.bf16.mxu1 %v6371_v21 }
 0x356   : > { %v2998_v42 = vadd.f32 %v2997_v17, %v2841_v33  ;;  %v2845_v45 = vmax.f32 %v2712_v39, 0.0 }
 0x357   : > { %v2962_v34 = vadd.f32 %v2961_v40, %v2844_v16  ;;  %v7496_v16 = vrot.slane %v3371_v51, %v7137_v41 }
 0x358   : > { %v2999_v38 = vadd.f32 %v2998_v42, %v2845_v45  ;;  %v2715_v46 = vpop.f32.mrb[184].mxu1  ;;  %6189 = vmatpush3.bf16.msra.mxu1 %v6372_v27  ;;  %v6373_v42 = vld [vmem:[%s8425_s5 + $0x2d8] sm:$0xff]  }
 0x359   : > { %v2716_v48 = vadd.f32 %v2715_v46, %v7330_v22  ;;  %v2717_v49 = vpop.f32.mrb[185].mxu1  ;;  %6190 = vmatprep.subr.bf16.mxu1 %v6373_v42 }
 0x35a   : > { %v2718_v52 = vadd.f32 %v2717_v49, %v7333_v26  ;;  %v2719_v53 = vpop.f32.mrb[186].mxu1 }
 0x35b   : > { %v2848_v55 = vmax.f32 %v2716_v48, 0.0  ;;  %5857 = vmatmul.mubr.msk.bf16.gmra.mrb[112].mxu0 %vm335_vm3, %v6829_v19  ;;  %v2720_v6 = vadd.f32 %v2719_v53, %v7330_v22  ;;  %v2721_v57 = vpop.f32.mrb[187].mxu1 }
 0x35c   : > { %v2849_v3 = vmax.f32 %v2718_v52, 0.0  ;;  %v2722_v5 = vadd.f32 %v2721_v57, %v7333_v26  ;;  %2490 = vmatprep.mubr.bf16.mxu0 %v6490_v1  ;;  %v6375_v52 = vld [vmem:[%s8425_s5 + $0x2e0] sm:$0xff]  }
 0x35d   : > { %v2963_v7 = vadd.f32 %v2962_v34, %v2848_v55  ;;  %v2852_v8 = vmax.f32 %v2720_v6, 0.0  ;;  %v6376_v55 = vld [vmem:[%s8425_s5 + $0x2a0] sm:$0xff]  }
 0x35e   : > { %v3000_v11 = vadd.f32 %v2999_v38, %v2849_v3  ;;  %v2853_v14 = vmax.f32 %v2722_v5, 0.0 }
 0x35f   : > { %v2964_v62 = vadd.f32 %v2963_v7, %v2852_v8  ;;  %v6377_v8 = vld [vmem:[%s8425_s5 + $0x2e8] sm:$0xff]  }
 0x360   : > { %v3001_v15 = vadd.f32 %v3000_v11, %v2853_v14  ;;  %v2725_v63 = vpop.f32.mrb[188].mxu1  ;;  %v6379_v14 = vld [vmem:[%s8425_s5 + $0x2a8] sm:$0xff]  }
 0x361   : > { %v2726_v17 = vadd.f32 %v2725_v63, %v7330_v22  ;;  %v2727_v20 = vpop.f32.mrb[189].mxu1 }
 0x362   : > { %v2728_v23 = vadd.f32 %v2727_v20, %v7333_v26  ;;  %v2729_v24 = vpop.f32.mrb[190].mxu1  ;;  %v6381_v20 = vld [vmem:[%s8425_s5 + $0x2f0] sm:$0xff]  }
 0x363   : > { %v2856_v29 = vmax.f32 %v2726_v17, 0.0  ;;  %5858 = vmatmul.mubr.msk.bf16.gmra.mrb[116].mxu0 %vm335_vm3, %v6838_v37  ;;  %v2730_v31 = vadd.f32 %v2729_v24, %v7330_v22  ;;  %v2731_v56 = vpop.f32.mrb[191].mxu1  ;;  %v7502_v22 = vrot.slane %v3371_v51, %v7141_v43  ;;  %v6382_v24 = vld [vmem:[%s8425_s5 + $0x2b0] sm:$0xff]  }
 0x364   : > { %v2857_v32 = vmax.f32 %v2728_v23, 0.0  ;;  %v2732_v33 = vadd.f32 %v2731_v56, %v7333_v26  ;;  %2500 = vmatprep.mubr.bf16.mxu0 %v6490_v1  ;;  %v6374_v26 = vld [vmem:[%s8425_s5 + $0x298] sm:$0xff]  }
 0x365   : > { %v2965_v39 = vadd.f32 %v2964_v62, %v2856_v29  ;;  %v2860_v40 = vmax.f32 %v2730_v31, 0.0  ;;  %6191 = vmatpush3.bf16.msra.mxu1 %v6374_v26  ;;  %v6378_v26 = vld [vmem:[%s8425_s5 + $0x140] sm:$0xff]  }
 0x366   : > { %v3002_v45 = vadd.f32 %v3001_v15, %v2857_v32  ;;  %v2861_v34 = vmax.f32 %v2732_v33, 0.0  ;;  %6192 = vmatprep.subr.bf16.mxu1 %v6375_v52  ;;  %v7558_v52 = vld [vmem:[%s8423_s3 + $0x38] sm:$0xff]  ;;  %6118 = vmatprep.subr.bf16.mxu0 %v6378_v26  ;;  %v6386_v26 = vld [vmem:[%s8425_s5 + $0x108] sm:$0xff]  }
 0x367   : > { %v7507_v38 = vadd.f32 %v2965_v39, %v2860_v40  ;;  %v6383_v39 = vld [vmem:[%s8425_s5 + $0x2f8] sm:$0xff]  }
 0x368   : > { %v7509_v46 = vadd.f32 %v3002_v45, %v2861_v34  ;;  %v3700_v48 = vpop.f32.mrb[192].mxu1  ;;  %v6384_v45 = vld [vmem:[%s8425_s5 + $0x2b8] sm:$0xff]  }
 0x369   : > { %v3701_v49 = vadd.f32 %v3700_v48, %v7496_v16  ;;  %v3702_v50 = vpop.f32.mrb[193].mxu1  ;;  %6193 = vmatpush3.bf16.msra.mxu1 %v6376_v55  ;;  %v6380_v48 = vld [vmem:[%s8425_s5 + $0x100] sm:$0xff]  }
 0x36a   : > { %v3703_v53 = vadd.f32 %v3702_v50, %v7502_v22  ;;  %v3704_v4 = vpop.f32.mrb[194].mxu1  ;;  %6194 = vmatprep.subr.bf16.mxu1 %v6377_v8  ;;  %6119 = vmatpush3.bf16.msra.mxu0 %v6380_v48 }
 0x36b   : > { %5859 = vmatmul.mubr.msk.bf16.gmra.mrb[120].mxu0 %vm335_vm3, %v6847_v54  ;;  %v3705_v6 = vadd.f32 %v3704_v4, %v7496_v16  ;;  %v3706_v57 = vpop.f32.mrb[195].mxu1  ;;  %v3861_v5 = vmax.f32 %v3701_v49, 0.0 }
 0x36c   : > { %v3707_v3 = vadd.f32 %v3706_v57, %v7502_v22  ;;  %2510 = vmatprep.mubr.bf16.mxu0 %v6490_v1  ;;  %v3862_v10 = vmax.f32 %v3703_v53, 0.0  ;;  %v7563_v53 = vld [vmem:[%s8423_s3 + $0x78] sm:$0xff] }
 0x36d   : > { %v3865_v7 = vmax.f32 %v3705_v6, 0.0  ;;  %6195 = vmatpush3.bf16.msra.mxu1 %v6379_v14  ;;  %v5994_v6 = vcombine.high %v7558_v52, %v7563_v53 }
 0x36e   : > { %v3866_v11 = vmax.f32 %v3707_v3, 0.0  ;;  %6196 = vmatprep.subr.bf16.mxu1 %v6381_v20 }
 0x36f   : > { %v4061_v59 = vadd.f32 %v3865_v7, %v3861_v5  ;;  %v5993_v5 = vcombine.low %v7558_v52, %v7563_v53 }
 0x370   : > { %v4098_v62 = vadd.f32 %v3866_v11, %v3862_v10  ;;  %v3710_v15 = vpop.f32.mrb[196].mxu1 }
 0x371   : > { %v3711_v63 = vadd.f32 %v3710_v15, %v7496_v16  ;;  %v3712_v17 = vpop.f32.mrb[197].mxu1  ;;  %6197 = vmatpush3.bf16.msra.mxu1 %v6382_v24 }
 0x372   : > { %v3713_v21 = vadd.f32 %v3712_v17, %v7502_v22  ;;  %v3714_v23 = vpop.f32.mrb[198].mxu1  ;;  %6198 = vmatprep.subr.bf16.mxu1 %v6383_v39 }
 0x373   : > { %v3869_v51 = vmax.f32 %v3711_v63, 0.0  ;;  %5860 = vmatmul.mubr.msk.bf16.gmra.mrb[124].mxu0 %vm335_vm3, %v6856_v9  ;;  %v3715_v27 = vadd.f32 %v3714_v23, %v7496_v16  ;;  %v3716_v29 = vpop.f32.mrb[199].mxu1 }
 0x374   : > { %v3870_v31 = vmax.f32 %v3713_v21, 0.0  ;;  %v3717_v56 = vadd.f32 %v3716_v29, %v7502_v22  ;;  %2520 = vmatprep.mubr.bf16.mxu0 %v6490_v1 }
 0x375   : > { %v4062_v32 = vadd.f32 %v4061_v59, %v3869_v51  ;;  %v3873_v33 = vmax.f32 %v3715_v27, 0.0  ;;  %6199 = vmatpush3.bf16.msra.mxu1 %v6384_v45 }
 0x376   : > { %v4099_v40 = vadd.f32 %v4098_v62, %v3870_v31  ;;  %v3874_v42 = vmax.f32 %v3717_v56, 0.0  ;;  %4791 = vmatprep.subr.bf16.mxu1 %v5994_v6 }
 0x377   : > { %v4063_v34 = vadd.f32 %v4062_v32, %v3873_v33 }
 0x378   : > { %v4100_v49 = vadd.f32 %v4099_v40, %v3874_v42  ;;  %v3720_v50 = vpop.f32.mrb[200].mxu1  ;;  %v6385_v42 = vld [vmem:[%s8425_s5 + $0x148] sm:$0xff]  }
 0x379   : > { %v3721_v4 = vadd.f32 %v3720_v50, %v7496_v16  ;;  %v3722_v55 = vpop.f32.mrb[201].mxu1  ;;  %6120 = vmatprep.subr.bf16.mxu0 %v6385_v42 }
 0x37a   : > { %v3723_v57 = vadd.f32 %v3722_v55, %v7502_v22  ;;  %v3724_v3 = vpop.f32.mrb[202].mxu1  ;;  %6121 = vmatpush3.bf16.msra.mxu0 %v6386_v26 }
 0x37b   : > { %v3877_v7 = vmax.f32 %v3721_v4, 0.0  ;;  %5861 = vmatmul.mubr.msk.bf16.gmra.mrb[128].mxu0 %vm335_vm3, %v6871_v25  ;;  %v3725_v8 = vadd.f32 %v3724_v3, %v7496_v16  ;;  %v3726_v10 = vpop.f32.mrb[203].mxu1 }
 0x37c   : > { %v3878_v11 = vmax.f32 %v3723_v57, 0.0  ;;  %v3727_v14 = vadd.f32 %v3726_v10, %v7502_v22  ;;  %2530 = vmatprep.mubr.bf16.mxu0 %v6490_v1 }
 0x37d   : > { %v4064_v59 = vadd.f32 %v4063_v34, %v3877_v7  ;;  %v3881_v62 = vmax.f32 %v3725_v8, 0.0 }
 0x37e   : > { %v4101_v15 = vadd.f32 %v4100_v49, %v3878_v11  ;;  %v3882_v63 = vmax.f32 %v3727_v14, 0.0 }
 0x37f   : > { %v4065_v17 = vadd.f32 %v4064_v59, %v3881_v62 }
 0x380   : > { %v4102_v20 = vadd.f32 %v4101_v15, %v3882_v63  ;;  %v3730_v21 = vpop.f32.mrb[204].mxu1 }
 0x381   : > { %v3731_v23 = vadd.f32 %v3730_v21, %v7496_v16  ;;  %v3732_v24 = vpop.f32.mrb[205].mxu1 }
 0x382   : > { %v3733_v51 = vadd.f32 %v3732_v24, %v7502_v22  ;;  %v3734_v27 = vpop.f32.mrb[206].mxu1 }
 0x383   : > { %v3885_v29 = vmax.f32 %v3731_v23, 0.0  ;;  %5862 = vmatmul.mubr.msk.bf16.gmra.mrb[132].mxu0 %vm335_vm3, %v6878_v36  ;;  %v3735_v31 = vadd.f32 %v3734_v27, %v7496_v16  ;;  %v3736_v56 = vpop.f32.mrb[207].mxu1 }
 0x384   : > { %v3886_v32 = vmax.f32 %v3733_v51, 0.0  ;;  %v3737_v33 = vadd.f32 %v3736_v56, %v7502_v22 }
 0x385   : > { %v4066_v39 = vadd.f32 %v4065_v17, %v3885_v29  ;;  %v3889_v40 = vmax.f32 %v3735_v31, 0.0 }
 0x386   : > { %v4103_v45 = vadd.f32 %v4102_v20, %v3886_v32  ;;  %v3890_v34 = vmax.f32 %v3737_v33, 0.0 }
 0x387   : > { %v4067_v48 = vadd.f32 %v4066_v39, %v3889_v40  ;;  %v6387_v40 = vld [vmem:[%s8425_s5 + $0x150] sm:$0xff]  }
 0x388   : > { %v4104_v49 = vadd.f32 %v4103_v45, %v3890_v34  ;;  %v3740_v50 = vpop.f32.mrb[208].mxu1  ;;  %v6388_v34 = vld [vmem:[%s8425_s5 + $0x110] sm:$0xff]   ;;  %6122 = vmatprep.subr.bf16.mxu0 %v6387_v40 }
 0x389   : > { %v3741_v4 = vadd.f32 %v3740_v50, %v7496_v16  ;;  %v3742_v55 = vpop.f32.mrb[209].mxu1  ;;  %6123 = vmatpush3.bf16.msra.mxu0 %v6388_v34 }
 0x38a   : > { %v3743_v6 = vadd.f32 %v3742_v55, %v7502_v22  ;;  %v3744_v57 = vpop.f32.mrb[210].mxu1 }
 0x38b   : > { %v3893_v3 = vmax.f32 %v3741_v4, 0.0  ;;  %v3745_v7 = vadd.f32 %v3744_v57, %v7496_v16  ;;  %v3746_v8 = vpop.f32.mrb[211].mxu1 }
 0x38c   : > { %v3894_v10 = vmax.f32 %v3743_v6, 0.0  ;;  %v3747_v11 = vadd.f32 %v3746_v8, %v7502_v22 }
 0x38d   : > { %v4068_v14 = vadd.f32 %v4067_v48, %v3893_v3  ;;  %v3897_v59 = vmax.f32 %v3745_v7, 0.0 }
 0x38e   : > { %v4105_v62 = vadd.f32 %v4104_v49, %v3894_v10  ;;  %v3898_v15 = vmax.f32 %v3747_v11, 0.0 }
 0x38f   : > { %v4069_v63 = vadd.f32 %v4068_v14, %v3897_v59 }
 0x390   : > { %v4106_v17 = vadd.f32 %v4105_v62, %v3898_v15  ;;  %v3750_v20 = vpop.f32.mrb[212].mxu1 }
 0x391   : > { %v3751_v21 = vadd.f32 %v3750_v20, %v7496_v16  ;;  %v3752_v23 = vpop.f32.mrb[213].mxu1 }
 0x392   : > { %v3753_v24 = vadd.f32 %v3752_v23, %v7502_v22  ;;  %v3754_v51 = vpop.f32.mrb[214].mxu1 }
 0x393   : > { %v3901_v27 = vmax.f32 %v3751_v21, 0.0  ;;  %v3755_v29 = vadd.f32 %v3754_v51, %v7496_v16  ;;  %v3756_v31 = vpop.f32.mrb[215].mxu1 }
 0x394   : > { %v3902_v56 = vmax.f32 %v3753_v24, 0.0  ;;  %v3757_v32 = vadd.f32 %v3756_v31, %v7502_v22 }
 0x395   : > { %v4070_v33 = vadd.f32 %v4069_v63, %v3901_v27  ;;  %v3905_v39 = vmax.f32 %v3755_v29, 0.0 }
 0x396   : > { %v4107_v42 = vadd.f32 %v4106_v17, %v3902_v56  ;;  %v3906_v45 = vmax.f32 %v3757_v32, 0.0 }
 0x397   : > { %v4071_v26 = vadd.f32 %v4070_v33, %v3905_v39  ;;  %v6389_v39 = vld [vmem:[%s8425_s5 + $0x158] sm:$0xff]  }
 0x398   : > { %v4108_v48 = vadd.f32 %v4107_v42, %v3906_v45  ;;  %v3760_v49 = vpop.f32.mrb[216].mxu1  ;;  %v6390_v45 = vld [vmem:[%s8425_s5 + $0x118] sm:$0xff]   ;;  %6124 = vmatprep.subr.bf16.mxu0 %v6389_v39 }
 0x399   : > { %v3761_v50 = vadd.f32 %v3760_v49, %v7496_v16  ;;  %v3762_v4 = vpop.f32.mrb[217].mxu1  ;;  %6125 = vmatpush3.bf16.msra.mxu0 %v6390_v45 }
 0x39a   : > { %v3763_v55 = vadd.f32 %v3762_v4, %v7502_v22  ;;  %v3764_v6 = vpop.f32.mrb[218].mxu1 }
 0x39b   : > { %v3909_v57 = vmax.f32 %v3761_v50, 0.0  ;;  %v3765_v3 = vadd.f32 %v3764_v6, %v7496_v16  ;;  %v3766_v7 = vpop.f32.mrb[219].mxu1 }
 0x39c   : > { %v3910_v8 = vmax.f32 %v3763_v55, 0.0  ;;  %v3767_v10 = vadd.f32 %v3766_v7, %v7502_v22 }
 0x39d   : > { %v4072_v11 = vadd.f32 %v4071_v26, %v3909_v57  ;;  %v3913_v14 = vmax.f32 %v3765_v3, 0.0 }
 0x39e   : > { %v4109_v59 = vadd.f32 %v4108_v48, %v3910_v8  ;;  %v3914_v62 = vmax.f32 %v3767_v10, 0.0 }
 0x39f   : > { %v4073_v15 = vadd.f32 %v4072_v11, %v3913_v14 }
 0x3a0   : > { %v4110_v63 = vadd.f32 %v4109_v59, %v3914_v62  ;;  %v3770_v17 = vpop.f32.mrb[220].mxu1 }
 0x3a1   : > { %v3771_v20 = vadd.f32 %v3770_v17, %v7496_v16  ;;  %v3772_v21 = vpop.f32.mrb[221].mxu1 }
 0x3a2   : > { %v3773_v23 = vadd.f32 %v3772_v21, %v7502_v22  ;;  %v3774_v24 = vpop.f32.mrb[222].mxu1 }
 0x3a3   : > { %v3917_v51 = vmax.f32 %v3771_v20, 0.0  ;;  %v3775_v27 = vadd.f32 %v3774_v24, %v7496_v16  ;;  %v3776_v29 = vpop.f32.mrb[223].mxu1 }
 0x3a4   : > { %v3918_v31 = vmax.f32 %v3773_v23, 0.0  ;;  %v3777_v56 = vadd.f32 %v3776_v29, %v7502_v22 }
 0x3a5   : > { %v4074_v32 = vadd.f32 %v4073_v15, %v3917_v51  ;;  %v3921_v33 = vmax.f32 %v3775_v27, 0.0 }
 0x3a6   : > { %v4111_v40 = vadd.f32 %v4110_v63, %v3918_v31  ;;  %v3922_v42 = vmax.f32 %v3777_v56, 0.0 }
 0x3a7   : > { %v4075_v34 = vadd.f32 %v4074_v32, %v3921_v33  ;;  %v6391_v33 = vld [vmem:[%s8425_s5 + $0x160] sm:$0xff]  }
 0x3a8   : > { %v4112_v26 = vadd.f32 %v4111_v40, %v3922_v42  ;;  %v3780_v48 = vpop.f32.mrb[224].mxu1  ;;  %v6392_v42 = vld [vmem:[%s8425_s5 + $0x120] sm:$0xff]   ;;  %6126 = vmatprep.subr.bf16.mxu0 %v6391_v33 }
 0x3a9   : > { %v3781_v49 = vadd.f32 %v3780_v48, %v7496_v16  ;;  %v3782_v50 = vpop.f32.mrb[225].mxu1  ;;  %6127 = vmatpush3.bf16.msra.mxu0 %v6392_v42 }
 0x3aa   : > { %v3783_v4 = vadd.f32 %v3782_v50, %v7502_v22  ;;  %v3784_v55 = vpop.f32.mrb[226].mxu1 }
 0x3ab   : > { %v3925_v6 = vmax.f32 %v3781_v49, 0.0  ;;  %v3785_v57 = vadd.f32 %v3784_v55, %v7496_v16  ;;  %v3786_v3 = vpop.f32.mrb[227].mxu1 }
 0x3ac   : > { %v3926_v7 = vmax.f32 %v3783_v4, 0.0  ;;  %v3787_v8 = vadd.f32 %v3786_v3, %v7502_v22 }
 0x3ad   : > { %v4076_v10 = vadd.f32 %v4075_v34, %v3925_v6  ;;  %v3929_v11 = vmax.f32 %v3785_v57, 0.0 }
 0x3ae   : > { %v4113_v14 = vadd.f32 %v4112_v26, %v3926_v7  ;;  %v3930_v59 = vmax.f32 %v3787_v8, 0.0 }
 0x3af   : > { %v4077_v62 = vadd.f32 %v4076_v10, %v3929_v11 }
 0x3b0   : > { %v4114_v15 = vadd.f32 %v4113_v14, %v3930_v59  ;;  %v3790_v63 = vpop.f32.mrb[228].mxu1 }
 0x3b1   : > { %v3791_v17 = vadd.f32 %v3790_v63, %v7496_v16  ;;  %v3792_v20 = vpop.f32.mrb[229].mxu1 }
 0x3b2   : > { %v3793_v21 = vadd.f32 %v3792_v20, %v7502_v22  ;;  %v3794_v23 = vpop.f32.mrb[230].mxu1 }
 0x3b3   : > { %v3933_v24 = vmax.f32 %v3791_v17, 0.0  ;;  %v3795_v51 = vadd.f32 %v3794_v23, %v7496_v16  ;;  %v3796_v27 = vpop.f32.mrb[231].mxu1 }
 0x3b4   : > { %v3934_v29 = vmax.f32 %v3793_v21, 0.0  ;;  %v3797_v31 = vadd.f32 %v3796_v27, %v7502_v22 }
 0x3b5   : > { %v4078_v56 = vadd.f32 %v4077_v62, %v3933_v24  ;;  %v3937_v32 = vmax.f32 %v3795_v51, 0.0 }
 0x3b6   : > { %v4115_v39 = vadd.f32 %v4114_v15, %v3934_v29  ;;  %v3938_v40 = vmax.f32 %v3797_v31, 0.0 }
 0x3b7   : > { %v4079_v45 = vadd.f32 %v4078_v56, %v3937_v32  ;;  %v6393_v32 = vld [vmem:[%s8425_s5 + $0x168] sm:$0xff]  }
 0x3b8   : > { %v4116_v34 = vadd.f32 %v4115_v39, %v3938_v40  ;;  %v3800_v26 = vpop.f32.mrb[232].mxu1  ;;  %v6394_v40 = vld [vmem:[%s8425_s5 + $0x128] sm:$0xff]   ;;  %6128 = vmatprep.subr.bf16.mxu0 %v6393_v32 }
 0x3b9   : > { %v3801_v48 = vadd.f32 %v3800_v26, %v7496_v16  ;;  %v3802_v49 = vpop.f32.mrb[233].mxu1  ;;  %6129 = vmatpush3.bf16.msra.mxu0 %v6394_v40 }
 0x3ba   : > { %v3803_v50 = vadd.f32 %v3802_v49, %v7502_v22  ;;  %v3804_v4 = vpop.f32.mrb[234].mxu1 }
 0x3bb   : > { %v3941_v55 = vmax.f32 %v3801_v48, 0.0  ;;  %v3805_v6 = vadd.f32 %v3804_v4, %v7496_v16  ;;  %v3806_v57 = vpop.f32.mrb[235].mxu1 }
 0x3bc   : > { %v3942_v3 = vmax.f32 %v3803_v50, 0.0  ;;  %v3807_v7 = vadd.f32 %v3806_v57, %v7502_v22 }
 0x3bd   : > { %v4080_v8 = vadd.f32 %v4079_v45, %v3941_v55  ;;  %v3945_v10 = vmax.f32 %v3805_v6, 0.0 }
 0x3be   : > { %v4117_v11 = vadd.f32 %v4116_v34, %v3942_v3  ;;  %v3946_v14 = vmax.f32 %v3807_v7, 0.0 }
 0x3bf   : > { %v4081_v59 = vadd.f32 %v4080_v8, %v3945_v10 }
 0x3c0   : > { %v4118_v62 = vadd.f32 %v4117_v11, %v3946_v14  ;;  %v3810_v15 = vpop.f32.mrb[236].mxu1 }
 0x3c1   : > { %v3811_v63 = vadd.f32 %v3810_v15, %v7496_v16  ;;  %v3812_v17 = vpop.f32.mrb[237].mxu1 }
 0x3c2   : > { %v3813_v20 = vadd.f32 %v3812_v17, %v7502_v22  ;;  %v3814_v21 = vpop.f32.mrb[238].mxu1 }
 0x3c3   : > { %v3949_v23 = vmax.f32 %v3811_v63, 0.0  ;;  %v3815_v24 = vadd.f32 %v3814_v21, %v7496_v16  ;;  %v3816_v51 = vpop.f32.mrb[239].mxu1 }
 0x3c4   : > { %v3950_v27 = vmax.f32 %v3813_v20, 0.0  ;;  %v3817_v29 = vadd.f32 %v3816_v51, %v7502_v22 }
 0x3c5   : > { %v4082_v31 = vadd.f32 %v4081_v59, %v3949_v23  ;;  %v3953_v56 = vmax.f32 %v3815_v24, 0.0 }
 0x3c6   : > { %v4119_v33 = vadd.f32 %v4118_v62, %v3950_v27  ;;  %v3954_v39 = vmax.f32 %v3817_v29, 0.0 }
 0x3c7   : > { %v4083_v42 = vadd.f32 %v4082_v31, %v3953_v56 }
 0x3c8   : > { %v4120_v45 = vadd.f32 %v4119_v33, %v3954_v39  ;;  %v3820_v34 = vpop.f32.mrb[240].mxu1 }
 0x3c9   : > { %v3821_v26 = vadd.f32 %v3820_v34, %v7496_v16  ;;  %v3822_v48 = vpop.f32.mrb[241].mxu1 }
 0x3ca   : > { %v3823_v49 = vadd.f32 %v3822_v48, %v7502_v22  ;;  %v3824_v50 = vpop.f32.mrb[242].mxu1 }
 0x3cb   : > { %v3957_v4 = vmax.f32 %v3821_v26, 0.0  ;;  %v3825_v55 = vadd.f32 %v3824_v50, %v7496_v16  ;;  %v3826_v6 = vpop.f32.mrb[243].mxu1 }
 0x3cc   : > { %v3958_v57 = vmax.f32 %v3823_v49, 0.0  ;;  %v3827_v3 = vadd.f32 %v3826_v6, %v7502_v22 }
 0x3cd   : > { %v4084_v7 = vadd.f32 %v4083_v42, %v3957_v4  ;;  %v3961_v8 = vmax.f32 %v3825_v55, 0.0 }
 0x3ce   : > { %v4121_v10 = vadd.f32 %v4120_v45, %v3958_v57  ;;  %v3962_v11 = vmax.f32 %v3827_v3, 0.0  ;;  %v6112_v14 = vpop.f32.mrb[68].mxu0  ;;  %v6395_v45 = vld [vmem:[%s8425_s5 + $0x170] sm:$0xff]  }
 0x3cf   : > { %v4085_v59 = vadd.f32 %v4084_v7, %v3961_v8  ;;  %v6113_v62 = vpop.f32.mrb[69].mxu0  ;;  %6130 = vmatprep.subr.bf16.mxu0 %v6395_v45 }
 0x3d0   : > { %v4122_v15 = vadd.f32 %v4121_v10, %v3962_v11  ;;  %v6114_v63 = vadd.f32 %v6113_v62, %v6112_v14  ;;  %v6115_v17 = vpop.f32.mrb[70].mxu0  ;;  %v3830_v20 = vpop.f32.mrb[244].mxu1  ;;  %v6463_v10 = vld [vmem:[%s8424_s4 + $0x4] sm:$0xf] }
 0x3d1   : > { %v3831_v21 = vadd.f32 %v3830_v20, %v7496_v16  ;;  %v6116_v23 = vpop.f32.mrb[71].mxu0  ;;  %v3832_v24 = vpop.f32.mrb[245].mxu1  ;;  %v7668_v11 = vrot.slane %v6463_v10, %v6946_v61  ;;  %v7672_v62 = vrot.slane %v6463_v10, %v6957_v2 }
 0x3d2   : > { %v7650_v51 = vadd.f32 %v6114_v63, %v7451_v18  ;;  %v3833_v27 = vadd.f32 %v3832_v24, %v7502_v22  ;;  %v3834_v29 = vpop.f32.mrb[246].mxu1  ;;  %v6396_v18 = vld [vmem:[%s8425_s5 + $0x130] sm:$0xff]  }
 0x3d3   : > { %v3965_v31 = vmax.f32 %v3831_v21, 0.0  ;;  %v3835_v56 = vadd.f32 %v3834_v29, %v7496_v16  ;;  %v3836_v32 = vpop.f32.mrb[247].mxu1  ;;  %6131 = vmatpush3.bf16.msra.mxu0 %v6396_v18 }
 0x3d4   : > { %v3966_v33 = vmax.f32 %v3833_v27, 0.0  ;;  %v3837_v39 = vadd.f32 %v3836_v32, %v7502_v22 }
 0x3d5   : > { %v4086_v40 = vadd.f32 %v4085_v59, %v3965_v31  ;;  %v3969_v42 = vmax.f32 %v3835_v56, 0.0 }
 0x3d6   : > { %v4123_v34 = vadd.f32 %v4122_v15, %v3966_v33  ;;  %v3970_v26 = vmax.f32 %v3837_v39, 0.0 }
 0x3d7   : > { %v4087_v48 = vadd.f32 %v4086_v40, %v3969_v42 }
 0x3d8   : > { %v4124_v49 = vadd.f32 %v4123_v34, %v3970_v26  ;;  %v3840_v50 = vpop.f32.mrb[248].mxu1 }
 0x3d9   : > { %v3841_v4 = vadd.f32 %v3840_v50, %v7496_v16  ;;  %v3842_v55 = vpop.f32.mrb[249].mxu1 }
 0x3da   : > { %v3843_v6 = vadd.f32 %v3842_v55, %v7502_v22  ;;  %v3844_v57 = vpop.f32.mrb[250].mxu1 }
 0x3db   : > { %v3973_v3 = vmax.f32 %v3841_v4, 0.0  ;;  %v3845_v7 = vadd.f32 %v3844_v57, %v7496_v16  ;;  %v3846_v8 = vpop.f32.mrb[251].mxu1 }
 0x3dc   : > { %v3974_v14 = vmax.f32 %v3843_v6, 0.0  ;;  %v3847_v59 = vadd.f32 %v3846_v8, %v7502_v22 }
 0x3dd   : > { %v4088_v15 = vadd.f32 %v4087_v48, %v3973_v3  ;;  %v3977_v63 = vmax.f32 %v3845_v7, 0.0 }
 0x3de   : > { %v4125_v17 = vadd.f32 %v4124_v49, %v3974_v14  ;;  %v3978_v20 = vmax.f32 %v3847_v59, 0.0  ;;  %v2382_v21 = vpop.f32.mrb[72].mxu0 }
 0x3df   : > { %v4089_v23 = vadd.f32 %v4088_v15, %v3977_v63  ;;  %v2383_v24 = vadd.f32 %v2382_v21, %v7668_v11  ;;  %v2384_v27 = vpop.f32.mrb[73].mxu0 }
 0x3e0   : > { %v4126_v29 = vadd.f32 %v4125_v17, %v3978_v20  ;;  %v2385_v31 = vadd.f32 %v2384_v27, %v7672_v62  ;;  %v2386_v56 = vpop.f32.mrb[74].mxu0  ;;  %v3850_v32 = vpop.f32.mrb[252].mxu1 }
 0x3e1   : > { %v2387_v33 = vadd.f32 %v2386_v56, %v7668_v11  ;;  %v2388_v39 = vpop.f32.mrb[75].mxu0  ;;  %v3851_v40 = vadd.f32 %v3850_v32, %v7496_v16  ;;  %v3852_v42 = vpop.f32.mrb[253].mxu1  ;;  %v2734_v18 = vmax.f32 %v2383_v24, 0.0 }
 0x3e2   : > { %v2389_v45 = vadd.f32 %v2388_v39, %v7672_v62  ;;  %v3853_v34 = vadd.f32 %v3852_v42, %v7502_v22  ;;  %v3854_v26 = vpop.f32.mrb[254].mxu1  ;;  %v2735_v55 = vmax.f32 %v2385_v31, 0.0 }
 0x3e3   : > { %v2738_v48 = vmax.f32 %v2387_v33, 0.0  ;;  %v3981_v49 = vmax.f32 %v3851_v40, 0.0  ;;  %v3855_v50 = vadd.f32 %v3854_v26, %v7496_v16  ;;  %v3856_v4 = vpop.f32.mrb[255].mxu1 }
 0x3e4   : > { %v2739_v6 = vmax.f32 %v2389_v45, 0.0  ;;  %v3982_v57 = vmax.f32 %v3853_v34, 0.0  ;;  %v3857_v3 = vadd.f32 %v3856_v4, %v7502_v22  ;;  %v6398_v34 = vld [vmem:[%s8425_s5 + $0x138] sm:$0xff]  }
 0x3e5   : > { %v2862_v7 = vadd.f32 %v2738_v48, %v2734_v18  ;;  %v4090_v8 = vadd.f32 %v4089_v23, %v3981_v49  ;;  %v3985_v10 = vmax.f32 %v3855_v50, 0.0 }
 0x3e6   : > { %v2899_v14 = vadd.f32 %v2739_v6, %v2735_v55  ;;  %v4127_v59 = vadd.f32 %v4126_v29, %v3982_v57  ;;  %v3986_v15 = vmax.f32 %v3857_v3, 0.0  ;;  %v2392_v63 = vpop.f32.mrb[76].mxu0  ;;  %v6397_v29 = vld [vmem:[%s8425_s5 + $0x178] sm:$0xff]   ;;  %v6399_v57 = vld [vmem:[%s8425_s5 + $0x1c0] sm:$0xff]  }
 0x3e7   : > { %v4091_v17 = vadd.f32 %v4090_v8, %v3985_v10  ;;  %v2393_v20 = vadd.f32 %v2392_v63, %v7668_v11  ;;  %v2394_v21 = vpop.f32.mrb[77].mxu0  ;;  %6132 = vmatprep.subr.bf16.mxu0 %v6397_v29 }
 0x3e8   : > { %v4128_v24 = vadd.f32 %v4127_v59, %v3986_v15  ;;  %v2395_v16 = vadd.f32 %v2394_v21, %v7672_v62  ;;  %v2396_v27 = vpop.f32.mrb[78].mxu0  ;;  %6133 = vmatpush3.bf16.msra.mxu0 %v6398_v34  ;;  %v4487_v34 = vld [vmem:[%s8423_s3 + $0xf8] sm:$0xff] }
 0x3e9   : > { %v4092_v31 = vrot.slane %v4091_v17, 4  ;;  %v2742_v56 = vmax.f32 %v2393_v20, 0.0  ;;  %v2397_v32 = vadd.f32 %v2396_v27, %v7668_v11  ;;  %v2398_v22 = vpop.f32.mrb[79].mxu0  ;;  %6140 = vmatprep.subr.bf16.mxu0 %v6399_v57 }
 0x3ea   : > { %v4129_v33 = vrot.slane %v4128_v24, 4  ;;  %v2743_v23 = vmax.f32 %v2395_v16, 0.0  ;;  %v2399_v39 = vadd.f32 %v2398_v22, %v7672_v62 }
 0x3eb   : > { %v4093_v40 = vadd.f32 %v4092_v31, %v4091_v17  ;;  %v2863_v42 = vadd.f32 %v2862_v7, %v2742_v56  ;;  %v2746_v45 = vmax.f32 %v2397_v32, 0.0 }
 0x3ec   : > { %v4130_v26 = vadd.f32 %v4129_v33, %v4128_v24  ;;  %v2900_v18 = vadd.f32 %v2899_v14, %v2743_v23  ;;  %v2747_v48 = vmax.f32 %v2399_v39, 0.0 }
 0x3ed   : > { %v4094_v49 = vrot.slane %v4093_v40, 2  ;;  %v2864_v50 = vadd.f32 %v2863_v42, %v2746_v45  ;;  %v4485_v45 = vld [vmem:[%s8423_s3 + $0xb8] sm:$0xff] }
 0x3ee   : > { %v4131_v4 = vrot.slane %v4130_v26, 2  ;;  %v2901_v55 = vadd.f32 %v2900_v18, %v2747_v48  ;;  %v2402_v6 = vpop.f32.mrb[80].mxu0 }
 0x3ef   : > { %v4095_v3 = vadd.f32 %v4094_v49, %v4093_v40  ;;  %v2403_v7 = vadd.f32 %v2402_v6, %v7668_v11  ;;  %v2404_v8 = vpop.f32.mrb[81].mxu0 }
 0x3f0   : > { %v2405_v10 = vadd.f32 %v2404_v8, %v7672_v62  ;;  %v2406_v59 = vpop.f32.mrb[82].mxu0  ;;  %v4132_v14 = vadd.f32 %v4131_v4, %v4130_v26 }
 0x3f1   : > { %v4096_v15 = vrot.slane %v4095_v3, 1  ;;  %v2750_v63 = vmax.f32 %v2403_v7, 0.0  ;;  %v2407_v17 = vadd.f32 %v2406_v59, %v7668_v11  ;;  %v2408_v20 = vpop.f32.mrb[83].mxu0  ;;  %v4491_v59 = vld [vmem:[%s8423_s3 + $0x178] sm:$0xff] }
 0x3f2   : > { %v2751_v21 = vmax.f32 %v2405_v10, 0.0  ;;  %v2409_v24 = vadd.f32 %v2408_v20, %v7672_v62  ;;  %v4133_v16 = vrot.slane %v4132_v14, 1  ;;  %v4489_v10 = vld [vmem:[%s8423_s3 + $0x138] sm:$0xff]  ;;  %v5997_v20 = vcombine.low %v4485_v45, %v4487_v34 }
 0x3f3   : > { %v4097_v27 = vadd.f32 %v4096_v15, %v4095_v3  ;;  %v2865_v31 = vadd.f32 %v2864_v50, %v2750_v63  ;;  %v2754_v56 = vmax.f32 %v2407_v17, 0.0  ;;  %v5998_v3 = vcombine.high %v4485_v45, %v4487_v34 }
 0x3f4   : > { %v2902_v32 = vadd.f32 %v2901_v55, %v2751_v21  ;;  %v2755_v22 = vmax.f32 %v2409_v24, 0.0  ;;  %v4134_v33 = vadd.f32 %v4133_v16, %v4132_v14  ;;  %v6002_v24 = vcombine.high %v4489_v10, %v4491_v59 }
 0x3f5   : > { %v4137_v23 = vmul.f32 0.00390625, %v4097_v27  ;;  %v2866_v39 = vadd.f32 %v2865_v31, %v2754_v56  ;;  %v4493_v31 = vld [vmem:[%s8423_s3 + $0x1b8] sm:$0xff] }
 0x3f6   : > { %v2903_v29 = vadd.f32 %v2902_v32, %v2755_v22  ;;  %v2412_v40 = vpop.f32.mrb[84].mxu0  ;;  %v4138_v42 = vmul.f32 0.00390625, %v4134_v33  ;;  %v4495_v56 = vld [vmem:[%s8423_s3 + $0x1f8] sm:$0xff]  ;;  %v6001_v22 = vcombine.low %v4489_v10, %v4491_v59 }
 0x3f7   : > { %v2413_v26 = vadd.f32 %v2412_v40, %v7668_v11  ;;  %v2414_v18 = vpop.f32.mrb[85].mxu0  ;;  %v4141_v4 = vpack.c.bf16 %v4137_v23, %v4137_v23 }
 0x3f8   : > { %v2415_v48 = vadd.f32 %v2414_v18, %v7672_v62  ;;  %v2416_v49 = vpop.f32.mrb[86].mxu0  ;;  %v4142_v50 = vpack.c.bf16 %v4138_v42, %v4138_v42 }
 0x3f9   : > { %v2758_v55 = vmax.f32 %v2413_v26, 0.0  ;;  %v2417_v6 = vadd.f32 %v2416_v49, %v7668_v11  ;;  %v2418_v57 = vpop.f32.mrb[87].mxu0 }
 0x3fa   : > { %v2759_v7 = vmax.f32 %v2415_v48, 0.0  ;;  %v2419_v8 = vadd.f32 %v2418_v57, %v7672_v62  ;;  %4471 = vmatprep.mubr.bf16.mxu1 %v4142_v50  ;;  %v6005_v48 = vcombine.low %v4493_v31, %v4495_v56 }
 0x3fb   : > { %v2867_v14 = vadd.f32 %v2866_v39, %v2758_v55  ;;  %v2762_v15 = vmax.f32 %v2417_v6, 0.0  ;;  %4472 = vmatmul.mubr.bf16.vlgmr.msra.gmra.mrb[0].mxu1 %v4141_v4 }
 0x3fc   : > { %v2904_v63 = vadd.f32 %v2903_v29, %v2759_v7  ;;  %v2763_v17 = vmax.f32 %v2419_v8, 0.0  ;;  %4792 = vmatpush1.bf16.msra.mxu1 %v5993_v5  ;;  %4823 = vmatprep.mubr.bf16.mxu1 %v6490_v1  ;;  %v6006_v29 = vcombine.high %v4493_v31, %v4495_v56 }
 0x3fd   : > { %v2868_v21 = vadd.f32 %v2867_v14, %v2762_v15  ;;  %4793 = vmatprep.subr.bf16.mxu1 %v5998_v3 }
 0x3fe   : > { %v2905_v16 = vadd.f32 %v2904_v63, %v2763_v17  ;;  %v2422_v27 = vpop.f32.mrb[88].mxu0 }
 0x3ff   : > { %v2423_v32 = vadd.f32 %v2422_v27, %v7668_v11  ;;  %v2424_v52 = vpop.f32.mrb[89].mxu0 }
 0x400   : > { %v2425_v53 = vadd.f32 %v2424_v52, %v7672_v62  ;;  %v2426_v5 = vpop.f32.mrb[90].mxu0  ;;  %4794 = vmatpush1.bf16.msra.mxu1 %v5997_v20 }
 0x401   : > { %v2766_v33 = vmax.f32 %v2423_v32, 0.0  ;;  %v2427_v23 = vadd.f32 %v2426_v5, %v7668_v11  ;;  %v2428_v39 = vpop.f32.mrb[91].mxu0  ;;  %4795 = vmatprep.subr.bf16.mxu1 %v6002_v24 }
 0x402   : > { %v2767_v40 = vmax.f32 %v2425_v53, 0.0  ;;  %v2429_v42 = vadd.f32 %v2428_v39, %v7672_v62 }
 0x403   : > { %v2869_v45 = vadd.f32 %v2868_v21, %v2766_v33  ;;  %v2770_v34 = vmax.f32 %v2427_v23, 0.0 }
 0x404   : > { %v2906_v26 = vadd.f32 %v2905_v16, %v2767_v40  ;;  %v2771_v18 = vmax.f32 %v2429_v42, 0.0  ;;  %4796 = vmatpush1.bf16.msra.mxu1 %v6001_v22 }
 0x405   : > { %v2870_v49 = vadd.f32 %v2869_v45, %v2770_v34  ;;  %4797 = vmatprep.subr.bf16.mxu1 %v6006_v29 }
 0x406   : > { %v2907_v50 = vadd.f32 %v2906_v26, %v2771_v18  ;;  %v2432_v4 = vpop.f32.mrb[92].mxu0 }
 0x407   : > { %v2433_v55 = vadd.f32 %v2432_v4, %v7668_v11  ;;  %v2434_v6 = vpop.f32.mrb[93].mxu0 }
 0x408   : > { %v2435_v57 = vadd.f32 %v2434_v6, %v7672_v62  ;;  %v2436_v3 = vpop.f32.mrb[94].mxu0  ;;  %4798 = vmatpush1.bf16.msra.mxu1 %v6005_v48 }
 0x409   : > { %v2774_v7 = vmax.f32 %v2433_v55, 0.0  ;;  %v2437_v8 = vadd.f32 %v2436_v3, %v7668_v11  ;;  %v2438_v10 = vpop.f32.mrb[95].mxu0 }
 0x40a   : > { %v2775_v59 = vmax.f32 %v2435_v57, 0.0  ;;  %v2439_v14 = vadd.f32 %v2438_v10, %v7672_v62 }
 0x40b   : > { %v2871_v15 = vadd.f32 %v2870_v49, %v2774_v7  ;;  %v2778_v63 = vmax.f32 %v2437_v8, 0.0  ;;  %6023 = vmatmul.mubr.msk.bf16.vlgmr.msra.gmra.mrb[4].mxu1 %vm335_vm3, %v6727_v35 }
 0x40c   : > { %v2908_v17 = vadd.f32 %v2907_v50, %v2775_v59  ;;  %v2779_v20 = vmax.f32 %v2439_v14, 0.0  ;;  %4833 = vmatprep.mubr.bf16.mxu1 %v6490_v1 }
 0x40d   : > { %v2872_v21 = vadd.f32 %v2871_v15, %v2778_v63 }
 0x40e   : > { %v2909_v24 = vadd.f32 %v2908_v17, %v2779_v20  ;;  %v2442_v16 = vpop.f32.mrb[96].mxu0 }
 0x40f   : > { %v2443_v27 = vadd.f32 %v2442_v16, %v7668_v11  ;;  %v2444_v31 = vpop.f32.mrb[97].mxu0 }
 0x410   : > { %v2445_v56 = vadd.f32 %v2444_v31, %v7672_v62  ;;  %v2446_v32 = vpop.f32.mrb[98].mxu0 }
 0x411   : > { %v2782_v52 = vmax.f32 %v2443_v27, 0.0  ;;  %v2447_v53 = vadd.f32 %v2446_v32, %v7668_v11  ;;  %v2448_v5 = vpop.f32.mrb[99].mxu0 }
 0x412   : > { %v2783_v22 = vmax.f32 %v2445_v56, 0.0  ;;  %v2449_v33 = vadd.f32 %v2448_v5, %v7672_v62 }
 0x413   : > { %v2873_v23 = vadd.f32 %v2872_v21, %v2782_v52  ;;  %v2786_v39 = vmax.f32 %v2447_v53, 0.0  ;;  %6024 = vmatmul.mubr.msk.bf16.gmra.mrb[8].mxu1 %vm335_vm3, %v6748_v58 }
 0x414   : > { %v2910_v29 = vadd.f32 %v2909_v24, %v2783_v22  ;;  %v2787_v40 = vmax.f32 %v2449_v33, 0.0  ;;  %4843 = vmatprep.mubr.bf16.mxu1 %v6490_v1 }
 0x415   : > { %v2874_v42 = vadd.f32 %v2873_v23, %v2786_v39 }
 0x416   : > { %v2911_v45 = vadd.f32 %v2910_v29, %v2787_v40  ;;  %v2452_v34 = vpop.f32.mrb[100].mxu0 }
 0x417   : > { %v2453_v26 = vadd.f32 %v2452_v34, %v7668_v11  ;;  %v2454_v18 = vpop.f32.mrb[101].mxu0 }
 0x418   : > { %v2455_v48 = vadd.f32 %v2454_v18, %v7672_v62  ;;  %v2456_v49 = vpop.f32.mrb[102].mxu0 }
 0x419   : > { %v2790_v50 = vmax.f32 %v2453_v26, 0.0  ;;  %v2457_v4 = vadd.f32 %v2456_v49, %v7668_v11  ;;  %v2458_v55 = vpop.f32.mrb[103].mxu0 }
 0x41a   : > { %v2791_v6 = vmax.f32 %v2455_v48, 0.0  ;;  %v2459_v57 = vadd.f32 %v2458_v55, %v7672_v62 }
 0x41b   : > { %v2875_v3 = vadd.f32 %v2874_v42, %v2790_v50  ;;  %v2794_v7 = vmax.f32 %v2457_v4, 0.0  ;;  %6025 = vmatmul.mubr.msk.bf16.gmra.mrb[12].mxu1 %vm335_vm3, %v6757_v12 }
 0x41c   : > { %v2912_v8 = vadd.f32 %v2911_v45, %v2791_v6  ;;  %v2795_v10 = vmax.f32 %v2459_v57, 0.0  ;;  %4853 = vmatprep.mubr.bf16.mxu1 %v6490_v1 }
 0x41d   : > { %v2876_v59 = vadd.f32 %v2875_v3, %v2794_v7 }
 0x41e   : > { %v2913_v14 = vadd.f32 %v2912_v8, %v2795_v10  ;;  %v2462_v15 = vpop.f32.mrb[104].mxu0 }
 0x41f   : > { %v2463_v63 = vadd.f32 %v2462_v15, %v7668_v11  ;;  %v2464_v17 = vpop.f32.mrb[105].mxu0 }
 0x420   : > { %v2465_v20 = vadd.f32 %v2464_v17, %v7672_v62  ;;  %v2466_v21 = vpop.f32.mrb[106].mxu0 }
 0x421   : > { %v2798_v24 = vmax.f32 %v2463_v63, 0.0  ;;  %v2467_v16 = vadd.f32 %v2466_v21, %v7668_v11  ;;  %v2468_v27 = vpop.f32.mrb[107].mxu0 }
 0x422   : > { %v2799_v31 = vmax.f32 %v2465_v20, 0.0  ;;  %v2469_v56 = vadd.f32 %v2468_v27, %v7672_v62 }
 0x423   : > { %v2877_v32 = vadd.f32 %v2876_v59, %v2798_v24  ;;  %v2802_v52 = vmax.f32 %v2467_v16, 0.0  ;;  %6026 = vmatmul.mubr.msk.bf16.gmra.mrb[16].mxu1 %vm335_vm3, %v6766_v28 }
 0x424   : > { %v2914_v53 = vadd.f32 %v2913_v14, %v2799_v31  ;;  %v2803_v5 = vmax.f32 %v2469_v56, 0.0  ;;  %4863 = vmatprep.mubr.bf16.mxu1 %v6490_v1 }
 0x425   : > { %v2878_v22 = vadd.f32 %v2877_v32, %v2802_v52 }
 0x426   : > { %v2915_v33 = vadd.f32 %v2914_v53, %v2803_v5  ;;  %v2472_v23 = vpop.f32.mrb[108].mxu0 }
 0x427   : > { %v2473_v39 = vadd.f32 %v2472_v23, %v7668_v11  ;;  %v2474_v29 = vpop.f32.mrb[109].mxu0 }
 0x428   : > { %v2475_v40 = vadd.f32 %v2474_v29, %v7672_v62  ;;  %v2476_v42 = vpop.f32.mrb[110].mxu0 }
 0x429   : > { %v2806_v45 = vmax.f32 %v2473_v39, 0.0  ;;  %v2477_v34 = vadd.f32 %v2476_v42, %v7668_v11  ;;  %v2478_v26 = vpop.f32.mrb[111].mxu0 }
 0x42a   : > { %v2807_v18 = vmax.f32 %v2475_v40, 0.0  ;;  %v2479_v48 = vadd.f32 %v2478_v26, %v7672_v62 }
 0x42b   : > { %v2879_v49 = vadd.f32 %v2878_v22, %v2806_v45  ;;  %v2810_v50 = vmax.f32 %v2477_v34, 0.0  ;;  %6027 = vmatmul.mubr.msk.bf16.gmra.mrb[20].mxu1 %vm335_vm3, %v6775_v44 }
 0x42c   : > { %v2916_v4 = vadd.f32 %v2915_v33, %v2807_v18  ;;  %v2811_v55 = vmax.f32 %v2479_v48, 0.0  ;;  %4873 = vmatprep.mubr.bf16.mxu1 %v6490_v1 }
 0x42d   : > { %v2880_v6 = vadd.f32 %v2879_v49, %v2810_v50 }
 0x42e   : > { %v2917_v57 = vadd.f32 %v2916_v4, %v2811_v55  ;;  %v2482_v3 = vpop.f32.mrb[112].mxu0 }
 0x42f   : > { %v2483_v7 = vadd.f32 %v2482_v3, %v7668_v11  ;;  %v2484_v8 = vpop.f32.mrb[113].mxu0 }
 0x430   : > { %v2485_v10 = vadd.f32 %v2484_v8, %v7672_v62  ;;  %v2486_v59 = vpop.f32.mrb[114].mxu0 }
 0x431   : > { %v2814_v14 = vmax.f32 %v2483_v7, 0.0  ;;  %v2487_v15 = vadd.f32 %v2486_v59, %v7668_v11  ;;  %v2488_v63 = vpop.f32.mrb[115].mxu0 }
 0x432   : > { %v2815_v17 = vmax.f32 %v2485_v10, 0.0  ;;  %v2489_v20 = vadd.f32 %v2488_v63, %v7672_v62 }
 0x433   : > { %v2881_v21 = vadd.f32 %v2880_v6, %v2814_v14  ;;  %v2818_v24 = vmax.f32 %v2487_v15, 0.0  ;;  %6028 = vmatmul.mubr.msk.bf16.gmra.mrb[24].mxu1 %vm335_vm3, %v6784_v60 }
 0x434   : > { %v2918_v16 = vadd.f32 %v2917_v57, %v2815_v17  ;;  %v2819_v27 = vmax.f32 %v2489_v20, 0.0  ;;  %4883 = vmatprep.mubr.bf16.mxu1 %v6490_v1 }
 0x435   : > { %v2882_v31 = vadd.f32 %v2881_v21, %v2818_v24 }
 0x436   : > { %v2919_v56 = vadd.f32 %v2918_v16, %v2819_v27  ;;  %v2492_v32 = vpop.f32.mrb[116].mxu0 }
 0x437   : > { %v2493_v52 = vadd.f32 %v2492_v32, %v7668_v11  ;;  %v2494_v53 = vpop.f32.mrb[117].mxu0 }
 0x438   : > { %v2495_v5 = vadd.f32 %v2494_v53, %v7672_v62  ;;  %v2496_v22 = vpop.f32.mrb[118].mxu0 }
 0x439   : > { %v2822_v33 = vmax.f32 %v2493_v52, 0.0  ;;  %v2497_v23 = vadd.f32 %v2496_v22, %v7668_v11  ;;  %v2498_v39 = vpop.f32.mrb[119].mxu0 }
 0x43a   : > { %v2823_v29 = vmax.f32 %v2495_v5, 0.0  ;;  %v2499_v40 = vadd.f32 %v2498_v39, %v7672_v62 }
 0x43b   : > { %v2883_v42 = vadd.f32 %v2882_v31, %v2822_v33  ;;  %v2826_v45 = vmax.f32 %v2497_v23, 0.0  ;;  %6029 = vmatmul.mubr.msk.bf16.gmra.mrb[28].mxu1 %vm335_vm3, %v6793_v13 }
 0x43c   : > { %v2920_v34 = vadd.f32 %v2919_v56, %v2823_v29  ;;  %v2827_v26 = vmax.f32 %v2499_v40, 0.0  ;;  %4893 = vmatprep.mubr.bf16.mxu1 %v6490_v1 }
 0x43d   : > { %v2884_v18 = vadd.f32 %v2883_v42, %v2826_v45 }
 0x43e   : > { %v2921_v48 = vadd.f32 %v2920_v34, %v2827_v26  ;;  %v2502_v49 = vpop.f32.mrb[120].mxu0 }
 0x43f   : > { %v2503_v50 = vadd.f32 %v2502_v49, %v7668_v11  ;;  %v2504_v4 = vpop.f32.mrb[121].mxu0 }
 0x440   : > { %v2505_v55 = vadd.f32 %v2504_v4, %v7672_v62  ;;  %v2506_v6 = vpop.f32.mrb[122].mxu0 }
 0x441   : > { %v2830_v57 = vmax.f32 %v2503_v50, 0.0  ;;  %v2507_v3 = vadd.f32 %v2506_v6, %v7668_v11  ;;  %v2508_v7 = vpop.f32.mrb[123].mxu0 }
 0x442   : > { %v2831_v8 = vmax.f32 %v2505_v55, 0.0  ;;  %v2509_v10 = vadd.f32 %v2508_v7, %v7672_v62 }
 0x443   : > { %v2885_v59 = vadd.f32 %v2884_v18, %v2830_v57  ;;  %v2834_v14 = vmax.f32 %v2507_v3, 0.0  ;;  %6030 = vmatmul.mubr.msk.bf16.gmra.mrb[32].mxu1 %vm335_vm3, %v6802_v30  ;;  %v3004_v3 = vrot.slane %v7509_v46, 4 }
 0x444   : > { %v2922_v15 = vadd.f32 %v2921_v48, %v2831_v8  ;;  %v2835_v63 = vmax.f32 %v2509_v10, 0.0  ;;  %4903 = vmatprep.mubr.bf16.mxu1 %v6490_v1 }
 0x445   : > { %v2886_v17 = vadd.f32 %v2885_v59, %v2834_v14 }
 0x446   : > { %v2923_v20 = vadd.f32 %v2922_v15, %v2835_v63  ;;  %v2512_v21 = vpop.f32.mrb[124].mxu0 }
 0x447   : > { %v2513_v24 = vadd.f32 %v2512_v21, %v7668_v11  ;;  %v2514_v16 = vpop.f32.mrb[125].mxu0 }
 0x448   : > { %v2515_v27 = vadd.f32 %v2514_v16, %v7672_v62  ;;  %v2516_v31 = vpop.f32.mrb[126].mxu0 }
 0x449   : > { %v2838_v56 = vmax.f32 %v2513_v24, 0.0  ;;  %v2517_v32 = vadd.f32 %v2516_v31, %v7668_v11  ;;  %v2518_v52 = vpop.f32.mrb[127].mxu0 }
 0x44a   : > { %v2839_v53 = vmax.f32 %v2515_v27, 0.0  ;;  %v2519_v5 = vadd.f32 %v2518_v52, %v7672_v62 }
 0x44b   : > { %v2887_v22 = vadd.f32 %v2886_v17, %v2838_v56  ;;  %v2842_v33 = vmax.f32 %v2517_v32, 0.0  ;;  %6031 = vmatmul.mubr.msk.bf16.gmra.mrb[36].mxu1 %vm335_vm3, %v6811_v47  ;;  %v3005_v17 = vadd.f32 %v3004_v3, %v7509_v46 }
 0x44c   : > { %v2924_v23 = vadd.f32 %v2923_v20, %v2839_v53  ;;  %v2843_v39 = vmax.f32 %v2519_v5, 0.0  ;;  %4913 = vmatprep.mubr.bf16.mxu1 %v6490_v1 }
 0x44d   : > { %v2888_v29 = vadd.f32 %v2887_v22, %v2842_v33  ;;  %v3006_v53 = vrot.slane %v3005_v17, 2 }
 0x44e   : > { %v2925_v40 = vadd.f32 %v2924_v23, %v2843_v39  ;;  %v2522_v42 = vpop.f32.mrb[128].mxu0 }
 0x44f   : > { %v2523_v45 = vadd.f32 %v2522_v42, %v7668_v11  ;;  %v2524_v34 = vpop.f32.mrb[129].mxu0 }
 0x450   : > { %v2525_v26 = vadd.f32 %v2524_v34, %v7672_v62  ;;  %v2526_v18 = vpop.f32.mrb[130].mxu0 }
 0x451   : > { %v2846_v48 = vmax.f32 %v2523_v45, 0.0  ;;  %v2527_v49 = vadd.f32 %v2526_v18, %v7668_v11  ;;  %v2528_v50 = vpop.f32.mrb[131].mxu0 }
 0x452   : > { %v2847_v4 = vmax.f32 %v2525_v26, 0.0  ;;  %v2529_v55 = vadd.f32 %v2528_v50, %v7672_v62 }
 0x453   : > { %v2889_v6 = vadd.f32 %v2888_v29, %v2846_v48  ;;  %v2850_v57 = vmax.f32 %v2527_v49, 0.0  ;;  %6032 = vmatmul.mubr.msk.bf16.gmra.mrb[40].mxu1 %vm335_vm3, %v6820_v0  ;;  %v3007_v29 = vadd.f32 %v3006_v53, %v3005_v17  ;;  %v6404_v17 = vld [vmem:[%s8425_s5 + $0x190] sm:$0xff]  }
 0x454   : > { %v2926_v7 = vadd.f32 %v2925_v40, %v2847_v4  ;;  %v2851_v8 = vmax.f32 %v2529_v55, 0.0  ;;  %4923 = vmatprep.mubr.bf16.mxu1 %v6490_v1  ;;  %v6411_v53 = vld [vmem:[%s8425_s5 + $0x1f0] sm:$0xff]  }
 0x455   : > { %v2890_v10 = vadd.f32 %v2889_v6, %v2850_v57  ;;  %v3008_v45 = vrot.slane %v3007_v29, 1 }
 0x456   : > { %v2927_v59 = vadd.f32 %v2926_v7, %v2851_v8  ;;  %v2532_v14 = vpop.f32.mrb[132].mxu0  ;;  %v6400_v7 = vld [vmem:[%s8425_s5 + $0x180] sm:$0xff]  }
 0x457   : > { %v2533_v15 = vadd.f32 %v2532_v14, %v7668_v11  ;;  %v2534_v63 = vpop.f32.mrb[133].mxu0  ;;  %v3009_v49 = vadd.f32 %v3008_v45, %v3007_v29  ;;  %v6402_v14 = vld [vmem:[%s8425_s5 + $0x188] sm:$0xff]  }
 0x458   : > { %v2535_v20 = vadd.f32 %v2534_v63, %v7672_v62  ;;  %v2536_v21 = vpop.f32.mrb[134].mxu0  ;;  %v6403_v63 = vld [vmem:[%s8425_s5 + $0x1d0] sm:$0xff]  }
 0x459   : > { %v2854_v24 = vmax.f32 %v2533_v15, 0.0  ;;  %v2537_v16 = vadd.f32 %v2536_v21, %v7668_v11  ;;  %v2538_v27 = vpop.f32.mrb[135].mxu0  ;;  %v3013_v57 = vmul.f32 0.00390625, %v3009_v49  ;;  %v2967_v15 = vrot.slane %v7507_v38, 4  ;;  %v6405_v21 = vld [vmem:[%s8425_s5 + $0x1d8] sm:$0xff]  }
 0x45a   : > { %v2855_v31 = vmax.f32 %v2535_v20, 0.0  ;;  %v2539_v56 = vadd.f32 %v2538_v27, %v7672_v62  ;;  %v6407_v27 = vld [vmem:[%s8425_s5 + $0x1e0] sm:$0xff]  }
 0x45b   : > { %v2891_v32 = vadd.f32 %v2890_v10, %v2854_v24  ;;  %v2858_v52 = vmax.f32 %v2537_v16, 0.0  ;;  %6033 = vmatmul.mubr.msk.bf16.gmra.mrb[44].mxu1 %vm335_vm3, %v6829_v19  ;;  %v6401_v10 = vld [vmem:[%s8425_s5 + $0x1c8] sm:$0xff]   ;;  %v2968_v20 = vadd.f32 %v2967_v15, %v7507_v38  ;;  %v6406_v24 = vld [vmem:[%s8425_s5 + $0x198] sm:$0xff]   ;;  %v6408_v38 = vld [vmem:[%s8425_s5 + $0x1a0] sm:$0xff]  }
 0x45c   : > { %v2928_v5 = vadd.f32 %v2927_v59, %v2855_v31  ;;  %v2859_v22 = vmax.f32 %v2539_v56, 0.0  ;;  %4933 = vmatprep.mubr.bf16.mxu1 %v6490_v1  ;;  %v3017_v59 = vpack.c.bf16 %v3013_v57, %v3013_v57  ;;  %v6409_v56 = vld [vmem:[%s8425_s5 + $0x1e8] sm:$0xff]   ;;  %v6416_v15 = vld [vmem:[%s8425_s5 + $0x380] sm:$0xff]  }
 0x45d   : > { %v2892_v46 = vadd.f32 %v2891_v32, %v2858_v52  ;;  %v2969_v16 = vrot.slane %v2968_v20, 2  ;;  %v6410_v32 = vld [vmem:[%s8425_s5 + $0x1a8] sm:$0xff]  }
 0x45e   : > { %v2929_v33 = vadd.f32 %v2928_v5, %v2859_v22  ;;  %v6412_v5 = vld [vmem:[%s8425_s5 + $0x1b0] sm:$0xff]   ;;  %v6413_v22 = vld [vmem:[%s8425_s5 + $0x1f8] sm:$0xff]  }
 0x45f   : > { %v2893_v23 = vrot.slane %v2892_v46, 4  ;;  %v2970_v31 = vadd.f32 %v2969_v16, %v2968_v20  ;;  %v4496_v20 = vld [vmem:[%s8424_s4 + $0xc] sm:$0xf] }
 0x460   : > { %v2930_v39 = vrot.slane %v2929_v33, 4  ;;  %v7942_v16 = vrot.slane %v4496_v20, %v7137_v41 }
 0x461   : > { %v2894_v11 = vadd.f32 %v2893_v23, %v2892_v46  ;;  %v2971_v52 = vrot.slane %v2970_v31, 1  ;;  %v3357_v23 = vld [vmem:[%s8423_s3 + $0x60] sm:$0xff] }
 0x462   : > { %v2931_v40 = vadd.f32 %v2930_v39, %v2929_v33  ;;  %v3355_v33 = vld [vmem:[%s8423_s3 + $0x20] sm:$0xff]  ;;  %v6414_v39 = vld [vmem:[%s8425_s5 + $0x1b8] sm:$0xff]  }
 0x463   : > { %v2895_v42 = vrot.slane %v2894_v11, 2  ;;  %6034 = vmatmul.mubr.msk.bf16.gmra.mrb[48].mxu1 %vm335_vm3, %v6838_v37  ;;  %v2972_v46 = vadd.f32 %v2971_v52, %v2970_v31  ;;  %v6422_v31 = vld [vmem:[%s8425_s5 + $0x398] sm:$0xff]  }
 0x464   : > { %v2932_v62 = vrot.slane %v2931_v40, 2  ;;  %4943 = vmatprep.mubr.bf16.mxu1 %v6490_v1 }
 0x465   : > { %v2896_v34 = vadd.f32 %v2895_v42, %v2894_v11  ;;  %v3012_v29 = vmul.f32 0.00390625, %v2972_v46  ;;  %v5912_v11 = vcombine.high %v3355_v33, %v3357_v23  ;;  %v3361_v42 = vld [vmem:[%s8423_s3 + $0xe0] sm:$0xff] }
 0x466   : > { %v2933_v26 = vadd.f32 %v2932_v62, %v2931_v40  ;;  %v3359_v40 = vld [vmem:[%s8423_s3 + $0xa0] sm:$0xff]  ;;  %v5911_v62 = vcombine.low %v3355_v33, %v3357_v23 }
 0x467   : > { %v2897_v18 = vrot.slane %v2896_v34, 1  ;;  %v3016_v45 = vpack.c.bf16 %v3012_v29, %v3012_v29  ;;  %v6424_v46 = vld [vmem:[%s8425_s5 + $0x3a0] sm:$0xff]  }
 0x468   : > { %v2934_v48 = vrot.slane %v2933_v26, 1 }
 0x469   : > { %v2898_v50 = vadd.f32 %v2897_v18, %v2896_v34  ;;  %v5916_v34 = vcombine.high %v3359_v40, %v3361_v42  ;;  %v3365_v18 = vld [vmem:[%s8423_s3 + $0x160] sm:$0xff] }
 0x46a   : > { %v2935_v4 = vadd.f32 %v2934_v48, %v2933_v26  ;;  %v3363_v26 = vld [vmem:[%s8423_s3 + $0x120] sm:$0xff]  ;;  %v5915_v48 = vcombine.low %v3359_v40, %v3361_v42  ;;  %v6425_v40 = vld [vmem:[%s8425_s5 + $0x3e8] sm:$0xff]  }
 0x46b   : > { %v3010_v55 = vmul.f32 0.00390625, %v2898_v50  ;;  %6035 = vmatmul.mubr.msk.bf16.gmra.mrb[52].mxu1 %vm335_vm3, %v6847_v54  ;;  %v5920_v49 = vcombine.high %v3363_v26, %v3365_v18  ;;  %v3367_v50 = vld [vmem:[%s8423_s3 + $0x1a0] sm:$0xff] }
 0x46c   : > { %v3011_v6 = vmul.f32 0.00390625, %v2935_v4  ;;  %4953 = vmatprep.mubr.bf16.mxu1 %v6490_v1  ;;  %v3369_v4 = vld [vmem:[%s8423_s3 + $0x1e0] sm:$0xff] }
 0x46d   : > { %v3014_v8 = vpack.c.bf16 %v3010_v55, %v3010_v55  ;;  %v5919_v55 = vcombine.low %v3363_v26, %v3365_v18  ;;  %v5923_v57 = vcombine.low %v3367_v50, %v3369_v4 }
 0x46e   : > { %v3015_v3 = vpack.c.bf16 %v3011_v6, %v3011_v6  ;;  %v5924_v6 = vcombine.high %v3367_v50, %v3369_v4  ;;  %v6427_v50 = vld [vmem:[%s8425_s5 + $0x3f0] sm:$0xff]  }
 0x470   : > { %3306 = vmatprep.mubr.bf16.mxu0 %v3015_v3 }
 0x471   : > { %3307 = vmatmul.mubr.bf16.vlgmr.msra.gmra.mrb[136].mxu0 %v3014_v8 }
 0x472   : > { %6141 = vmatpush3.bf16.msra.mxu0 %v6400_v7  ;;  %3346 = vmatprep.mubr.bf16.mxu0 %v3017_v59  ;;  %v6415_v59 = vld [vmem:[%s8425_s5 + $0x3c0] sm:$0xff]  }
 0x473   : > { %6036 = vmatmul.mubr.msk.bf16.gmra.mrb[56].mxu1 %vm335_vm3, %v6856_v9  ;;  %6142 = vmatprep.subr.bf16.mxu0 %v6401_v10 }
 0x474   : > { %4963 = vmatprep.mubr.bf16.mxu1 %v6490_v1  ;;  %6228 = vmatprep.subr.bf16.mxu1 %v6415_v59 }
 0x475   : > { %6229 = vmatpush3.bf16.msra.mxu1 %v6416_v15 }
 0x476   : > { %6143 = vmatpush3.bf16.msra.mxu0 %v6402_v14 }
 0x477   : > { %6144 = vmatprep.subr.bf16.mxu0 %v6403_v63  ;;  %v6417_v63 = vld [vmem:[%s8425_s5 + $0x3c8] sm:$0xff]  }
 0x478   : > { %6230 = vmatprep.subr.bf16.mxu1 %v6417_v63  ;;  %v6429_v63 = vld [vmem:[%s8425_s5 + $0x3f8] sm:$0xff]  }
 0x47a   : > { %6145 = vmatpush3.bf16.msra.mxu0 %v6404_v17  ;;  %v6418_v17 = vld [vmem:[%s8425_s5 + $0x388] sm:$0xff]  }
 0x47b   : > { %6037 = vmatmul.mubr.msk.bf16.gmra.mrb[60].mxu1 %vm335_vm3, %v6871_v25  ;;  %6146 = vmatprep.subr.bf16.mxu0 %v6405_v21  ;;  %v6419_v21 = vld [vmem:[%s8425_s5 + $0x3d0] sm:$0xff]  }
 0x47c   : > { %4973 = vmatprep.mubr.bf16.mxu1 %v6490_v1  ;;  %6231 = vmatpush3.bf16.msra.mxu1 %v6418_v17 }
 0x47d   : > { %6232 = vmatprep.subr.bf16.mxu1 %v6419_v21 }
 0x47e   : > { %6147 = vmatpush3.bf16.msra.mxu0 %v6406_v24  ;;  %v6420_v24 = vld [vmem:[%s8425_s5 + $0x390] sm:$0xff]  }
 0x47f   : > { %6148 = vmatprep.subr.bf16.mxu0 %v6407_v27  ;;  %v7945_v27 = vrot.slane %v4496_v20, %v7141_v43  ;;  %v6423_v43 = vld [vmem:[%s8425_s5 + $0x3e0] sm:$0xff]   ;;  %v6430_v20 = vld [vmem:[%s8425_s5 + $0x3b8] sm:$0xff]  }
 0x480   : > { %6233 = vmatpush3.bf16.msra.mxu1 %v6420_v24 }
 0x482   : > { %6149 = vmatpush3.bf16.msra.mxu0 %v6408_v38  ;;  %v6421_v38 = vld [vmem:[%s8425_s5 + $0x3d8] sm:$0xff]  }
 0x483   : > { %6038 = vmatmul.mubr.msk.bf16.gmra.mrb[64].mxu1 %vm335_vm3, %v6878_v36  ;;  %6150 = vmatprep.subr.bf16.mxu0 %v6409_v56 }
 0x484   : > { %6234 = vmatprep.subr.bf16.mxu1 %v6421_v38 }
 0x485   : > { %6235 = vmatpush3.bf16.msra.mxu1 %v6422_v31 }
 0x486   : > { %6151 = vmatpush3.bf16.msra.mxu0 %v6410_v32  ;;  %6236 = vmatprep.subr.bf16.mxu1 %v6423_v43 }
 0x487   : > { %6152 = vmatprep.subr.bf16.mxu0 %v6411_v53 }
 0x489   : > { %6237 = vmatpush3.bf16.msra.mxu1 %v6424_v46 }
 0x48a   : > { %6153 = vmatpush3.bf16.msra.mxu0 %v6412_v5  ;;  %6238 = vmatprep.subr.bf16.mxu1 %v6425_v40 }
 0x48b   : > { %6154 = vmatprep.subr.bf16.mxu0 %v6413_v22 }
 0x48e   : > { %6155 = vmatpush3.bf16.msra.mxu0 %v6414_v39 }
 0x48f   : > { %3473 = vmatprep.subr.bf16.mxu0 %v5912_v11 }
 0x491   : > { %3347 = vmatmul.mubr.bf16.vlgmr.msra.gmra.mrb[140].mxu0 %v3016_v45 }
 0x492   : > { %3474 = vmatpush1.bf16.msra.mxu0 %v5911_v62  ;;  %3505 = vmatprep.mubr.bf16.mxu0 %v6490_v1  ;;  %v6426_v62 = vld [vmem:[%s8425_s5 + $0x3a8] sm:$0xff]  }
 0x493   : > { %3475 = vmatprep.subr.bf16.mxu0 %v5916_v34  ;;  %6239 = vmatpush3.bf16.msra.mxu1 %v6426_v62 }
 0x494   : > { %6240 = vmatprep.subr.bf16.mxu1 %v6427_v50 }
 0x496   : > { %3476 = vmatpush1.bf16.msra.mxu0 %v5915_v48 }
 0x497   : > { %3477 = vmatprep.subr.bf16.mxu0 %v5920_v49 }
 0x49a   : > { %3478 = vmatpush1.bf16.msra.mxu0 %v5919_v55 }
 0x49b   : > { %3479 = vmatprep.subr.bf16.mxu0 %v5924_v6 }
 0x49e   : > { %3480 = vmatpush1.bf16.msra.mxu0 %v5923_v57  ;;  %v6428_v57 = vld [vmem:[%s8425_s5 + $0x3b0] sm:$0xff]  }
 0x49f   : > { %6241 = vmatpush3.bf16.msra.mxu1 %v6428_v57 }
 0x4a0   : > { %6242 = vmatprep.subr.bf16.mxu1 %v6429_v63 }
 0x4a1   : > { %5927 = vmatmul.mubr.msk.bf16.vlgmr.msra.gmra.mrb[144].mxu0 %vm335_vm3, %v6727_v35 }
 0x4a2   : > { %3515 = vmatprep.mubr.bf16.mxu0 %v6490_v1 }
 0x4a3   : > { %6243 = vmatpush3.bf16.msra.mxu1 %v6430_v20 }
 0x4a9   : > { %5928 = vmatmul.mubr.msk.bf16.gmra.mrb[148].mxu0 %vm335_vm3, %v6748_v58 }
 0x4aa   : > { %3525 = vmatprep.mubr.bf16.mxu0 %v6490_v1 }
 0x4b1   : > { %5929 = vmatmul.mubr.msk.bf16.gmra.mrb[152].mxu0 %vm335_vm3, %v6757_v12 }
 0x4b2   : > { %3535 = vmatprep.mubr.bf16.mxu0 %v6490_v1 }
 0x4b9   : > { %5930 = vmatmul.mubr.msk.bf16.gmra.mrb[156].mxu0 %vm335_vm3, %v6766_v28 }
 0x4ba   : > { %3545 = vmatprep.mubr.bf16.mxu0 %v6490_v1 }
 0x4c1   : > { %5931 = vmatmul.mubr.msk.bf16.gmra.mrb[160].mxu0 %vm335_vm3, %v6775_v44 }
 0x4c2   : > { %3555 = vmatprep.mubr.bf16.mxu0 %v6490_v1 }
 0x4c9   : > { %5932 = vmatmul.mubr.msk.bf16.gmra.mrb[164].mxu0 %vm335_vm3, %v6784_v60 }
 0x4ca   : > { %3565 = vmatprep.mubr.bf16.mxu0 %v6490_v1 }
 0x4ce   : > { %v6200_v3 = vpop.f32.mrb[0].mxu1 }
 0x4cf   : > { %v6201_v7 = vpop.f32.mrb[1].mxu1 }
 0x4d0   : > { %v7912_v8 = vadd.f32 %v6201_v7, %v6200_v3  ;;  %v6203_v10 = vpop.f32.mrb[2].mxu1 }
 0x4d1   : > { %5933 = vmatmul.mubr.msk.bf16.gmra.mrb[168].mxu0 %vm335_vm3, %v6793_v13  ;;  %v6204_v14 = vpop.f32.mrb[3].mxu1 }
 0x4d2   : > { %3575 = vmatprep.mubr.bf16.mxu0 %v6490_v1 }
 0x4d9   : > { %5934 = vmatmul.mubr.msk.bf16.gmra.mrb[172].mxu0 %vm335_vm3, %v6802_v30 }
 0x4da   : > { %3585 = vmatprep.mubr.bf16.mxu0 %v6490_v1 }
 0x4de   : > { %v4825_v56 = vpop.f32.mrb[4].mxu1 }
 0x4df   : > { %v4826_v32 = vadd.f32 %v4825_v56, %v7942_v16  ;;  %v4827_v52 = vpop.f32.mrb[5].mxu1 }
 0x4e0   : > { %v4828_v41 = vadd.f32 %v4827_v52, %v7945_v27  ;;  %v4829_v53 = vpop.f32.mrb[6].mxu1 }
 0x4e1   : > { %5935 = vmatmul.mubr.msk.bf16.gmra.mrb[176].mxu0 %vm335_vm3, %v6811_v47  ;;  %v4830_v5 = vadd.f32 %v4829_v53, %v7942_v16  ;;  %v4831_v22 = vpop.f32.mrb[7].mxu1  ;;  %v4986_v23 = vmax.f32 %v4826_v32, 0.0 }
 0x4e2   : > { %v4832_v33 = vadd.f32 %v4831_v22, %v7945_v27  ;;  %3595 = vmatprep.mubr.bf16.mxu0 %v6490_v1  ;;  %v4987_v29 = vmax.f32 %v4828_v41, 0.0 }
 0x4e3   : > { %v4990_v39 = vmax.f32 %v4830_v5, 0.0 }
 0x4e4   : > { %v4991_v11 = vmax.f32 %v4832_v33, 0.0 }
 0x4e5   : > { %v5186_v42 = vadd.f32 %v4990_v39, %v4986_v23 }
 0x4e6   : > { %v5223_v45 = vadd.f32 %v4991_v11, %v4987_v29  ;;  %v4835_v34 = vpop.f32.mrb[8].mxu1 }
 0x4e7   : > { %v4836_v26 = vadd.f32 %v4835_v34, %v7942_v16  ;;  %v4837_v18 = vpop.f32.mrb[9].mxu1 }
 0x4e8   : > { %v4838_v48 = vadd.f32 %v4837_v18, %v7945_v27  ;;  %v4839_v49 = vpop.f32.mrb[10].mxu1 }
 0x4e9   : > { %v4994_v4 = vmax.f32 %v4836_v26, 0.0  ;;  %5936 = vmatmul.mubr.msk.bf16.gmra.mrb[180].mxu0 %vm335_vm3, %v6820_v0  ;;  %v4840_v55 = vadd.f32 %v4839_v49, %v7942_v16  ;;  %v4841_v6 = vpop.f32.mrb[11].mxu1 }
 0x4ea   : > { %v4995_v3 = vmax.f32 %v4838_v48, 0.0  ;;  %v4842_v7 = vadd.f32 %v4841_v6, %v7945_v27  ;;  %3605 = vmatprep.mubr.bf16.mxu0 %v6490_v1 }
 0x4eb   : > { %v5187_v10 = vadd.f32 %v5186_v42, %v4994_v4  ;;  %v4998_v59 = vmax.f32 %v4840_v55, 0.0 }
 0x4ec   : > { %v5224_v14 = vadd.f32 %v5223_v45, %v4995_v3  ;;  %v4999_v15 = vmax.f32 %v4842_v7, 0.0 }
 0x4ed   : > { %v5188_v17 = vadd.f32 %v5187_v10, %v4998_v59 }
 0x4ee   : > { %v5225_v21 = vadd.f32 %v5224_v14, %v4999_v15  ;;  %v4845_v24 = vpop.f32.mrb[12].mxu1 }
 0x4ef   : > { %v4846_v38 = vadd.f32 %v4845_v24, %v7942_v16  ;;  %v4847_v31 = vpop.f32.mrb[13].mxu1 }
 0x4f0   : > { %v4848_v56 = vadd.f32 %v4847_v31, %v7945_v27  ;;  %v4849_v32 = vpop.f32.mrb[14].mxu1 }
 0x4f1   : > { %v5002_v52 = vmax.f32 %v4846_v38, 0.0  ;;  %5937 = vmatmul.mubr.msk.bf16.gmra.mrb[184].mxu0 %vm335_vm3, %v6829_v19  ;;  %v4850_v41 = vadd.f32 %v4849_v32, %v7942_v16  ;;  %v4851_v53 = vpop.f32.mrb[15].mxu1 }
 0x4f2   : > { %v5003_v43 = vmax.f32 %v4848_v56, 0.0  ;;  %v4852_v5 = vadd.f32 %v4851_v53, %v7945_v27  ;;  %3615 = vmatprep.mubr.bf16.mxu0 %v6490_v1 }
 0x4f3   : > { %v5189_v22 = vadd.f32 %v5188_v17, %v5002_v52  ;;  %v5006_v46 = vmax.f32 %v4850_v41, 0.0 }
 0x4f4   : > { %v5226_v33 = vadd.f32 %v5225_v21, %v5003_v43  ;;  %v5007_v23 = vmax.f32 %v4852_v5, 0.0 }
 0x4f5   : > { %v5190_v39 = vadd.f32 %v5189_v22, %v5006_v46 }
 0x4f6   : > { %v5227_v29 = vadd.f32 %v5226_v33, %v5007_v23  ;;  %v4855_v11 = vpop.f32.mrb[16].mxu1 }
 0x4f7   : > { %v4856_v40 = vadd.f32 %v4855_v11, %v7942_v16  ;;  %v4857_v42 = vpop.f32.mrb[17].mxu1 }
 0x4f8   : > { %v4858_v62 = vadd.f32 %v4857_v42, %v7945_v27  ;;  %v4859_v45 = vpop.f32.mrb[18].mxu1 }
 0x4f9   : > { %v5010_v34 = vmax.f32 %v4856_v40, 0.0  ;;  %5938 = vmatmul.mubr.msk.bf16.gmra.mrb[188].mxu0 %vm335_vm3, %v6838_v37  ;;  %v4860_v26 = vadd.f32 %v4859_v45, %v7942_v16  ;;  %v4861_v18 = vpop.f32.mrb[19].mxu1 }
 0x4fa   : > { %v5011_v48 = vmax.f32 %v4858_v62, 0.0  ;;  %v4862_v49 = vadd.f32 %v4861_v18, %v7945_v27  ;;  %3625 = vmatprep.mubr.bf16.mxu0 %v6490_v1  ;;  %v6431_v62 = vld [vmem:[%s8425_s5 + $0x240] sm:$0xff]  }
 0x4fb   : > { %v5191_v50 = vadd.f32 %v5190_v39, %v5010_v34  ;;  %v5014_v4 = vmax.f32 %v4860_v26, 0.0  ;;  %v6432_v26 = vld [vmem:[%s8425_s5 + $0x200] sm:$0xff]   ;;  %6162 = vmatprep.subr.bf16.mxu0 %v6431_v62 }
 0x4fc   : > { %v5228_v55 = vadd.f32 %v5227_v29, %v5011_v48  ;;  %v5015_v6 = vmax.f32 %v4862_v49, 0.0  ;;  %6163 = vmatpush3.bf16.msra.mxu0 %v6432_v26 }
 0x4fd   : > { %v5192_v57 = vadd.f32 %v5191_v50, %v5014_v4 }
 0x4fe   : > { %v5229_v3 = vadd.f32 %v5228_v55, %v5015_v6  ;;  %v4865_v7 = vpop.f32.mrb[20].mxu1 }
 0x4ff   : > { %v4866_v10 = vadd.f32 %v4865_v7, %v7942_v16  ;;  %v4867_v59 = vpop.f32.mrb[21].mxu1 }
 0x500   : > { %v4868_v14 = vadd.f32 %v4867_v59, %v7945_v27  ;;  %v4869_v15 = vpop.f32.mrb[22].mxu1 }
 0x501   : > { %v5018_v63 = vmax.f32 %v4866_v10, 0.0  ;;  %5939 = vmatmul.mubr.msk.bf16.gmra.mrb[192].mxu0 %vm335_vm3, %v6847_v54  ;;  %v4870_v17 = vadd.f32 %v4869_v15, %v7942_v16  ;;  %v4871_v20 = vpop.f32.mrb[23].mxu1 }
 0x502   : > { %v5019_v21 = vmax.f32 %v4868_v14, 0.0  ;;  %v4872_v24 = vadd.f32 %v4871_v20, %v7945_v27  ;;  %3635 = vmatprep.mubr.bf16.mxu0 %v6490_v1 }
 0x503   : > { %v5193_v38 = vadd.f32 %v5192_v57, %v5018_v63  ;;  %v5022_v31 = vmax.f32 %v4870_v17, 0.0 }
 0x504   : > { %v5230_v56 = vadd.f32 %v5229_v3, %v5019_v21  ;;  %v5023_v32 = vmax.f32 %v4872_v24, 0.0 }
 0x505   : > { %v5194_v52 = vadd.f32 %v5193_v38, %v5022_v31 }
 0x506   : > { %v5231_v41 = vadd.f32 %v5230_v56, %v5023_v32  ;;  %v4875_v53 = vpop.f32.mrb[24].mxu1 }
 0x507   : > { %v4876_v43 = vadd.f32 %v4875_v53, %v7942_v16  ;;  %v4877_v5 = vpop.f32.mrb[25].mxu1 }
 0x508   : > { %v4878_v22 = vadd.f32 %v4877_v5, %v7945_v27  ;;  %v4879_v46 = vpop.f32.mrb[26].mxu1 }
 0x509   : > { %v5026_v33 = vmax.f32 %v4876_v43, 0.0  ;;  %5940 = vmatmul.mubr.msk.bf16.gmra.mrb[196].mxu0 %vm335_vm3, %v6856_v9  ;;  %v4880_v23 = vadd.f32 %v4879_v46, %v7942_v16  ;;  %v4881_v39 = vpop.f32.mrb[27].mxu1 }
 0x50a   : > { %v5027_v29 = vmax.f32 %v4878_v22, 0.0  ;;  %v4882_v11 = vadd.f32 %v4881_v39, %v7945_v27  ;;  %3645 = vmatprep.mubr.bf16.mxu0 %v6490_v1 }
 0x50b   : > { %v5195_v40 = vadd.f32 %v5194_v52, %v5026_v33  ;;  %v5030_v42 = vmax.f32 %v4880_v23, 0.0  ;;  %v6433_v33 = vld [vmem:[%s8425_s5 + $0x248] sm:$0xff]  }
 0x50c   : > { %v5232_v45 = vadd.f32 %v5231_v41, %v5027_v29  ;;  %v5031_v34 = vmax.f32 %v4882_v11, 0.0  ;;  %v6434_v29 = vld [vmem:[%s8425_s5 + $0x208] sm:$0xff]   ;;  %6164 = vmatprep.subr.bf16.mxu0 %v6433_v33 }
 0x50d   : > { %v5196_v18 = vadd.f32 %v5195_v40, %v5030_v42  ;;  %6165 = vmatpush3.bf16.msra.mxu0 %v6434_v29 }
 0x50e   : > { %v5233_v48 = vadd.f32 %v5232_v45, %v5031_v34  ;;  %v4885_v49 = vpop.f32.mrb[28].mxu1 }
 0x50f   : > { %v4886_v50 = vadd.f32 %v4885_v49, %v7942_v16  ;;  %v4887_v4 = vpop.f32.mrb[29].mxu1 }
 0x510   : > { %v4888_v55 = vadd.f32 %v4887_v4, %v7945_v27  ;;  %v4889_v6 = vpop.f32.mrb[30].mxu1 }
 0x511   : > { %v5034_v57 = vmax.f32 %v4886_v50, 0.0  ;;  %5941 = vmatmul.mubr.msk.bf16.gmra.mrb[200].mxu0 %vm335_vm3, %v6871_v25  ;;  %v4890_v3 = vadd.f32 %v4889_v6, %v7942_v16  ;;  %v4891_v7 = vpop.f32.mrb[31].mxu1 }
 0x512   : > { %v5035_v10 = vmax.f32 %v4888_v55, 0.0  ;;  %v4892_v59 = vadd.f32 %v4891_v7, %v7945_v27  ;;  %3655 = vmatprep.mubr.bf16.mxu0 %v6490_v1 }
 0x513   : > { %v5197_v14 = vadd.f32 %v5196_v18, %v5034_v57  ;;  %v5038_v15 = vmax.f32 %v4890_v3, 0.0 }
 0x514   : > { %v5234_v63 = vadd.f32 %v5233_v48, %v5035_v10  ;;  %v5039_v17 = vmax.f32 %v4892_v59, 0.0 }
 0x515   : > { %v5198_v20 = vadd.f32 %v5197_v14, %v5038_v15 }
 0x516   : > { %v5235_v21 = vadd.f32 %v5234_v63, %v5039_v17  ;;  %v4895_v24 = vpop.f32.mrb[32].mxu1 }
 0x517   : > { %v4896_v38 = vadd.f32 %v4895_v24, %v7942_v16  ;;  %v4897_v31 = vpop.f32.mrb[33].mxu1 }
 0x518   : > { %v4898_v56 = vadd.f32 %v4897_v31, %v7945_v27  ;;  %v4899_v32 = vpop.f32.mrb[34].mxu1 }
 0x519   : > { %v5042_v52 = vmax.f32 %v4896_v38, 0.0  ;;  %5942 = vmatmul.mubr.msk.bf16.gmra.mrb[204].mxu0 %vm335_vm3, %v6878_v36  ;;  %v4900_v41 = vadd.f32 %v4899_v32, %v7942_v16  ;;  %v4901_v53 = vpop.f32.mrb[35].mxu1 }
 0x51a   : > { %v5043_v43 = vmax.f32 %v4898_v56, 0.0  ;;  %v4902_v5 = vadd.f32 %v4901_v53, %v7945_v27 }
 0x51b   : > { %v5199_v22 = vadd.f32 %v5198_v20, %v5042_v52  ;;  %v5046_v46 = vmax.f32 %v4900_v41, 0.0  ;;  %v6435_v52 = vld [vmem:[%s8425_s5 + $0x250] sm:$0xff]  }
 0x51c   : > { %v5236_v23 = vadd.f32 %v5235_v21, %v5043_v43  ;;  %v5047_v39 = vmax.f32 %v4902_v5, 0.0  ;;  %v6436_v43 = vld [vmem:[%s8425_s5 + $0x210] sm:$0xff]   ;;  %6166 = vmatprep.subr.bf16.mxu0 %v6435_v52 }
 0x51d   : > { %v5200_v11 = vadd.f32 %v5199_v22, %v5046_v46  ;;  %6167 = vmatpush3.bf16.msra.mxu0 %v6436_v43 }
 0x51e   : > { %v5237_v40 = vadd.f32 %v5236_v23, %v5047_v39  ;;  %v4905_v42 = vpop.f32.mrb[36].mxu1 }
 0x51f   : > { %v4906_v62 = vadd.f32 %v4905_v42, %v7942_v16  ;;  %v4907_v45 = vpop.f32.mrb[37].mxu1 }
 0x520   : > { %v4908_v34 = vadd.f32 %v4907_v45, %v7945_v27  ;;  %v4909_v26 = vpop.f32.mrb[38].mxu1 }
 0x521   : > { %v5050_v18 = vmax.f32 %v4906_v62, 0.0  ;;  %v4910_v48 = vadd.f32 %v4909_v26, %v7942_v16  ;;  %v4911_v49 = vpop.f32.mrb[39].mxu1 }
 0x522   : > { %v5051_v50 = vmax.f32 %v4908_v34, 0.0  ;;  %v4912_v4 = vadd.f32 %v4911_v49, %v7945_v27 }
 0x523   : > { %v5201_v55 = vadd.f32 %v5200_v11, %v5050_v18  ;;  %v5054_v6 = vmax.f32 %v4910_v48, 0.0 }
 0x524   : > { %v5238_v57 = vadd.f32 %v5237_v40, %v5051_v50  ;;  %v5055_v3 = vmax.f32 %v4912_v4, 0.0 }
 0x525   : > { %v5202_v7 = vadd.f32 %v5201_v55, %v5054_v6 }
 0x526   : > { %v5239_v10 = vadd.f32 %v5238_v57, %v5055_v3  ;;  %v4915_v59 = vpop.f32.mrb[40].mxu1 }
 0x527   : > { %v4916_v14 = vadd.f32 %v4915_v59, %v7942_v16  ;;  %v4917_v15 = vpop.f32.mrb[41].mxu1 }
 0x528   : > { %v4918_v63 = vadd.f32 %v4917_v15, %v7945_v27  ;;  %v4919_v17 = vpop.f32.mrb[42].mxu1 }
 0x529   : > { %v5058_v20 = vmax.f32 %v4916_v14, 0.0  ;;  %v4920_v21 = vadd.f32 %v4919_v17, %v7942_v16  ;;  %v4921_v24 = vpop.f32.mrb[43].mxu1 }
 0x52a   : > { %v5059_v38 = vmax.f32 %v4918_v63, 0.0  ;;  %v4922_v31 = vadd.f32 %v4921_v24, %v7945_v27 }
 0x52b   : > { %v5203_v56 = vadd.f32 %v5202_v7, %v5058_v20  ;;  %v5062_v32 = vmax.f32 %v4920_v21, 0.0  ;;  %v6437_v20 = vld [vmem:[%s8425_s5 + $0x258] sm:$0xff]  }
 0x52c   : > { %v5240_v41 = vadd.f32 %v5239_v10, %v5059_v38  ;;  %v5063_v53 = vmax.f32 %v4922_v31, 0.0  ;;  %v6438_v38 = vld [vmem:[%s8425_s5 + $0x218] sm:$0xff]   ;;  %6168 = vmatprep.subr.bf16.mxu0 %v6437_v20 }
 0x52d   : > { %v5204_v5 = vadd.f32 %v5203_v56, %v5062_v32  ;;  %6169 = vmatpush3.bf16.msra.mxu0 %v6438_v38 }
 0x52e   : > { %v5241_v22 = vadd.f32 %v5240_v41, %v5063_v53  ;;  %v4925_v46 = vpop.f32.mrb[44].mxu1 }
 0x52f   : > { %v4926_v33 = vadd.f32 %v4925_v46, %v7942_v16  ;;  %v4927_v23 = vpop.f32.mrb[45].mxu1 }
 0x530   : > { %v4928_v39 = vadd.f32 %v4927_v23, %v7945_v27  ;;  %v4929_v29 = vpop.f32.mrb[46].mxu1 }
 0x531   : > { %v5066_v11 = vmax.f32 %v4926_v33, 0.0  ;;  %v4930_v40 = vadd.f32 %v4929_v29, %v7942_v16  ;;  %v4931_v42 = vpop.f32.mrb[47].mxu1 }
 0x532   : > { %v5067_v62 = vmax.f32 %v4928_v39, 0.0  ;;  %v4932_v45 = vadd.f32 %v4931_v42, %v7945_v27 }
 0x533   : > { %v5205_v34 = vadd.f32 %v5204_v5, %v5066_v11  ;;  %v5070_v26 = vmax.f32 %v4930_v40, 0.0 }
 0x534   : > { %v5242_v18 = vadd.f32 %v5241_v22, %v5067_v62  ;;  %v5071_v48 = vmax.f32 %v4932_v45, 0.0 }
 0x535   : > { %v5206_v49 = vadd.f32 %v5205_v34, %v5070_v26 }
 0x536   : > { %v5243_v50 = vadd.f32 %v5242_v18, %v5071_v48  ;;  %v4935_v4 = vpop.f32.mrb[48].mxu1 }
 0x537   : > { %v4936_v55 = vadd.f32 %v4935_v4, %v7942_v16  ;;  %v4937_v6 = vpop.f32.mrb[49].mxu1 }
 0x538   : > { %v4938_v57 = vadd.f32 %v4937_v6, %v7945_v27  ;;  %v4939_v3 = vpop.f32.mrb[50].mxu1 }
 0x539   : > { %v5074_v7 = vmax.f32 %v4936_v55, 0.0  ;;  %v4940_v10 = vadd.f32 %v4939_v3, %v7942_v16  ;;  %v4941_v59 = vpop.f32.mrb[51].mxu1 }
 0x53a   : > { %v5075_v14 = vmax.f32 %v4938_v57, 0.0  ;;  %v4942_v15 = vadd.f32 %v4941_v59, %v7945_v27 }
 0x53b   : > { %v5207_v63 = vadd.f32 %v5206_v49, %v5074_v7  ;;  %v5078_v17 = vmax.f32 %v4940_v10, 0.0 }
 0x53c   : > { %v5244_v21 = vadd.f32 %v5243_v50, %v5075_v14  ;;  %v5079_v24 = vmax.f32 %v4942_v15, 0.0 }
 0x53d   : > { %v5208_v31 = vadd.f32 %v5207_v63, %v5078_v17  ;;  %v6439_v63 = vld [vmem:[%s8425_s5 + $0x260] sm:$0xff]  }
 0x53e   : > { %v5245_v56 = vadd.f32 %v5244_v21, %v5079_v24  ;;  %v4945_v32 = vpop.f32.mrb[52].mxu1  ;;  %v6440_v21 = vld [vmem:[%s8425_s5 + $0x220] sm:$0xff]   ;;  %6170 = vmatprep.subr.bf16.mxu0 %v6439_v63 }
 0x53f   : > { %v4946_v52 = vadd.f32 %v4945_v32, %v7942_v16  ;;  %v4947_v41 = vpop.f32.mrb[53].mxu1  ;;  %6171 = vmatpush3.bf16.msra.mxu0 %v6440_v21 }
 0x540   : > { %v4948_v53 = vadd.f32 %v4947_v41, %v7945_v27  ;;  %v4949_v43 = vpop.f32.mrb[54].mxu1 }
 0x541   : > { %v5082_v5 = vmax.f32 %v4946_v52, 0.0  ;;  %v4950_v22 = vadd.f32 %v4949_v43, %v7942_v16  ;;  %v4951_v46 = vpop.f32.mrb[55].mxu1 }
 0x542   : > { %v5083_v33 = vmax.f32 %v4948_v53, 0.0  ;;  %v4952_v23 = vadd.f32 %v4951_v46, %v7945_v27 }
 0x543   : > { %v5209_v39 = vadd.f32 %v5208_v31, %v5082_v5  ;;  %v5086_v29 = vmax.f32 %v4950_v22, 0.0 }
 0x544   : > { %v5246_v11 = vadd.f32 %v5245_v56, %v5083_v33  ;;  %v5087_v40 = vmax.f32 %v4952_v23, 0.0  ;;  %v6134_v42 = vpop.f32.mrb[136].mxu0 }
 0x545   : > { %v5210_v62 = vadd.f32 %v5209_v39, %v5086_v29  ;;  %v6135_v45 = vpop.f32.mrb[137].mxu0 }
 0x546   : > { %v5247_v34 = vadd.f32 %v5246_v11, %v5087_v40  ;;  %v8076_v26 = vadd.f32 %v6135_v45, %v6134_v42  ;;  %v6137_v18 = vpop.f32.mrb[138].mxu0  ;;  %v4955_v48 = vpop.f32.mrb[56].mxu1 }
 0x547   : > { %v4956_v49 = vadd.f32 %v4955_v48, %v7942_v16  ;;  %v6138_v50 = vpop.f32.mrb[139].mxu0  ;;  %v4957_v4 = vpop.f32.mrb[57].mxu1 }
 0x548   : > { %v4958_v55 = vadd.f32 %v4957_v4, %v7945_v27  ;;  %v4959_v6 = vpop.f32.mrb[58].mxu1 }
 0x549   : > { %v5090_v57 = vmax.f32 %v4956_v49, 0.0  ;;  %v4960_v3 = vadd.f32 %v4959_v6, %v7942_v16  ;;  %v4961_v7 = vpop.f32.mrb[59].mxu1 }
 0x54a   : > { %v5091_v10 = vmax.f32 %v4958_v55, 0.0  ;;  %v4962_v59 = vadd.f32 %v4961_v7, %v7945_v27 }
 0x54b   : > { %v5211_v14 = vadd.f32 %v5210_v62, %v5090_v57  ;;  %v5094_v15 = vmax.f32 %v4960_v3, 0.0  ;;  %v6441_v3 = vld [vmem:[%s8425_s5 + $0x268] sm:$0xff]  }
 0x54c   : > { %v5248_v17 = vadd.f32 %v5247_v34, %v5091_v10  ;;  %v5095_v20 = vmax.f32 %v4962_v59, 0.0  ;;  %v6442_v59 = vld [vmem:[%s8425_s5 + $0x228] sm:$0xff]   ;;  %6172 = vmatprep.subr.bf16.mxu0 %v6441_v3 }
 0x54d   : > { %v5212_v24 = vadd.f32 %v5211_v14, %v5094_v15  ;;  %6173 = vmatpush3.bf16.msra.mxu0 %v6442_v59 }
 0x54e   : > { %v5249_v38 = vadd.f32 %v5248_v17, %v5095_v20  ;;  %v4965_v31 = vpop.f32.mrb[60].mxu1 }
 0x54f   : > { %v4966_v56 = vadd.f32 %v4965_v31, %v7942_v16  ;;  %v4967_v32 = vpop.f32.mrb[61].mxu1 }
 0x550   : > { %v4968_v52 = vadd.f32 %v4967_v32, %v7945_v27  ;;  %v4969_v41 = vpop.f32.mrb[62].mxu1 }
 0x551   : > { %v5098_v53 = vmax.f32 %v4966_v56, 0.0  ;;  %v4970_v43 = vadd.f32 %v4969_v41, %v7942_v16  ;;  %v4971_v5 = vpop.f32.mrb[63].mxu1 }
 0x552   : > { %v5099_v22 = vmax.f32 %v4968_v52, 0.0  ;;  %v4972_v46 = vadd.f32 %v4971_v5, %v7945_v27 }
 0x553   : > { %v5213_v33 = vadd.f32 %v5212_v24, %v5098_v53  ;;  %v5102_v23 = vmax.f32 %v4970_v43, 0.0 }
 0x554   : > { %v5250_v39 = vadd.f32 %v5249_v38, %v5099_v22  ;;  %v5103_v29 = vmax.f32 %v4972_v46, 0.0  ;;  %v1056_v38 = vld [vmem:[%s8426_s6] sm:$0x1] }
 0x555   : > { %v5214_v11 = vadd.f32 %v5213_v33, %v5102_v23  ;;  %v2229_v5 = vadd.f32 %v7650_v51, %v1056_v38 }
 0x556   : > { %v5251_v40 = vadd.f32 %v5250_v39, %v5103_v29  ;;  %v4975_v42 = vpop.f32.mrb[64].mxu1 }
 0x557   : > { %v4976_v62 = vadd.f32 %v4975_v42, %v7942_v16  ;;  %v4977_v45 = vpop.f32.mrb[65].mxu1  ;;  %v6444_v42 = vld [vmem:[%s8425_s5 + $0x230] sm:$0xff]  }
 0x558   : > { %v4978_v34 = vadd.f32 %v4977_v45, %v7945_v27  ;;  %v4979_v18 = vpop.f32.mrb[66].mxu1 }
 0x559   : > { %v5106_v48 = vmax.f32 %v4976_v62, 0.0  ;;  %v4980_v49 = vadd.f32 %v4979_v18, %v7942_v16  ;;  %v4981_v50 = vpop.f32.mrb[67].mxu1 }
 0x55a   : > { %v5107_v4 = vmax.f32 %v4978_v34, 0.0  ;;  %v4982_v55 = vadd.f32 %v4981_v50, %v7945_v27 }
 0x55b   : > { %v5215_v6 = vadd.f32 %v5214_v11, %v5106_v48  ;;  %v5110_v57 = vmax.f32 %v4980_v49, 0.0  ;;  %v6443_v11 = vld [vmem:[%s8425_s5 + $0x270] sm:$0xff]  }
 0x55c   : > { %v5252_v7 = vadd.f32 %v5251_v40, %v5107_v4  ;;  %v5111_v10 = vmax.f32 %v4982_v55, 0.0  ;;  %6174 = vmatprep.subr.bf16.mxu0 %v6443_v11 }
 0x55d   : > { %v5216_v14 = vadd.f32 %v5215_v6, %v5110_v57  ;;  %6175 = vmatpush3.bf16.msra.mxu0 %v6444_v42 }
 0x55e   : > { %v5253_v15 = vadd.f32 %v5252_v7, %v5111_v10 }
 0x55f   : > { %v5217_v16 = vrot.slane %v5216_v14, 4 }
 0x560   : > { %v5254_v63 = vrot.slane %v5253_v15, 4 }
 0x561   : > { %v5218_v17 = vadd.f32 %v5217_v16, %v5216_v14 }
 0x562   : > { %v5255_v27 = vadd.f32 %v5254_v63, %v5253_v15 }
 0x563   : > { %v5219_v20 = vrot.slane %v5218_v17, 2 }
 0x564   : > { %v5256_v21 = vrot.slane %v5255_v27, 2  ;;  %v6156_v24 = vpop.f32.mrb[140].mxu0 }
 0x565   : > { %v5220_v31 = vadd.f32 %v5219_v20, %v5218_v17  ;;  %v6157_v56 = vpop.f32.mrb[141].mxu0 }
 0x566   : > { %v6158_v32 = vadd.f32 %v6157_v56, %v6156_v24  ;;  %v6159_v52 = vpop.f32.mrb[142].mxu0  ;;  %v5257_v41 = vadd.f32 %v5256_v21, %v5255_v27 }
 0x567   : > { %v5221_v53 = vrot.slane %v5220_v31, 1  ;;  %v6160_v43 = vpop.f32.mrb[143].mxu0 }
 0x568   : > { %v3349_v22 = vadd.f32 %v6158_v32, %v8076_v26  ;;  %v5258_v46 = vrot.slane %v5257_v41, 1  ;;  %v6464_v26 = vld [vmem:[%s8424_s4 + $0x8] sm:$0xf]  ;;  %v6445_v32 = vld [vmem:[%s8425_s5 + $0x278] sm:$0xff]  }
 0x569   : > { %v5222_v33 = vadd.f32 %v5221_v53, %v5220_v31  ;;  %v8119_v45 = vrot.slane %v6464_v26, %v6946_v61  ;;  %v8122_v34 = vrot.slane %v6464_v26, %v6957_v2  ;;  %v6446_v53 = vld [vmem:[%s8425_s5 + $0x238] sm:$0xff]   ;;  %6176 = vmatprep.subr.bf16.mxu0 %v6445_v32 }
 0x56a   : > { %v8107_v23 = vadd.f32 %v3349_v22, %v2229_v5  ;;  %v5259_v39 = vadd.f32 %v5258_v46, %v5257_v41  ;;  %6177 = vmatpush3.bf16.msra.mxu0 %v6446_v53  ;;  %v8141_v46 = vld [vmem:[%s8423_s3 + $0x30] sm:$0xff] }
 0x56b   : > { %v5262_v29 = vmul.f32 0.00390625, %v5222_v33  ;;  %v8146_v33 = vld [vmem:[%s8423_s3 + $0x70] sm:$0xff] }
 0x56c   : > { %v5263_v40 = vmul.f32 0.00390625, %v5259_v39  ;;  %v5992_v11 = vcombine.high %v8141_v46, %v8146_v33 }
 0x56d   : > { %v5266_v51 = vpack.c.bf16 %v5262_v29, %v5262_v29 }
 0x56e   : > { %v5267_v62 = vpack.c.bf16 %v5263_v40, %v5263_v40  ;;  %4598 = vmatprep.subr.bf16.mxu0 %v5992_v11 }
 0x570   : > { %5596 = vmatprep.mubr.bf16.mxu1 %v5267_v62  ;;  %v5991_v62 = vcombine.low %v8141_v46, %v8146_v33 }
 0x571   : > { %5597 = vmatmul.mubr.bf16.vlgmr.msra.gmra.mrb[68].mxu1 %v5266_v51 }
 0x574   : > { %v3507_v18 = vpop.f32.mrb[144].mxu0 }
 0x575   : > { %v3508_v48 = vadd.f32 %v3507_v18, %v8119_v45  ;;  %v3509_v49 = vpop.f32.mrb[145].mxu0 }
 0x576   : > { %v3510_v50 = vadd.f32 %v3509_v49, %v8122_v34  ;;  %v3511_v4 = vpop.f32.mrb[146].mxu0 }
 0x577   : > { %v3512_v55 = vadd.f32 %v3511_v4, %v8119_v45  ;;  %v3513_v6 = vpop.f32.mrb[147].mxu0  ;;  %v3859_v3 = vmax.f32 %v3508_v48, 0.0 }
 0x578   : > { %v3514_v57 = vadd.f32 %v3513_v6, %v8122_v34  ;;  %v3860_v10 = vmax.f32 %v3510_v50, 0.0 }
 0x579   : > { %v3863_v7 = vmax.f32 %v3512_v55, 0.0 }
 0x57a   : > { %v3864_v59 = vmax.f32 %v3514_v57, 0.0 }
 0x57b   : > { %v3987_v14 = vadd.f32 %v3863_v7, %v3859_v3 }
 0x57c   : > { %v4024_v15 = vadd.f32 %v3864_v59, %v3860_v10  ;;  %v3517_v16 = vpop.f32.mrb[148].mxu0 }
 0x57d   : > { %v3518_v63 = vadd.f32 %v3517_v16, %v8119_v45  ;;  %v3519_v17 = vpop.f32.mrb[149].mxu0 }
 0x57e   : > { %v3520_v27 = vadd.f32 %v3519_v17, %v8122_v34  ;;  %v3521_v20 = vpop.f32.mrb[150].mxu0 }
 0x57f   : > { %v3867_v21 = vmax.f32 %v3518_v63, 0.0  ;;  %v3522_v24 = vadd.f32 %v3521_v20, %v8119_v45  ;;  %v3523_v38 = vpop.f32.mrb[151].mxu0 }
 0x580   : > { %v3868_v31 = vmax.f32 %v3520_v27, 0.0  ;;  %v3524_v56 = vadd.f32 %v3523_v38, %v8122_v34 }
 0x581   : > { %v3988_v52 = vadd.f32 %v3987_v14, %v3867_v21  ;;  %v3871_v41 = vmax.f32 %v3522_v24, 0.0 }
 0x582   : > { %v4025_v43 = vadd.f32 %v4024_v15, %v3868_v31  ;;  %v3872_v5 = vmax.f32 %v3524_v56, 0.0 }
 0x583   : > { %v3989_v22 = vadd.f32 %v3988_v52, %v3871_v41 }
 0x584   : > { %v4026_v39 = vadd.f32 %v4025_v43, %v3872_v5  ;;  %v3527_v29 = vpop.f32.mrb[152].mxu0 }
 0x585   : > { %v3528_v40 = vadd.f32 %v3527_v29, %v8119_v45  ;;  %v3529_v42 = vpop.f32.mrb[153].mxu0 }
 0x586   : > { %v3530_v51 = vadd.f32 %v3529_v42, %v8122_v34  ;;  %v3531_v26 = vpop.f32.mrb[154].mxu0 }
 0x587   : > { %v3875_v18 = vmax.f32 %v3528_v40, 0.0  ;;  %v3532_v48 = vadd.f32 %v3531_v26, %v8119_v45  ;;  %v3533_v49 = vpop.f32.mrb[155].mxu0 }
 0x588   : > { %v3876_v50 = vmax.f32 %v3530_v51, 0.0  ;;  %v3534_v4 = vadd.f32 %v3533_v49, %v8122_v34 }
 0x589   : > { %v3990_v55 = vadd.f32 %v3989_v22, %v3875_v18  ;;  %v3879_v6 = vmax.f32 %v3532_v48, 0.0 }
 0x58a   : > { %v4027_v57 = vadd.f32 %v4026_v39, %v3876_v50  ;;  %v3880_v3 = vmax.f32 %v3534_v4, 0.0 }
 0x58b   : > { %v3991_v7 = vadd.f32 %v3990_v55, %v3879_v6 }
 0x58c   : > { %v4028_v10 = vadd.f32 %v4027_v57, %v3880_v3  ;;  %v3537_v59 = vpop.f32.mrb[156].mxu0 }
 0x58d   : > { %v3538_v14 = vadd.f32 %v3537_v59, %v8119_v45  ;;  %v3539_v15 = vpop.f32.mrb[157].mxu0 }
 0x58e   : > { %v3540_v16 = vadd.f32 %v3539_v15, %v8122_v34  ;;  %v3541_v63 = vpop.f32.mrb[158].mxu0 }
 0x58f   : > { %v3883_v17 = vmax.f32 %v3538_v14, 0.0  ;;  %v3542_v27 = vadd.f32 %v3541_v63, %v8119_v45  ;;  %v3543_v20 = vpop.f32.mrb[159].mxu0 }
 0x590   : > { %v3884_v21 = vmax.f32 %v3540_v16, 0.0  ;;  %v3544_v24 = vadd.f32 %v3543_v20, %v8122_v34 }
 0x591   : > { %v3992_v38 = vadd.f32 %v3991_v7, %v3883_v17  ;;  %v3887_v31 = vmax.f32 %v3542_v27, 0.0 }
 0x592   : > { %v4029_v56 = vadd.f32 %v4028_v10, %v3884_v21  ;;  %v3888_v32 = vmax.f32 %v3544_v24, 0.0 }
 0x593   : > { %v3993_v52 = vadd.f32 %v3992_v38, %v3887_v31 }
 0x594   : > { %v4030_v41 = vadd.f32 %v4029_v56, %v3888_v32  ;;  %v3547_v53 = vpop.f32.mrb[160].mxu0 }
 0x595   : > { %v3548_v43 = vadd.f32 %v3547_v53, %v8119_v45  ;;  %v3549_v5 = vpop.f32.mrb[161].mxu0 }
 0x596   : > { %v3550_v22 = vadd.f32 %v3549_v5, %v8122_v34  ;;  %v3551_v39 = vpop.f32.mrb[162].mxu0 }
 0x597   : > { %v3891_v29 = vmax.f32 %v3548_v43, 0.0  ;;  %v3552_v11 = vadd.f32 %v3551_v39, %v8119_v45  ;;  %v3553_v40 = vpop.f32.mrb[163].mxu0 }
 0x598   : > { %v3892_v42 = vmax.f32 %v3550_v22, 0.0  ;;  %v3554_v51 = vadd.f32 %v3553_v40, %v8122_v34 }
 0x599   : > { %v3994_v26 = vadd.f32 %v3993_v52, %v3891_v29  ;;  %v3895_v18 = vmax.f32 %v3552_v11, 0.0 }
 0x59a   : > { %v4031_v48 = vadd.f32 %v4030_v41, %v3892_v42  ;;  %v3896_v49 = vmax.f32 %v3554_v51, 0.0 }
 0x59b   : > { %v3995_v50 = vadd.f32 %v3994_v26, %v3895_v18 }
 0x59c   : > { %v4032_v4 = vadd.f32 %v4031_v48, %v3896_v49  ;;  %v3557_v55 = vpop.f32.mrb[164].mxu0 }
 0x59d   : > { %v3558_v6 = vadd.f32 %v3557_v55, %v8119_v45  ;;  %v3559_v57 = vpop.f32.mrb[165].mxu0 }
 0x59e   : > { %v3560_v3 = vadd.f32 %v3559_v57, %v8122_v34  ;;  %v3561_v7 = vpop.f32.mrb[166].mxu0 }
 0x59f   : > { %v3899_v10 = vmax.f32 %v3558_v6, 0.0  ;;  %v3562_v59 = vadd.f32 %v3561_v7, %v8119_v45  ;;  %v3563_v14 = vpop.f32.mrb[167].mxu0 }
 0x5a0   : > { %v3900_v15 = vmax.f32 %v3560_v3, 0.0  ;;  %v3564_v16 = vadd.f32 %v3563_v14, %v8122_v34 }
 0x5a1   : > { %v3996_v63 = vadd.f32 %v3995_v50, %v3899_v10  ;;  %v3903_v17 = vmax.f32 %v3562_v59, 0.0 }
 0x5a2   : > { %v4033_v27 = vadd.f32 %v4032_v4, %v3900_v15  ;;  %v3904_v20 = vmax.f32 %v3564_v16, 0.0 }
 0x5a3   : > { %v3997_v21 = vadd.f32 %v3996_v63, %v3903_v17 }
 0x5a4   : > { %v4034_v24 = vadd.f32 %v4033_v27, %v3904_v20  ;;  %v3567_v38 = vpop.f32.mrb[168].mxu0 }
 0x5a5   : > { %v3568_v31 = vadd.f32 %v3567_v38, %v8119_v45  ;;  %v3569_v56 = vpop.f32.mrb[169].mxu0 }
 0x5a6   : > { %v3570_v32 = vadd.f32 %v3569_v56, %v8122_v34  ;;  %v3571_v52 = vpop.f32.mrb[170].mxu0 }
 0x5a7   : > { %v3907_v41 = vmax.f32 %v3568_v31, 0.0  ;;  %v3572_v53 = vadd.f32 %v3571_v52, %v8119_v45  ;;  %v3573_v43 = vpop.f32.mrb[171].mxu0 }
 0x5a8   : > { %v3908_v5 = vmax.f32 %v3570_v32, 0.0  ;;  %v3574_v22 = vadd.f32 %v3573_v43, %v8122_v34 }
 0x5a9   : > { %v3998_v39 = vadd.f32 %v3997_v21, %v3907_v41  ;;  %v3911_v29 = vmax.f32 %v3572_v53, 0.0 }
 0x5aa   : > { %v4035_v11 = vadd.f32 %v4034_v24, %v3908_v5  ;;  %v3912_v40 = vmax.f32 %v3574_v22, 0.0 }
 0x5ab   : > { %v3999_v42 = vadd.f32 %v3998_v39, %v3911_v29 }
 0x5ac   : > { %v4036_v51 = vadd.f32 %v4035_v11, %v3912_v40  ;;  %v3577_v26 = vpop.f32.mrb[172].mxu0 }
 0x5ad   : > { %v3578_v18 = vadd.f32 %v3577_v26, %v8119_v45  ;;  %v3579_v48 = vpop.f32.mrb[173].mxu0 }
 0x5ae   : > { %v3580_v49 = vadd.f32 %v3579_v48, %v8122_v34  ;;  %v3581_v50 = vpop.f32.mrb[174].mxu0 }
 0x5af   : > { %v3915_v4 = vmax.f32 %v3578_v18, 0.0  ;;  %v3582_v55 = vadd.f32 %v3581_v50, %v8119_v45  ;;  %v3583_v6 = vpop.f32.mrb[175].mxu0 }
 0x5b0   : > { %v3916_v57 = vmax.f32 %v3580_v49, 0.0  ;;  %v3584_v3 = vadd.f32 %v3583_v6, %v8122_v34 }
 0x5b1   : > { %v4000_v7 = vadd.f32 %v3999_v42, %v3915_v4  ;;  %v3919_v10 = vmax.f32 %v3582_v55, 0.0 }
 0x5b2   : > { %v4037_v59 = vadd.f32 %v4036_v51, %v3916_v57  ;;  %v3920_v14 = vmax.f32 %v3584_v3, 0.0 }
 0x5b3   : > { %v4001_v15 = vadd.f32 %v4000_v7, %v3919_v10 }
 0x5b4   : > { %v4038_v16 = vadd.f32 %v4037_v59, %v3920_v14  ;;  %v3587_v63 = vpop.f32.mrb[176].mxu0 }
 0x5b5   : > { %v3588_v17 = vadd.f32 %v3587_v63, %v8119_v45  ;;  %v3589_v27 = vpop.f32.mrb[177].mxu0 }
 0x5b6   : > { %v3590_v20 = vadd.f32 %v3589_v27, %v8122_v34  ;;  %v3591_v21 = vpop.f32.mrb[178].mxu0 }
 0x5b7   : > { %v3923_v24 = vmax.f32 %v3588_v17, 0.0  ;;  %v3592_v38 = vadd.f32 %v3591_v21, %v8119_v45  ;;  %v3593_v31 = vpop.f32.mrb[179].mxu0 }
 0x5b8   : > { %v3924_v56 = vmax.f32 %v3590_v20, 0.0  ;;  %v3594_v32 = vadd.f32 %v3593_v31, %v8122_v34 }
 0x5b9   : > { %v4002_v52 = vadd.f32 %v4001_v15, %v3923_v24  ;;  %v3927_v41 = vmax.f32 %v3592_v38, 0.0 }
 0x5ba   : > { %v4039_v53 = vadd.f32 %v4038_v16, %v3924_v56  ;;  %v3928_v43 = vmax.f32 %v3594_v32, 0.0 }
 0x5bb   : > { %v4003_v5 = vadd.f32 %v4002_v52, %v3927_v41 }
 0x5bc   : > { %v4040_v22 = vadd.f32 %v4039_v53, %v3928_v43  ;;  %v3597_v39 = vpop.f32.mrb[180].mxu0 }
 0x5bd   : > { %v3598_v29 = vadd.f32 %v3597_v39, %v8119_v45  ;;  %v3599_v11 = vpop.f32.mrb[181].mxu0 }
 0x5be   : > { %v3600_v40 = vadd.f32 %v3599_v11, %v8122_v34  ;;  %v3601_v42 = vpop.f32.mrb[182].mxu0 }
 0x5bf   : > { %v3931_v51 = vmax.f32 %v3598_v29, 0.0  ;;  %v3602_v26 = vadd.f32 %v3601_v42, %v8119_v45  ;;  %v3603_v18 = vpop.f32.mrb[183].mxu0 }
 0x5c0   : > { %v3932_v48 = vmax.f32 %v3600_v40, 0.0  ;;  %v3604_v49 = vadd.f32 %v3603_v18, %v8122_v34 }
 0x5c1   : > { %v4004_v50 = vadd.f32 %v4003_v5, %v3931_v51  ;;  %v3935_v4 = vmax.f32 %v3602_v26, 0.0 }
 0x5c2   : > { %v4041_v55 = vadd.f32 %v4040_v22, %v3932_v48  ;;  %v3936_v6 = vmax.f32 %v3604_v49, 0.0 }
 0x5c3   : > { %v4005_v57 = vadd.f32 %v4004_v50, %v3935_v4 }
 0x5c4   : > { %v4042_v3 = vadd.f32 %v4041_v55, %v3936_v6  ;;  %v3607_v7 = vpop.f32.mrb[184].mxu0 }
 0x5c5   : > { %v3608_v10 = vadd.f32 %v3607_v7, %v8119_v45  ;;  %v3609_v59 = vpop.f32.mrb[185].mxu0 }
 0x5c6   : > { %v3610_v14 = vadd.f32 %v3609_v59, %v8122_v34  ;;  %v3611_v15 = vpop.f32.mrb[186].mxu0 }
 0x5c7   : > { %v3939_v16 = vmax.f32 %v3608_v10, 0.0  ;;  %v3612_v63 = vadd.f32 %v3611_v15, %v8119_v45  ;;  %v3613_v17 = vpop.f32.mrb[187].mxu0 }
 0x5c8   : > { %v3940_v27 = vmax.f32 %v3610_v14, 0.0  ;;  %v3614_v20 = vadd.f32 %v3613_v17, %v8122_v34 }
 0x5c9   : > { %v4006_v21 = vadd.f32 %v4005_v57, %v3939_v16  ;;  %v3943_v24 = vmax.f32 %v3612_v63, 0.0 }
 0x5ca   : > { %v4043_v38 = vadd.f32 %v4042_v3, %v3940_v27  ;;  %v3944_v31 = vmax.f32 %v3614_v20, 0.0 }
 0x5cb   : > { %v4007_v56 = vadd.f32 %v4006_v21, %v3943_v24 }
 0x5cc   : > { %v4044_v32 = vadd.f32 %v4043_v38, %v3944_v31  ;;  %v3617_v52 = vpop.f32.mrb[188].mxu0 }
 0x5cd   : > { %v3618_v41 = vadd.f32 %v3617_v52, %v8119_v45  ;;  %v3619_v53 = vpop.f32.mrb[189].mxu0 }
 0x5ce   : > { %v3620_v43 = vadd.f32 %v3619_v53, %v8122_v34  ;;  %v3621_v5 = vpop.f32.mrb[190].mxu0 }
 0x5cf   : > { %v3947_v22 = vmax.f32 %v3618_v41, 0.0  ;;  %v3622_v39 = vadd.f32 %v3621_v5, %v8119_v45  ;;  %v3623_v29 = vpop.f32.mrb[191].mxu0 }
 0x5d0   : > { %v3948_v11 = vmax.f32 %v3620_v43, 0.0  ;;  %v3624_v40 = vadd.f32 %v3623_v29, %v8122_v34 }
 0x5d1   : > { %v4008_v42 = vadd.f32 %v4007_v56, %v3947_v22  ;;  %v3951_v51 = vmax.f32 %v3622_v39, 0.0 }
 0x5d2   : > { %v4045_v26 = vadd.f32 %v4044_v32, %v3948_v11  ;;  %v3952_v18 = vmax.f32 %v3624_v40, 0.0 }
 0x5d3   : > { %v4009_v48 = vadd.f32 %v4008_v42, %v3951_v51 }
 0x5d4   : > { %v4046_v49 = vadd.f32 %v4045_v26, %v3952_v18  ;;  %v3627_v50 = vpop.f32.mrb[192].mxu0 }
 0x5d5   : > { %v3628_v4 = vadd.f32 %v3627_v50, %v8119_v45  ;;  %v3629_v55 = vpop.f32.mrb[193].mxu0 }
 0x5d6   : > { %v3630_v6 = vadd.f32 %v3629_v55, %v8122_v34  ;;  %v3631_v57 = vpop.f32.mrb[194].mxu0 }
 0x5d7   : > { %v3955_v3 = vmax.f32 %v3628_v4, 0.0  ;;  %v3632_v7 = vadd.f32 %v3631_v57, %v8119_v45  ;;  %v3633_v10 = vpop.f32.mrb[195].mxu0 }
 0x5d8   : > { %v3956_v59 = vmax.f32 %v3630_v6, 0.0  ;;  %v3634_v14 = vadd.f32 %v3633_v10, %v8122_v34 }
 0x5d9   : > { %v4010_v15 = vadd.f32 %v4009_v48, %v3955_v3  ;;  %v3959_v16 = vmax.f32 %v3632_v7, 0.0 }
 0x5da   : > { %v4047_v63 = vadd.f32 %v4046_v49, %v3956_v59  ;;  %v3960_v17 = vmax.f32 %v3634_v14, 0.0 }
 0x5db   : > { %v4011_v27 = vadd.f32 %v4010_v15, %v3959_v16 }
 0x5dc   : > { %v4048_v20 = vadd.f32 %v4047_v63, %v3960_v17  ;;  %v3637_v21 = vpop.f32.mrb[196].mxu0 }
 0x5dd   : > { %v3638_v24 = vadd.f32 %v3637_v21, %v8119_v45  ;;  %v3639_v38 = vpop.f32.mrb[197].mxu0 }
 0x5de   : > { %v3640_v31 = vadd.f32 %v3639_v38, %v8122_v34  ;;  %v3641_v56 = vpop.f32.mrb[198].mxu0 }
 0x5df   : > { %v3963_v32 = vmax.f32 %v3638_v24, 0.0  ;;  %v3642_v52 = vadd.f32 %v3641_v56, %v8119_v45  ;;  %v3643_v41 = vpop.f32.mrb[199].mxu0 }
 0x5e0   : > { %v3964_v53 = vmax.f32 %v3640_v31, 0.0  ;;  %v3644_v43 = vadd.f32 %v3643_v41, %v8122_v34 }
 0x5e1   : > { %v4012_v5 = vadd.f32 %v4011_v27, %v3963_v32  ;;  %v3967_v22 = vmax.f32 %v3642_v52, 0.0 }
 0x5e2   : > { %v4049_v39 = vadd.f32 %v4048_v20, %v3964_v53  ;;  %v3968_v29 = vmax.f32 %v3644_v43, 0.0 }
 0x5e3   : > { %v4013_v11 = vadd.f32 %v4012_v5, %v3967_v22 }
 0x5e4   : > { %v4050_v40 = vadd.f32 %v4049_v39, %v3968_v29  ;;  %v3647_v42 = vpop.f32.mrb[200].mxu0 }
 0x5e5   : > { %v3648_v51 = vadd.f32 %v3647_v42, %v8119_v45  ;;  %v3649_v26 = vpop.f32.mrb[201].mxu0 }
 0x5e6   : > { %v3650_v18 = vadd.f32 %v3649_v26, %v8122_v34  ;;  %v3651_v48 = vpop.f32.mrb[202].mxu0 }
 0x5e7   : > { %v3971_v49 = vmax.f32 %v3648_v51, 0.0  ;;  %v3652_v50 = vadd.f32 %v3651_v48, %v8119_v45  ;;  %v3653_v4 = vpop.f32.mrb[203].mxu0 }
 0x5e8   : > { %v3972_v55 = vmax.f32 %v3650_v18, 0.0  ;;  %v3654_v6 = vadd.f32 %v3653_v4, %v8122_v34  ;;  %v4486_v4 = vld [vmem:[%s8423_s3 + $0xf0] sm:$0xff] }
 0x5e9   : > { %v4014_v57 = vadd.f32 %v4013_v11, %v3971_v49  ;;  %v3975_v3 = vmax.f32 %v3652_v50, 0.0  ;;  %v4484_v50 = vld [vmem:[%s8423_s3 + $0xb0] sm:$0xff] }
 0x5ea   : > { %v4051_v7 = vadd.f32 %v4050_v40, %v3972_v55  ;;  %v3976_v10 = vmax.f32 %v3654_v6, 0.0 }
 0x5eb   : > { %v4015_v59 = vadd.f32 %v4014_v57, %v3975_v3  ;;  %v5996_v57 = vcombine.high %v4484_v50, %v4486_v4  ;;  %v4488_v3 = vld [vmem:[%s8423_s3 + $0x130] sm:$0xff] }
 0x5ec   : > { %v4052_v14 = vadd.f32 %v4051_v7, %v3976_v10  ;;  %v3657_v15 = vpop.f32.mrb[204].mxu0  ;;  %v4490_v7 = vld [vmem:[%s8423_s3 + $0x170] sm:$0xff]  ;;  %v5995_v10 = vcombine.low %v4484_v50, %v4486_v4 }
 0x5ed   : > { %v3658_v16 = vadd.f32 %v3657_v15, %v8119_v45  ;;  %v3659_v63 = vpop.f32.mrb[205].mxu0  ;;  %v4494_v15 = vld [vmem:[%s8423_s3 + $0x1f0] sm:$0xff] }
 0x5ee   : > { %v3660_v17 = vadd.f32 %v3659_v63, %v8122_v34  ;;  %v3661_v27 = vpop.f32.mrb[206].mxu0 }
 0x5ef   : > { %v3979_v20 = vmax.f32 %v3658_v16, 0.0  ;;  %v3662_v21 = vadd.f32 %v3661_v27, %v8119_v45  ;;  %v3663_v24 = vpop.f32.mrb[207].mxu0  ;;  %v5999_v16 = vcombine.low %v4488_v3, %v4490_v7 }
 0x5f0   : > { %v3980_v38 = vmax.f32 %v3660_v17, 0.0  ;;  %v3664_v31 = vadd.f32 %v3663_v24, %v8122_v34 }
 0x5f1   : > { %v4016_v56 = vadd.f32 %v4015_v59, %v3979_v20  ;;  %v3983_v32 = vmax.f32 %v3662_v21, 0.0  ;;  %v6000_v59 = vcombine.high %v4488_v3, %v4490_v7  ;;  %v6461_v3 = vld [vmem:[%s8425_s5 + $0x378] sm:$0xff]  }
 0x5f2   : > { %v4053_v52 = vadd.f32 %v4052_v14, %v3980_v38  ;;  %v3984_v41 = vmax.f32 %v3664_v31, 0.0  ;;  %v4492_v14 = vld [vmem:[%s8423_s3 + $0x1b0] sm:$0xff] }
 0x5f3   : > { %v4017_v53 = vadd.f32 %v4016_v56, %v3983_v32  ;;  %v6004_v63 = vcombine.high %v4492_v14, %v4494_v15  ;;  %v6003_v46 = vcombine.low %v4492_v14, %v4494_v15  ;;  %v6459_v38 = vld [vmem:[%s8425_s5 + $0x370] sm:$0xff]   ;;  %v6465_v56 = vld [vmem:[%s8424_s4 + $0xc] sm:$0xf] }
 0x5f4   : > { %v4054_v43 = vadd.f32 %v4053_v52, %v3984_v41  ;;  %v6460_v31 = vld [vmem:[%s8425_s5 + $0x330] sm:$0xff]   ;;  %v8329_v32 = vrot.slane %v6465_v56, %v6946_v61 }
 0x5f5   : > { %v4018_v5 = vrot.slane %v4017_v53, 4 }
 0x5f6   : > { %v4055_v22 = vrot.slane %v4054_v43, 4 }
 0x5f7   : > { %v4019_v39 = vadd.f32 %v4018_v5, %v4017_v53 }
 0x5f8   : > { %v4056_v29 = vadd.f32 %v4055_v22, %v4054_v43 }
 0x5f9   : > { %v4020_v11 = vrot.slane %v4019_v39, 2 }
 0x5fa   : > { %v4057_v40 = vrot.slane %v4056_v29, 2 }
 0x5fb   : > { %v4021_v42 = vadd.f32 %v4020_v11, %v4019_v39 }
 0x5fc   : > { %v4058_v51 = vadd.f32 %v4057_v40, %v4056_v29 }
 0x5fd   : > { %v4022_v26 = vrot.slane %v4021_v42, 1 }
 0x5fe   : > { %v4059_v45 = vrot.slane %v4058_v51, 1 }
 0x5ff   : > { %v4023_v18 = vadd.f32 %v4022_v26, %v4021_v42 }
 0x600   : > { %v4060_v48 = vadd.f32 %v4059_v45, %v4058_v51 }
 0x601   : > { %v4135_v49 = vmul.f32 0.00390625, %v4023_v18 }
 0x602   : > { %v4136_v34 = vmul.f32 0.00390625, %v4060_v48 }
 0x603   : > { %v4139_v6 = vpack.c.bf16 %v4135_v49, %v4135_v49 }
 0x604   : > { %v4140_v55 = vpack.c.bf16 %v4136_v34, %v4136_v34 }
 0x606   : > { %4431 = vmatprep.mubr.bf16.mxu0 %v4140_v55 }
 0x607   : > { %4432 = vmatmul.mubr.bf16.vlgmr.msra.gmra.mrb[208].mxu0 %v4139_v6 }
 0x608   : > { %4599 = vmatpush1.bf16.msra.mxu0 %v5991_v62  ;;  %4630 = vmatprep.mubr.bf16.mxu0 %v6490_v1 }
 0x609   : > { %4600 = vmatprep.subr.bf16.mxu0 %v5996_v57 }
 0x60c   : > { %4601 = vmatpush1.bf16.msra.mxu0 %v5995_v10 }
 0x60d   : > { %4602 = vmatprep.subr.bf16.mxu0 %v6000_v59  ;;  %v6462_v59 = vld [vmem:[%s8425_s5 + $0x338] sm:$0xff]  }
 0x610   : > { %4603 = vmatpush1.bf16.msra.mxu0 %v5999_v16 }
 0x611   : > { %4604 = vmatprep.subr.bf16.mxu0 %v6004_v63 }
 0x614   : > { %4605 = vmatpush1.bf16.msra.mxu0 %v6003_v46 }
 0x617   : > { %6007 = vmatmul.mubr.msk.bf16.vlgmr.msra.gmra.mrb[212].mxu0 %vm335_vm3, %v6727_v35 }
 0x618   : > { %4640 = vmatprep.mubr.bf16.mxu0 %v6490_v1 }
 0x61f   : > { %6008 = vmatmul.mubr.msk.bf16.gmra.mrb[216].mxu0 %vm335_vm3, %v6748_v58 }
 0x620   : > { %4650 = vmatprep.mubr.bf16.mxu0 %v6490_v1 }
 0x627   : > { %6009 = vmatmul.mubr.msk.bf16.gmra.mrb[220].mxu0 %vm335_vm3, %v6757_v12 }
 0x628   : > { %4660 = vmatprep.mubr.bf16.mxu0 %v6490_v1 }
 0x62f   : > { %6010 = vmatmul.mubr.msk.bf16.gmra.mrb[224].mxu0 %vm335_vm3, %v6766_v28 }
 0x630   : > { %4670 = vmatprep.mubr.bf16.mxu0 %v6490_v1 }
 0x637   : > { %6011 = vmatmul.mubr.msk.bf16.gmra.mrb[228].mxu0 %vm335_vm3, %v6775_v44  ;;  %v6447_v44 = vld [vmem:[%s8425_s5 + $0x340] sm:$0xff]  }
 0x638   : > { %4680 = vmatprep.mubr.bf16.mxu0 %v6490_v1  ;;  %6206 = vmatprep.subr.bf16.mxu0 %v6447_v44 }
 0x63f   : > { %6012 = vmatmul.mubr.msk.bf16.gmra.mrb[232].mxu0 %vm335_vm3, %v6784_v60  ;;  %v6448_v60 = vld [vmem:[%s8425_s5 + $0x300] sm:$0xff]  }
 0x640   : > { %4690 = vmatprep.mubr.bf16.mxu0 %v6490_v1  ;;  %6207 = vmatpush3.bf16.msra.mxu0 %v6448_v60 }
 0x644   : > { %v6244_v35 = vpop.f32.mrb[68].mxu1 }
 0x645   : > { %v6245_v58 = vpop.f32.mrb[69].mxu1 }
 0x646   : > { %v8248_v12 = vadd.f32 %v6245_v58, %v6244_v35  ;;  %v6247_v33 = vpop.f32.mrb[70].mxu1 }
 0x647   : > { %6013 = vmatmul.mubr.msk.bf16.gmra.mrb[236].mxu0 %vm335_vm3, %v6793_v13  ;;  %v6248_v28 = vpop.f32.mrb[71].mxu1  ;;  %v6449_v13 = vld [vmem:[%s8425_s5 + $0x348] sm:$0xff]  }
 0x648   : > { %4700 = vmatprep.mubr.bf16.mxu0 %v6490_v1  ;;  %6208 = vmatprep.subr.bf16.mxu0 %v6449_v13 }
 0x64f   : > { %6014 = vmatmul.mubr.msk.bf16.gmra.mrb[240].mxu0 %vm335_vm3, %v6802_v30  ;;  %v6450_v30 = vld [vmem:[%s8425_s5 + $0x308] sm:$0xff]  }
 0x650   : > { %4710 = vmatprep.mubr.bf16.mxu0 %v6490_v1  ;;  %6209 = vmatpush3.bf16.msra.mxu0 %v6450_v30 }
 0x657   : > { %6015 = vmatmul.mubr.msk.bf16.gmra.mrb[244].mxu0 %vm335_vm3, %v6811_v47  ;;  %v6451_v47 = vld [vmem:[%s8425_s5 + $0x350] sm:$0xff]  }
 0x658   : > { %4720 = vmatprep.mubr.bf16.mxu0 %v6490_v1  ;;  %6210 = vmatprep.subr.bf16.mxu0 %v6451_v47 }
 0x65f   : > { %6016 = vmatmul.mubr.msk.bf16.gmra.mrb[248].mxu0 %vm335_vm3, %v6820_v0  ;;  %v6453_v0 = vld [vmem:[%s8425_s5 + $0x358] sm:$0xff]  }
 0x660   : > { %4730 = vmatprep.mubr.bf16.mxu0 %v6490_v1 }
 0x667   : > { %6017 = vmatmul.mubr.msk.bf16.gmra.mrb[252].mxu0 %vm335_vm3, %v6829_v19  ;;  %v6454_v19 = vld [vmem:[%s8425_s5 + $0x318] sm:$0xff]  }
 0x668   : > { %4740 = vmatprep.mubr.bf16.mxu0 %v6490_v1 }
 0x66f   : > { %6018 = vmatmul.mubr.msk.bf16.gmra.mrb[0].mxu0 %vm335_vm3, %v6838_v37  ;;  %v6455_v37 = vld [vmem:[%s8425_s5 + $0x360] sm:$0xff]  }
 0x670   : > { %4750 = vmatprep.mubr.bf16.mxu0 %v6490_v1 }
 0x677   : > { %6019 = vmatmul.mubr.msk.bf16.gmra.mrb[4].mxu0 %vm335_vm3, %v6847_v54  ;;  %v6456_v54 = vld [vmem:[%s8425_s5 + $0x320] sm:$0xff]  }
 0x678   : > { %4760 = vmatprep.mubr.bf16.mxu0 %v6490_v1 }
 0x67f   : > { %6020 = vmatmul.mubr.msk.bf16.gmra.mrb[8].mxu0 %vm335_vm3, %v6856_v9  ;;  %v6457_v9 = vld [vmem:[%s8425_s5 + $0x368] sm:$0xff]  }
 0x680   : > { %4770 = vmatprep.mubr.bf16.mxu0 %v6490_v1 }
 0x687   : > { %6021 = vmatmul.mubr.msk.bf16.gmra.mrb[12].mxu0 %vm335_vm3, %v6871_v25  ;;  %v6458_v25 = vld [vmem:[%s8425_s5 + $0x328] sm:$0xff]  }
 0x688   : > { %4780 = vmatprep.mubr.bf16.mxu0 %v6490_v1  ;;  %v6452_v1 = vld [vmem:[%s8425_s5 + $0x310] sm:$0xff]  }
 0x689   : > { %6211 = vmatpush3.bf16.msra.mxu0 %v6452_v1 }
 0x68a   : > { %6212 = vmatprep.subr.bf16.mxu0 %v6453_v0 }
 0x68d   : > { %6213 = vmatpush3.bf16.msra.mxu0 %v6454_v19 }
 0x68e   : > { %6214 = vmatprep.subr.bf16.mxu0 %v6455_v37 }
 0x68f   : > { %6022 = vmatmul.mubr.msk.bf16.gmra.mrb[16].mxu0 %vm335_vm3, %v6878_v36 }
 0x691   : > { %6215 = vmatpush3.bf16.msra.mxu0 %v6456_v54 }
 0x692   : > { %6216 = vmatprep.subr.bf16.mxu0 %v6457_v9 }
 0x695   : > { %6217 = vmatpush3.bf16.msra.mxu0 %v6458_v25 }
 0x696   : > { %6218 = vmatprep.subr.bf16.mxu0 %v6459_v38 }
 0x699   : > { %6219 = vmatpush3.bf16.msra.mxu0 %v6460_v31 }
 0x69a   : > { %6220 = vmatprep.subr.bf16.mxu0 %v6461_v3 }
 0x69d   : > { %6221 = vmatpush3.bf16.msra.mxu0 %v6462_v59 }
 0x6da   : > { %v6178_v36 = vpop.f32.mrb[208].mxu0 }
 0x6db   : > { %v6179_v62 = vpop.f32.mrb[209].mxu0 }
 0x6dc   : > { %v6180_v17 = vadd.f32 %v6179_v62, %v6178_v36  ;;  %v6181_v27 = vpop.f32.mrb[210].mxu0 }
 0x6dd   : > { %v6182_v20 = vpop.f32.mrb[211].mxu0 }
 0x6de   : > { %v4474_v21 = vadd.f32 %v7912_v8, %v6180_v17  ;;  %v8332_v8 = vrot.slane %v6465_v56, %v6957_v2 }
 0x6e0   : > { %v8317_v24 = vadd.f32 %v4474_v21, %v8107_v23 }
 0x6ea   : > { %v4632_v23 = vpop.f32.mrb[212].mxu0 }
 0x6eb   : > { %v4633_v52 = vadd.f32 %v4632_v23, %v8329_v32  ;;  %v4634_v41 = vpop.f32.mrb[213].mxu0 }
 0x6ec   : > { %v4635_v53 = vadd.f32 %v4634_v41, %v8332_v8  ;;  %v4636_v43 = vpop.f32.mrb[214].mxu0 }
 0x6ed   : > { %v4637_v5 = vadd.f32 %v4636_v43, %v8329_v32  ;;  %v4638_v22 = vpop.f32.mrb[215].mxu0  ;;  %v4984_v29 = vmax.f32 %v4633_v52, 0.0 }
 0x6ee   : > { %v4639_v39 = vadd.f32 %v4638_v22, %v8332_v8  ;;  %v4985_v40 = vmax.f32 %v4635_v53, 0.0 }
 0x6ef   : > { %v4988_v11 = vmax.f32 %v4637_v5, 0.0 }
 0x6f0   : > { %v4989_v61 = vmax.f32 %v4639_v39, 0.0 }
 0x6f1   : > { %v5112_v42 = vadd.f32 %v4988_v11, %v4984_v29 }
 0x6f2   : > { %v5149_v51 = vadd.f32 %v4989_v61, %v4985_v40  ;;  %v4642_v2 = vpop.f32.mrb[216].mxu0 }
 0x6f3   : > { %v4643_v26 = vadd.f32 %v4642_v2, %v8329_v32  ;;  %v4644_v45 = vpop.f32.mrb[217].mxu0 }
 0x6f4   : > { %v4645_v18 = vadd.f32 %v4644_v45, %v8332_v8  ;;  %v4646_v48 = vpop.f32.mrb[218].mxu0 }
 0x6f5   : > { %v4992_v49 = vmax.f32 %v4643_v26, 0.0  ;;  %v4647_v34 = vadd.f32 %v4646_v48, %v8329_v32  ;;  %v4648_v50 = vpop.f32.mrb[219].mxu0 }
 0x6f6   : > { %v4993_v4 = vmax.f32 %v4645_v18, 0.0  ;;  %v4649_v55 = vadd.f32 %v4648_v50, %v8332_v8 }
 0x6f7   : > { %v5113_v6 = vadd.f32 %v5112_v42, %v4992_v49  ;;  %v4996_v57 = vmax.f32 %v4647_v34, 0.0 }
 0x6f8   : > { %v5150_v7 = vadd.f32 %v5149_v51, %v4993_v4  ;;  %v4997_v10 = vmax.f32 %v4649_v55, 0.0 }
 0x6f9   : > { %v5114_v14 = vadd.f32 %v5113_v6, %v4996_v57 }
 0x6fa   : > { %v5151_v15 = vadd.f32 %v5150_v7, %v4997_v10  ;;  %v4652_v16 = vpop.f32.mrb[220].mxu0 }
 0x6fb   : > { %v4653_v63 = vadd.f32 %v4652_v16, %v8329_v32  ;;  %v4654_v46 = vpop.f32.mrb[221].mxu0 }
 0x6fc   : > { %v4655_v35 = vadd.f32 %v4654_v46, %v8332_v8  ;;  %v4656_v58 = vpop.f32.mrb[222].mxu0 }
 0x6fd   : > { %v5000_v33 = vmax.f32 %v4653_v63, 0.0  ;;  %v4657_v28 = vadd.f32 %v4656_v58, %v8329_v32  ;;  %v4658_v44 = vpop.f32.mrb[223].mxu0 }
 0x6fe   : > { %v5001_v60 = vmax.f32 %v4655_v35, 0.0  ;;  %v4659_v13 = vadd.f32 %v4658_v44, %v8332_v8 }
 0x6ff   : > { %v5115_v30 = vadd.f32 %v5114_v14, %v5000_v33  ;;  %v5004_v47 = vmax.f32 %v4657_v28, 0.0 }
 0x700   : > { %v5152_v1 = vadd.f32 %v5151_v15, %v5001_v60  ;;  %v5005_v0 = vmax.f32 %v4659_v13, 0.0 }
 0x701   : > { %v5116_v19 = vadd.f32 %v5115_v30, %v5004_v47 }
 0x702   : > { %v5153_v37 = vadd.f32 %v5152_v1, %v5005_v0  ;;  %v4662_v54 = vpop.f32.mrb[224].mxu0 }
 0x703   : > { %v4663_v9 = vadd.f32 %v4662_v54, %v8329_v32  ;;  %v4664_v25 = vpop.f32.mrb[225].mxu0 }
 0x704   : > { %v4665_v36 = vadd.f32 %v4664_v25, %v8332_v8  ;;  %v4666_v62 = vpop.f32.mrb[226].mxu0 }
 0x705   : > { %v5008_v17 = vmax.f32 %v4663_v9, 0.0  ;;  %v4667_v27 = vadd.f32 %v4666_v62, %v8329_v32  ;;  %v4668_v20 = vpop.f32.mrb[227].mxu0 }
 0x706   : > { %v5009_v21 = vmax.f32 %v4665_v36, 0.0  ;;  %v4669_v38 = vadd.f32 %v4668_v20, %v8332_v8 }
 0x707   : > { %v5117_v31 = vadd.f32 %v5116_v19, %v5008_v17  ;;  %v5012_v56 = vmax.f32 %v4667_v27, 0.0 }
 0x708   : > { %v5154_v23 = vadd.f32 %v5153_v37, %v5009_v21  ;;  %v5013_v52 = vmax.f32 %v4669_v38, 0.0 }
 0x709   : > { %v5118_v41 = vadd.f32 %v5117_v31, %v5012_v56 }
 0x70a   : > { %v5155_v53 = vadd.f32 %v5154_v23, %v5013_v52  ;;  %v4672_v43 = vpop.f32.mrb[228].mxu0 }
 0x70b   : > { %v4673_v5 = vadd.f32 %v4672_v43, %v8329_v32  ;;  %v4674_v22 = vpop.f32.mrb[229].mxu0 }
 0x70c   : > { %v4675_v39 = vadd.f32 %v4674_v22, %v8332_v8  ;;  %v4676_v29 = vpop.f32.mrb[230].mxu0 }
 0x70d   : > { %v5016_v11 = vmax.f32 %v4673_v5, 0.0  ;;  %v4677_v40 = vadd.f32 %v4676_v29, %v8329_v32  ;;  %v4678_v61 = vpop.f32.mrb[231].mxu0 }
 0x70e   : > { %v5017_v42 = vmax.f32 %v4675_v39, 0.0  ;;  %v4679_v51 = vadd.f32 %v4678_v61, %v8332_v8 }
 0x70f   : > { %v5119_v2 = vadd.f32 %v5118_v41, %v5016_v11  ;;  %v5020_v26 = vmax.f32 %v4677_v40, 0.0 }
 0x710   : > { %v5156_v45 = vadd.f32 %v5155_v53, %v5017_v42  ;;  %v5021_v18 = vmax.f32 %v4679_v51, 0.0 }
 0x711   : > { %v5120_v48 = vadd.f32 %v5119_v2, %v5020_v26 }
 0x712   : > { %v5157_v49 = vadd.f32 %v5156_v45, %v5021_v18  ;;  %v4682_v34 = vpop.f32.mrb[232].mxu0 }
 0x713   : > { %v4683_v50 = vadd.f32 %v4682_v34, %v8329_v32  ;;  %v4684_v4 = vpop.f32.mrb[233].mxu0 }
 0x714   : > { %v4685_v55 = vadd.f32 %v4684_v4, %v8332_v8  ;;  %v4686_v6 = vpop.f32.mrb[234].mxu0 }
 0x715   : > { %v5024_v57 = vmax.f32 %v4683_v50, 0.0  ;;  %v4687_v3 = vadd.f32 %v4686_v6, %v8329_v32  ;;  %v4688_v7 = vpop.f32.mrb[235].mxu0 }
 0x716   : > { %v5025_v10 = vmax.f32 %v4685_v55, 0.0  ;;  %v4689_v59 = vadd.f32 %v4688_v7, %v8332_v8 }
 0x717   : > { %v5121_v14 = vadd.f32 %v5120_v48, %v5024_v57  ;;  %v5028_v15 = vmax.f32 %v4687_v3, 0.0 }
 0x718   : > { %v5158_v16 = vadd.f32 %v5157_v49, %v5025_v10  ;;  %v5029_v63 = vmax.f32 %v4689_v59, 0.0 }
 0x719   : > { %v5122_v46 = vadd.f32 %v5121_v14, %v5028_v15 }
 0x71a   : > { %v5159_v35 = vadd.f32 %v5158_v16, %v5029_v63  ;;  %v4692_v58 = vpop.f32.mrb[236].mxu0 }
 0x71b   : > { %v4693_v33 = vadd.f32 %v4692_v58, %v8329_v32  ;;  %v4694_v28 = vpop.f32.mrb[237].mxu0 }
 0x71c   : > { %v4695_v44 = vadd.f32 %v4694_v28, %v8332_v8  ;;  %v4696_v60 = vpop.f32.mrb[238].mxu0 }
 0x71d   : > { %v5032_v13 = vmax.f32 %v4693_v33, 0.0  ;;  %v4697_v30 = vadd.f32 %v4696_v60, %v8329_v32  ;;  %v4698_v47 = vpop.f32.mrb[239].mxu0 }
 0x71e   : > { %v5033_v1 = vmax.f32 %v4695_v44, 0.0  ;;  %v4699_v0 = vadd.f32 %v4698_v47, %v8332_v8 }
 0x71f   : > { %v5123_v19 = vadd.f32 %v5122_v46, %v5032_v13  ;;  %v5036_v37 = vmax.f32 %v4697_v30, 0.0 }
 0x720   : > { %v5160_v54 = vadd.f32 %v5159_v35, %v5033_v1  ;;  %v5037_v9 = vmax.f32 %v4699_v0, 0.0 }
 0x721   : > { %v5124_v25 = vadd.f32 %v5123_v19, %v5036_v37 }
 0x722   : > { %v5161_v36 = vadd.f32 %v5160_v54, %v5037_v9  ;;  %v4702_v62 = vpop.f32.mrb[240].mxu0 }
 0x723   : > { %v4703_v17 = vadd.f32 %v4702_v62, %v8329_v32  ;;  %v4704_v27 = vpop.f32.mrb[241].mxu0 }
 0x724   : > { %v4705_v20 = vadd.f32 %v4704_v27, %v8332_v8  ;;  %v4706_v21 = vpop.f32.mrb[242].mxu0 }
 0x725   : > { %v5040_v38 = vmax.f32 %v4703_v17, 0.0  ;;  %v4707_v31 = vadd.f32 %v4706_v21, %v8329_v32  ;;  %v4708_v56 = vpop.f32.mrb[243].mxu0 }
 0x726   : > { %v5041_v23 = vmax.f32 %v4705_v20, 0.0  ;;  %v4709_v52 = vadd.f32 %v4708_v56, %v8332_v8 }
 0x727   : > { %v5125_v41 = vadd.f32 %v5124_v25, %v5040_v38  ;;  %v5044_v53 = vmax.f32 %v4707_v31, 0.0 }
 0x728   : > { %v5162_v43 = vadd.f32 %v5161_v36, %v5041_v23  ;;  %v5045_v5 = vmax.f32 %v4709_v52, 0.0 }
 0x729   : > { %v5126_v22 = vadd.f32 %v5125_v41, %v5044_v53 }
 0x72a   : > { %v5163_v39 = vadd.f32 %v5162_v43, %v5045_v5  ;;  %v4712_v29 = vpop.f32.mrb[244].mxu0 }
 0x72b   : > { %v4713_v11 = vadd.f32 %v4712_v29, %v8329_v32  ;;  %v4714_v40 = vpop.f32.mrb[245].mxu0 }
 0x72c   : > { %v4715_v61 = vadd.f32 %v4714_v40, %v8332_v8  ;;  %v4716_v42 = vpop.f32.mrb[246].mxu0 }
 0x72d   : > { %v5048_v51 = vmax.f32 %v4713_v11, 0.0  ;;  %v4717_v2 = vadd.f32 %v4716_v42, %v8329_v32  ;;  %v4718_v26 = vpop.f32.mrb[247].mxu0 }
 0x72e   : > { %v5049_v45 = vmax.f32 %v4715_v61, 0.0  ;;  %v4719_v18 = vadd.f32 %v4718_v26, %v8332_v8 }
 0x72f   : > { %v5127_v48 = vadd.f32 %v5126_v22, %v5048_v51  ;;  %v5052_v49 = vmax.f32 %v4717_v2, 0.0 }
 0x730   : > { %v5164_v34 = vadd.f32 %v5163_v39, %v5049_v45  ;;  %v5053_v50 = vmax.f32 %v4719_v18, 0.0 }
 0x731   : > { %v5128_v4 = vadd.f32 %v5127_v48, %v5052_v49 }
 0x732   : > { %v5165_v55 = vadd.f32 %v5164_v34, %v5053_v50  ;;  %v4722_v6 = vpop.f32.mrb[248].mxu0 }
 0x733   : > { %v4723_v57 = vadd.f32 %v4722_v6, %v8329_v32  ;;  %v4724_v3 = vpop.f32.mrb[249].mxu0 }
 0x734   : > { %v4725_v7 = vadd.f32 %v4724_v3, %v8332_v8  ;;  %v4726_v10 = vpop.f32.mrb[250].mxu0 }
 0x735   : > { %v5056_v59 = vmax.f32 %v4723_v57, 0.0  ;;  %v4727_v14 = vadd.f32 %v4726_v10, %v8329_v32  ;;  %v4728_v15 = vpop.f32.mrb[251].mxu0 }
 0x736   : > { %v5057_v16 = vmax.f32 %v4725_v7, 0.0  ;;  %v4729_v63 = vadd.f32 %v4728_v15, %v8332_v8 }
 0x737   : > { %v5129_v46 = vadd.f32 %v5128_v4, %v5056_v59  ;;  %v5060_v35 = vmax.f32 %v4727_v14, 0.0 }
 0x738   : > { %v5166_v58 = vadd.f32 %v5165_v55, %v5057_v16  ;;  %v5061_v33 = vmax.f32 %v4729_v63, 0.0 }
 0x739   : > { %v5130_v28 = vadd.f32 %v5129_v46, %v5060_v35 }
 0x73a   : > { %v5167_v44 = vadd.f32 %v5166_v58, %v5061_v33  ;;  %v4732_v60 = vpop.f32.mrb[252].mxu0 }
 0x73b   : > { %v4733_v13 = vadd.f32 %v4732_v60, %v8329_v32  ;;  %v4734_v30 = vpop.f32.mrb[253].mxu0 }
 0x73c   : > { %v4735_v47 = vadd.f32 %v4734_v30, %v8332_v8  ;;  %v4736_v1 = vpop.f32.mrb[254].mxu0 }
 0x73d   : > { %v5064_v0 = vmax.f32 %v4733_v13, 0.0  ;;  %v4737_v19 = vadd.f32 %v4736_v1, %v8329_v32  ;;  %v4738_v37 = vpop.f32.mrb[255].mxu0 }
 0x73e   : > { %v5065_v54 = vmax.f32 %v4735_v47, 0.0  ;;  %v4739_v9 = vadd.f32 %v4738_v37, %v8332_v8 }
 0x73f   : > { %v5131_v25 = vadd.f32 %v5130_v28, %v5064_v0  ;;  %v5068_v36 = vmax.f32 %v4737_v19, 0.0 }
 0x740   : > { %v5168_v62 = vadd.f32 %v5167_v44, %v5065_v54  ;;  %v5069_v17 = vmax.f32 %v4739_v9, 0.0 }
 0x741   : > { %v5132_v27 = vadd.f32 %v5131_v25, %v5068_v36 }
 0x742   : > { %v5169_v20 = vadd.f32 %v5168_v62, %v5069_v17  ;;  %v4742_v21 = vpop.f32.mrb[0].mxu0 }
 0x743   : > { %v4743_v38 = vadd.f32 %v4742_v21, %v8329_v32  ;;  %v4744_v31 = vpop.f32.mrb[1].mxu0 }
 0x744   : > { %v4745_v56 = vadd.f32 %v4744_v31, %v8332_v8  ;;  %v4746_v23 = vpop.f32.mrb[2].mxu0 }
 0x745   : > { %v5072_v52 = vmax.f32 %v4743_v38, 0.0  ;;  %v4747_v41 = vadd.f32 %v4746_v23, %v8329_v32  ;;  %v4748_v53 = vpop.f32.mrb[3].mxu0 }
 0x746   : > { %v5073_v43 = vmax.f32 %v4745_v56, 0.0  ;;  %v4749_v5 = vadd.f32 %v4748_v53, %v8332_v8 }
 0x747   : > { %v5133_v22 = vadd.f32 %v5132_v27, %v5072_v52  ;;  %v5076_v39 = vmax.f32 %v4747_v41, 0.0 }
 0x748   : > { %v5170_v29 = vadd.f32 %v5169_v20, %v5073_v43  ;;  %v5077_v11 = vmax.f32 %v4749_v5, 0.0 }
 0x749   : > { %v5134_v40 = vadd.f32 %v5133_v22, %v5076_v39 }
 0x74a   : > { %v5171_v61 = vadd.f32 %v5170_v29, %v5077_v11  ;;  %v4752_v42 = vpop.f32.mrb[4].mxu0 }
 0x74b   : > { %v4753_v51 = vadd.f32 %v4752_v42, %v8329_v32  ;;  %v4754_v2 = vpop.f32.mrb[5].mxu0 }
 0x74c   : > { %v4755_v26 = vadd.f32 %v4754_v2, %v8332_v8  ;;  %v4756_v45 = vpop.f32.mrb[6].mxu0 }
 0x74d   : > { %v5080_v18 = vmax.f32 %v4753_v51, 0.0  ;;  %v4757_v48 = vadd.f32 %v4756_v45, %v8329_v32  ;;  %v4758_v49 = vpop.f32.mrb[7].mxu0 }
 0x74e   : > { %v5081_v34 = vmax.f32 %v4755_v26, 0.0  ;;  %v4759_v50 = vadd.f32 %v4758_v49, %v8332_v8 }
 0x74f   : > { %v5135_v4 = vadd.f32 %v5134_v40, %v5080_v18  ;;  %v5084_v55 = vmax.f32 %v4757_v48, 0.0 }
 0x750   : > { %v5172_v6 = vadd.f32 %v5171_v61, %v5081_v34  ;;  %v5085_v57 = vmax.f32 %v4759_v50, 0.0 }
 0x751   : > { %v5136_v3 = vadd.f32 %v5135_v4, %v5084_v55 }
 0x752   : > { %v5173_v7 = vadd.f32 %v5172_v6, %v5085_v57  ;;  %v4762_v10 = vpop.f32.mrb[8].mxu0 }
 0x753   : > { %v4763_v59 = vadd.f32 %v4762_v10, %v8329_v32  ;;  %v4764_v14 = vpop.f32.mrb[9].mxu0 }
 0x754   : > { %v4765_v15 = vadd.f32 %v4764_v14, %v8332_v8  ;;  %v4766_v16 = vpop.f32.mrb[10].mxu0 }
 0x755   : > { %v5088_v63 = vmax.f32 %v4763_v59, 0.0  ;;  %v4767_v46 = vadd.f32 %v4766_v16, %v8329_v32  ;;  %v4768_v35 = vpop.f32.mrb[11].mxu0 }
 0x756   : > { %v5089_v58 = vmax.f32 %v4765_v15, 0.0  ;;  %v4769_v33 = vadd.f32 %v4768_v35, %v8332_v8 }
 0x757   : > { %v5137_v28 = vadd.f32 %v5136_v3, %v5088_v63  ;;  %v5092_v44 = vmax.f32 %v4767_v46, 0.0 }
 0x758   : > { %v5174_v60 = vadd.f32 %v5173_v7, %v5089_v58  ;;  %v5093_v13 = vmax.f32 %v4769_v33, 0.0 }
 0x759   : > { %v5138_v30 = vadd.f32 %v5137_v28, %v5092_v44 }
 0x75a   : > { %v5175_v47 = vadd.f32 %v5174_v60, %v5093_v13  ;;  %v4772_v1 = vpop.f32.mrb[12].mxu0 }
 0x75b   : > { %v4773_v0 = vadd.f32 %v4772_v1, %v8329_v32  ;;  %v4774_v19 = vpop.f32.mrb[13].mxu0 }
 0x75c   : > { %v4775_v37 = vadd.f32 %v4774_v19, %v8332_v8  ;;  %v4776_v54 = vpop.f32.mrb[14].mxu0 }
 0x75d   : > { %v5096_v9 = vmax.f32 %v4773_v0, 0.0  ;;  %v4777_v25 = vadd.f32 %v4776_v54, %v8329_v32  ;;  %v4778_v36 = vpop.f32.mrb[15].mxu0 }
 0x75e   : > { %v5097_v62 = vmax.f32 %v4775_v37, 0.0  ;;  %v4779_v17 = vadd.f32 %v4778_v36, %v8332_v8 }
 0x75f   : > { %v5139_v27 = vadd.f32 %v5138_v30, %v5096_v9  ;;  %v5100_v20 = vmax.f32 %v4777_v25, 0.0 }
 0x760   : > { %v5176_v21 = vadd.f32 %v5175_v47, %v5097_v62  ;;  %v5101_v38 = vmax.f32 %v4779_v17, 0.0 }
 0x761   : > { %v5140_v31 = vadd.f32 %v5139_v27, %v5100_v20 }
 0x762   : > { %v5177_v56 = vadd.f32 %v5176_v21, %v5101_v38  ;;  %v4782_v23 = vpop.f32.mrb[16].mxu0 }
 0x763   : > { %v4783_v52 = vadd.f32 %v4782_v23, %v8329_v32  ;;  %v4784_v41 = vpop.f32.mrb[17].mxu0 }
 0x764   : > { %v4785_v53 = vadd.f32 %v4784_v41, %v8332_v8  ;;  %v4786_v43 = vpop.f32.mrb[18].mxu0 }
 0x765   : > { %v5104_v5 = vmax.f32 %v4783_v52, 0.0  ;;  %v4787_v22 = vadd.f32 %v4786_v43, %v8329_v32  ;;  %v4788_v39 = vpop.f32.mrb[19].mxu0 }
 0x766   : > { %v5105_v29 = vmax.f32 %v4785_v53, 0.0  ;;  %v4789_v11 = vadd.f32 %v4788_v39, %v8332_v8 }
 0x767   : > { %v5141_v40 = vadd.f32 %v5140_v31, %v5104_v5  ;;  %v5108_v61 = vmax.f32 %v4787_v22, 0.0 }
 0x768   : > { %v5178_v42 = vadd.f32 %v5177_v56, %v5105_v29  ;;  %v5109_v51 = vmax.f32 %v4789_v11, 0.0 }
 0x769   : > { %v5142_v2 = vadd.f32 %v5141_v40, %v5108_v61 }
 0x76a   : > { %v5179_v26 = vadd.f32 %v5178_v42, %v5109_v51 }
 0x76b   : > { %v5143_v45 = vrot.slane %v5142_v2, 4 }
 0x76c   : > { %v5180_v18 = vrot.slane %v5179_v26, 4 }
 0x76d   : > { %v5144_v48 = vadd.f32 %v5143_v45, %v5142_v2 }
 0x76e   : > { %v5181_v49 = vadd.f32 %v5180_v18, %v5179_v26 }
 0x76f   : > { %v5145_v34 = vrot.slane %v5144_v48, 2 }
 0x770   : > { %v5182_v50 = vrot.slane %v5181_v49, 2 }
 0x771   : > { %v5146_v4 = vadd.f32 %v5145_v34, %v5144_v48 }
 0x772   : > { %v5183_v32 = vadd.f32 %v5182_v50, %v5181_v49 }
 0x773   : > { %v5147_v55 = vrot.slane %v5146_v4, 1 }
 0x774   : > { %v5184_v6 = vrot.slane %v5183_v32, 1 }
 0x775   : > { %v5148_v57 = vadd.f32 %v5147_v55, %v5146_v4 }
 0x776   : > { %v5185_v8 = vadd.f32 %v5184_v6, %v5183_v32 }
 0x777   : > { %v5260_v3 = vmul.f32 0.00390625, %v5148_v57 }
 0x778   : > { %v5261_v7 = vmul.f32 0.00390625, %v5185_v8 }
 0x779   : > { %v5264_v59 = vpack.c.bf16 %v5260_v3, %v5260_v3 }
 0x77a   : > { %v5265_v10 = vpack.c.bf16 %v5261_v7, %v5261_v7 }
 0x77c   : > { %5556 = vmatprep.mubr.bf16.mxu0 %v5265_v10 }
 0x77d   : > { %5557 = vmatmul.mubr.bf16.vlgmr.msra.gmra.mrb[20].mxu0 %v5264_v59 }
 0x850   : > { %v6222_v14 = vpop.f32.mrb[20].mxu0 }
 0x851   : > { %v6223_v15 = vpop.f32.mrb[21].mxu0 }
 0x852   : > { %v6224_v16 = vadd.f32 %v6223_v15, %v6222_v14  ;;  %v6225_v63 = vpop.f32.mrb[22].mxu0 }
 0x853   : > { %v6226_v46 = vpop.f32.mrb[23].mxu0 }
 0x854   : > { %v5599_v35 = vadd.f32 %v8248_v12, %v6224_v16 }
 0x856   : > { %v5604_v58 = vadd.f32 %v5599_v35, %v8317_v24 }
 0x858   : > { %5605 = vst [vmem:[%s329_s16] sm:$0x1] %v5604_v58 }
 0x859 PF: > { %s17_s26 = sadd.s32 1, %s6488_s26   ;;  %s8428_s24 = smov %s6484_s25 }
 0x85a   : > { %p14_p6 = scmp.ge.s32.totalorder %s17_s26, 4   ;;  %s8429_s25 = smov %s8431_s27 }
 0x85c   :  { %16 = sbr.rel (!%p14_p6) target bundleno = 2 (0x2), region = 89 }

</bundles_post_ra>
